<compile_context>
chip_gen: v7x
topology: tpu7x:2x2x1
jax: 0.10.0
libtpu: 0.0.40
codegen_flags: <defaults>
</compile_context>

<pallas_src>
import math
import functools

import jax
import jax.numpy as jnp
from jax import lax
from jax.experimental import pallas as pl
from jax.experimental.pallas import tpu as pltpu


_VMEM_LIMIT = 48 * 1024 * 1024   # < v7x 64 MiB physical, > default scoped limit


def _round_up(x, m):
    return (x + m - 1) // m * m


# --------------------------------------------------------------------------
# Tiled matmul (MXU) with fused bias / activation epilogue.
# --------------------------------------------------------------------------

def _mm_kernel(a_ref, b_ref, bias_ref, o_ref, acc_ref, *, act):
    @pl.when(pl.program_id(2) == 0)
    def _():
        acc_ref[...] = jnp.zeros_like(acc_ref)

    acc_ref[...] += jnp.dot(a_ref[...], b_ref[...],
                            preferred_element_type=jnp.float32)

    @pl.when(pl.program_id(2) == pl.num_programs(2) - 1)
    def _():
        r = acc_ref[...] + bias_ref[...]
        if act == "leaky_relu":
            r = jnp.where(r >= 0, r, 0.01 * r)
        elif act == "silu":
            r = r * jax.nn.sigmoid(r)
        o_ref[...] = r.astype(o_ref.dtype)


def _mm_tiles(M, N, K):
    # bf16-friendly tiling: tm multiple of 16 (sublane packing), lane-dense tn
    # (multiple of 128), contraction padded to >=128 to keep the systolic array
    # fed; tiles allowed up to 512 for large problems.
    tm = min(512, _round_up(M, 16))
    tn = min(512, _round_up(N, 128))
    Kp = _round_up(K, 128)
    if Kp <= 512:
        tk = Kp
    else:
        Kp = _round_up(K, 512)
        tk = 512
    return tm, tn, tk, _round_up(M, tm), _round_up(N, tn), Kp


def pallas_matmul(a, b, bias=None, act=None, use_bf16=True):
    """(M,K) @ (K,N) + bias (+activation), tiled/pipelined, f32 accumulation."""
    M, K = a.shape
    K2, N = b.shape
    assert K == K2
    tm, tn, tk, Mp, Np, Kp = _mm_tiles(M, N, K)
    if use_bf16:                       # cast BEFORE padding (half the pad traffic)
        a = a.astype(jnp.bfloat16)
        b = b.astype(jnp.bfloat16)
    a = jnp.pad(a, ((0, Mp - M), (0, Kp - K)))
    b = jnp.pad(b, ((0, Kp - K), (0, Np - N)))
    if bias is None:
        bias_p = jnp.zeros((1, Np), jnp.float32)
    else:
        bias_p = jnp.pad(bias.astype(jnp.float32).reshape(1, N),
                         ((0, 0), (0, Np - N)))
    grid = (Mp // tm, Np // tn, Kp // tk)
    out = pl.pallas_call(
        functools.partial(_mm_kernel, act=act),
        out_shape=jax.ShapeDtypeStruct((Mp, Np), jnp.float32),
        grid_spec=pltpu.PrefetchScalarGridSpec(
            num_scalar_prefetch=0,
            grid=grid,
            in_specs=[pl.BlockSpec((tm, tk), lambda i, j, k: (i, k)),
                      pl.BlockSpec((tk, tn), lambda i, j, k: (k, j)),
                      pl.BlockSpec((1, tn), lambda i, j, k: (0, j))],
            out_specs=pl.BlockSpec((tm, tn), lambda i, j, k: (i, j)),
            scratch_shapes=[pltpu.VMEM((tm, tn), jnp.float32)]),
        compiler_params=pltpu.CompilerParams(
            dimension_semantics=("parallel", "parallel", "arbitrary"),
            vmem_limit_bytes=_VMEM_LIMIT),
    )(a, b, bias_p)
    if Mp == M and Np == N:            # avoid an output-slice HBM copy if unpadded
        return out
    return out[:M, :N]


# --------------------------------------------------------------------------
# Batched matmul: one gridded call over the K=4 scan directions.
# --------------------------------------------------------------------------

def _bmm_kernel(a_ref, b_ref, o_ref, acc_ref):
    @pl.when(pl.program_id(3) == 0)
    def _():
        acc_ref[...] = jnp.zeros_like(acc_ref)

    acc_ref[...] += jnp.dot(a_ref[...], b_ref[...],
                            preferred_element_type=jnp.float32)

    @pl.when(pl.program_id(3) == pl.num_programs(3) - 1)
    def _():
        o_ref[...] = acc_ref[...].astype(o_ref.dtype)


def pallas_bmm(a, b, use_bf16=True):
    """[G,M,K] @ [G,K,N] -> [G,M,N] in a single gridded pallas_call."""
    G, M, K = a.shape
    G2, K2, N = b.shape
    assert G == G2 and K == K2
    tm, tn, tk, Mp, Np, Kp = _mm_tiles(M, N, K)
    if use_bf16:
        a = a.astype(jnp.bfloat16)
        b = b.astype(jnp.bfloat16)
    a = jnp.pad(a, ((0, 0), (0, Mp - M), (0, Kp - K)))
    b = jnp.pad(b, ((0, 0), (0, Kp - K), (0, Np - N)))
    grid = (G, Mp // tm, Np // tn, Kp // tk)
    out = pl.pallas_call(
        _bmm_kernel,
        out_shape=jax.ShapeDtypeStruct((G, Mp, Np), jnp.float32),
        grid_spec=pltpu.PrefetchScalarGridSpec(
            num_scalar_prefetch=0,
            grid=grid,
            in_specs=[pl.BlockSpec((None, tm, tk), lambda g, i, j, k: (g, i, k)),
                      pl.BlockSpec((None, tk, tn), lambda g, i, j, k: (g, k, j))],
            out_specs=pl.BlockSpec((None, tm, tn), lambda g, i, j, k: (g, i, j)),
            scratch_shapes=[pltpu.VMEM((tm, tn), jnp.float32)]),
        compiler_params=pltpu.CompilerParams(
            dimension_semantics=("parallel", "parallel", "parallel",
                                 "arbitrary"),
            vmem_limit_bytes=_VMEM_LIMIT),
    )(a, b)
    if Mp == M and Np == N:
        return out
    return out[:, :M, :N]


# --------------------------------------------------------------------------
# Dense 3x3 conv (stride 1, pad 1), NHWC, bias / folded-BN / activation fused.
# No im2col: 9 accumulating MXU matmuls over shifted windows of the padded
# image, built from 3 column strips (only 3 sublane-crossing slices).
# --------------------------------------------------------------------------

def _conv3x3_kernel(xp_ref, w_ref, b_ref, o_ref, *, act):
    H, W, Cout = o_ref.shape
    Cin = xp_ref.shape[-1]
    xp = xp_ref[...]                                    # [H+2, W+2, Cin]
    w = w_ref[...]                                      # [9, Cin, Cout] bf16
    acc = jnp.zeros((H * W, Cout), jnp.float32)
    for dj in range(3):                                 # 3 column strips
        strip = xp[:, dj:dj + W, :].reshape((H + 2) * W, Cin).astype(jnp.bfloat16)
        for di in range(3):                             # cheap row shifts
            win = strip[di * W:(di + H) * W, :]
            acc = acc + jnp.dot(win, w[di * 3 + dj],
                                preferred_element_type=jnp.float32)
    acc = acc + b_ref[...]                              # [1, Cout] broadcast
    if act == "leaky_relu":
        acc = jnp.where(acc >= 0, acc, 0.01 * acc)
    elif act == "silu":
        acc = acc * jax.nn.sigmoid(acc)
    o_ref[...] = acc.reshape(H, W, Cout)


def conv3x3_nhwc(x, w, b, act=None):
    """Dense 3x3 conv, stride 1, pad 1, NHWC. w: [Cout, Cin, 3, 3]."""
    B, H, W, Cin = x.shape
    Cout = w.shape[0]
    xp = jnp.pad(x.astype(jnp.float32), ((0, 0), (1, 1), (1, 1), (0, 0)))
    wm = jnp.transpose(w, (2, 3, 1, 0)).reshape(9, Cin, Cout).astype(jnp.bfloat16)
    bias = b.reshape(1, Cout).astype(jnp.float32)
    # TODO(synk): tile over H (halo blocks) for large resolutions; whole-image
    # blocks per batch element are used here.
    return pl.pallas_call(
        functools.partial(_conv3x3_kernel, act=act),
        out_shape=jax.ShapeDtypeStruct((B, H, W, Cout), jnp.float32),
        grid_spec=pltpu.PrefetchScalarGridSpec(
            num_scalar_prefetch=0,
            grid=(B,),
            in_specs=[pl.BlockSpec((None, H + 2, W + 2, Cin),
                                   lambda bb: (bb, 0, 0, 0)),
                      pl.BlockSpec((9, Cin, Cout), lambda bb: (0, 0, 0)),
                      pl.BlockSpec((1, Cout), lambda bb: (0, 0))],
            out_specs=pl.BlockSpec((None, H, W, Cout), lambda bb: (bb, 0, 0, 0))),
        compiler_params=pltpu.CompilerParams(
            dimension_semantics=("parallel",),
            vmem_limit_bytes=_VMEM_LIMIT),
    )(xp, wm, bias)


def conv1x1_nhwc(x, w, b):
    B, H, W, Cin = x.shape
    Cout = w.shape[0]
    out = pallas_matmul(x.reshape(B * H * W, Cin), w.reshape(Cout, Cin).T,
                        bias=b)
    return out.reshape(B, H, W, Cout)


# --------------------------------------------------------------------------
# Depthwise 3x3 conv + SiLU + BatchNorm(eval), fused, NHWC (C on lanes).
# 3 column strips (3 sublane-crossing slices) x 3 cheap row shifts.
# --------------------------------------------------------------------------

def _dwconv_silu_bn_kernel(xp_ref, w_ref, b_ref, s_ref, t_ref, o_ref):
    H, W, C = o_ref.shape
    xp = xp_ref[...]                                   # [H+2, W+2, C]
    w = w_ref[...]                                     # [9, C]
    acc = jnp.zeros((H, W, C), jnp.float32)
    for dj in range(3):
        strip = xp[:, dj:dj + W, :]                    # [H+2, W, C]
        for di in range(3):
            tap = di * 3 + dj
            acc = acc + strip[di:di + H] * w[tap:tap + 1].reshape(1, 1, C)
    acc = acc + b_ref[...].reshape(1, 1, C)
    acc = acc * jax.nn.sigmoid(acc)                    # SiLU
    o_ref[...] = (acc * s_ref[...].reshape(1, 1, C)
                  + t_ref[...].reshape(1, 1, C))       # BatchNorm (eval)


def dwconv3x3_silu_bn(x, w9c, bias, bn_scale, bn_shift):
    B, H, W, C = x.shape
    xp = jnp.pad(x.astype(jnp.float32), ((0, 0), (1, 1), (1, 1), (0, 0)))
    # TODO(synk): H-tiled halo blocks for large resolutions / v7x VMEM budget.
    return pl.pallas_call(
        _dwconv_silu_bn_kernel,
        out_shape=jax.ShapeDtypeStruct((B, H, W, C), jnp.float32),
        grid_spec=pltpu.PrefetchScalarGridSpec(
            num_scalar_prefetch=0,
            grid=(B,),
            in_specs=[pl.BlockSpec((None, H + 2, W + 2, C),
                                   lambda b: (b, 0, 0, 0)),
                      pl.BlockSpec((9, C), lambda b: (0, 0)),
                      pl.BlockSpec((1, C), lambda b: (0, 0)),
                      pl.BlockSpec((1, C), lambda b: (0, 0)),
                      pl.BlockSpec((1, C), lambda b: (0, 0))],
            out_specs=pl.BlockSpec((None, H, W, C), lambda b: (b, 0, 0, 0))),
        compiler_params=pltpu.CompilerParams(
            dimension_semantics=("parallel",),
            vmem_limit_bytes=_VMEM_LIMIT),
    )(xp, w9c.astype(jnp.float32),
      bias.reshape(1, C).astype(jnp.float32),
      bn_scale.reshape(1, C).astype(jnp.float32),
      bn_shift.reshape(1, C).astype(jnp.float32))


# --------------------------------------------------------------------------
# Selective scan.
# Grid (K directions, batch, L-chunks); (K, B) are "parallel" (megacore),
# the chunk axis is "arbitrary" with the [N, D] state carried in VMEM scratch.
# B/C stay compact ([.., L, N], no d_inner expansion in HBM); exp(dt*A),
# dt*u*B and the lane-broadcast C are precomputed per chunk into VMEM scratch,
# so the serial chain per step is just FMA + sublane-reduce.  The recurrence
# is unrolled 8-wide and y is stored in sublane-dense (8, D) tiles.
# --------------------------------------------------------------------------

def _scan_kernel(dtsp_ref, dtu_ref, b_ref, c_ref, a_ref, y_ref,
                 state_ref, da_ref, bu_ref, ce_ref, *, unroll):
    @pl.when(pl.program_id(2) == 0)
    def _():
        state_ref[...] = jnp.zeros_like(state_ref)

    TL, D = dtsp_ref.shape
    N = a_ref.shape[0]

    A = a_ref[...]                                             # [N, D]
    dtsp = dtsp_ref[...]                                       # [TL, D]
    # Chunk-parallel precompute (off the serial critical path):
    da_ref[...] = jnp.exp(dtsp[:, None, :] * A[None, :, :])    # [TL, N, D]
    bu_ref[...] = dtu_ref[...][:, None, :] * b_ref[...][:, :, None]
    ce_ref[...] = jnp.broadcast_to(c_ref[...][:, :, None], (TL, N, D))

    nblk = TL // unroll

    def body(i, state):
        base = pl.multiple_of(i * unroll, unroll)
        rows = []
        for u in range(unroll):
            state = da_ref[base + u] * state + bu_ref[base + u]
            rows.append(jnp.sum(state * ce_ref[base + u], axis=0,
                                keepdims=True))
        y_ref[pl.ds(base, unroll), :] = jnp.concatenate(rows, axis=0)
        return state

    state_ref[...] = lax.fori_loop(0, nblk, body, state_ref[...])


def selective_scan(dt_sp, dtu, Bs, Cs, A_knd, l_chunk=256, unroll=8):
    """dt_sp, dtu: [K,B,L,D]; Bs, Cs: [K,B,L,N]; A_knd: [K,N,D] -> y [K,B,L,D]."""
    K, Bb, L, D = dt_sp.shape
    N = A_knd.shape[1]
    TL = min(l_chunk, _round_up(L, unroll))
    Lp = _round_up(L, TL)

    def pad_l(t):
        return jnp.pad(t, ((0, 0), (0, 0), (0, Lp - L), (0, 0)))

    dt_sp, dtu, Bs, Cs = pad_l(dt_sp), pad_l(dtu), pad_l(Bs), pad_l(Cs)
    nck = Lp // TL

    y = pl.pallas_call(
        functools.partial(_scan_kernel, unroll=unroll),
        out_shape=jax.ShapeDtypeStruct((K, Bb, Lp, D), jnp.float32),
        grid_spec=pltpu.PrefetchScalarGridSpec(
            num_scalar_prefetch=0,
            grid=(K, Bb, nck),
            in_specs=[pl.BlockSpec((None, None, TL, D),
                                   lambda k, b, c: (k, b, c, 0)),
                      pl.BlockSpec((None, None, TL, D),
                                   lambda k, b, c: (k, b, c, 0)),
                      pl.BlockSpec((None, None, TL, N),
                                   lambda k, b, c: (k, b, c, 0)),
                      pl.BlockSpec((None, None, TL, N),
                                   lambda k, b, c: (k, b, c, 0)),
                      pl.BlockSpec((None, N, D), lambda k, b, c: (k, 0, 0))],
            out_specs=pl.BlockSpec((None, None, TL, D),
                                   lambda k, b, c: (k, b, c, 0)),
            scratch_shapes=[pltpu.VMEM((N, D), jnp.float32),
                            pltpu.VMEM((TL, N, D), jnp.float32),
                            pltpu.VMEM((TL, N, D), jnp.float32),
                            pltpu.VMEM((TL, N, D), jnp.float32)]),
        compiler_params=pltpu.CompilerParams(
            dimension_semantics=("parallel", "parallel", "arbitrary"),
            vmem_limit_bytes=_VMEM_LIMIT),
    )(dt_sp, dtu, Bs, Cs, A_knd)
    if Lp == L:
        return y
    return y[:, :, :L, :]


# ------------------------------- JAX glue ----------------------------------

def layernorm(x, g, b, eps=1e-5):
    mu = jnp.mean(x, axis=-1, keepdims=True)
    var = jnp.mean(jnp.square(x - mu), axis=-1, keepdims=True)
    return (x - mu) * lax.rsqrt(var + eps) * g + b


def silu(x):
    return x * jax.nn.sigmoid(x)


def fold_bn_into_conv(w, b, g, beta, rm, rv, eps=1e-5):
    s = g / jnp.sqrt(rv + eps)
    return w * s[:, None, None, None], (b - rm) * s + beta


# --------------------------------- SS2D -------------------------------------

def ss2d_forward(p, x):
    B, H, W, d_model = x.shape
    d_inner = p['in_proj_w'].shape[0] // 2
    d_state = p['A_logs'].shape[-1]
    dt_rank = p['dt_w'].shape[-1]
    K = 4
    L = H * W

    # in_proj (single lane-dense matmul), split x / z
    xz = pallas_matmul(x.reshape(B * L, d_model), p['in_proj_w'].T)
    xh, z = xz[:, :d_inner], xz[:, d_inner:]

    # depthwise 3x3 + SiLU + BatchNorm(eval), fused, NHWC
    bn_s = p['bn_g'] * lax.rsqrt(p['bn_rv'] + 1e-5)
    bn_t = p['bn_b'] - p['bn_rm'] * bn_s
    xc = dwconv3x3_silu_bn(xh.reshape(B, H, W, d_inner),
                           p['conv_w'].reshape(d_inner, 9).T,
                           p['conv_b'], bn_s, bn_t)              # [B,H,W,d]

    # 4 scan directions, canonical [K, B, L, D] layout
    d0 = xc.reshape(B, L, d_inner)                               # h-major
    d1 = jnp.transpose(xc, (0, 2, 1, 3)).reshape(B, L, d_inner)  # w-major
    # TODO(synk): fold the L-reversal of directions 2/3 into the scan
    # index_map (reversed chunk order + reversed in-chunk walk) instead of
    # materializing flips.
    xs = jnp.stack([d0, d1, jnp.flip(d0, 1), jnp.flip(d1, 1)], axis=0)

    # x_proj and dt_proj folded into ONE gridded batched matmul:
    #   dt_proj(x_proj(x)[:dt_rank]) == x @ (x_proj[:dt_rank].T @ dt_proj.T)
    w_dt = jnp.einsum('kdr,krc->kdc', p['dt_w'], p['x_proj_w'][:, :dt_rank, :])
    w_comb = jnp.concatenate([w_dt, p['x_proj_w'][:, dt_rank:, :]], axis=1)
    x_all = pallas_bmm(xs.reshape(K, B * L, d_inner),
                       jnp.transpose(w_comb, (0, 2, 1)))         # [K,B*L,d+2N]
    x_all = x_all.reshape(K, B, L, -1)
    dts = x_all[..., :d_inner]
    Bs = x_all[..., d_inner:d_inner + d_state]                   # compact [K,B,L,N]
    Cs = x_all[..., d_inner + d_state:]

    # L-parallel prep hoisted out of the sequential kernel
    dt_sp = jax.nn.softplus(dts + p['dt_b'][:, None, None, :])   # delta_softplus
    dtu = dt_sp * xs
    A_knd = -jnp.exp(p['A_logs']).reshape(K, d_inner, d_state)
    A_knd = jnp.transpose(A_knd, (0, 2, 1))                      # [K, N, D]

    y = selective_scan(dt_sp, dtu, Bs, Cs, A_knd)                # [K,B,L,D]
    y = y + xs * p['Ds'].reshape(K, 1, 1, d_inner)               # D*u skip

    # merge the 4 directions back to h-major, channels-last
    def wmaj_to_hmaj(t):          # [B,L,D] with l = w*H + h  ->  l = h*W + w
        return jnp.transpose(t.reshape(B, W, H, d_inner),
                             (0, 2, 1, 3)).reshape(B, L, d_inner)

    y_sum = (y[0] + jnp.flip(y[2], axis=1)
             + wmaj_to_hmaj(y[1]) + wmaj_to_hmaj(jnp.flip(y[3], axis=1)))

    y_out = layernorm(y_sum.reshape(B * L, d_inner),
                      p['out_norm_g'], p['out_norm_b'])
    y_out = y_out * silu(z)
    out = pallas_matmul(y_out, p['out_proj_w'].T)
    return out.reshape(B, H, W, d_model)


# ----------------------------- ConvSSM / layer -------------------------------

def convssm_forward(p, inp):
    C = inp.shape[-1]
    left, right = inp[..., :C // 2], inp[..., C // 2:]

    # right branch: residual + SS2D(LayerNorm(right)); drop_path(0) == identity
    x = right + ss2d_forward(p['ss2d'],
                             layernorm(right, p['ln1_g'], p['ln1_b']))

    # left branch: [conv3x3 + BN + LeakyReLU] x2 + conv1x1, NHWC;
    # BatchNorm(eval) folded into conv weights, activation fused in-kernel
    w1, b1 = fold_bn_into_conv(p['conv1_w'], p['conv1_b'], p['bn1_g'],
                               p['bn1_b'], p['bn1_rm'], p['bn1_rv'])
    w2, b2 = fold_bn_into_conv(p['conv2_w'], p['conv2_b'], p['bn2_g'],
                               p['bn2_b'], p['bn2_rm'], p['bn2_rv'])
    l = conv3x3_nhwc(left, w1, b1, act='leaky_relu')
    l = conv3x3_nhwc(l, w2, b2, act='leaky_relu')
    l = conv1x1_nhwc(l, p['conv3_w'], p['conv3_b'])

    # TODO(synk): SDFF is not defined in the provided source; placeholder fuses
    # the two half-width branches by channel concatenation so the residual add
    # has matching width.
    fused = jnp.concatenate([l, x], axis=-1)
    return fused + inp


def vss_layer_up_forward(blocks, x):
    # upsample is None in this configuration
    for p in blocks:
        x = convssm_forward(p, x)
    return x


# ----------------------------- parameter init --------------------------------

class KeyGen:
    def __init__(self, key):
        self.key = key

    def __call__(self):
        self.key, sub = jax.random.split(self.key)
        return sub


def init_params(key, dim, d_state=16, depth=1):
    d_model = dim // 2
    d_inner = 2 * d_model
    dt_rank = max(1, math.ceil(d_model / 16))
    K = 4
    kg = KeyGen(key)

    def unif(shape, scale):
        return jax.random.uniform(kg(), shape, jnp.float32, -scale, scale)

    def nrm(shape, scale=1.0):
        return scale * jax.random.normal(kg(), shape, jnp.float32)

    blocks = []
    for _ in range(depth):
        c_half = d_model
        ss2d = dict(
            in_proj_w=unif((2 * d_inner, d_model), 1.0 / math.sqrt(d_model)),
            conv_w=unif((d_inner, 3, 3), 1.0 / 3.0),
            conv_b=unif((d_inner,), 1.0 / 3.0),
            bn_g=1.0 + 0.1 * nrm((d_inner,)),
            bn_b=0.1 * nrm((d_inner,)),
            bn_rm=0.1 * nrm((d_inner,)),
            bn_rv=1.0 + 0.1 * jax.random.uniform(kg(), (d_inner,), jnp.float32),
            x_proj_w=unif((K, dt_rank + 2 * d_state, d_inner),
                          1.0 / math.sqrt(d_inner)),
            dt_w=unif((K, d_inner, dt_rank), dt_rank ** -0.5),
            out_norm_g=1.0 + 0.05 * nrm((d_inner,)),
            out_norm_b=0.05 * nrm((d_inner,)),
            out_proj_w=unif((d_model, d_inner), 1.0 / math.sqrt(d_inner)),
            A_logs=jnp.tile(
                jnp.log(jnp.arange(1, d_state + 1, dtype=jnp.float32))[None, :],
                (K * d_inner, 1)),
            Ds=jnp.ones((K * d_inner,), jnp.float32),
        )
        # dt_projs_bias init = inv_softplus(dt), dt ~ LogUniform(1e-3, 1e-1)
        dt = jnp.exp(jax.random.uniform(kg(), (K, d_inner), jnp.float32)
                     * (math.log(0.1) - math.log(0.001)) + math.log(0.001))
        dt = jnp.maximum(dt, 1e-4)
        ss2d['dt_b'] = dt + jnp.log(-jnp.expm1(-dt))

        blk = dict(
            ln1_g=1.0 + 0.05 * nrm((c_half,)),
            ln1_b=0.05 * nrm((c_half,)),
            ss2d=ss2d,
            conv1_w=unif((c_half, c_half, 3, 3), 1.0 / math.sqrt(c_half * 9)),
            conv1_b=unif((c_half,), 1.0 / math.sqrt(c_half * 9)),
            bn1_g=1.0 + 0.1 * nrm((c_half,)),
            bn1_b=0.1 * nrm((c_half,)),
            bn1_rm=0.1 * nrm((c_half,)),
            bn1_rv=1.0 + 0.1 * jax.random.uniform(kg(), (c_half,), jnp.float32),
            conv2_w=unif((c_half, c_half, 3, 3), 1.0 / math.sqrt(c_half * 9)),
            conv2_b=unif((c_half,), 1.0 / math.sqrt(c_half * 9)),
            bn2_g=1.0 + 0.1 * nrm((c_half,)),
            bn2_b=0.1 * nrm((c_half,)),
            bn2_rm=0.1 * nrm((c_half,)),
            bn2_rv=1.0 + 0.1 * jax.random.uniform(kg(), (c_half,), jnp.float32),
            conv3_w=unif((c_half, c_half, 1, 1), 1.0 / math.sqrt(c_half)),
            conv3_b=unif((c_half,), 1.0 / math.sqrt(c_half)),
        )
        blocks.append(blk)
    return blocks


# ---------------------------------- main --------------------------------------

if __name__ == "__main__":
    B, H, W, dim = 2, 8, 8, 32   # VSSLayer_up(dim=32, depth=1, d_state=16)
    depth = 1

    key = jax.random.PRNGKey(0)
    pkey, xkey = jax.random.split(key)
    params = init_params(pkey, dim, d_state=16, depth=depth)
    x = jax.random.normal(xkey, (B, H, W, dim), jnp.float32)

    fwd = jax.jit(functools.partial(vss_layer_up_forward, params))
    out = jax.block_until_ready(fwd(x))
    assert out.shape == (B, H, W, dim)
    assert bool(jnp.all(jnp.isfinite(out)))
    print("KERNEL_OK")
</pallas_src>

<mosaic_0001>
module attributes {stable_mosaic.version = 11 : i64} {
  func.func @_mm_kernel(%arg0: i32, %arg1: i32, %arg2: i32, %arg3: memref<128x128xbf16, #tpu.memory_space<vmem>>, %arg4: memref<128x128xbf16, #tpu.memory_space<vmem>>, %arg5: memref<1x128xf32, #tpu.memory_space<vmem>>, %arg6: memref<128x128xf32, #tpu.memory_space<vmem>>, %arg7: memref<128x128xf32, #tpu.memory_space<vmem>>) attributes {dimension_semantics = [#tpu.dimension_semantics<parallel>, #tpu.dimension_semantics<parallel>, #tpu.dimension_semantics<arbitrary>], iteration_bounds = array<i64: 1, 1, 1>, scalar_prefetch = 0 : i64, scratch_operands = 1 : i64, tpu.core_type = #tpu.core_type<tc>, window_params = [{transform_indices = @transform_0, window_bounds = array<i64: 128, 128>}, {transform_indices = @transform_1, window_bounds = array<i64: 128, 128>}, {transform_indices = @transform_2, window_bounds = array<i64: 1, 128>}, {transform_indices = @transform_3, window_bounds = array<i64: 128, 128>}]} {
    %c0_i32 = arith.constant 0 : i32
    %0 = arith.cmpi eq, %arg2, %c0_i32 : i32
    %1 = arith.extui %0 : i1 to i32
    %c0_i32_0 = arith.constant 0 : i32
    %2 = arith.cmpi ne, %1, %c0_i32_0 : i32
    scf.if %2 {
      %cst_10 = arith.constant 0.000000e+00 : f32
      %12 = vector.broadcast %cst_10 : f32 to vector<128x128xf32>
      %c0_11 = arith.constant 0 : index
      %c0_12 = arith.constant 0 : index
      %13 = vector.load %arg7[%c0_11, %c0_12] : memref<128x128xf32, #tpu.memory_space<vmem>>, vector<128x128xf32>
      tpu.vector_store %arg7[%c0_11, %c0_12], %12 {strides = array<i32>} : memref<128x128xf32, #tpu.memory_space<vmem>>, vector<128x128xf32>,
    } else {
    }
    %c0 = arith.constant 0 : index
    %c0_1 = arith.constant 0 : index
    %3 = vector.load %arg7[%c0, %c0_1] : memref<128x128xf32, #tpu.memory_space<vmem>>, vector<128x128xf32>
    %c0_2 = arith.constant 0 : index
    %c0_3 = arith.constant 0 : index
    %4 = vector.load %arg3[%c0_2, %c0_3] : memref<128x128xbf16, #tpu.memory_space<vmem>>, vector<128x128xbf16>
    %c0_4 = arith.constant 0 : index
    %c0_5 = arith.constant 0 : index
    %5 = vector.load %arg4[%c0_4, %c0_5] : memref<128x128xbf16, #tpu.memory_space<vmem>>, vector<128x128xbf16>
    %cst = arith.constant dense<0.000000e+00> : vector<128x128xf32>
    %6 = tpu.matmul %4, %5, %cst {dimension_numbers = #tpu.dot_dimension_numbers<[1], [0], [0], [1], [0, 0, 1, 1], [], []>} : vector<128x128xbf16>, vector<128x128xbf16>, vector<128x128xf32> -> vector<128x128xf32>
    %7 = arith.addf %3, %6 : vector<128x128xf32>
    %c0_6 = arith.constant 0 : index
    %c0_7 = arith.constant 0 : index
    %8 = vector.load %arg7[%c0_6, %c0_7] : memref<128x128xf32, #tpu.memory_space<vmem>>, vector<128x128xf32>
    tpu.vector_store %arg7[%c0_6, %c0_7], %7 {strides = array<i32>} : memref<128x128xf32, #tpu.memory_space<vmem>>, vector<128x128xf32>,
    %c0_i32_8 = arith.constant 0 : i32
    %9 = arith.cmpi eq, %arg2, %c0_i32_8 : i32
    %10 = arith.extui %9 : i1 to i32
    %c0_i32_9 = arith.constant 0 : i32
    %11 = arith.cmpi ne, %10, %c0_i32_9 : i32
    scf.if %11 {
      %c0_10 = arith.constant 0 : index
      %c0_11 = arith.constant 0 : index
      %12 = vector.load %arg7[%c0_10, %c0_11] : memref<128x128xf32, #tpu.memory_space<vmem>>, vector<128x128xf32>
      %c0_12 = arith.constant 0 : index
      %c0_13 = arith.constant 0 : index
      %13 = vector.load %arg5[%c0_12, %c0_13] : memref<1x128xf32, #tpu.memory_space<vmem>>, vector<1x128xf32>
      %14 = vector.broadcast %13 : vector<1x128xf32> to vector<128x128xf32>
      %15 = arith.addf %12, %14 : vector<128x128xf32>
      %c0_14 = arith.constant 0 : index
      %c0_15 = arith.constant 0 : index
      %16 = vector.load %arg6[%c0_14, %c0_15] : memref<128x128xf32, #tpu.memory_space<vmem>>, vector<128x128xf32>
      tpu.vector_store %arg6[%c0_14, %c0_15], %15 {strides = array<i32>} : memref<128x128xf32, #tpu.memory_space<vmem>>, vector<128x128xf32>,
    } else {
    }
    return
  }
  func.func @transform_0(%arg0: i32, %arg1: i32, %arg2: i32) -> (i32, i32) {
    %c0_i32 = arith.constant 0 : i32
    return %arg0, %arg2 : i32, i32
  }
  func.func @transform_1(%arg0: i32, %arg1: i32, %arg2: i32) -> (i32, i32) {
    %c0_i32 = arith.constant 0 : i32
    return %arg2, %arg1 : i32, i32
  }
  func.func @transform_2(%arg0: i32, %arg1: i32, %arg2: i32) -> (i32, i32) {
    %c0_i32 = arith.constant 0 : i32
    %c0_i32_0 = arith.constant 0 : i32
    return %c0_i32, %arg1 : i32, i32
  }
  func.func @transform_3(%arg0: i32, %arg1: i32, %arg2: i32) -> (i32, i32) {
    %c0_i32 = arith.constant 0 : i32
    return %arg0, %arg1 : i32, i32
  }
}

module attributes {stable_mosaic.version = 11 : i64} {
  func.func @_conv3x3_kernel(%arg0: i32, %arg1: memref<1x10x10x16xf32, #tpu.memory_space<vmem>>, %arg2: memref<9x16x16xbf16, #tpu.memory_space<vmem>>, %arg3: memref<1x16xf32, #tpu.memory_space<vmem>>, %arg4: memref<1x8x8x16xf32, #tpu.memory_space<vmem>>) attributes {dimension_semantics = [#tpu.dimension_semantics<parallel>], iteration_bounds = array<i64: 2>, scalar_prefetch = 0 : i64, scratch_operands = 0 : i64, tpu.core_type = #tpu.core_type<tc>, window_params = [{transform_indices = @transform_0, window_bounds = array<i64: 1, 10, 10, 16>}, {pipeline_mode = #tpu.pipeline_mode<synchronous>, transform_indices = @transform_1, window_bounds = array<i64: 9, 16, 16>}, {pipeline_mode = #tpu.pipeline_mode<synchronous>, transform_indices = @transform_2, window_bounds = array<i64: 1, 16>}, {transform_indices = @transform_3, window_bounds = array<i64: 1, 8, 8, 16>}]} {
    %c0 = arith.constant 0 : index
    %c0_0 = arith.constant 0 : index
    %c0_1 = arith.constant 0 : index
    %c0_2 = arith.constant 0 : index
    %0 = vector.load %arg1[%c0, %c0_0, %c0_1, %c0_2] : memref<1x10x10x16xf32, #tpu.memory_space<vmem>>, vector<1x10x10x16xf32>
    %1 = vector.shape_cast %0 : vector<1x10x10x16xf32> to vector<10x10x16xf32>
    %c0_3 = arith.constant 0 : index
    %c0_4 = arith.constant 0 : index
    %c0_5 = arith.constant 0 : index
    %2 = vector.load %arg2[%c0_3, %c0_4, %c0_5] : memref<9x16x16xbf16, #tpu.memory_space<vmem>>, vector<9x16x16xbf16>
    %cst = arith.constant 0.000000e+00 : f32
    %3 = vector.broadcast %cst : f32 to vector<64x16xf32>
    %4 = vector.extract_strided_slice %1 {offsets = [0, 0, 0], sizes = [10, 8, 16], strides = [1, 1, 1]} : vector<10x10x16xf32> to vector<10x8x16xf32>
    %5 = vector.shape_cast %4 : vector<10x8x16xf32> to vector<80x16xf32>
    %6 = arith.truncf %5 : vector<80x16xf32> to vector<80x16xbf16>
    %7 = vector.extract_strided_slice %6 {offsets = [0, 0], sizes = [64, 16], strides = [1, 1]} : vector<80x16xbf16> to vector<64x16xbf16>
    %8 = vector.extract_strided_slice %2 {offsets = [0, 0, 0], sizes = [1, 16, 16], strides = [1, 1, 1]} : vector<9x16x16xbf16> to vector<1x16x16xbf16>
    %9 = vector.shape_cast %8 : vector<1x16x16xbf16> to vector<16x16xbf16>
    %cst_6 = arith.constant dense<0.000000e+00> : vector<64x16xf32>
    %10 = tpu.matmul %7, %9, %cst_6 {dimension_numbers = #tpu.dot_dimension_numbers<[1], [0], [0], [1], [0, 0, 1, 1], [], []>} : vector<64x16xbf16>, vector<16x16xbf16>, vector<64x16xf32> -> vector<64x16xf32>
    %11 = arith.addf %3, %10 : vector<64x16xf32>
    %12 = vector.extract_strided_slice %6 {offsets = [8, 0], sizes = [64, 16], strides = [1, 1]} : vector<80x16xbf16> to vector<64x16xbf16>
    %13 = vector.extract_strided_slice %2 {offsets = [3, 0, 0], sizes = [1, 16, 16], strides = [1, 1, 1]} : vector<9x16x16xbf16> to vector<1x16x16xbf16>
    %14 = vector.shape_cast %13 : vector<1x16x16xbf16> to vector<16x16xbf16>
    %cst_7 = arith.constant dense<0.000000e+00> : vector<64x16xf32>
    %15 = tpu.matmul %12, %14, %cst_7 {dimension_numbers = #tpu.dot_dimension_numbers<[1], [0], [0], [1], [0, 0, 1, 1], [], []>} : vector<64x16xbf16>, vector<16x16xbf16>, vector<64x16xf32> -> vector<64x16xf32>
    %16 = arith.addf %11, %15 : vector<64x16xf32>
    %17 = vector.extract_strided_slice %6 {offsets = [16, 0], sizes = [64, 16], strides = [1, 1]} : vector<80x16xbf16> to vector<64x16xbf16>
    %18 = vector.extract_strided_slice %2 {offsets = [6, 0, 0], sizes = [1, 16, 16], strides = [1, 1, 1]} : vector<9x16x16xbf16> to vector<1x16x16xbf16>
    %19 = vector.shape_cast %18 : vector<1x16x16xbf16> to vector<16x16xbf16>
    %cst_8 = arith.constant dense<0.000000e+00> : vector<64x16xf32>
    %20 = tpu.matmul %17, %19, %cst_8 {dimension_numbers = #tpu.dot_dimension_numbers<[1], [0], [0], [1], [0, 0, 1, 1], [], []>} : vector<64x16xbf16>, vector<16x16xbf16>, vector<64x16xf32> -> vector<64x16xf32>
    %21 = arith.addf %16, %20 : vector<64x16xf32>
    %22 = vector.extract_strided_slice %1 {offsets = [0, 1, 0], sizes = [10, 8, 16], strides = [1, 1, 1]} : vector<10x10x16xf32> to vector<10x8x16xf32>
    %23 = vector.shape_cast %22 : vector<10x8x16xf32> to vector<80x16xf32>
    %24 = arith.truncf %23 : vector<80x16xf32> to vector<80x16xbf16>
    %25 = vector.extract_strided_slice %24 {offsets = [0, 0], sizes = [64, 16], strides = [1, 1]} : vector<80x16xbf16> to vector<64x16xbf16>
    %26 = vector.extract_strided_slice %2 {offsets = [1, 0, 0], sizes = [1, 16, 16], strides = [1, 1, 1]} : vector<9x16x16xbf16> to vector<1x16x16xbf16>
    %27 = vector.shape_cast %26 : vector<1x16x16xbf16> to vector<16x16xbf16>
    %cst_9 = arith.constant dense<0.000000e+00> : vector<64x16xf32>
    %28 = tpu.matmul %25, %27, %cst_9 {dimension_numbers = #tpu.dot_dimension_numbers<[1], [0], [0], [1], [0, 0, 1, 1], [], []>} : vector<64x16xbf16>, vector<16x16xbf16>, vector<64x16xf32> -> vector<64x16xf32>
    %29 = arith.addf %21, %28 : vector<64x16xf32>
    %30 = vector.extract_strided_slice %24 {offsets = [8, 0], sizes = [64, 16], strides = [1, 1]} : vector<80x16xbf16> to vector<64x16xbf16>
    %31 = vector.extract_strided_slice %2 {offsets = [4, 0, 0], sizes = [1, 16, 16], strides = [1, 1, 1]} : vector<9x16x16xbf16> to vector<1x16x16xbf16>
    %32 = vector.shape_cast %31 : vector<1x16x16xbf16> to vector<16x16xbf16>
    %cst_10 = arith.constant dense<0.000000e+00> : vector<64x16xf32>
    %33 = tpu.matmul %30, %32, %cst_10 {dimension_numbers = #tpu.dot_dimension_numbers<[1], [0], [0], [1], [0, 0, 1, 1], [], []>} : vector<64x16xbf16>, vector<16x16xbf16>, vector<64x16xf32> -> vector<64x16xf32>
    %34 = arith.addf %29, %33 : vector<64x16xf32>
    %35 = vector.extract_strided_slice %24 {offsets = [16, 0], sizes = [64, 16], strides = [1, 1]} : vector<80x16xbf16> to vector<64x16xbf16>
    %36 = vector.extract_strided_slice %2 {offsets = [7, 0, 0], sizes = [1, 16, 16], strides = [1, 1, 1]} : vector<9x16x16xbf16> to vector<1x16x16xbf16>
    %37 = vector.shape_cast %36 : vector<1x16x16xbf16> to vector<16x16xbf16>
    %cst_11 = arith.constant dense<0.000000e+00> : vector<64x16xf32>
    %38 = tpu.matmul %35, %37, %cst_11 {dimension_numbers = #tpu.dot_dimension_numbers<[1], [0], [0], [1], [0, 0, 1, 1], [], []>} : vector<64x16xbf16>, vector<16x16xbf16>, vector<64x16xf32> -> vector<64x16xf32>
    %39 = arith.addf %34, %38 : vector<64x16xf32>
    %40 = vector.extract_strided_slice %1 {offsets = [0, 2, 0], sizes = [10, 8, 16], strides = [1, 1, 1]} : vector<10x10x16xf32> to vector<10x8x16xf32>
    %41 = vector.shape_cast %40 : vector<10x8x16xf32> to vector<80x16xf32>
    %42 = arith.truncf %41 : vector<80x16xf32> to vector<80x16xbf16>
    %43 = vector.extract_strided_slice %42 {offsets = [0, 0], sizes = [64, 16], strides = [1, 1]} : vector<80x16xbf16> to vector<64x16xbf16>
    %44 = vector.extract_strided_slice %2 {offsets = [2, 0, 0], sizes = [1, 16, 16], strides = [1, 1, 1]} : vector<9x16x16xbf16> to vector<1x16x16xbf16>
    %45 = vector.shape_cast %44 : vector<1x16x16xbf16> to vector<16x16xbf16>
    %cst_12 = arith.constant dense<0.000000e+00> : vector<64x16xf32>
    %46 = tpu.matmul %43, %45, %cst_12 {dimension_numbers = #tpu.dot_dimension_numbers<[1], [0], [0], [1], [0, 0, 1, 1], [], []>} : vector<64x16xbf16>, vector<16x16xbf16>, vector<64x16xf32> -> vector<64x16xf32>
    %47 = arith.addf %39, %46 : vector<64x16xf32>
    %48 = vector.extract_strided_slice %42 {offsets = [8, 0], sizes = [64, 16], strides = [1, 1]} : vector<80x16xbf16> to vector<64x16xbf16>
    %49 = vector.extract_strided_slice %2 {offsets = [5, 0, 0], sizes = [1, 16, 16], strides = [1, 1, 1]} : vector<9x16x16xbf16> to vector<1x16x16xbf16>
    %50 = vector.shape_cast %49 : vector<1x16x16xbf16> to vector<16x16xbf16>
    %cst_13 = arith.constant dense<0.000000e+00> : vector<64x16xf32>
    %51 = tpu.matmul %48, %50, %cst_13 {dimension_numbers = #tpu.dot_dimension_numbers<[1], [0], [0], [1], [0, 0, 1, 1], [], []>} : vector<64x16xbf16>, vector<16x16xbf16>, vector<64x16xf32> -> vector<64x16xf32>
    %52 = arith.addf %47, %51 : vector<64x16xf32>
    %53 = vector.extract_strided_slice %42 {offsets = [16, 0], sizes = [64, 16], strides = [1, 1]} : vector<80x16xbf16> to vector<64x16xbf16>
    %54 = vector.extract_strided_slice %2 {offsets = [8, 0, 0], sizes = [1, 16, 16], strides = [1, 1, 1]} : vector<9x16x16xbf16> to vector<1x16x16xbf16>
    %55 = vector.shape_cast %54 : vector<1x16x16xbf16> to vector<16x16xbf16>
    %cst_14 = arith.constant dense<0.000000e+00> : vector<64x16xf32>
    %56 = tpu.matmul %53, %55, %cst_14 {dimension_numbers = #tpu.dot_dimension_numbers<[1], [0], [0], [1], [0, 0, 1, 1], [], []>} : vector<64x16xbf16>, vector<16x16xbf16>, vector<64x16xf32> -> vector<64x16xf32>
    %57 = arith.addf %52, %56 : vector<64x16xf32>
    %c0_15 = arith.constant 0 : index
    %c0_16 = arith.constant 0 : index
    %58 = vector.load %arg3[%c0_15, %c0_16] : memref<1x16xf32, #tpu.memory_space<vmem>>, vector<1x16xf32>
    %59 = vector.broadcast %58 : vector<1x16xf32> to vector<64x16xf32>
    %60 = arith.addf %57, %59 : vector<64x16xf32>
    %cst_17 = arith.constant 0.000000e+00 : f32
    %61 = vector.broadcast %cst_17 : f32 to vector<64x16xf32>
    %62 = arith.cmpf oge, %60, %61 : vector<64x16xf32>
    %cst_18 = arith.constant 0.00999999977 : f32
    %63 = vector.broadcast %cst_18 : f32 to vector<64x16xf32>
    %64 = arith.mulf %63, %60 : vector<64x16xf32>
    %65 = arith.select %62, %60, %64 : vector<64x16xi1>, vector<64x16xf32>
    %66 = vector.shape_cast %65 : vector<64x16xf32> to vector<8x8x16xf32>
    %c0_19 = arith.constant 0 : index
    %c0_20 = arith.constant 0 : index
    %c0_21 = arith.constant 0 : index
    %c0_22 = arith.constant 0 : index
    %67 = vector.load %arg4[%c0_19, %c0_20, %c0_21, %c0_22] : memref<1x8x8x16xf32, #tpu.memory_space<vmem>>, vector<1x8x8x16xf32>
    %68 = vector.shape_cast %67 : vector<1x8x8x16xf32> to vector<8x8x16xf32>
    %69 = vector.shape_cast %66 : vector<8x8x16xf32> to vector<1x8x8x16xf32>
    tpu.vector_store %arg4[%c0_19, %c0_20, %c0_21, %c0_22], %69 {strides = array<i32>} : memref<1x8x8x16xf32, #tpu.memory_space<vmem>>, vector<1x8x8x16xf32>,
    return
  }
  func.func @transform_0(%arg0: i32) -> (i32, i32, i32, i32) {
    %c0_i32 = arith.constant 0 : i32
    %c0_i32_0 = arith.constant 0 : i32
    %c0_i32_1 = arith.constant 0 : i32
    %c0_i32_2 = arith.constant 0 : i32
    return %arg0, %c0_i32, %c0_i32_0, %c0_i32_1 : i32, i32, i32, i32
  }
  func.func @transform_1(%arg0: i32) -> (i32, i32, i32) {
    %c0_i32 = arith.constant 0 : i32
    %c0_i32_0 = arith.constant 0 : i32
    %c0_i32_1 = arith.constant 0 : i32
    %c0_i32_2 = arith.constant 0 : i32
    return %c0_i32, %c0_i32_0, %c0_i32_1 : i32, i32, i32
  }
  func.func @transform_2(%arg0: i32) -> (i32, i32) {
    %c0_i32 = arith.constant 0 : i32
    %c0_i32_0 = arith.constant 0 : i32
    %c0_i32_1 = arith.constant 0 : i32
    return %c0_i32, %c0_i32_0 : i32, i32
  }
  func.func @transform_3(%arg0: i32) -> (i32, i32, i32, i32) {
    %c0_i32 = arith.constant 0 : i32
    %c0_i32_0 = arith.constant 0 : i32
    %c0_i32_1 = arith.constant 0 : i32
    %c0_i32_2 = arith.constant 0 : i32
    return %arg0, %c0_i32, %c0_i32_0, %c0_i32_1 : i32, i32, i32, i32
  }
}

module attributes {stable_mosaic.version = 11 : i64} {
  func.func @_dwconv_silu_bn_kernel(%arg0: i32, %arg1: memref<1x10x10x32xf32, #tpu.memory_space<vmem>>, %arg2: memref<9x32xf32, #tpu.memory_space<vmem>>, %arg3: memref<1x32xf32, #tpu.memory_space<vmem>>, %arg4: memref<1x32xf32, #tpu.memory_space<vmem>>, %arg5: memref<1x32xf32, #tpu.memory_space<vmem>>, %arg6: memref<1x8x8x32xf32, #tpu.memory_space<vmem>>) attributes {dimension_semantics = [#tpu.dimension_semantics<parallel>], iteration_bounds = array<i64: 2>, scalar_prefetch = 0 : i64, scratch_operands = 0 : i64, tpu.core_type = #tpu.core_type<tc>, window_params = [{transform_indices = @transform_0, window_bounds = array<i64: 1, 10, 10, 32>}, {pipeline_mode = #tpu.pipeline_mode<synchronous>, transform_indices = @transform_1, window_bounds = array<i64: 9, 32>}, {pipeline_mode = #tpu.pipeline_mode<synchronous>, transform_indices = @transform_2, window_bounds = array<i64: 1, 32>}, {pipeline_mode = #tpu.pipeline_mode<synchronous>, transform_indices = @transform_3, window_bounds = array<i64: 1, 32>}, {pipeline_mode = #tpu.pipeline_mode<synchronous>, transform_indices = @transform_4, window_bounds = array<i64: 1, 32>}, {transform_indices = @transform_5, window_bounds = array<i64: 1, 8, 8, 32>}]} {
    %c0 = arith.constant 0 : index
    %c0_0 = arith.constant 0 : index
    %c0_1 = arith.constant 0 : index
    %c0_2 = arith.constant 0 : index
    %0 = vector.load %arg1[%c0, %c0_0, %c0_1, %c0_2] : memref<1x10x10x32xf32, #tpu.memory_space<vmem>>, vector<1x10x10x32xf32>
    %1 = vector.shape_cast %0 : vector<1x10x10x32xf32> to vector<10x10x32xf32>
    %c0_3 = arith.constant 0 : index
    %c0_4 = arith.constant 0 : index
    %2 = vector.load %arg2[%c0_3, %c0_4] : memref<9x32xf32, #tpu.memory_space<vmem>>, vector<9x32xf32>
    %cst = arith.constant 0.000000e+00 : f32
    %3 = vector.broadcast %cst : f32 to vector<8x8x32xf32>
    %4 = vector.extract_strided_slice %1 {offsets = [0, 0, 0], sizes = [10, 8, 32], strides = [1, 1, 1]} : vector<10x10x32xf32> to vector<10x8x32xf32>
    %5 = vector.extract_strided_slice %4 {offsets = [0, 0, 0], sizes = [8, 8, 32], strides = [1, 1, 1]} : vector<10x8x32xf32> to vector<8x8x32xf32>
    %6 = vector.extract_strided_slice %2 {offsets = [0, 0], sizes = [1, 32], strides = [1, 1]} : vector<9x32xf32> to vector<1x32xf32>
    %7 = vector.shape_cast %6 : vector<1x32xf32> to vector<1x1x32xf32>
    %8 = vector.broadcast %7 : vector<1x1x32xf32> to vector<8x8x32xf32>
    %9 = arith.mulf %5, %8 : vector<8x8x32xf32>
    %10 = arith.addf %3, %9 : vector<8x8x32xf32>
    %11 = vector.extract_strided_slice %4 {offsets = [1, 0, 0], sizes = [8, 8, 32], strides = [1, 1, 1]} : vector<10x8x32xf32> to vector<8x8x32xf32>
    %12 = vector.extract_strided_slice %2 {offsets = [3, 0], sizes = [1, 32], strides = [1, 1]} : vector<9x32xf32> to vector<1x32xf32>
    %13 = vector.shape_cast %12 : vector<1x32xf32> to vector<1x1x32xf32>
    %14 = vector.broadcast %13 : vector<1x1x32xf32> to vector<8x8x32xf32>
    %15 = arith.mulf %11, %14 : vector<8x8x32xf32>
    %16 = arith.addf %10, %15 : vector<8x8x32xf32>
    %17 = vector.extract_strided_slice %4 {offsets = [2, 0, 0], sizes = [8, 8, 32], strides = [1, 1, 1]} : vector<10x8x32xf32> to vector<8x8x32xf32>
    %18 = vector.extract_strided_slice %2 {offsets = [6, 0], sizes = [1, 32], strides = [1, 1]} : vector<9x32xf32> to vector<1x32xf32>
    %19 = vector.shape_cast %18 : vector<1x32xf32> to vector<1x1x32xf32>
    %20 = vector.broadcast %19 : vector<1x1x32xf32> to vector<8x8x32xf32>
    %21 = arith.mulf %17, %20 : vector<8x8x32xf32>
    %22 = arith.addf %16, %21 : vector<8x8x32xf32>
    %23 = vector.extract_strided_slice %1 {offsets = [0, 1, 0], sizes = [10, 8, 32], strides = [1, 1, 1]} : vector<10x10x32xf32> to vector<10x8x32xf32>
    %24 = vector.extract_strided_slice %23 {offsets = [0, 0, 0], sizes = [8, 8, 32], strides = [1, 1, 1]} : vector<10x8x32xf32> to vector<8x8x32xf32>
    %25 = vector.extract_strided_slice %2 {offsets = [1, 0], sizes = [1, 32], strides = [1, 1]} : vector<9x32xf32> to vector<1x32xf32>
    %26 = vector.shape_cast %25 : vector<1x32xf32> to vector<1x1x32xf32>
    %27 = vector.broadcast %26 : vector<1x1x32xf32> to vector<8x8x32xf32>
    %28 = arith.mulf %24, %27 : vector<8x8x32xf32>
    %29 = arith.addf %22, %28 : vector<8x8x32xf32>
    %30 = vector.extract_strided_slice %23 {offsets = [1, 0, 0], sizes = [8, 8, 32], strides = [1, 1, 1]} : vector<10x8x32xf32> to vector<8x8x32xf32>
    %31 = vector.extract_strided_slice %2 {offsets = [4, 0], sizes = [1, 32], strides = [1, 1]} : vector<9x32xf32> to vector<1x32xf32>
    %32 = vector.shape_cast %31 : vector<1x32xf32> to vector<1x1x32xf32>
    %33 = vector.broadcast %32 : vector<1x1x32xf32> to vector<8x8x32xf32>
    %34 = arith.mulf %30, %33 : vector<8x8x32xf32>
    %35 = arith.addf %29, %34 : vector<8x8x32xf32>
    %36 = vector.extract_strided_slice %23 {offsets = [2, 0, 0], sizes = [8, 8, 32], strides = [1, 1, 1]} : vector<10x8x32xf32> to vector<8x8x32xf32>
    %37 = vector.extract_strided_slice %2 {offsets = [7, 0], sizes = [1, 32], strides = [1, 1]} : vector<9x32xf32> to vector<1x32xf32>
    %38 = vector.shape_cast %37 : vector<1x32xf32> to vector<1x1x32xf32>
    %39 = vector.broadcast %38 : vector<1x1x32xf32> to vector<8x8x32xf32>
    %40 = arith.mulf %36, %39 : vector<8x8x32xf32>
    %41 = arith.addf %35, %40 : vector<8x8x32xf32>
    %42 = vector.extract_strided_slice %1 {offsets = [0, 2, 0], sizes = [10, 8, 32], strides = [1, 1, 1]} : vector<10x10x32xf32> to vector<10x8x32xf32>
    %43 = vector.extract_strided_slice %42 {offsets = [0, 0, 0], sizes = [8, 8, 32], strides = [1, 1, 1]} : vector<10x8x32xf32> to vector<8x8x32xf32>
    %44 = vector.extract_strided_slice %2 {offsets = [2, 0], sizes = [1, 32], strides = [1, 1]} : vector<9x32xf32> to vector<1x32xf32>
    %45 = vector.shape_cast %44 : vector<1x32xf32> to vector<1x1x32xf32>
    %46 = vector.broadcast %45 : vector<1x1x32xf32> to vector<8x8x32xf32>
    %47 = arith.mulf %43, %46 : vector<8x8x32xf32>
    %48 = arith.addf %41, %47 : vector<8x8x32xf32>
    %49 = vector.extract_strided_slice %42 {offsets = [1, 0, 0], sizes = [8, 8, 32], strides = [1, 1, 1]} : vector<10x8x32xf32> to vector<8x8x32xf32>
    %50 = vector.extract_strided_slice %2 {offsets = [5, 0], sizes = [1, 32], strides = [1, 1]} : vector<9x32xf32> to vector<1x32xf32>
    %51 = vector.shape_cast %50 : vector<1x32xf32> to vector<1x1x32xf32>
    %52 = vector.broadcast %51 : vector<1x1x32xf32> to vector<8x8x32xf32>
    %53 = arith.mulf %49, %52 : vector<8x8x32xf32>
    %54 = arith.addf %48, %53 : vector<8x8x32xf32>
    %55 = vector.extract_strided_slice %42 {offsets = [2, 0, 0], sizes = [8, 8, 32], strides = [1, 1, 1]} : vector<10x8x32xf32> to vector<8x8x32xf32>
    %56 = vector.extract_strided_slice %2 {offsets = [8, 0], sizes = [1, 32], strides = [1, 1]} : vector<9x32xf32> to vector<1x32xf32>
    %57 = vector.shape_cast %56 : vector<1x32xf32> to vector<1x1x32xf32>
    %58 = vector.broadcast %57 : vector<1x1x32xf32> to vector<8x8x32xf32>
    %59 = arith.mulf %55, %58 : vector<8x8x32xf32>
    %60 = arith.addf %54, %59 : vector<8x8x32xf32>
    %c0_5 = arith.constant 0 : index
    %c0_6 = arith.constant 0 : index
    %61 = vector.load %arg3[%c0_5, %c0_6] : memref<1x32xf32, #tpu.memory_space<vmem>>, vector<1x32xf32>
    %62 = vector.shape_cast %61 : vector<1x32xf32> to vector<1x1x32xf32>
    %63 = vector.broadcast %62 : vector<1x1x32xf32> to vector<8x8x32xf32>
    %64 = arith.addf %60, %63 : vector<8x8x32xf32>
    %65 = arith.negf %64 : vector<8x8x32xf32>
    %66 = math.exp %65 : vector<8x8x32xf32>
    %cst_7 = arith.constant 1.000000e+00 : f32
    %67 = vector.broadcast %cst_7 : f32 to vector<8x8x32xf32>
    %68 = arith.addf %67, %66 : vector<8x8x32xf32>
    %69 = arith.divf %67, %68 : vector<8x8x32xf32>
    %70 = arith.mulf %64, %69 : vector<8x8x32xf32>
    %c0_8 = arith.constant 0 : index
    %c0_9 = arith.constant 0 : index
    %71 = vector.load %arg4[%c0_8, %c0_9] : memref<1x32xf32, #tpu.memory_space<vmem>>, vector<1x32xf32>
    %72 = vector.shape_cast %71 : vector<1x32xf32> to vector<1x1x32xf32>
    %73 = vector.broadcast %72 : vector<1x1x32xf32> to vector<8x8x32xf32>
    %74 = arith.mulf %70, %73 : vector<8x8x32xf32>
    %c0_10 = arith.constant 0 : index
    %c0_11 = arith.constant 0 : index
    %75 = vector.load %arg5[%c0_10, %c0_11] : memref<1x32xf32, #tpu.memory_space<vmem>>, vector<1x32xf32>
    %76 = vector.shape_cast %75 : vector<1x32xf32> to vector<1x1x32xf32>
    %77 = vector.broadcast %76 : vector<1x1x32xf32> to vector<8x8x32xf32>
    %78 = arith.addf %74, %77 : vector<8x8x32xf32>
    %c0_12 = arith.constant 0 : index
    %c0_13 = arith.constant 0 : index
    %c0_14 = arith.constant 0 : index
    %c0_15 = arith.constant 0 : index
    %79 = vector.load %arg6[%c0_12, %c0_13, %c0_14, %c0_15] : memref<1x8x8x32xf32, #tpu.memory_space<vmem>>, vector<1x8x8x32xf32>
    %80 = vector.shape_cast %79 : vector<1x8x8x32xf32> to vector<8x8x32xf32>
    %81 = vector.shape_cast %78 : vector<8x8x32xf32> to vector<1x8x8x32xf32>
    tpu.vector_store %arg6[%c0_12, %c0_13, %c0_14, %c0_15], %81 {strides = array<i32>} : memref<1x8x8x32xf32, #tpu.memory_space<vmem>>, vector<1x8x8x32xf32>,
    return
  }
  func.func @transform_0(%arg0: i32) -> (i32, i32, i32, i32) {
    %c0_i32 = arith.constant 0 : i32
    %c0_i32_0 = arith.constant 0 : i32
    %c0_i32_1 = arith.constant 0 : i32
    %c0_i32_2 = arith.constant 0 : i32
    return %arg0, %c0_i32, %c0_i32_0, %c0_i32_1 : i32, i32, i32, i32
  }
  func.func @transform_1(%arg0: i32) -> (i32, i32) {
    %c0_i32 = arith.constant 0 : i32
    %c0_i32_0 = arith.constant 0 : i32
    %c0_i32_1 = arith.constant 0 : i32
    return %c0_i32, %c0_i32_0 : i32, i32
  }
  func.func @transform_2(%arg0: i32) -> (i32, i32) {
    %c0_i32 = arith.constant 0 : i32
    %c0_i32_0 = arith.constant 0 : i32
    %c0_i32_1 = arith.constant 0 : i32
    return %c0_i32, %c0_i32_0 : i32, i32
  }
  func.func @transform_3(%arg0: i32) -> (i32, i32) {
    %c0_i32 = arith.constant 0 : i32
    %c0_i32_0 = arith.constant 0 : i32
    %c0_i32_1 = arith.constant 0 : i32
    return %c0_i32, %c0_i32_0 : i32, i32
  }
  func.func @transform_4(%arg0: i32) -> (i32, i32) {
    %c0_i32 = arith.constant 0 : i32
    %c0_i32_0 = arith.constant 0 : i32
    %c0_i32_1 = arith.constant 0 : i32
    return %c0_i32, %c0_i32_0 : i32, i32
  }
  func.func @transform_5(%arg0: i32) -> (i32, i32, i32, i32) {
    %c0_i32 = arith.constant 0 : i32
    %c0_i32_0 = arith.constant 0 : i32
    %c0_i32_1 = arith.constant 0 : i32
    %c0_i32_2 = arith.constant 0 : i32
    return %arg0, %c0_i32, %c0_i32_0, %c0_i32_1 : i32, i32, i32, i32
  }
}

module attributes {stable_mosaic.version = 11 : i64} {
  func.func @_bmm_kernel(%arg0: i32, %arg1: i32, %arg2: i32, %arg3: i32, %arg4: memref<1x128x128xbf16, #tpu.memory_space<vmem>>, %arg5: memref<1x128x128xbf16, #tpu.memory_space<vmem>>, %arg6: memref<1x128x128xf32, #tpu.memory_space<vmem>>, %arg7: memref<128x128xf32, #tpu.memory_space<vmem>>) attributes {dimension_semantics = [#tpu.dimension_semantics<parallel>, #tpu.dimension_semantics<parallel>, #tpu.dimension_semantics<parallel>, #tpu.dimension_semantics<arbitrary>], iteration_bounds = array<i64: 4, 1, 1, 1>, scalar_prefetch = 0 : i64, scratch_operands = 1 : i64, tpu.core_type = #tpu.core_type<tc>, window_params = [{transform_indices = @transform_0, window_bounds = array<i64: 1, 128, 128>}, {transform_indices = @transform_1, window_bounds = array<i64: 1, 128, 128>}, {transform_indices = @transform_2, window_bounds = array<i64: 1, 128, 128>}]} {
    %c0_i32 = arith.constant 0 : i32
    %0 = arith.cmpi eq, %arg3, %c0_i32 : i32
    %1 = arith.extui %0 : i1 to i32
    %c0_i32_0 = arith.constant 0 : i32
    %2 = arith.cmpi ne, %1, %c0_i32_0 : i32
    scf.if %2 {
      %cst_12 = arith.constant 0.000000e+00 : f32
      %14 = vector.broadcast %cst_12 : f32 to vector<128x128xf32>
      %c0_13 = arith.constant 0 : index
      %c0_14 = arith.constant 0 : index
      %15 = vector.load %arg7[%c0_13, %c0_14] : memref<128x128xf32, #tpu.memory_space<vmem>>, vector<128x128xf32>
      tpu.vector_store %arg7[%c0_13, %c0_14], %14 {strides = array<i32>} : memref<128x128xf32, #tpu.memory_space<vmem>>, vector<128x128xf32>,
    } else {
    }
    %c0 = arith.constant 0 : index
    %c0_1 = arith.constant 0 : index
    %3 = vector.load %arg7[%c0, %c0_1] : memref<128x128xf32, #tpu.memory_space<vmem>>, vector<128x128xf32>
    %c0_2 = arith.constant 0 : index
    %c0_3 = arith.constant 0 : index
    %c0_4 = arith.constant 0 : index
    %4 = vector.load %arg4[%c0_2, %c0_3, %c0_4] : memref<1x128x128xbf16, #tpu.memory_space<vmem>>, vector<1x128x128xbf16>
    %5 = vector.shape_cast %4 : vector<1x128x128xbf16> to vector<128x128xbf16>
    %c0_5 = arith.constant 0 : index
    %c0_6 = arith.constant 0 : index
    %c0_7 = arith.constant 0 : index
    %6 = vector.load %arg5[%c0_5, %c0_6, %c0_7] : memref<1x128x128xbf16, #tpu.memory_space<vmem>>, vector<1x128x128xbf16>
    %7 = vector.shape_cast %6 : vector<1x128x128xbf16> to vector<128x128xbf16>
    %cst = arith.constant dense<0.000000e+00> : vector<128x128xf32>
    %8 = tpu.matmul %5, %7, %cst {dimension_numbers = #tpu.dot_dimension_numbers<[1], [0], [0], [1], [0, 0, 1, 1], [], []>} : vector<128x128xbf16>, vector<128x128xbf16>, vector<128x128xf32> -> vector<128x128xf32>
    %9 = arith.addf %3, %8 : vector<128x128xf32>
    %c0_8 = arith.constant 0 : index
    %c0_9 = arith.constant 0 : index
    %10 = vector.load %arg7[%c0_8, %c0_9] : memref<128x128xf32, #tpu.memory_space<vmem>>, vector<128x128xf32>
    tpu.vector_store %arg7[%c0_8, %c0_9], %9 {strides = array<i32>} : memref<128x128xf32, #tpu.memory_space<vmem>>, vector<128x128xf32>,
    %c0_i32_10 = arith.constant 0 : i32
    %11 = arith.cmpi eq, %arg3, %c0_i32_10 : i32
    %12 = arith.extui %11 : i1 to i32
    %c0_i32_11 = arith.constant 0 : i32
    %13 = arith.cmpi ne, %12, %c0_i32_11 : i32
    scf.if %13 {
      %c0_12 = arith.constant 0 : index
      %c0_13 = arith.constant 0 : index
      %14 = vector.load %arg7[%c0_12, %c0_13] : memref<128x128xf32, #tpu.memory_space<vmem>>, vector<128x128xf32>
      %c0_14 = arith.constant 0 : index
      %c0_15 = arith.constant 0 : index
      %c0_16 = arith.constant 0 : index
      %15 = vector.load %arg6[%c0_14, %c0_15, %c0_16] : memref<1x128x128xf32, #tpu.memory_space<vmem>>, vector<1x128x128xf32>
      %16 = vector.shape_cast %15 : vector<1x128x128xf32> to vector<128x128xf32>
      %17 = vector.shape_cast %14 : vector<128x128xf32> to vector<1x128x128xf32>
      tpu.vector_store %arg6[%c0_14, %c0_15, %c0_16], %17 {strides = array<i32>} : memref<1x128x128xf32, #tpu.memory_space<vmem>>, vector<1x128x128xf32>,
    } else {
    }
    return
  }
  func.func @transform_0(%arg0: i32, %arg1: i32, %arg2: i32, %arg3: i32) -> (i32, i32, i32) {
    %c0_i32 = arith.constant 0 : i32
    return %arg0, %arg1, %arg3 : i32, i32, i32
  }
  func.func @transform_1(%arg0: i32, %arg1: i32, %arg2: i32, %arg3: i32) -> (i32, i32, i32) {
    %c0_i32 = arith.constant 0 : i32
    return %arg0, %arg3, %arg2 : i32, i32, i32
  }
  func.func @transform_2(%arg0: i32, %arg1: i32, %arg2: i32, %arg3: i32) -> (i32, i32, i32) {
    %c0_i32 = arith.constant 0 : i32
    return %arg0, %arg1, %arg2 : i32, i32, i32
  }
}

module attributes {stable_mosaic.version = 11 : i64} {
  func.func @_scan_kernel(%arg0: i32, %arg1: i32, %arg2: i32, %arg3: memref<1x1x64x32xf32, #tpu.memory_space<vmem>>, %arg4: memref<1x1x64x32xf32, #tpu.memory_space<vmem>>, %arg5: memref<1x1x64x16xf32, #tpu.memory_space<vmem>>, %arg6: memref<1x1x64x16xf32, #tpu.memory_space<vmem>>, %arg7: memref<1x16x32xf32, #tpu.memory_space<vmem>>, %arg8: memref<1x1x64x32xf32, #tpu.memory_space<vmem>>, %arg9: memref<16x32xf32, #tpu.memory_space<vmem>>, %arg10: memref<64x16x32xf32, #tpu.memory_space<vmem>>, %arg11: memref<64x16x32xf32, #tpu.memory_space<vmem>>, %arg12: memref<64x16x32xf32, #tpu.memory_space<vmem>>) attributes {dimension_semantics = [#tpu.dimension_semantics<parallel>, #tpu.dimension_semantics<parallel>, #tpu.dimension_semantics<arbitrary>], iteration_bounds = array<i64: 4, 2, 1>, scalar_prefetch = 0 : i64, scratch_operands = 4 : i64, tpu.core_type = #tpu.core_type<tc>, window_params = [{transform_indices = @transform_0, window_bounds = array<i64: 1, 1, 64, 32>}, {transform_indices = @transform_1, window_bounds = array<i64: 1, 1, 64, 32>}, {transform_indices = @transform_2, window_bounds = array<i64: 1, 1, 64, 16>}, {transform_indices = @transform_3, window_bounds = array<i64: 1, 1, 64, 16>}, {transform_indices = @transform_4, window_bounds = array<i64: 1, 16, 32>}, {transform_indices = @transform_5, window_bounds = array<i64: 1, 1, 64, 32>}]} {
    %c0_i32 = arith.constant 0 : i32
    %0 = arith.cmpi eq, %arg2, %c0_i32 : i32
    %1 = arith.extui %0 : i1 to i32
    %c0_i32_0 = arith.constant 0 : i32
    %2 = arith.cmpi ne, %1, %c0_i32_0 : i32
    scf.if %2 {
      %cst = arith.constant 0.000000e+00 : f32
      %34 = vector.broadcast %cst : f32 to vector<16x32xf32>
      %c0_34 = arith.constant 0 : index
      %c0_35 = arith.constant 0 : index
      %35 = vector.load %arg9[%c0_34, %c0_35] : memref<16x32xf32, #tpu.memory_space<vmem>>, vector<16x32xf32>
      tpu.vector_store %arg9[%c0_34, %c0_35], %34 {strides = array<i32>} : memref<16x32xf32, #tpu.memory_space<vmem>>, vector<16x32xf32>,
    } else {
    }
    %c0 = arith.constant 0 : index
    %c0_1 = arith.constant 0 : index
    %c0_2 = arith.constant 0 : index
    %3 = vector.load %arg7[%c0, %c0_1, %c0_2] : memref<1x16x32xf32, #tpu.memory_space<vmem>>, vector<1x16x32xf32>
    %4 = vector.shape_cast %3 : vector<1x16x32xf32> to vector<16x32xf32>
    %c0_3 = arith.constant 0 : index
    %c0_4 = arith.constant 0 : index
    %c0_5 = arith.constant 0 : index
    %c0_6 = arith.constant 0 : index
    %5 = vector.load %arg3[%c0_3, %c0_4, %c0_5, %c0_6] : memref<1x1x64x32xf32, #tpu.memory_space<vmem>>, vector<1x1x64x32xf32>
    %6 = vector.shape_cast %5 : vector<1x1x64x32xf32> to vector<64x32xf32>
    %7 = vector.shape_cast %6 : vector<64x32xf32> to vector<64x1x32xf32>
    %8 = vector.shape_cast %4 : vector<16x32xf32> to vector<1x16x32xf32>
    %9 = vector.broadcast %7 : vector<64x1x32xf32> to vector<64x16x32xf32>
    %10 = vector.broadcast %8 : vector<1x16x32xf32> to vector<64x16x32xf32>
    %11 = arith.mulf %9, %10 : vector<64x16x32xf32>
    %12 = math.exp %11 : vector<64x16x32xf32>
    %c0_7 = arith.constant 0 : index
    %c0_8 = arith.constant 0 : index
    %c0_9 = arith.constant 0 : index
    %13 = vector.load %arg10[%c0_7, %c0_8, %c0_9] : memref<64x16x32xf32, #tpu.memory_space<vmem>>, vector<64x16x32xf32>
    tpu.vector_store %arg10[%c0_7, %c0_8, %c0_9], %12 {strides = array<i32>} : memref<64x16x32xf32, #tpu.memory_space<vmem>>, vector<64x16x32xf32>,
    %c0_10 = arith.constant 0 : index
    %c0_11 = arith.constant 0 : index
    %c0_12 = arith.constant 0 : index
    %c0_13 = arith.constant 0 : index
    %14 = vector.load %arg4[%c0_10, %c0_11, %c0_12, %c0_13] : memref<1x1x64x32xf32, #tpu.memory_space<vmem>>, vector<1x1x64x32xf32>
    %15 = vector.shape_cast %14 : vector<1x1x64x32xf32> to vector<64x32xf32>
    %16 = vector.shape_cast %15 : vector<64x32xf32> to vector<64x1x32xf32>
    %c0_14 = arith.constant 0 : index
    %c0_15 = arith.constant 0 : index
    %c0_16 = arith.constant 0 : index
    %c0_17 = arith.constant 0 : index
    %17 = vector.load %arg5[%c0_14, %c0_15, %c0_16, %c0_17] : memref<1x1x64x16xf32, #tpu.memory_space<vmem>>, vector<1x1x64x16xf32>
    %18 = vector.shape_cast %17 : vector<1x1x64x16xf32> to vector<64x16xf32>
    %19 = vector.shape_cast %18 : vector<64x16xf32> to vector<64x16x1xf32>
    %20 = vector.broadcast %16 : vector<64x1x32xf32> to vector<64x16x32xf32>
    %21 = vector.broadcast %19 : vector<64x16x1xf32> to vector<64x16x32xf32>
    %22 = arith.mulf %20, %21 : vector<64x16x32xf32>
    %c0_18 = arith.constant 0 : index
    %c0_19 = arith.constant 0 : index
    %c0_20 = arith.constant 0 : index
    %23 = vector.load %arg11[%c0_18, %c0_19, %c0_20] : memref<64x16x32xf32, #tpu.memory_space<vmem>>, vector<64x16x32xf32>
    tpu.vector_store %arg11[%c0_18, %c0_19, %c0_20], %22 {strides = array<i32>} : memref<64x16x32xf32, #tpu.memory_space<vmem>>, vector<64x16x32xf32>,
    %c0_21 = arith.constant 0 : index
    %c0_22 = arith.constant 0 : index
    %c0_23 = arith.constant 0 : index
    %c0_24 = arith.constant 0 : index
    %24 = vector.load %arg6[%c0_21, %c0_22, %c0_23, %c0_24] : memref<1x1x64x16xf32, #tpu.memory_space<vmem>>, vector<1x1x64x16xf32>
    %25 = vector.shape_cast %24 : vector<1x1x64x16xf32> to vector<64x16xf32>
    %26 = vector.shape_cast %25 : vector<64x16xf32> to vector<64x16x1xf32>
    %27 = vector.shape_cast %26 : vector<64x16x1xf32> to vector<64x16x1xf32>
    %28 = vector.broadcast %27 : vector<64x16x1xf32> to vector<64x16x32xf32>
    %c0_25 = arith.constant 0 : index
    %c0_26 = arith.constant 0 : index
    %c0_27 = arith.constant 0 : index
    %29 = vector.load %arg12[%c0_25, %c0_26, %c0_27] : memref<64x16x32xf32, #tpu.memory_space<vmem>>, vector<64x16x32xf32>
    tpu.vector_store %arg12[%c0_25, %c0_26, %c0_27], %28 {strides = array<i32>} : memref<64x16x32xf32, #tpu.memory_space<vmem>>, vector<64x16x32xf32>,
    %c0_28 = arith.constant 0 : index
    %c0_29 = arith.constant 0 : index
    %30 = vector.load %arg9[%c0_28, %c0_29] : memref<16x32xf32, #tpu.memory_space<vmem>>, vector<16x32xf32>
    %c0_i32_30 = arith.constant 0 : i32
    %c8_i32 = arith.constant 8 : i32
    %31 = arith.addi %c0_i32_30, %c8_i32 : i32
    %c1_i32 = arith.constant 1 : i32
    %32 = scf.for %arg13 = %c0_i32_30 to %31 step %c1_i32 iter_args(%arg14 = %30) -> (vector<16x32xf32>)  : i32 {
      %c8_i32_34 = arith.constant 8 : i32
      %34 = arith.muli %arg13, %c8_i32_34 : i32
      %35 = tpu.assume_multiple %34, 8 : i32
      %c0_i32_35 = arith.constant 0 : i32
      %36 = arith.addi %35, %c0_i32_35 : i32
      %37 = arith.index_cast %36 : i32 to index
      %c0_36 = arith.constant 0 : index
      %c0_37 = arith.constant 0 : index
      %38 = vector.load %arg10[%37, %c0_36, %c0_37] : memref<64x16x32xf32, #tpu.memory_space<vmem>>, vector<1x16x32xf32>
      %39 = vector.shape_cast %38 : vector<1x16x32xf32> to vector<16x32xf32>
      %40 = arith.mulf %39, %arg14 : vector<16x32xf32>
      %c0_i32_38 = arith.constant 0 : i32
      %41 = arith.addi %35, %c0_i32_38 : i32
      %42 = arith.index_cast %41 : i32 to index
      %c0_39 = arith.constant 0 : index
      %c0_40 = arith.constant 0 : index
      %43 = vector.load %arg11[%42, %c0_39, %c0_40] : memref<64x16x32xf32, #tpu.memory_space<vmem>>, vector<1x16x32xf32>
      %44 = vector.shape_cast %43 : vector<1x16x32xf32> to vector<16x32xf32>
      %45 = arith.addf %40, %44 : vector<16x32xf32>
      %c0_i32_41 = arith.constant 0 : i32
      %46 = arith.addi %35, %c0_i32_41 : i32
      %47 = arith.index_cast %46 : i32 to index
      %c0_42 = arith.constant 0 : index
      %c0_43 = arith.constant 0 : index
      %48 = vector.load %arg12[%47, %c0_42, %c0_43] : memref<64x16x32xf32, #tpu.memory_space<vmem>>, vector<1x16x32xf32>
      %49 = vector.shape_cast %48 : vector<1x16x32xf32> to vector<16x32xf32>
      %50 = arith.mulf %45, %49 : vector<16x32xf32>
      %cst = arith.constant dense<0.000000e+00> : vector<32xf32>
      %51 = vector.multi_reduction <add>, %50, %cst [0] : vector<16x32xf32> to vector<32xf32>
      %52 = vector.shape_cast %51 : vector<32xf32> to vector<1x32xf32>
      %c1_i32_44 = arith.constant 1 : i32
      %53 = arith.addi %35, %c1_i32_44 : i32
      %54 = arith.index_cast %53 : i32 to index
      %c0_45 = arith.constant 0 : index
      %c0_46 = arith.constant 0 : index
      %55 = vector.load %arg10[%54, %c0_45, %c0_46] : memref<64x16x32xf32, #tpu.memory_space<vmem>>, vector<1x16x32xf32>
      %56 = vector.shape_cast %55 : vector<1x16x32xf32> to vector<16x32xf32>
      %57 = arith.mulf %56, %45 : vector<16x32xf32>
      %c1_i32_47 = arith.constant 1 : i32
      %58 = arith.addi %35, %c1_i32_47 : i32
      %59 = arith.index_cast %58 : i32 to index
      %c0_48 = arith.constant 0 : index
      %c0_49 = arith.constant 0 : index
      %60 = vector.load %arg11[%59, %c0_48, %c0_49] : memref<64x16x32xf32, #tpu.memory_space<vmem>>, vector<1x16x32xf32>
      %61 = vector.shape_cast %60 : vector<1x16x32xf32> to vector<16x32xf32>
      %62 = arith.addf %57, %61 : vector<16x32xf32>
      %c1_i32_50 = arith.constant 1 : i32
      %63 = arith.addi %35, %c1_i32_50 : i32
      %64 = arith.index_cast %63 : i32 to index
      %c0_51 = arith.constant 0 : index
      %c0_52 = arith.constant 0 : index
      %65 = vector.load %arg12[%64, %c0_51, %c0_52] : memref<64x16x32xf32, #tpu.memory_space<vmem>>, vector<1x16x32xf32>
      %66 = vector.shape_cast %65 : vector<1x16x32xf32> to vector<16x32xf32>
      %67 = arith.mulf %62, %66 : vector<16x32xf32>
      %cst_53 = arith.constant dense<0.000000e+00> : vector<32xf32>
      %68 = vector.multi_reduction <add>, %67, %cst_53 [0] : vector<16x32xf32> to vector<32xf32>
      %69 = vector.shape_cast %68 : vector<32xf32> to vector<1x32xf32>
      %c2_i32 = arith.constant 2 : i32
      %70 = arith.addi %35, %c2_i32 : i32
      %71 = arith.index_cast %70 : i32 to index
      %c0_54 = arith.constant 0 : index
      %c0_55 = arith.constant 0 : index
      %72 = vector.load %arg10[%71, %c0_54, %c0_55] : memref<64x16x32xf32, #tpu.memory_space<vmem>>, vector<1x16x32xf32>
      %73 = vector.shape_cast %72 : vector<1x16x32xf32> to vector<16x32xf32>
      %74 = arith.mulf %73, %62 : vector<16x32xf32>
      %c2_i32_56 = arith.constant 2 : i32
      %75 = arith.addi %35, %c2_i32_56 : i32
      %76 = arith.index_cast %75 : i32 to index
      %c0_57 = arith.constant 0 : index
      %c0_58 = arith.constant 0 : index
      %77 = vector.load %arg11[%76, %c0_57, %c0_58] : memref<64x16x32xf32, #tpu.memory_space<vmem>>, vector<1x16x32xf32>
      %78 = vector.shape_cast %77 : vector<1x16x32xf32> to vector<16x32xf32>
      %79 = arith.addf %74, %78 : vector<16x32xf32>
      %c2_i32_59 = arith.constant 2 : i32
      %80 = arith.addi %35, %c2_i32_59 : i32
      %81 = arith.index_cast %80 : i32 to index
      %c0_60 = arith.constant 0 : index
      %c0_61 = arith.constant 0 : index
      %82 = vector.load %arg12[%81, %c0_60, %c0_61] : memref<64x16x32xf32, #tpu.memory_space<vmem>>, vector<1x16x32xf32>
      %83 = vector.shape_cast %82 : vector<1x16x32xf32> to vector<16x32xf32>
      %84 = arith.mulf %79, %83 : vector<16x32xf32>
      %cst_62 = arith.constant dense<0.000000e+00> : vector<32xf32>
      %85 = vector.multi_reduction <add>, %84, %cst_62 [0] : vector<16x32xf32> to vector<32xf32>
      %86 = vector.shape_cast %85 : vector<32xf32> to vector<1x32xf32>
      %c3_i32 = arith.constant 3 : i32
      %87 = arith.addi %35, %c3_i32 : i32
      %88 = arith.index_cast %87 : i32 to index
      %c0_63 = arith.constant 0 : index
      %c0_64 = arith.constant 0 : index
      %89 = vector.load %arg10[%88, %c0_63, %c0_64] : memref<64x16x32xf32, #tpu.memory_space<vmem>>, vector<1x16x32xf32>
      %90 = vector.shape_cast %89 : vector<1x16x32xf32> to vector<16x32xf32>
      %91 = arith.mulf %90, %79 : vector<16x32xf32>
      %c3_i32_65 = arith.constant 3 : i32
      %92 = arith.addi %35, %c3_i32_65 : i32
      %93 = arith.index_cast %92 : i32 to index
      %c0_66 = arith.constant 0 : index
      %c0_67 = arith.constant 0 : index
      %94 = vector.load %arg11[%93, %c0_66, %c0_67] : memref<64x16x32xf32, #tpu.memory_space<vmem>>, vector<1x16x32xf32>
      %95 = vector.shape_cast %94 : vector<1x16x32xf32> to vector<16x32xf32>
      %96 = arith.addf %91, %95 : vector<16x32xf32>
      %c3_i32_68 = arith.constant 3 : i32
      %97 = arith.addi %35, %c3_i32_68 : i32
      %98 = arith.index_cast %97 : i32 to index
      %c0_69 = arith.constant 0 : index
      %c0_70 = arith.constant 0 : index
      %99 = vector.load %arg12[%98, %c0_69, %c0_70] : memref<64x16x32xf32, #tpu.memory_space<vmem>>, vector<1x16x32xf32>
      %100 = vector.shape_cast %99 : vector<1x16x32xf32> to vector<16x32xf32>
      %101 = arith.mulf %96, %100 : vector<16x32xf32>
      %cst_71 = arith.constant dense<0.000000e+00> : vector<32xf32>
      %102 = vector.multi_reduction <add>, %101, %cst_71 [0] : vector<16x32xf32> to vector<32xf32>
      %103 = vector.shape_cast %102 : vector<32xf32> to vector<1x32xf32>
      %c4_i32 = arith.constant 4 : i32
      %104 = arith.addi %35, %c4_i32 : i32
      %105 = arith.index_cast %104 : i32 to index
      %c0_72 = arith.constant 0 : index
      %c0_73 = arith.constant 0 : index
      %106 = vector.load %arg10[%105, %c0_72, %c0_73] : memref<64x16x32xf32, #tpu.memory_space<vmem>>, vector<1x16x32xf32>
      %107 = vector.shape_cast %106 : vector<1x16x32xf32> to vector<16x32xf32>
      %108 = arith.mulf %107, %96 : vector<16x32xf32>
      %c4_i32_74 = arith.constant 4 : i32
      %109 = arith.addi %35, %c4_i32_74 : i32
      %110 = arith.index_cast %109 : i32 to index
      %c0_75 = arith.constant 0 : index
      %c0_76 = arith.constant 0 : index
      %111 = vector.load %arg11[%110, %c0_75, %c0_76] : memref<64x16x32xf32, #tpu.memory_space<vmem>>, vector<1x16x32xf32>
      %112 = vector.shape_cast %111 : vector<1x16x32xf32> to vector<16x32xf32>
      %113 = arith.addf %108, %112 : vector<16x32xf32>
      %c4_i32_77 = arith.constant 4 : i32
      %114 = arith.addi %35, %c4_i32_77 : i32
      %115 = arith.index_cast %114 : i32 to index
      %c0_78 = arith.constant 0 : index
      %c0_79 = arith.constant 0 : index
      %116 = vector.load %arg12[%115, %c0_78, %c0_79] : memref<64x16x32xf32, #tpu.memory_space<vmem>>, vector<1x16x32xf32>
      %117 = vector.shape_cast %116 : vector<1x16x32xf32> to vector<16x32xf32>
      %118 = arith.mulf %113, %117 : vector<16x32xf32>
      %cst_80 = arith.constant dense<0.000000e+00> : vector<32xf32>
      %119 = vector.multi_reduction <add>, %118, %cst_80 [0] : vector<16x32xf32> to vector<32xf32>
      %120 = vector.shape_cast %119 : vector<32xf32> to vector<1x32xf32>
      %c5_i32 = arith.constant 5 : i32
      %121 = arith.addi %35, %c5_i32 : i32
      %122 = arith.index_cast %121 : i32 to index
      %c0_81 = arith.constant 0 : index
      %c0_82 = arith.constant 0 : index
      %123 = vector.load %arg10[%122, %c0_81, %c0_82] : memref<64x16x32xf32, #tpu.memory_space<vmem>>, vector<1x16x32xf32>
      %124 = vector.shape_cast %123 : vector<1x16x32xf32> to vector<16x32xf32>
      %125 = arith.mulf %124, %113 : vector<16x32xf32>
      %c5_i32_83 = arith.constant 5 : i32
      %126 = arith.addi %35, %c5_i32_83 : i32
      %127 = arith.index_cast %126 : i32 to index
      %c0_84 = arith.constant 0 : index
      %c0_85 = arith.constant 0 : index
      %128 = vector.load %arg11[%127, %c0_84, %c0_85] : memref<64x16x32xf32, #tpu.memory_space<vmem>>, vector<1x16x32xf32>
      %129 = vector.shape_cast %128 : vector<1x16x32xf32> to vector<16x32xf32>
      %130 = arith.addf %125, %129 : vector<16x32xf32>
      %c5_i32_86 = arith.constant 5 : i32
      %131 = arith.addi %35, %c5_i32_86 : i32
      %132 = arith.index_cast %131 : i32 to index
      %c0_87 = arith.constant 0 : index
      %c0_88 = arith.constant 0 : index
      %133 = vector.load %arg12[%132, %c0_87, %c0_88] : memref<64x16x32xf32, #tpu.memory_space<vmem>>, vector<1x16x32xf32>
      %134 = vector.shape_cast %133 : vector<1x16x32xf32> to vector<16x32xf32>
      %135 = arith.mulf %130, %134 : vector<16x32xf32>
      %cst_89 = arith.constant dense<0.000000e+00> : vector<32xf32>
      %136 = vector.multi_reduction <add>, %135, %cst_89 [0] : vector<16x32xf32> to vector<32xf32>
      %137 = vector.shape_cast %136 : vector<32xf32> to vector<1x32xf32>
      %c6_i32 = arith.constant 6 : i32
      %138 = arith.addi %35, %c6_i32 : i32
      %139 = arith.index_cast %138 : i32 to index
      %c0_90 = arith.constant 0 : index
      %c0_91 = arith.constant 0 : index
      %140 = vector.load %arg10[%139, %c0_90, %c0_91] : memref<64x16x32xf32, #tpu.memory_space<vmem>>, vector<1x16x32xf32>
      %141 = vector.shape_cast %140 : vector<1x16x32xf32> to vector<16x32xf32>
      %142 = arith.mulf %141, %130 : vector<16x32xf32>
      %c6_i32_92 = arith.constant 6 : i32
      %143 = arith.addi %35, %c6_i32_92 : i32
      %144 = arith.index_cast %143 : i32 to index
      %c0_93 = arith.constant 0 : index
      %c0_94 = arith.constant 0 : index
      %145 = vector.load %arg11[%144, %c0_93, %c0_94] : memref<64x16x32xf32, #tpu.memory_space<vmem>>, vector<1x16x32xf32>
      %146 = vector.shape_cast %145 : vector<1x16x32xf32> to vector<16x32xf32>
      %147 = arith.addf %142, %146 : vector<16x32xf32>
      %c6_i32_95 = arith.constant 6 : i32
      %148 = arith.addi %35, %c6_i32_95 : i32
      %149 = arith.index_cast %148 : i32 to index
      %c0_96 = arith.constant 0 : index
      %c0_97 = arith.constant 0 : index
      %150 = vector.load %arg12[%149, %c0_96, %c0_97] : memref<64x16x32xf32, #tpu.memory_space<vmem>>, vector<1x16x32xf32>
      %151 = vector.shape_cast %150 : vector<1x16x32xf32> to vector<16x32xf32>
      %152 = arith.mulf %147, %151 : vector<16x32xf32>
      %cst_98 = arith.constant dense<0.000000e+00> : vector<32xf32>
      %153 = vector.multi_reduction <add>, %152, %cst_98 [0] : vector<16x32xf32> to vector<32xf32>
      %154 = vector.shape_cast %153 : vector<32xf32> to vector<1x32xf32>
      %c7_i32 = arith.constant 7 : i32
      %155 = arith.addi %35, %c7_i32 : i32
      %156 = arith.index_cast %155 : i32 to index
      %c0_99 = arith.constant 0 : index
      %c0_100 = arith.constant 0 : index
      %157 = vector.load %arg10[%156, %c0_99, %c0_100] : memref<64x16x32xf32, #tpu.memory_space<vmem>>, vector<1x16x32xf32>
      %158 = vector.shape_cast %157 : vector<1x16x32xf32> to vector<16x32xf32>
      %159 = arith.mulf %158, %147 : vector<16x32xf32>
      %c7_i32_101 = arith.constant 7 : i32
      %160 = arith.addi %35, %c7_i32_101 : i32
      %161 = arith.index_cast %160 : i32 to index
      %c0_102 = arith.constant 0 : index
      %c0_103 = arith.constant 0 : index
      %162 = vector.load %arg11[%161, %c0_102, %c0_103] : memref<64x16x32xf32, #tpu.memory_space<vmem>>, vector<1x16x32xf32>
      %163 = vector.shape_cast %162 : vector<1x16x32xf32> to vector<16x32xf32>
      %164 = arith.addf %159, %163 : vector<16x32xf32>
      %c7_i32_104 = arith.constant 7 : i32
      %165 = arith.addi %35, %c7_i32_104 : i32
      %166 = arith.index_cast %165 : i32 to index
      %c0_105 = arith.constant 0 : index
      %c0_106 = arith.constant 0 : index
      %167 = vector.load %arg12[%166, %c0_105, %c0_106] : memref<64x16x32xf32, #tpu.memory_space<vmem>>, vector<1x16x32xf32>
      %168 = vector.shape_cast %167 : vector<1x16x32xf32> to vector<16x32xf32>
      %169 = arith.mulf %164, %168 : vector<16x32xf32>
      %cst_107 = arith.constant dense<0.000000e+00> : vector<32xf32>
      %170 = vector.multi_reduction <add>, %169, %cst_107 [0] : vector<16x32xf32> to vector<32xf32>
      %171 = vector.shape_cast %170 : vector<32xf32> to vector<1x32xf32>
      %172 = tpu.concatenate %52, %69, %86, %103, %120, %137, %154, %171 in 0 : vector<1x32xf32>, vector<1x32xf32>, vector<1x32xf32>, vector<1x32xf32>, vector<1x32xf32>, vector<1x32xf32>, vector<1x32xf32>, vector<1x32xf32> -> vector<8x32xf32>
      %c0_108 = arith.constant 0 : index
      %c0_109 = arith.constant 0 : index
      %173 = arith.index_cast %35 : i32 to index
      %c0_110 = arith.constant 0 : index
      %174 = vector.load %arg8[%c0_108, %c0_109, %173, %c0_110] : memref<1x1x64x32xf32, #tpu.memory_space<vmem>>, vector<1x1x8x32xf32>
      %175 = vector.shape_cast %174 : vector<1x1x8x32xf32> to vector<8x32xf32>
      %176 = vector.shape_cast %172 : vector<8x32xf32> to vector<1x1x8x32xf32>
      tpu.vector_store %arg8[%c0_108, %c0_109, %173, %c0_110], %176 {strides = array<i32>} : memref<1x1x64x32xf32, #tpu.memory_space<vmem>>, vector<1x1x8x32xf32>,
      scf.yield %164 : vector<16x32xf32>
    }
    %c8_i32_31 = arith.constant 8 : i32
    %c0_32 = arith.constant 0 : index
    %c0_33 = arith.constant 0 : index
    %33 = vector.load %arg9[%c0_32, %c0_33] : memref<16x32xf32, #tpu.memory_space<vmem>>, vector<16x32xf32>
    tpu.vector_store %arg9[%c0_32, %c0_33], %32 {strides = array<i32>} : memref<16x32xf32, #tpu.memory_space<vmem>>, vector<16x32xf32>,
    return
  }
  func.func @transform_0(%arg0: i32, %arg1: i32, %arg2: i32) -> (i32, i32, i32, i32) {
    %c0_i32 = arith.constant 0 : i32
    %c0_i32_0 = arith.constant 0 : i32
    return %arg0, %arg1, %arg2, %c0_i32 : i32, i32, i32, i32
  }
  func.func @transform_1(%arg0: i32, %arg1: i32, %arg2: i32) -> (i32, i32, i32, i32) {
    %c0_i32 = arith.constant 0 : i32
    %c0_i32_0 = arith.constant 0 : i32
    return %arg0, %arg1, %arg2, %c0_i32 : i32, i32, i32, i32
  }
  func.func @transform_2(%arg0: i32, %arg1: i32, %arg2: i32) -> (i32, i32, i32, i32) {
    %c0_i32 = arith.constant 0 : i32
    %c0_i32_0 = arith.constant 0 : i32
    return %arg0, %arg1, %arg2, %c0_i32 : i32, i32, i32, i32
  }
  func.func @transform_3(%arg0: i32, %arg1: i32, %arg2: i32) -> (i32, i32, i32, i32) {
    %c0_i32 = arith.constant 0 : i32
    %c0_i32_0 = arith.constant 0 : i32
    return %arg0, %arg1, %arg2, %c0_i32 : i32, i32, i32, i32
  }
  func.func @transform_4(%arg0: i32, %arg1: i32, %arg2: i32) -> (i32, i32, i32) {
    %c0_i32 = arith.constant 0 : i32
    %c0_i32_0 = arith.constant 0 : i32
    %c0_i32_1 = arith.constant 0 : i32
    return %arg0, %c0_i32, %c0_i32_0 : i32, i32, i32
  }
  func.func @transform_5(%arg0: i32, %arg1: i32, %arg2: i32) -> (i32, i32, i32, i32) {
    %c0_i32 = arith.constant 0 : i32
    %c0_i32_0 = arith.constant 0 : i32
    return %arg0, %arg1, %arg2, %c0_i32 : i32, i32, i32, i32
  }
}

</mosaic_0001>

<bundles_post_ra>
// kernel: vss_layer_up_forward.8
= control target key start
LH: loop header
LB: loop body
LE: loop exit
PB: predicated region body
PF: predicated region fallthrough
CT: control target
= control target key end

     0   :  { %s586_s1 = inlined_call_operand.vmem [shape: bf16[128,128], index: 1, kind: input, shape index: {}]   ;;  %s587_s0 = inlined_call_operand.vmem [shape: bf16[128,128], index: 0, kind: input, shape index: {}]   ;;  %s588_s2 = inlined_call_operand.vmem [shape: f32[1,128], index: 2, kind: input, shape index: {}]   ;;  %s589_s3 = inlined_call_operand.vmem [shape: f32[128,128], index: 3, kind: output, shape index: {}]  }
   0x1   :  { %v451_v0 = vld [vmem:[%s586_s1] sm:$0xff]   ;;  %v452_v1 = vld [vmem:[%s586_s1 + $0x8] sm:$0xff]   ;;  %v453_v2 = vld [vmem:[%s586_s1 + $0x10] sm:$0xff]  }
   0x2   :  { %403 = vmatprep.subr.bf16.mxu0 %v451_v0  ;;  %435 = vmatprep.subr.bf16.mxu1 %v451_v0  ;;  %v454_v3 = vld [vmem:[%s586_s1 + $0x18] sm:$0xff]   ;;  %v459_v4 = vld [vmem:[%s587_s0] sm:$0xff]   ;;  %v456_v7 = vld [vmem:[%s586_s1 + $0x28] sm:$0xff]  }
   0x3   :  { %404 = vmatpush3.bf16.msra.mxu0 %v451_v0  ;;  %443 = vmatpush3.bf16.msra.mxu1 %v451_v0  ;;  %v460_v5 = vld [vmem:[%s587_s0 + $0x20] sm:$0xff]   ;;  %v457_v8 = vld [vmem:[%s586_s1 + $0x30] sm:$0xff]   ;;  %v458_v9 = vld [vmem:[%s586_s1 + $0x38] sm:$0xff]  }
   0x4   :  { %405 = vmatprep.subr.bf16.mxu0 %v452_v1  ;;  %436 = vmatprep.subr.bf16.mxu1 %v452_v1  ;;  %v455_v6 = vld [vmem:[%s586_s1 + $0x20] sm:$0xff]   ;;  %v461_v10 = vld [vmem:[%s587_s0 + $0x8] sm:$0xff]   ;;  %v463_v12 = vld [vmem:[%s587_s0 + $0x10] sm:$0xff]  }
   0x5   :  { %419 = vmatprep.mubr.bf16.mxu0 %v459_v4  ;;  %427 = vmatprep.mubr.bf16.mxu1 %v460_v5  ;;  %v462_v11 = vld [vmem:[%s587_s0 + $0x28] sm:$0xff]   ;;  %v464_v13 = vld [vmem:[%s587_s0 + $0x30] sm:$0xff]   ;;  %v465_v14 = vld [vmem:[%s587_s0 + $0x18] sm:$0xff]  }
   0x6   :  { %v466_v15 = vld [vmem:[%s587_s0 + $0x38] sm:$0xff]   ;;  %v386_v16 = vld [vmem:[%s588_s2] ss:$0 sm:$0xff] }
   0x7   :  { %406 = vmatpush3.bf16.msra.mxu0 %v452_v1  ;;  %444 = vmatpush3.bf16.msra.mxu1 %v452_v1 }
   0x8   :  { %407 = vmatprep.subr.bf16.mxu0 %v453_v2  ;;  %437 = vmatprep.subr.bf16.mxu1 %v453_v2 }
   0xb   :  { %408 = vmatpush3.bf16.msra.mxu0 %v453_v2  ;;  %445 = vmatpush3.bf16.msra.mxu1 %v453_v2 }
   0xc   :  { %409 = vmatprep.subr.bf16.mxu0 %v454_v3  ;;  %438 = vmatprep.subr.bf16.mxu1 %v454_v3 }
   0xf   :  { %410 = vmatpush3.bf16.msra.mxu0 %v454_v3  ;;  %446 = vmatpush3.bf16.msra.mxu1 %v454_v3 }
  0x10   :  { %411 = vmatprep.subr.bf16.mxu0 %v455_v6  ;;  %439 = vmatprep.subr.bf16.mxu1 %v455_v6 }
  0x13   :  { %412 = vmatpush3.bf16.msra.mxu0 %v455_v6  ;;  %447 = vmatpush3.bf16.msra.mxu1 %v455_v6 }
  0x14   :  { %413 = vmatprep.subr.bf16.mxu0 %v456_v7  ;;  %440 = vmatprep.subr.bf16.mxu1 %v456_v7 }
  0x17   :  { %414 = vmatpush3.bf16.msra.mxu0 %v456_v7  ;;  %448 = vmatpush3.bf16.msra.mxu1 %v456_v7 }
  0x18   :  { %415 = vmatprep.subr.bf16.mxu0 %v457_v8  ;;  %441 = vmatprep.subr.bf16.mxu1 %v457_v8 }
  0x1b   :  { %416 = vmatpush3.bf16.msra.mxu0 %v457_v8  ;;  %449 = vmatpush3.bf16.msra.mxu1 %v457_v8 }
  0x1c   :  { %417 = vmatprep.subr.bf16.mxu0 %v458_v9  ;;  %442 = vmatprep.subr.bf16.mxu1 %v458_v9 }
  0x1f   :  { %418 = vmatpush3.bf16.msra.mxu0 %v458_v9  ;;  %450 = vmatpush3.bf16.msra.mxu1 %v458_v9 }
  0x22   :  { %420 = vmatmul.mubr.bf16.vlgmr.msra.gmra.mrb[0].mxu0 %v461_v10  ;;  %428 = vmatmul.mubr.bf16.vlgmr.msra.gmra.mrb[0].mxu1 %v462_v11 }
  0x23   :  { %423 = vmatprep.mubr.bf16.mxu0 %v463_v12  ;;  %431 = vmatprep.mubr.bf16.mxu1 %v464_v13 }
  0x2a   :  { %424 = vmatmul.mubr.bf16.gmra.mrb[4].mxu0 %v465_v14  ;;  %432 = vmatmul.mubr.bf16.gmra.mrb[4].mxu1 %v466_v15 }
  0xf5   :  { %v421_v17 = vpop.f32.mrb[0].mxu0  ;;  %v429_v18 = vpop.f32.mrb[0].mxu1 }
  0xf6   :  { %v336_v19 = vadd.f32 %v421_v17, %v386_v16  ;;  %v344_v20 = vadd.f32 %v429_v18, %v386_v16  ;;  %v213_v21 = vpop.f32.mrb[1].mxu0  ;;  %v245_v22 = vpop.f32.mrb[1].mxu1 }
  0xf7   :  { %v334_v23 = vadd.f32 %v386_v16, %v213_v21  ;;  %v342_v24 = vadd.f32 %v386_v16, %v245_v22  ;;  %v422_v25 = vpop.f32.mrb[2].mxu0  ;;  %v430_v26 = vpop.f32.mrb[2].mxu1 }
  0xf8   :  { %352 = vst [vmem:[%s589_s3 + $0x10] sm:$0xff] %v336_v19  ;;  %360 = vst [vmem:[%s589_s3 + $0x50] sm:$0xff] %v344_v20  ;;  %v337_v27 = vadd.f32 %v422_v25, %v386_v16  ;;  %v345_v28 = vadd.f32 %v430_v26, %v386_v16  ;;  %v216_v29 = vpop.f32.mrb[3].mxu0  ;;  %v248_v30 = vpop.f32.mrb[3].mxu1 }
  0xf9   :  { %350 = vst [vmem:[%s589_s3] sm:$0xff] %v334_v23  ;;  %358 = vst [vmem:[%s589_s3 + $0x40] sm:$0xff] %v342_v24  ;;  %v335_v31 = vadd.f32 %v386_v16, %v216_v29  ;;  %v343_v32 = vadd.f32 %v386_v16, %v248_v30 }
  0xfa   :  { %353 = vst [vmem:[%s589_s3 + $0x18] sm:$0xff] %v337_v27  ;;  %361 = vst [vmem:[%s589_s3 + $0x58] sm:$0xff] %v345_v28 }
  0xfb   :  { %351 = vst [vmem:[%s589_s3 + $0x8] sm:$0xff] %v335_v31  ;;  %359 = vst [vmem:[%s589_s3 + $0x48] sm:$0xff] %v343_v32 }
  0xfd   :  { %v425_v33 = vpop.f32.mrb[4].mxu0  ;;  %v433_v34 = vpop.f32.mrb[4].mxu1 }
  0xfe   :  { %v340_v35 = vadd.f32 %v425_v33, %v386_v16  ;;  %v348_v36 = vadd.f32 %v433_v34, %v386_v16  ;;  %v229_v37 = vpop.f32.mrb[5].mxu0  ;;  %v261_v38 = vpop.f32.mrb[5].mxu1 }
  0xff   :  { %v338_v39 = vadd.f32 %v386_v16, %v229_v37  ;;  %v346_v40 = vadd.f32 %v386_v16, %v261_v38  ;;  %v426_v41 = vpop.f32.mrb[6].mxu0  ;;  %v434_v42 = vpop.f32.mrb[6].mxu1 }
 0x100   :  { %356 = vst [vmem:[%s589_s3 + $0x30] sm:$0xff] %v340_v35  ;;  %364 = vst [vmem:[%s589_s3 + $0x70] sm:$0xff] %v348_v36  ;;  %v341_v43 = vadd.f32 %v426_v41, %v386_v16  ;;  %v349_v44 = vadd.f32 %v434_v42, %v386_v16  ;;  %v232_v45 = vpop.f32.mrb[7].mxu0  ;;  %v264_v46 = vpop.f32.mrb[7].mxu1 }
 0x101   :  { %354 = vst [vmem:[%s589_s3 + $0x20] sm:$0xff] %v338_v39  ;;  %362 = vst [vmem:[%s589_s3 + $0x60] sm:$0xff] %v346_v40  ;;  %v339_v47 = vadd.f32 %v386_v16, %v232_v45  ;;  %v347_v48 = vadd.f32 %v386_v16, %v264_v46 }
 0x102   :  { %357 = vst [vmem:[%s589_s3 + $0x38] sm:$0xff] %v341_v43  ;;  %365 = vst [vmem:[%s589_s3 + $0x78] sm:$0xff] %v349_v44 }
 0x103   :  { %355 = vst [vmem:[%s589_s3 + $0x28] sm:$0xff] %v339_v47  ;;  %363 = vst [vmem:[%s589_s3 + $0x68] sm:$0xff] %v347_v48 }

// kernel: vss_layer_up_forward.13
= control target key start
LH: loop header
LB: loop body
LE: loop exit
PB: predicated region body
PF: predicated region fallthrough
CT: control target
= control target key end

     0   :  { %s1553_s12 = smov 0   ;;  %s1862_s0 = inlined_call_operand.vmem [shape: f32[2,10,10,16], index: 0, kind: input, shape index: {}]   ;;  %s1863_s1 = inlined_call_operand.vmem [shape: bf16[9,16,16], index: 1, kind: input, shape index: {}]   ;;  %s1864_s2 = inlined_call_operand.vmem [shape: f32[1,16], index: 2, kind: input, shape index: {}]   ;;  %s1865_s3 = inlined_call_operand.vmem [shape: f32[2,8,8,16], index: 3, kind: output, shape index: {}]  }
   0x1 LB: > { %s1249_s13 = sadd.s32 4294967295, %s1531_s12   ;;  %p1253_p0 = scmp.ge.s32.totalorder %s1531_s12, 1  ;;  %s1531_s12 = sphi %s1553_s12, %s13_s12  }
   0x2   : > { %p137_p1 = scmp.lt.s32.totalorder %s1531_s12, 3 }
   0x4   : > { %p138_p2 = pnand %p1253_p0, %p137_p1 }
   0x5   : > { %v1516_v0 = vld [vmem:[%s1863_s1 + $0x18] sm:$0xff] (!%p138_p2)   ;;  %p161_p3 = scmp.lt.s32.totalorder (!%p138_p2), %s1249_s13, 1  ;;  %v1567_v1 = vld [vmem:[%s1863_s1 + $0x20] sm:$0xff] (!%p138_p2)   ;;  %vm220_vm0 = vcmask (!%p138_p2), 1043456   ;;  %vm236_vm1 = vcmask (!%p138_p2), 130048   ;;  %vm499_vm2 = vcmask (!%p138_p2), 1046528  }
   0x6   : > { %141 = sbr.rel (%p138_p2) target bundleno = 323 (0x143), region = 32  ;;  %1351 = vmatprep.subr.bf16.mxu1 (!%p138_p2), %v1516_v0  ;;  %1391 = vmatprep.subr.bf16.mxu0 (!%p138_p2), %v1567_v1  ;;  %v1518_v2 = vld [vmem:[%s1863_s1] sm:$0xff] (!%p138_p2)   ;;  %v1580_v3 = vld [vmem:[%s1863_s1 + $0x38] sm:$0xff] (!%p138_p2)   ;;  %v1521_v25 = vld [vmem:[%s1863_s1 + $0x30] sm:$0xff] (!%p138_p2)   ;;  %vm823_vm3 = vcmask (!%p138_p2), 1045504  }
   0x7   : > { %1352 = vmatpush3.bf16.msra.mxu1 (!%p138_p2), %v1516_v0  ;;  %1392 = vmatpush3.bf16.msra.mxu0 (!%p138_p2), %v1567_v1  ;;  %v1520_v60 = vld [vmem:[%s1863_s1 + $0x10] sm:$0xff] (!%p138_p2)  }
   0x8   : > { %1361 = vmatprep.subr.bf16.mxu1 (!%p138_p2), %v1518_v2  ;;  %1401 = vmatprep.subr.bf16.mxu0 (!%p138_p2), %v1580_v3 }
   0xd   : > { %s1867_s13 = smov (!%p161_p3, %s1249_s13), 1 }
   0xe   : > { %s1507_s20 = smul.u32 160, %s1867_s13  ;;  %s1305_s11 = sshll.u32 %s1867_s13, 6 }
   0xf   : > { %s1841_s16 = scalar_lea.vmem %s1865_s3, %s1305_s11 }
  0x10   : > { %s1585_s25 = scalar_lea.vmem %s1862_s0, %s1507_s20 }
  0x11   : > { %v1589_v4 = vld [vmem:[%s1585_s25] sm:$0xff]  ;;  %v1592_v5 = vld [vmem:[%s1585_s25 + $0x10] sm:$0xff]  ;;  %v1617_v14 = vld [vmem:[%s1585_s25 + $0x8] sm:$0x3] }
  0x12   : > { %v1595_v6 = vld [vmem:[%s1585_s25 + $0x20] sm:$0xff]  ;;  %v1598_v7 = vld [vmem:[%s1585_s25 + $0x30] sm:$0xff]  ;;  %v1602_v8 = vpack.c.bf16 %v1592_v5, %v1589_v4  ;;  %v500_v12 = vrot.slane %v1589_v4, 1  ;;  %v503_v13 = vrot.slane %v1592_v5, 1  ;;  %v1627_v19 = vld [vmem:[%s1585_s25 + $0x18] sm:$0x3] }
  0x13   : > { %v1605_v9 = vld [vmem:[%s1585_s25 + $0x40] sm:$0xff]  ;;  %v1608_v10 = vld [vmem:[%s1585_s25 + $0x50] sm:$0xff]  ;;  %v1612_v11 = vpack.c.bf16 %v1598_v7, %v1595_v6  ;;  %v506_v16 = vrot.slane %v1595_v6, 1  ;;  %v509_v17 = vrot.slane %v1598_v7, 1  ;;  %v1631_v21 = vld [vmem:[%s1585_s25 + $0x28] sm:$0x3] }
  0x14   : > { %v221_v15 = vrot.slane %v1602_v8, 4  ;;  %v1624_v18 = vpack.c.bf16 %v1608_v10, %v1605_v9  ;;  %v501_v22 = vrot.slane %v1617_v14, 1  ;;  %v1635_v23 = vld [vmem:[%s1585_s25 + $0x60] sm:$0xff]  ;;  %v1638_v24 = vld [vmem:[%s1585_s25 + $0x70] sm:$0xff]  ;;  %v512_v27 = vrot.slane %v1605_v9, 1 }
  0x15   : > { %v222_v20 = vrot.slane %v1612_v11, 4  ;;  %v1646_v28 = vld [vmem:[%s1585_s25 + $0x38] sm:$0x3]  ;;  %v504_v29 = vrot.slane %v1627_v19, 1  ;;  %v507_v30 = vrot.slane %v1631_v21, 1  ;;  %v515_v32 = vrot.slane %v1608_v10, 1 }
  0x16   : > { %v224_v26 = vrot.slane %v1624_v18, 4  ;;  %v502_v33 = vsel %vm499_vm2, %v500_v12, %v501_v22  ;;  %v510_v34 = vrot.slane %v1646_v28, 1  ;;  %v1655_v35 = vld [vmem:[%s1585_s25 + $0x48] sm:$0x3]  ;;  %v1658_v36 = vld [vmem:[%s1585_s25 + $0x58] sm:$0x3]  ;;  %v1678_v46 = vpack.c.bf16 %v1638_v24, %v1635_v23 }
  0x17   : > { %v223_v31 = vsel %vm220_vm0, %v221_v15, %v222_v20  ;;  %v505_v38 = vsel %vm499_vm2, %v503_v13, %v504_v29  ;;  %v508_v39 = vsel %vm499_vm2, %v506_v16, %v507_v30  ;;  %v513_v40 = vrot.slane %v1655_v35, 1  ;;  %v1666_v41 = vld [vmem:[%s1585_s25 + $0x80] sm:$0xff]  ;;  %v1669_v42 = vld [vmem:[%s1585_s25 + $0x90] sm:$0xff]  ;;  %v1707_v62 = vld [vmem:[%s1585_s25 + $0x68] sm:$0x3] }
  0x18   : > { %1353 = vmatprep.mubr.msk.bf16.mxu1 %vm236_vm1, %v223_v31  ;;  %v225_v37 = vsel %vm220_vm0, %v222_v20, %v224_v26  ;;  %v511_v43 = vsel %vm499_vm2, %v509_v17, %v510_v34  ;;  %v1673_v44 = vpack.c.bf16 %v505_v38, %v502_v33  ;;  %v516_v45 = vrot.slane %v1658_v36, 1  ;;  %v1710_v63 = vld [vmem:[%s1585_s25 + $0x78] sm:$0x3] }
  0x19   : > { %1354 = vmatmul.mubr.msk.bf16.vlgmr.msra.gmra.mrb[0].mxu1 %vm236_vm1, %v225_v37  ;;  %v1680_v47 = vpack.c.bf16 %v511_v43, %v508_v39  ;;  %v514_v48 = vsel %vm499_vm2, %v512_v27, %v513_v40  ;;  %v1685_v49 = vpack.c.bf16 %v1669_v42, %v1666_v41  ;;  %v226_v52 = vrot.slane %v1678_v46, 4  ;;  %v1729_v17 = vld [vmem:[%s1585_s25 + $0x98] sm:$0x3] }
  0x1a   : > { %1362 = vmatpush3.bf16.msra.mxu1 %v1518_v2  ;;  %v641_v50 = vrot.slane %v1673_v44, 4  ;;  %v517_v51 = vsel %vm499_vm2, %v515_v32, %v516_v45  ;;  %v518_v0 = vrot.slane %v1635_v23, 1  ;;  %v519_v2 = vrot.slane %v1707_v62, 1 }
  0x1b   : > { %1371 = vmatprep.subr.bf16.mxu1 %v1521_v25  ;;  %v642_v53 = vrot.slane %v1680_v47, 4  ;;  %v1691_v54 = vpack.c.bf16 %v517_v51, %v514_v48  ;;  %v228_v55 = vrot.slane %v1685_v49, 4  ;;  %v227_v56 = vsel %vm220_vm0, %v224_v26, %v226_v52 }
  0x1c   : > { %1357 = vmatprep.mubr.msk.bf16.mxu1 %vm236_vm1, %v227_v56  ;;  %v521_v12 = vrot.slane %v1638_v24, 1  ;;  %v522_v13 = vrot.slane %v1710_v63, 1  ;;  %v520_v15 = vsel %vm499_vm2, %v518_v0, %v519_v2  ;;  %v524_v20 = vrot.slane %v1666_v41, 1 }
  0x1d   : > { %v643_v57 = vsel %vm220_vm0, %v641_v50, %v642_v53  ;;  %v644_v58 = vrot.slane %v1691_v54, 4  ;;  %v229_v59 = vsel %vm220_vm0, %v226_v52, %v228_v55  ;;  %v527_v27 = vrot.slane %v1669_v42, 1 }
  0x1e   : > { %1393 = vmatprep.mubr.msk.bf16.mxu0 %vm236_vm1, %v643_v57  ;;  %v523_v16 = vsel %vm499_vm2, %v521_v12, %v522_v13  ;;  %v528_v29 = vrot.slane %v1729_v17, 1  ;;  %v824_v30 = vrot.slane %v1589_v4, 2  ;;  %v827_v31 = vrot.slane %v1592_v5, 2 }
  0x1f   : > { %v645_v61 = vsel %vm220_vm0, %v642_v53, %v644_v58  ;;  %v1737_v22 = vpack.c.bf16 %v523_v16, %v520_v15  ;;  %v825_v32 = vrot.slane %v1617_v14, 2  ;;  %v828_v33 = vrot.slane %v1627_v19, 2  ;;  %v1524_v53 = vld [vmem:[%s1863_s1 + $0x40] sm:$0xff]  }
  0x20   : > { %1394 = vmatmul.mubr.msk.bf16.vlgmr.msra.gmra.mrb[0].mxu0 %vm236_vm1, %v645_v61  ;;  %v529_v5 = vsel %vm499_vm2, %v527_v27, %v528_v29  ;;  %v830_v34 = vrot.slane %v1595_v6, 2  ;;  %v833_v38 = vrot.slane %v1598_v7, 2  ;;  %v831_v39 = vrot.slane %v1631_v21, 2 }
  0x21   : > { %1358 = vmatmul.mubr.msk.bf16.gmra.mrb[4].mxu1 %vm236_vm1, %v229_v59  ;;  %1402 = vmatpush3.bf16.msra.mxu0 %v1580_v3  ;;  %v1726_v3 = vld [vmem:[%s1585_s25 + $0x88] sm:$0x3]  ;;  %v826_v14 = vsel %vm823_vm3, %v824_v30, %v825_v32  ;;  %v829_v19 = vsel %vm823_vm3, %v827_v31, %v828_v33  ;;  %v834_v40 = vrot.slane %v1646_v28, 2  ;;  %v836_v45 = vrot.slane %v1605_v9, 2 }
  0x22   : > { %1403 = vmatprep.mubr.msk.bf16.mxu0 %vm236_vm1, %v1680_v47  ;;  %1411 = vmatprep.subr.bf16.mxu0 %v1520_v60  ;;  %v525_v26 = vrot.slane %v1726_v3, 1  ;;  %v864_v43 = vpack.c.bf16 %v829_v19, %v826_v14  ;;  %v837_v48 = vrot.slane %v1655_v35, 2  ;;  %v839_v6 = vrot.slane %v1608_v10, 2 }
  0x23   : > { %1363 = vmatprep.mubr.msk.bf16.mxu1 %vm236_vm1, %v1602_v8  ;;  %v1523_v8 = vld [vmem:[%s1863_s1 + $0x8] sm:$0xff]   ;;  %v840_v50 = vrot.slane %v1658_v36, 2  ;;  %v832_v7 = vsel %vm823_vm3, %v830_v34, %v831_v39  ;;  %v835_v21 = vsel %vm823_vm3, %v833_v38, %v834_v40  ;;  %v842_v10 = vrot.slane %v1635_v23, 2 }
  0x24   : > { %v526_v4 = vsel %vm499_vm2, %v524_v20, %v525_v26  ;;  %v838_v28 = vsel %vm823_vm3, %v836_v45, %v837_v48  ;;  %v865_v9 = vpack.c.bf16 %v835_v21, %v832_v7  ;;  %v843_v36 = vrot.slane %v1707_v62, 2 }
  0x25   : > { %v1760_v37 = vpack.c.bf16 %v529_v5, %v526_v4  ;;  %v845_v51 = vrot.slane %v1638_v24, 2  ;;  %v846_v52 = vrot.slane %v1710_v63, 2  ;;  %v848_v56 = vrot.slane %v1666_v41, 2 }
  0x26   : > { %v966_v55 = vrot.slane %v865_v9, 4  ;;  %v851_v57 = vrot.slane %v1669_v42, 2  ;;  %v849_v59 = vrot.slane %v1726_v3, 2  ;;  %v646_v2 = vrot.slane %v1737_v22, 4 }
  0x27   : > { %v847_v23 = vsel %vm823_vm3, %v845_v51, %v846_v52  ;;  %v648_v13 = vrot.slane %v1760_v37, 4 }
  0x29   : > { %1364 = vmatmul.mubr.msk.bf16.vlgmr.msra.gmra.mrb[0].mxu1 %vm236_vm1, %v1612_v11  ;;  %v649_v15 = vsel %vm220_vm0, %v646_v2, %v648_v13 }
  0x2a   : > { %1372 = vmatpush3.bf16.msra.mxu1 %v1521_v25  ;;  %1367 = vmatprep.mubr.msk.bf16.mxu1 %vm236_vm1, %v1624_v18  ;;  %v1522_v25 = vld [vmem:[%s1863_s1 + $0x28] sm:$0xff]  }
  0x2b   : > { %1381 = vmatprep.subr.bf16.mxu1 %v1523_v8 }
  0x2c   : > { %1404 = vmatmul.mubr.msk.bf16.vlgmr.msra.gmra.mrb[0].mxu0 %vm236_vm1, %v1691_v54 }
  0x2d   : > { %1412 = vmatpush3.bf16.msra.mxu0 %v1520_v60  ;;  %1407 = vmatprep.mubr.msk.bf16.mxu0 %vm236_vm1, %v1737_v22  ;;  %v852_v60 = vrot.slane %v1729_v17, 2 }
  0x2e   : > { %1421 = vmatprep.subr.bf16.mxu0 %v1522_v25 }
  0x2f   : > { %v853_v41 = vsel %vm823_vm3, %v851_v57, %v852_v60 }
  0x31   : > { %1368 = vmatmul.mubr.msk.bf16.gmra.mrb[4].mxu1 %vm236_vm1, %v1678_v46 }
  0x32   : > { %1373 = vmatprep.mubr.msk.bf16.mxu1 %vm236_vm1, %v1612_v11  ;;  %v841_v11 = vsel %vm823_vm3, %v839_v6, %v840_v50 }
  0x33   : > { %v866_v35 = vpack.c.bf16 %v841_v11, %v838_v28 }
  0x34   : > { %1408 = vmatmul.mubr.msk.bf16.gmra.mrb[4].mxu0 %vm236_vm1, %v1760_v37 }
  0x35   : > { %1413 = vmatprep.mubr.msk.bf16.mxu0 %vm236_vm1, %v864_v43  ;;  %v968_v62 = vrot.slane %v866_v35, 4 }
  0x37   : > { %v969_v42 = vsel %vm220_vm0, %v966_v55, %v968_v62 }
  0x39   : > { %1374 = vmatmul.mubr.msk.bf16.vlgmr.msra.gmra.mrb[0].mxu1 %vm236_vm1, %v1624_v18  ;;  %v844_v18 = vsel %vm823_vm3, %v842_v10, %v843_v36 }
  0x3a   : > { %1382 = vmatpush3.bf16.msra.mxu1 %v1523_v8  ;;  %1377 = vmatprep.mubr.msk.bf16.mxu1 %vm236_vm1, %v1678_v46  ;;  %v965_v46 = vrot.slane %v864_v43, 4  ;;  %v867_v24 = vpack.c.bf16 %v847_v23, %v844_v18  ;;  %v1302_v8 = vld [vmem:[%s1864_s2] ss:$0 sm:$0xff] }
  0x3b   : > { %1441 = vmatprep.subr.bf16.mxu1 %v1567_v1 }
  0x3c   : > { %1414 = vmatmul.mubr.msk.bf16.vlgmr.msra.gmra.mrb[0].mxu0 %vm236_vm1, %v865_v9  ;;  %v967_v61 = vsel %vm220_vm0, %v965_v46, %v966_v55  ;;  %v970_v63 = vrot.slane %v867_v24, 4 }
  0x3d   : > { %1422 = vmatpush3.bf16.msra.mxu0 %v1522_v25  ;;  %1417 = vmatprep.mubr.msk.bf16.mxu0 %vm236_vm1, %v866_v35 }
  0x3e   : > { %1431 = vmatprep.subr.bf16.mxu0 %v1524_v53  ;;  %v971_v0 = vsel %vm220_vm0, %v968_v62, %v970_v63 }
  0x41   : > { %1378 = vmatmul.mubr.msk.bf16.gmra.mrb[4].mxu1 %vm236_vm1, %v1685_v49  ;;  %v850_v49 = vsel %vm823_vm3, %v848_v56, %v849_v59 }
  0x42   : > { %1383 = vmatprep.mubr.msk.bf16.mxu1 %vm236_vm1, %v1673_v44  ;;  %v868_v44 = vpack.c.bf16 %v853_v41, %v850_v49 }
  0x44   : > { %1418 = vmatmul.mubr.msk.bf16.gmra.mrb[4].mxu0 %vm236_vm1, %v867_v24  ;;  %v972_v12 = vrot.slane %v868_v44, 4 }
  0x45   : > { %1423 = vmatprep.mubr.msk.bf16.mxu0 %vm236_vm1, %v967_v61 }
  0x49   : > { %1384 = vmatmul.mubr.msk.bf16.vlgmr.msra.gmra.mrb[0].mxu1 %vm236_vm1, %v1680_v47  ;;  %v647_v47 = vsel %vm220_vm0, %v644_v58, %v646_v2 }
  0x4a   : > { %1442 = vmatpush3.bf16.msra.mxu1 %v1567_v1  ;;  %1387 = vmatprep.mubr.msk.bf16.mxu1 %vm236_vm1, %v1691_v54  ;;  %v973_v1 = vsel %vm220_vm0, %v970_v63, %v972_v12 }
  0x4c   : > { %1424 = vmatmul.mubr.msk.bf16.vlgmr.msra.gmra.mrb[0].mxu0 %vm236_vm1, %v969_v42 }
  0x4d   : > { %1432 = vmatpush3.bf16.msra.mxu0 %v1524_v53  ;;  %1427 = vmatprep.mubr.msk.bf16.mxu0 %vm236_vm1, %v971_v0 }
  0x51   : > { %1388 = vmatmul.mubr.msk.bf16.gmra.mrb[4].mxu1 %vm236_vm1, %v1737_v22 }
  0x52   : > { %1397 = vmatprep.mubr.msk.bf16.mxu1 %vm236_vm1, %v647_v47 }
  0x54   : > { %1428 = vmatmul.mubr.msk.bf16.gmra.mrb[4].mxu0 %vm236_vm1, %v973_v1 }
  0x55   : > { %1433 = vmatprep.mubr.msk.bf16.mxu0 %vm236_vm1, %v865_v9 }
  0x5c   : > { %1434 = vmatmul.mubr.msk.bf16.vlgmr.msra.gmra.mrb[0].mxu0 %vm236_vm1, %v866_v35 }
  0x5d   : > { %1398 = vmatmul.mubr.msk.bf16.vlgmr.msra.gmra.mrb[4].mxu1 %vm236_vm1, %v649_v15  ;;  %1437 = vmatprep.mubr.msk.bf16.mxu0 %vm236_vm1, %v867_v24 }
  0x64   : > { %1438 = vmatmul.mubr.msk.bf16.gmra.mrb[4].mxu0 %vm236_vm1, %v868_v44 }
 0x11c   : > { %v1385_v54 = vpop.f32.mrb[0].mxu1 }
 0x11d   : > { %v597_v58 = vpop.f32.mrb[1].mxu1 }
 0x11e   : > { %v1386_v16 = vpop.f32.mrb[2].mxu1 }
 0x11f   : > { %v600_v3 = vpop.f32.mrb[3].mxu1 }
 0x12f   : > { %v1435_v17 = vpop.f32.mrb[0].mxu0 }
 0x130   : > { %v1399_v20 = vpop.f32.mrb[4].mxu1  ;;  %v1443_v22 = vadd.f32 %v1435_v17, %v1385_v54  ;;  %v1108_v26 = vpop.f32.mrb[1].mxu0 }
 0x131   : > { %v718_v27 = vpop.f32.mrb[5].mxu1  ;;  %v1444_v29 = vadd.f32 %v1108_v26, %v597_v58  ;;  %v1436_v30 = vpop.f32.mrb[2].mxu0 }
 0x132   : > { %v1400_v31 = vpop.f32.mrb[6].mxu1  ;;  %v1156_v32 = vadd.f32 %v1443_v22, %v1302_v8  ;;  %v1445_v33 = vadd.f32 %v1436_v30, %v1386_v16  ;;  %v1111_v25 = vpop.f32.mrb[3].mxu0 }
 0x133   : > { %v721_v4 = vpop.f32.mrb[7].mxu1  ;;  %v1154_v5 = vadd.f32 %v1444_v29, %v1302_v8  ;;  %v1446_v14 = vadd.f32 %v1111_v25, %v600_v3 }
 0x134   : > { %vm1164_vm4 = vcmp.ge.f32.partialorder %v1156_v32, 0.0  ;;  %v1172_v19 = vmul.f32 0.01, %v1156_v32  ;;  %v1157_v34 = vadd.f32 %v1445_v33, %v1302_v8 }
 0x135   : > { %vm1162_vm5 = vcmp.ge.f32.partialorder %v1154_v5, 0.0  ;;  %v1170_v37 = vmul.f32 0.01, %v1154_v5  ;;  %v1155_v38 = vadd.f32 %v1446_v14, %v1302_v8 }
 0x136   : > { %v1180_v39 = vsel %vm1164_vm4, %v1156_v32, %v1172_v19  ;;  %vm1165_vm6 = vcmp.ge.f32.partialorder %v1157_v34, 0.0  ;;  %v1173_v40 = vmul.f32 0.01, %v1157_v34 }
 0x137   : > { %1188 = vst.msk [vmem:[%s1841_s16 + $0x10] sm:$0xff] %vm236_vm1, %v1180_v39  ;;  %v1178_v43 = vsel %vm1162_vm5, %v1154_v5, %v1170_v37  ;;  %vm1163_vm7 = vcmp.ge.f32.partialorder %v1155_v38, 0.0  ;;  %v1171_v45 = vmul.f32 0.01, %v1155_v38  ;;  %v1439_v48 = vpop.f32.mrb[4].mxu0 }
 0x138   : > { %1186 = vst.msk [vmem:[%s1841_s16] sm:$0xff] %vm236_vm1, %v1178_v43  ;;  %v1181_v6 = vsel %vm1165_vm6, %v1157_v34, %v1173_v40  ;;  %v1447_v50 = vadd.f32 %v1439_v48, %v1399_v20  ;;  %v1124_v7 = vpop.f32.mrb[5].mxu0 }
 0x139   : > { %1189 = vst.msk [vmem:[%s1841_s16 + $0x18] sm:$0xff] %vm236_vm1, %v1181_v6  ;;  %v1179_v21 = vsel %vm1163_vm7, %v1155_v38, %v1171_v45  ;;  %v1448_v28 = vadd.f32 %v1124_v7, %v718_v27  ;;  %v1440_v11 = vpop.f32.mrb[6].mxu0 }
 0x13a   : > { %1187 = vst.msk [vmem:[%s1841_s16 + $0x8] sm:$0xff] %vm236_vm1, %v1179_v21  ;;  %v1160_v9 = vadd.f32 %v1447_v50, %v1302_v8  ;;  %v1449_v10 = vadd.f32 %v1440_v11, %v1400_v31  ;;  %v1127_v35 = vpop.f32.mrb[7].mxu0 }
 0x13b   : > { %v1158_v36 = vadd.f32 %v1448_v28, %v1302_v8  ;;  %v1450_v51 = vadd.f32 %v1127_v35, %v721_v4 }
 0x13c   : > { %vm1168_vm8 = vcmp.ge.f32.partialorder %v1160_v9, 0.0  ;;  %v1176_v52 = vmul.f32 0.01, %v1160_v9  ;;  %v1161_v53 = vadd.f32 %v1449_v10, %v1302_v8 }
 0x13d   : > { %vm1166_vm9 = vcmp.ge.f32.partialorder %v1158_v36, 0.0  ;;  %v1174_v18 = vmul.f32 0.01, %v1158_v36  ;;  %v1159_v23 = vadd.f32 %v1450_v51, %v1302_v8 }
 0x13e   : > { %v1184_v46 = vsel %vm1168_vm8, %v1160_v9, %v1176_v52  ;;  %vm1169_vm10 = vcmp.ge.f32.partialorder %v1161_v53, 0.0  ;;  %v1177_v55 = vmul.f32 0.01, %v1161_v53 }
 0x13f   : > { %1192 = vst.msk [vmem:[%s1841_s16 + $0x30] sm:$0xff] %vm236_vm1, %v1184_v46  ;;  %v1182_v24 = vsel %vm1166_vm9, %v1158_v36, %v1174_v18  ;;  %vm1167_vm11 = vcmp.ge.f32.partialorder %v1159_v23, 0.0  ;;  %v1175_v56 = vmul.f32 0.01, %v1159_v23 }
 0x140   : > { %1190 = vst.msk [vmem:[%s1841_s16 + $0x20] sm:$0xff] %vm236_vm1, %v1182_v24  ;;  %v1185_v57 = vsel %vm1169_vm10, %v1161_v53, %v1177_v55 }
 0x141   : > { %1193 = vst.msk [vmem:[%s1841_s16 + $0x38] sm:$0xff] %vm236_vm1, %v1185_v57  ;;  %v1183_v59 = vsel %vm1167_vm11, %v1159_v23, %v1175_v56 }
 0x142   : > { %1191 = vst.msk [vmem:[%s1841_s16 + $0x28] sm:$0xff] %vm236_vm1, %v1183_v59 }
 0x143 PF: > { %s13_s12 = sadd.s32 1, %s1531_s12  }
 0x144   : > { %p10_p4 = scmp.ge.s32.totalorder %s13_s12, 4  }
 0x146   :  { %12 = sbr.rel (!%p10_p4) target bundleno = 1 (0x1), region = 62 }

// kernel: vss_layer_up_forward.9
= control target key start
LH: loop header
LB: loop body
LE: loop exit
PB: predicated region body
PF: predicated region fallthrough
CT: control target
= control target key end

     0   :  { %s1032_s18 = smov 0   ;;  %s1490_s0 = inlined_call_operand.vmem [shape: f32[2,10,10,32], index: 0, kind: input, shape index: {}]   ;;  %s1491_s1 = inlined_call_operand.vmem [shape: f32[9,32], index: 1, kind: input, shape index: {}]   ;;  %s1492_s2 = inlined_call_operand.vmem [shape: f32[1,32], index: 2, kind: input, shape index: {}]   ;;  %s1493_s3 = inlined_call_operand.vmem [shape: f32[1,32], index: 3, kind: input, shape index: {}]   ;;  %s1494_s4 = inlined_call_operand.vmem [shape: f32[1,32], index: 4, kind: input, shape index: {}]   ;;  %s1495_s5 = inlined_call_operand.vmem [shape: f32[2,8,8,32], index: 5, kind: output, shape index: {}]  }
   0x1 LB: > { %s930_s19 = sadd.s32 4294967295, %s1000_s18   ;;  %p934_p0 = scmp.ge.s32.totalorder %s1000_s18, 1  ;;  %s1000_s18 = sphi %s1032_s18, %s15_s18  }
   0x2   : > { %p187_p1 = scmp.lt.s32.totalorder %s1000_s18, 3 }
   0x4   : > { %p188_p2 = pnand %p934_p0, %p187_p1 }
   0x5   : > { %p215_p3 = scmp.lt.s32.totalorder (!%p188_p2), %s930_s19, 1  ;;  %v247_v0 = vlaneseq (!%p188_p2)  ;;  %v245_v2 = vld [vmem:[%s1491_s1] sm:$0xff] (!%p188_p2)  ;;  %vm343_vm0 = vcmask (!%p188_p2), 1046528   ;;  %vm572_vm1 = vcmask (!%p188_p2), 1045504   ;;  %v1099_v37 = vld [vmem:[%s1491_s1 + $0x8] ss:$0 sm:$0xff] (!%p188_p2) }
   0x6   : > { %191 = sbr.rel (%p188_p2) target bundleno = 153 (0x99), region = 40  ;;  %vm866_vm2 = vcmask (!%p188_p2), 261120  }
   0x7   : > { %v248_v1 = vshrl.u32 (!%p188_p2), %v247_v0, 7 }
   0x9   : > { %v249_v3 = vsub.s32 (!%p188_p2), 0, %v248_v1  ;;  %v269_v4 = vsub.s32 (!%p188_p2), 3, %v248_v1  ;;  %v289_v5 = vsub.s32 (!%p188_p2), 6, %v248_v1  ;;  %v309_v6 = vsub.s32 (!%p188_p2), 1, %v248_v1 }
   0xa   : > { %v386_v7 = vsub.s32 (!%p188_p2), 4, %v248_v1  ;;  %v462_v8 = vsub.s32 (!%p188_p2), 7, %v248_v1  ;;  %v538_v9 = vsub.s32 (!%p188_p2), 2, %v248_v1  ;;  %v615_v10 = vsub.s32 (!%p188_p2), 5, %v248_v1 }
   0xb   : > { %v1051_v11 = vrot.slane (!%p188_p2), %v245_v2, %v249_v3  ;;  %v1053_v12 = vrot.slane (!%p188_p2), %v245_v2, %v269_v4  ;;  %v1055_v13 = vrot.slane (!%p188_p2), %v245_v2, %v289_v5  ;;  %v1057_v14 = vrot.slane (!%p188_p2), %v245_v2, %v309_v6 }
   0xc   : > { %v1064_v18 = vrot.slane (!%p188_p2), %v245_v2, %v386_v7  ;;  %v1066_v19 = vrot.slane (!%p188_p2), %v245_v2, %v462_v8  ;;  %v1068_v20 = vrot.slane (!%p188_p2), %v245_v2, %v538_v9  ;;  %v1070_v21 = vrot.slane (!%p188_p2), %v245_v2, %v615_v10 }
   0xd   : > { %s1497_s19 = smov (!%p215_p3, %s930_s19), 1 }
   0xe   : > { %s953_s22 = smul.u32 160, %s1497_s19  ;;  %s952_s7 = sshll.u32 %s1497_s19, 6 }
   0xf   : > { %s1303_s12 = scalar_lea.vmem %s1495_s5, %s952_s7 }
  0x10   : > { %s1049_s25 = scalar_lea.vmem %s1490_s0, %s953_s22 }
  0x11   : > { %v225_v15 = vld [vmem:[%s1049_s25] sm:$0xff]  ;;  %v226_v16 = vld [vmem:[%s1049_s25 + $0x8] sm:$0x3]  ;;  %v1062_v17 = vld [vmem:[%s1049_s25 + $0x10] sm:$0xff] }
  0x12   : > { %v1073_v22 = vld [vmem:[%s1049_s25 + $0x18] sm:$0x3]  ;;  %v1076_v23 = vld [vmem:[%s1049_s25 + $0x20] sm:$0xff]  ;;  %v251_v24 = vmul.f32 %v1051_v11, %v225_v15  ;;  %v271_v25 = vmul.f32 %v1053_v12, %v1062_v17  ;;  %v311_v26 = vmul.f32 %v1057_v14, %v225_v15  ;;  %v312_v27 = vmul.f32 %v1057_v14, %v226_v16  ;;  %v1084_v28 = vld [vmem:[%s1049_s25 + $0x28] sm:$0x3] }
  0x13   : > { %v291_v29 = vmul.f32 %v1055_v13, %v1076_v23  ;;  %v388_v30 = vmul.f32 %v1064_v18, %v1062_v17  ;;  %v389_v31 = vmul.f32 %v1064_v18, %v1073_v22  ;;  %v464_v32 = vmul.f32 %v1066_v19, %v1076_v23  ;;  %v1118_v61 = vld [vmem:[%s1049_s25 + $0x30] sm:$0xff] }
  0x14   : > { %v279_v33 = vadd.f32 %v271_v25, %v251_v24  ;;  %v344_v34 = vrot.slane %v311_v26, 1  ;;  %v345_v35 = vrot.slane %v312_v27, 1  ;;  %v465_v36 = vmul.f32 %v1066_v19, %v1084_v28 }
  0x15   : > { %v420_v38 = vrot.slane %v388_v30, 1  ;;  %v421_v39 = vrot.slane %v389_v31, 1  ;;  %v496_v40 = vrot.slane %v464_v32, 1  ;;  %v540_v41 = vmul.f32 %v1068_v20, %v225_v15 }
  0x16   : > { %v299_v42 = vadd.f32 %v291_v29, %v279_v33  ;;  %v346_v43 = vsel %vm343_vm0, %v344_v34, %v345_v35  ;;  %v497_v44 = vrot.slane %v465_v36, 1  ;;  %v541_v45 = vmul.f32 %v1068_v20, %v226_v16  ;;  %v1137_v16 = vld [vmem:[%s1049_s25 + $0x38] sm:$0x3]  ;;  %v1151_v36 = vld [vmem:[%s1492_s2] ss:$0 sm:$0xff] }
  0x17   : > { %v422_v46 = vsel %vm343_vm0, %v420_v38, %v421_v39  ;;  %v573_v47 = vrot.slane %v540_v41, 2  ;;  %v617_v48 = vmul.f32 %v1070_v21, %v1062_v17  ;;  %v618_v49 = vmul.f32 %v1070_v21, %v1073_v22 }
  0x18   : > { %v376_v50 = vadd.f32 %v346_v43, %v299_v42  ;;  %v498_v51 = vsel %vm343_vm0, %v496_v40, %v497_v44  ;;  %v574_v52 = vrot.slane %v541_v45, 2  ;;  %v693_v53 = vmul.f32 %v1099_v37, %v1076_v23 }
  0x19   : > { %v649_v54 = vrot.slane %v617_v48, 2  ;;  %v650_v55 = vrot.slane %v618_v49, 2  ;;  %v694_v56 = vmul.f32 %v1099_v37, %v1084_v28  ;;  %v252_v57 = vmul.f32 %v1051_v11, %v1062_v17 }
  0x1a   : > { %v452_v58 = vadd.f32 %v422_v46, %v376_v50  ;;  %v575_v59 = vsel %vm572_vm1, %v573_v47, %v574_v52  ;;  %v725_v60 = vrot.slane %v693_v53, 2  ;;  %v272_v62 = vmul.f32 %v1053_v12, %v1076_v23 }
  0x1b   : > { %v651_v63 = vsel %vm572_vm1, %v649_v54, %v650_v55  ;;  %v726_v0 = vrot.slane %v694_v56, 2  ;;  %v292_v1 = vmul.f32 %v1055_v13, %v1118_v61  ;;  %v313_v2 = vmul.f32 %v1057_v14, %v1062_v17  ;;  %v1168_v55 = vld [vmem:[%s1049_s25 + $0x40] sm:$0xff] }
  0x1c   : > { %v528_v3 = vadd.f32 %v498_v51, %v452_v58  ;;  %v280_v4 = vadd.f32 %v272_v62, %v252_v57  ;;  %v314_v5 = vmul.f32 %v1057_v14, %v1073_v22  ;;  %v390_v6 = vmul.f32 %v1064_v18, %v1076_v23 }
  0x1d   : > { %v727_v7 = vsel %vm572_vm1, %v725_v60, %v726_v0  ;;  %v347_v8 = vrot.slane %v313_v2, 1  ;;  %v391_v9 = vmul.f32 %v1064_v18, %v1084_v28  ;;  %v466_v10 = vmul.f32 %v1066_v19, %v1118_v61 }
  0x1e   : > { %v605_v15 = vadd.f32 %v575_v59, %v528_v3  ;;  %v300_v24 = vadd.f32 %v292_v1, %v280_v4  ;;  %v348_v25 = vrot.slane %v314_v5, 1  ;;  %v423_v26 = vrot.slane %v390_v6, 1  ;;  %v1186_v6 = vld [vmem:[%s1049_s25 + $0x48] sm:$0x3] }
  0x1f   : > { %v424_v27 = vrot.slane %v391_v9, 1  ;;  %v467_v29 = vmul.f32 %v1066_v19, %v1137_v16  ;;  %v499_v30 = vrot.slane %v466_v10, 1  ;;  %v542_v31 = vmul.f32 %v1068_v20, %v1062_v17 }
  0x20   : > { %v681_v32 = vadd.f32 %v651_v63, %v605_v15  ;;  %v349_v33 = vsel %vm343_vm0, %v347_v8, %v348_v25  ;;  %v543_v34 = vmul.f32 %v1068_v20, %v1073_v22  ;;  %v619_v35 = vmul.f32 %v1070_v21, %v1076_v23 }
  0x21   : > { %v377_v38 = vadd.f32 %v349_v33, %v300_v24  ;;  %v425_v39 = vsel %vm343_vm0, %v423_v26, %v424_v27  ;;  %v500_v40 = vrot.slane %v467_v29, 1  ;;  %v576_v41 = vrot.slane %v542_v31, 2 }
  0x22   : > { %v757_v17 = vadd.f32 %v727_v7, %v681_v32  ;;  %v577_v42 = vrot.slane %v543_v34, 2  ;;  %v620_v43 = vmul.f32 %v1070_v21, %v1084_v28  ;;  %v652_v22 = vrot.slane %v619_v35, 2 }
  0x23   : > { %v453_v44 = vadd.f32 %v425_v39, %v377_v38  ;;  %v501_v45 = vsel %vm343_vm0, %v499_v30, %v500_v40  ;;  %v695_v46 = vmul.f32 %v1099_v37, %v1118_v61  ;;  %v696_v47 = vmul.f32 %v1099_v37, %v1137_v16 }
  0x24   : > { %v1162_v48 = vadd.f32 %v1151_v36, %v757_v17  ;;  %v578_v49 = vsel %vm572_vm1, %v576_v41, %v577_v42  ;;  %v653_v50 = vrot.slane %v620_v43, 2  ;;  %v253_v51 = vmul.f32 %v1051_v11, %v1076_v23 }
  0x25   : > { %v529_v52 = vadd.f32 %v501_v45, %v453_v44  ;;  %v728_v53 = vrot.slane %v695_v46, 2  ;;  %v729_v54 = vrot.slane %v696_v47, 2  ;;  %v273_v56 = vmul.f32 %v1053_v12, %v1118_v61 }
  0x26   : > { %v940_v57 = vmul.f32 -1.442695, %v1162_v48  ;;  %v654_v58 = vsel %vm572_vm1, %v652_v22, %v653_v50  ;;  %v293_v59 = vmul.f32 %v1055_v13, %v1168_v55  ;;  %v315_v60 = vmul.f32 %v1057_v14, %v1076_v23 }
  0x27   : > { %v606_v62 = vadd.f32 %v578_v49, %v529_v52  ;;  %v730_v63 = vsel %vm572_vm1, %v728_v53, %v729_v54  ;;  %v281_v0 = vadd.f32 %v273_v56, %v253_v51  ;;  %v316_v1 = vmul.f32 %v1057_v14, %v1084_v28  ;;  %v1213_v49 = vld [vmem:[%s1049_s25 + $0x50] sm:$0xff] }
  0x28   : > { %962 = vpow2.f32 %v940_v57  ;;  %v350_v2 = vrot.slane %v315_v60, 1  ;;  %v392_v3 = vmul.f32 %v1064_v18, %v1118_v61  ;;  %v393_v4 = vmul.f32 %v1064_v18, %v1137_v16 }
  0x29   : > { %v682_v5 = vadd.f32 %v654_v58, %v606_v62  ;;  %v301_v7 = vadd.f32 %v293_v59, %v281_v0  ;;  %v351_v8 = vrot.slane %v316_v1, 1  ;;  %v468_v9 = vmul.f32 %v1066_v19, %v1168_v55 }
  0x2a   : > { %v426_v10 = vrot.slane %v392_v3, 1  ;;  %v427_v15 = vrot.slane %v393_v4, 1  ;;  %v469_v24 = vmul.f32 %v1066_v19, %v1186_v6  ;;  %v544_v25 = vmul.f32 %v1068_v20, %v1076_v23 }
  0x2b   : > { %v758_v26 = vadd.f32 %v730_v63, %v682_v5  ;;  %v352_v27 = vsel %vm343_vm0, %v350_v2, %v351_v8  ;;  %v502_v29 = vrot.slane %v468_v9, 1  ;;  %v545_v30 = vmul.f32 %v1068_v20, %v1084_v28  ;;  %v1234_v5 = vld [vmem:[%s1049_s25 + $0x58] sm:$0x3] }
  0x2c   : > { %v378_v31 = vadd.f32 %v352_v27, %v301_v7  ;;  %v428_v32 = vsel %vm343_vm0, %v426_v10, %v427_v15  ;;  %v503_v33 = vrot.slane %v469_v24, 1  ;;  %v579_v34 = vrot.slane %v544_v25, 2 }
  0x2d   : > { %v1199_v35 = vadd.f32 %v1151_v36, %v758_v26  ;;  %v580_v38 = vrot.slane %v545_v30, 2  ;;  %v621_v23 = vmul.f32 %v1070_v21, %v1118_v61  ;;  %v622_v39 = vmul.f32 %v1070_v21, %v1137_v16 }
  0x2e   : > { %v454_v40 = vadd.f32 %v428_v32, %v378_v31  ;;  %v504_v41 = vsel %vm343_vm0, %v502_v29, %v503_v33  ;;  %v697_v28 = vmul.f32 %v1099_v37, %v1168_v55  ;;  %v698_v17 = vmul.f32 %v1099_v37, %v1186_v6 }
  0x2f   : > { %v941_v42 = vmul.f32 -1.442695, %v1199_v35  ;;  %v581_v43 = vsel %vm572_vm1, %v579_v34, %v580_v38  ;;  %v655_v22 = vrot.slane %v621_v23, 2  ;;  %v656_v44 = vrot.slane %v622_v39, 2 }
  0x30   : > { %v530_v45 = vadd.f32 %v504_v41, %v454_v40  ;;  %v731_v46 = vrot.slane %v697_v28, 2  ;;  %v732_v47 = vrot.slane %v698_v17, 2  ;;  %v254_v50 = vmul.f32 %v1051_v11, %v1118_v61 }
  0x31   : > { %964 = vpow2.f32 %v941_v42  ;;  %v657_v51 = vsel %vm572_vm1, %v655_v22, %v656_v44  ;;  %v274_v52 = vmul.f32 %v1053_v12, %v1168_v55  ;;  %v294_v53 = vmul.f32 %v1055_v13, %v1213_v49 }
  0x32   : > { %v963_v54 = vpop.eup %962  ;;  %v607_v56 = vadd.f32 %v581_v43, %v530_v45  ;;  %v733_v57 = vsel %vm572_vm1, %v731_v46, %v732_v47  ;;  %v317_v58 = vmul.f32 %v1057_v14, %v1118_v61  ;;  %v318_v59 = vmul.f32 %v1057_v14, %v1137_v16  ;;  %v1260_v47 = vld [vmem:[%s1049_s25 + $0x60] sm:$0xff] }
  0x33   : > { %v804_v60 = vadd.f32 1.0, %v963_v54  ;;  %v282_v62 = vadd.f32 %v274_v52, %v254_v50  ;;  %v394_v63 = vmul.f32 %v1064_v18, %v1168_v55  ;;  %v395_v0 = vmul.f32 %v1064_v18, %v1186_v6 }
  0x34   : > { %v683_v1 = vadd.f32 %v657_v51, %v607_v56  ;;  %v353_v2 = vrot.slane %v317_v58, 1  ;;  %v354_v3 = vrot.slane %v318_v59, 1  ;;  %v470_v4 = vmul.f32 %v1066_v19, %v1213_v49 }
  0x35   : > { %966 = vrcp.f32 %v804_v60  ;;  %v302_v7 = vadd.f32 %v294_v53, %v282_v62  ;;  %v429_v8 = vrot.slane %v394_v63, 1  ;;  %v430_v9 = vrot.slane %v395_v0, 1  ;;  %v1277_v60 = vld [vmem:[%s1493_s3] ss:$0 sm:$0xff] }
  0x36   : > { %v759_v10 = vadd.f32 %v733_v57, %v683_v1  ;;  %v355_v15 = vsel %vm343_vm0, %v353_v2, %v354_v3  ;;  %v471_v24 = vmul.f32 %v1066_v19, %v1234_v5  ;;  %v505_v25 = vrot.slane %v470_v4, 1 }
  0x37   : > { %v379_v26 = vadd.f32 %v355_v15, %v302_v7  ;;  %v431_v27 = vsel %vm343_vm0, %v429_v8, %v430_v9  ;;  %v546_v29 = vmul.f32 %v1068_v20, %v1118_v61  ;;  %v547_v30 = vmul.f32 %v1068_v20, %v1137_v16  ;;  %v1287_v8 = vld [vmem:[%s1494_s4] ss:$0 sm:$0xff] }
  0x38   : > { %v1245_v31 = vadd.f32 %v1151_v36, %v759_v10  ;;  %v506_v32 = vrot.slane %v471_v24, 1  ;;  %v623_v33 = vmul.f32 %v1070_v21, %v1168_v55  ;;  %v624_v34 = vmul.f32 %v1070_v21, %v1186_v6  ;;  %v1290_v10 = vld [vmem:[%s1049_s25 + $0x68] sm:$0x3] }
  0x39   : > { %v455_v38 = vadd.f32 %v431_v27, %v379_v26  ;;  %v582_v23 = vrot.slane %v546_v29, 2  ;;  %v583_v39 = vrot.slane %v547_v30, 2  ;;  %v699_v61 = vmul.f32 %v1099_v37, %v1213_v49 }
  0x3a   : > { %v942_v40 = vmul.f32 -1.442695, %v1245_v31  ;;  %v507_v16 = vsel %vm343_vm0, %v505_v25, %v506_v32  ;;  %v658_v41 = vrot.slane %v623_v33, 2  ;;  %v659_v28 = vrot.slane %v624_v34, 2 }
  0x3b   : > { %v965_v17 = vpop.eup %964  ;;  %v531_v42 = vadd.f32 %v507_v16, %v455_v38  ;;  %v584_v43 = vsel %vm572_vm1, %v582_v23, %v583_v39  ;;  %v700_v22 = vmul.f32 %v1099_v37, %v1234_v5  ;;  %v734_v44 = vrot.slane %v699_v61, 2 }
  0x3c   : > { %v805_v45 = vadd.f32 1.0, %v965_v17  ;;  %968 = vpow2.f32 %v942_v40  ;;  %v660_v46 = vsel %vm572_vm1, %v658_v41, %v659_v28  ;;  %v255_v50 = vmul.f32 %v1051_v11, %v1168_v55 }
  0x3d   : > { %v608_v51 = vadd.f32 %v584_v43, %v531_v42  ;;  %v735_v52 = vrot.slane %v700_v22, 2  ;;  %v275_v53 = vmul.f32 %v1053_v12, %v1213_v49  ;;  %v295_v54 = vmul.f32 %v1055_v13, %v1260_v47 }
  0x3e   : > { %970 = vrcp.f32 %v805_v45  ;;  %v319_v56 = vmul.f32 %v1057_v14, %v1168_v55  ;;  %v320_v57 = vmul.f32 %v1057_v14, %v1186_v6  ;;  %v396_v58 = vmul.f32 %v1064_v18, %v1213_v49 }
  0x3f   : > { %v967_v59 = vpop.eup %966  ;;  %v684_v62 = vadd.f32 %v660_v46, %v608_v51  ;;  %v736_v63 = vsel %vm572_vm1, %v734_v44, %v735_v52  ;;  %v283_v0 = vadd.f32 %v275_v53, %v255_v50  ;;  %v397_v1 = vmul.f32 %v1064_v18, %v1234_v5 }
  0x40   : > { %v828_v2 = vmul.f32 %v967_v59, %v1162_v48  ;;  %v356_v3 = vrot.slane %v319_v56, 1  ;;  %v357_v4 = vrot.slane %v320_v57, 1  ;;  %v432_v7 = vrot.slane %v396_v58, 1  ;;  %v1327_v57 = vld [vmem:[%s1049_s25 + $0x70] sm:$0xff] }
  0x41   : > { %v760_v9 = vadd.f32 %v736_v63, %v684_v62  ;;  %v303_v15 = vadd.f32 %v295_v54, %v283_v0  ;;  %v433_v24 = vrot.slane %v397_v1, 1  ;;  %v472_v25 = vmul.f32 %v1066_v19, %v1260_v47 }
  0x42   : > { %v843_v26 = vmul.f32 %v1277_v60, %v828_v2  ;;  %v358_v48 = vsel %vm343_vm0, %v356_v3, %v357_v4  ;;  %v473_v27 = vmul.f32 %v1066_v19, %v1290_v10  ;;  %v548_v29 = vmul.f32 %v1068_v20, %v1168_v55 }
  0x43   : > { %v1306_v30 = vadd.f32 %v1151_v36, %v760_v9  ;;  %v380_v32 = vadd.f32 %v358_v48, %v303_v15  ;;  %v434_v33 = vsel %vm343_vm0, %v432_v7, %v433_v24  ;;  %v508_v34 = vrot.slane %v472_v25, 1 }
  0x44   : > { %v858_v38 = vadd.f32 %v1287_v8, %v843_v26  ;;  %v509_v23 = vrot.slane %v473_v27, 1  ;;  %v549_v39 = vmul.f32 %v1068_v20, %v1186_v6  ;;  %v585_v55 = vrot.slane %v548_v29, 2  ;;  %v1350_v26 = vld [vmem:[%s1049_s25 + $0x78] sm:$0x3] }
  0x45   : > { %v943_v61 = vmul.f32 -1.442695, %v1306_v30  ;;  %v456_v40 = vadd.f32 %v434_v33, %v380_v32  ;;  %v625_v16 = vmul.f32 %v1070_v21, %v1213_v49  ;;  %v626_v41 = vmul.f32 %v1070_v21, %v1234_v5 }
  0x46   : > { %v969_v28 = vpop.eup %968  ;;  %867 = vst.msk [vmem:[%s1303_s12] sm:$0xff] %vm866_vm2, %v858_v38  ;;  %v510_v17 = vsel %vm343_vm0, %v508_v34, %v509_v23  ;;  %v586_v42 = vrot.slane %v549_v39, 2  ;;  %v701_v6 = vmul.f32 %v1099_v37, %v1260_v47  ;;  %v702_v43 = vmul.f32 %v1099_v37, %v1290_v10 }
  0x47   : > { %v806_v22 = vadd.f32 1.0, %v969_v28  ;;  %972 = vpow2.f32 %v943_v61  ;;  %v532_v44 = vadd.f32 %v510_v17, %v456_v40  ;;  %v661_v45 = vrot.slane %v625_v16, 2 }
  0x48   : > { %v971_v46 = vpop.eup %970  ;;  %v587_v50 = vsel %vm572_vm1, %v585_v55, %v586_v42  ;;  %v662_v51 = vrot.slane %v626_v41, 2  ;;  %v737_v52 = vrot.slane %v701_v6, 2  ;;  %v738_v53 = vrot.slane %v702_v43, 2 }
  0x49   : > { %v829_v54 = vmul.f32 %v971_v46, %v1199_v35  ;;  %974 = vrcp.f32 %v806_v22  ;;  %v609_v56 = vadd.f32 %v587_v50, %v532_v44  ;;  %v256_v58 = vmul.f32 %v1051_v11, %v1213_v49 }
  0x4a   : > { %v663_v59 = vsel %vm572_vm1, %v661_v45, %v662_v51  ;;  %v739_v62 = vsel %vm572_vm1, %v737_v52, %v738_v53  ;;  %v276_v63 = vmul.f32 %v1053_v12, %v1260_v47  ;;  %v296_v0 = vmul.f32 %v1055_v13, %v1327_v57 }
  0x4b   : > { %v844_v35 = vmul.f32 %v1277_v60, %v829_v54  ;;  %v685_v1 = vadd.f32 %v663_v59, %v609_v56  ;;  %v321_v2 = vmul.f32 %v1057_v14, %v1213_v49  ;;  %v322_v3 = vmul.f32 %v1057_v14, %v1234_v5 }
  0x4c   : > { %v284_v4 = vadd.f32 %v276_v63, %v256_v58  ;;  %v398_v7 = vmul.f32 %v1064_v18, %v1260_v47  ;;  %v399_v9 = vmul.f32 %v1064_v18, %v1290_v10  ;;  %v474_v15 = vmul.f32 %v1066_v19, %v1327_v57 }
  0x4d   : > { %v859_v24 = vadd.f32 %v1287_v8, %v844_v35  ;;  %v761_v25 = vadd.f32 %v739_v62, %v685_v1  ;;  %v359_v48 = vrot.slane %v321_v2, 1  ;;  %v360_v27 = vrot.slane %v322_v3, 1  ;;  %v1379_v62 = vld [vmem:[%s1049_s25 + $0x80] sm:$0xff] }
  0x4e   : > { %v304_v29 = vadd.f32 %v296_v0, %v284_v4  ;;  %v435_v32 = vrot.slane %v398_v7, 1  ;;  %v436_v33 = vrot.slane %v399_v9, 1  ;;  %v475_v34 = vmul.f32 %v1066_v19, %v1350_v26 }
  0x4f   : > { %868 = vst.msk [vmem:[%s1303_s12 + $0x8] sm:$0xff] %vm866_vm2, %v859_v24  ;;  %v1357_v38 = vadd.f32 %v1151_v36, %v761_v25  ;;  %v361_v23 = vsel %vm343_vm0, %v359_v48, %v360_v27  ;;  %v511_v39 = vrot.slane %v474_v15, 1  ;;  %v550_v55 = vmul.f32 %v1068_v20, %v1213_v49 }
  0x50   : > { %v381_v61 = vadd.f32 %v361_v23, %v304_v29  ;;  %v437_v40 = vsel %vm343_vm0, %v435_v32, %v436_v33  ;;  %v512_v16 = vrot.slane %v475_v34, 1  ;;  %v551_v41 = vmul.f32 %v1068_v20, %v1234_v5  ;;  %v1401_v34 = vld [vmem:[%s1049_s25 + $0x88] sm:$0x3] }
  0x51   : > { %v973_v28 = vpop.eup %972  ;;  %v944_v17 = vmul.f32 -1.442695, %v1357_v38  ;;  %v588_v42 = vrot.slane %v550_v55, 2  ;;  %v627_v6 = vmul.f32 %v1070_v21, %v1260_v47  ;;  %v628_v43 = vmul.f32 %v1070_v21, %v1290_v10 }
  0x52   : > { %v807_v22 = vadd.f32 1.0, %v973_v28  ;;  %v457_v49 = vadd.f32 %v437_v40, %v381_v61  ;;  %v513_v44 = vsel %vm343_vm0, %v511_v39, %v512_v16  ;;  %v589_v45 = vrot.slane %v551_v41, 2 }
  0x53   : > { %v975_v46 = vpop.eup %974  ;;  %976 = vpow2.f32 %v944_v17  ;;  %v664_v50 = vrot.slane %v627_v6, 2  ;;  %v665_v5 = vrot.slane %v628_v43, 2  ;;  %v703_v51 = vmul.f32 %v1099_v37, %v1327_v57 }
  0x54   : > { %v830_v52 = vmul.f32 %v975_v46, %v1245_v31  ;;  %978 = vrcp.f32 %v807_v22  ;;  %v533_v53 = vadd.f32 %v513_v44, %v457_v49  ;;  %v590_v54 = vsel %vm572_vm1, %v588_v42, %v589_v45 }
  0x55   : > { %v666_v56 = vsel %vm572_vm1, %v664_v50, %v665_v5  ;;  %v704_v58 = vmul.f32 %v1099_v37, %v1350_v26  ;;  %v740_v59 = vrot.slane %v703_v51, 2  ;;  %v257_v63 = vmul.f32 %v1051_v11, %v1260_v47 }
  0x56   : > { %v845_v0 = vmul.f32 %v1277_v60, %v830_v52  ;;  %v610_v35 = vadd.f32 %v590_v54, %v533_v53  ;;  %v277_v31 = vmul.f32 %v1053_v12, %v1327_v57  ;;  %v297_v1 = vmul.f32 %v1055_v13, %v1379_v62 }
  0x57   : > { %v741_v2 = vrot.slane %v704_v58, 2  ;;  %v323_v3 = vmul.f32 %v1057_v14, %v1260_v47  ;;  %v324_v4 = vmul.f32 %v1057_v14, %v1290_v10  ;;  %v400_v7 = vmul.f32 %v1064_v18, %v1327_v57 }
  0x58   : > { %v860_v9 = vadd.f32 %v1287_v8, %v845_v0  ;;  %v686_v15 = vadd.f32 %v666_v56, %v610_v35  ;;  %v285_v24 = vadd.f32 %v277_v31, %v257_v63  ;;  %v401_v25 = vmul.f32 %v1064_v18, %v1350_v26  ;;  %v243_v63 = vld [vmem:[%s1049_s25 + $0x90] sm:$0xff] }
  0x59   : > { %v742_v48 = vsel %vm572_vm1, %v740_v59, %v741_v2  ;;  %v362_v27 = vrot.slane %v323_v3, 1  ;;  %v363_v29 = vrot.slane %v324_v4, 1  ;;  %v438_v32 = vrot.slane %v400_v7, 1 }
  0x5a   : > { %869 = vst.msk [vmem:[%s1303_s12 + $0x10] sm:$0xff] %vm866_vm2, %v860_v9  ;;  %v762_v33 = vadd.f32 %v742_v48, %v686_v15  ;;  %v305_v23 = vadd.f32 %v297_v1, %v285_v24  ;;  %v439_v39 = vrot.slane %v401_v25, 1  ;;  %v476_v55 = vmul.f32 %v1066_v19, %v1379_v62  ;;  %v244_v25 = vld [vmem:[%s1049_s25 + $0x98] sm:$0x3] }
  0x5b   : > { %v364_v61 = vsel %vm343_vm0, %v362_v27, %v363_v29  ;;  %v477_v40 = vmul.f32 %v1066_v19, %v1401_v34  ;;  %v552_v16 = vmul.f32 %v1068_v20, %v1260_v47  ;;  %v553_v41 = vmul.f32 %v1068_v20, %v1290_v10 }
  0x5c   : > { %v1413_v28 = vadd.f32 %v1151_v36, %v762_v33  ;;  %v382_v17 = vadd.f32 %v364_v61, %v305_v23  ;;  %v440_v42 = vsel %vm343_vm0, %v438_v32, %v439_v39  ;;  %v514_v6 = vrot.slane %v476_v55, 1 }
  0x5d   : > { %v977_v43 = vpop.eup %976  ;;  %v515_v22 = vrot.slane %v477_v40, 1  ;;  %v591_v49 = vrot.slane %v552_v16, 2  ;;  %v592_v44 = vrot.slane %v553_v41, 2  ;;  %v629_v45 = vmul.f32 %v1070_v21, %v1327_v57 }
  0x5e   : > { %v979_v46 = vpop.eup %978  ;;  %v808_v47 = vadd.f32 1.0, %v977_v43  ;;  %v945_v50 = vmul.f32 -1.442695, %v1413_v28  ;;  %v458_v10 = vadd.f32 %v440_v42, %v382_v17  ;;  %v630_v5 = vmul.f32 %v1070_v21, %v1350_v26 }
  0x5f   : > { %v831_v51 = vmul.f32 %v979_v46, %v1306_v30  ;;  %v516_v52 = vsel %vm343_vm0, %v514_v6, %v515_v22  ;;  %v593_v53 = vsel %vm572_vm1, %v591_v49, %v592_v44  ;;  %v667_v54 = vrot.slane %v629_v45, 2 }
  0x60   : > { %980 = vrcp.f32 %v808_v47  ;;  %v534_v56 = vadd.f32 %v516_v52, %v458_v10  ;;  %v668_v58 = vrot.slane %v630_v5, 2  ;;  %v705_v59 = vmul.f32 %v1099_v37, %v1379_v62 }
  0x61   : > { %v846_v0 = vmul.f32 %v1277_v60, %v831_v51  ;;  %982 = vpow2.f32 %v945_v50  ;;  %v706_v30 = vmul.f32 %v1099_v37, %v1401_v34  ;;  %v258_v35 = vmul.f32 %v1051_v11, %v1327_v57 }
  0x62   : > { %v611_v31 = vadd.f32 %v593_v53, %v534_v56  ;;  %v669_v1 = vsel %vm572_vm1, %v667_v54, %v668_v58  ;;  %v743_v2 = vrot.slane %v705_v59, 2  ;;  %v278_v3 = vmul.f32 %v1053_v12, %v1379_v62 }
  0x63   : > { %v861_v4 = vadd.f32 %v1287_v8, %v846_v0  ;;  %v744_v7 = vrot.slane %v706_v30, 2  ;;  %v298_v9 = vmul.f32 %v1055_v13, %v243_v63  ;;  %v325_v15 = vmul.f32 %v1057_v14, %v1327_v57 }
  0x64   : > { %v687_v24 = vadd.f32 %v669_v1, %v611_v31  ;;  %v286_v48 = vadd.f32 %v278_v3, %v258_v35  ;;  %v326_v11 = vmul.f32 %v1057_v14, %v1350_v26  ;;  %v402_v27 = vmul.f32 %v1064_v18, %v1379_v62 }
  0x65   : > { %870 = vst.msk [vmem:[%s1303_s12 + $0x18] sm:$0xff] %vm866_vm2, %v861_v4  ;;  %v745_v12 = vsel %vm572_vm1, %v743_v2, %v744_v7  ;;  %v365_v29 = vrot.slane %v325_v15, 1  ;;  %v403_v13 = vmul.f32 %v1064_v18, %v1401_v34  ;;  %v478_v32 = vmul.f32 %v1066_v19, %v243_v63 }
  0x66   : > { %v763_v33 = vadd.f32 %v745_v12, %v687_v24  ;;  %v306_v23 = vadd.f32 %v298_v9, %v286_v48  ;;  %v366_v39 = vrot.slane %v326_v11, 1  ;;  %v441_v55 = vrot.slane %v402_v27, 1 }
  0x67   : > { %v442_v61 = vrot.slane %v403_v13, 1  ;;  %v479_v14 = vmul.f32 %v1066_v19, %v244_v25  ;;  %v517_v40 = vrot.slane %v478_v32, 1  ;;  %v554_v16 = vmul.f32 %v1068_v20, %v1327_v57 }
  0x68   : > { %v778_v41 = vadd.f32 %v1151_v36, %v763_v33  ;;  %v367_v17 = vsel %vm343_vm0, %v365_v29, %v366_v39  ;;  %v555_v18 = vmul.f32 %v1068_v20, %v1350_v26  ;;  %v631_v42 = vmul.f32 %v1070_v21, %v1379_v62 }
  0x69   : > { %v383_v6 = vadd.f32 %v367_v17, %v306_v23  ;;  %v443_v43 = vsel %vm343_vm0, %v441_v55, %v442_v61  ;;  %v518_v22 = vrot.slane %v479_v14, 1  ;;  %v594_v49 = vrot.slane %v554_v16, 2 }
  0x6a   : > { %v981_v19 = vpop.eup %980  ;;  %v946_v44 = vmul.f32 -1.442695, %v778_v41  ;;  %v595_v45 = vrot.slane %v555_v18, 2  ;;  %v632_v57 = vmul.f32 %v1070_v21, %v1401_v34  ;;  %v670_v46 = vrot.slane %v631_v42, 2 }
  0x6b   : > { %v983_v47 = vpop.eup %982  ;;  %v832_v50 = vmul.f32 %v981_v19, %v1357_v38  ;;  %v459_v10 = vadd.f32 %v443_v43, %v383_v6  ;;  %v519_v20 = vsel %vm343_vm0, %v517_v40, %v518_v22  ;;  %v707_v26 = vmul.f32 %v1099_v37, %v243_v63 }
  0x6c   : > { %v809_v62 = vadd.f32 1.0, %v983_v47  ;;  %984 = vpow2.f32 %v946_v44  ;;  %v596_v5 = vsel %vm572_vm1, %v594_v49, %v595_v45  ;;  %v671_v51 = vrot.slane %v632_v57, 2 }
  0x6d   : > { %v847_v52 = vmul.f32 %v1277_v60, %v832_v50  ;;  %v535_v53 = vadd.f32 %v519_v20, %v459_v10  ;;  %v708_v21 = vmul.f32 %v1099_v37, %v244_v25  ;;  %v746_v34 = vrot.slane %v707_v26, 2 }
  0x6e   : > { %986 = vrcp.f32 %v809_v62  ;;  %v672_v38 = vsel %vm572_vm1, %v670_v46, %v671_v51 }
  0x6f   : > { %v862_v54 = vadd.f32 %v1287_v8, %v847_v52  ;;  %v612_v56 = vadd.f32 %v596_v5, %v535_v53  ;;  %v747_v58 = vrot.slane %v708_v21, 2 }
  0x71   : > { %871 = vst.msk [vmem:[%s1303_s12 + $0x20] sm:$0xff] %vm866_vm2, %v862_v54  ;;  %v688_v59 = vadd.f32 %v672_v38, %v612_v56  ;;  %v748_v63 = vsel %vm572_vm1, %v746_v34, %v747_v58 }
  0x73   : > { %v764_v0 = vadd.f32 %v748_v63, %v688_v59 }
  0x75   : > { %v779_v30 = vadd.f32 %v1151_v36, %v764_v0 }
  0x76   : > { %v985_v35 = vpop.eup %984 }
  0x77   : > { %v810_v31 = vadd.f32 1.0, %v985_v35  ;;  %v947_v37 = vmul.f32 -1.442695, %v779_v30 }
  0x78   : > { %v987_v1 = vpop.eup %986 }
  0x79   : > { %v833_v2 = vmul.f32 %v987_v1, %v1413_v28  ;;  %988 = vrcp.f32 %v810_v31 }
  0x7a   : > { %990 = vpow2.f32 %v947_v37 }
  0x7b   : > { %v848_v3 = vmul.f32 %v1277_v60, %v833_v2 }
  0x7d   : > { %v863_v4 = vadd.f32 %v1287_v8, %v848_v3 }
  0x7f   : > { %872 = vst.msk [vmem:[%s1303_s12 + $0x28] sm:$0xff] %vm866_vm2, %v863_v4 }
  0x83   : > { %v989_v7 = vpop.eup %988 }
  0x84   : > { %v991_v9 = vpop.eup %990  ;;  %v834_v15 = vmul.f32 %v989_v7, %v778_v41 }
  0x85   : > { %v811_v36 = vadd.f32 1.0, %v991_v9 }
  0x86   : > { %v849_v24 = vmul.f32 %v1277_v60, %v834_v15 }
  0x87   : > { %992 = vrcp.f32 %v811_v36 }
  0x88   : > { %v864_v25 = vadd.f32 %v1287_v8, %v849_v24 }
  0x8a   : > { %873 = vst.msk [vmem:[%s1303_s12 + $0x30] sm:$0xff] %vm866_vm2, %v864_v25 }
  0x91   : > { %v993_v28 = vpop.eup %992 }
  0x92   : > { %v835_v48 = vmul.f32 %v993_v28, %v779_v30 }
  0x94   : > { %v850_v11 = vmul.f32 %v1277_v60, %v835_v48 }
  0x96   : > { %v865_v27 = vadd.f32 %v1287_v8, %v850_v11 }
  0x98   : > { %874 = vst.msk [vmem:[%s1303_s12 + $0x38] sm:$0xff] %vm866_vm2, %v865_v27 }
  0x99 PF: > { %s15_s18 = sadd.s32 1, %s1000_s18  }
  0x9a   : > { %p12_p4 = scmp.ge.s32.totalorder %s15_s18, 4  }
  0x9c   :  { %14 = sbr.rel (!%p12_p4) target bundleno = 1 (0x1), region = 70 }

// kernel: vss_layer_up_forward.10
= control target key start
LH: loop header
LB: loop body
LE: loop exit
PB: predicated region body
PF: predicated region fallthrough
CT: control target
= control target key end

     0   :  { %s894_s9 = smov 0   ;;  %s896_s10 = smov 0   ;;  %s972_s0 = inlined_call_operand.vmem [shape: bf16[4,128,128], index: 0, kind: input, shape index: {}]   ;;  %s973_s1 = inlined_call_operand.vmem [shape: bf16[4,128,128], index: 1, kind: input, shape index: {}]   ;;  %s974_s2 = inlined_call_operand.vmem [shape: f32[4,128,128], index: 2, kind: output, shape index: {}]  }
   0x1   :  { %s898_s11 = smov 0  }
   0x2 LB: > { %s38_s12 = sadd.s32 1, %s873_s10  ;;  %p723_p0 = scmp.ge.s32.totalorder %s877_s11, 1  ;;  %s877_s11 = sphi %s898_s11, %s12_s11   ;;  %s873_s10 = sphi %s896_s10, %s976_s10   ;;  %s869_s9 = sphi %s894_s9, %s975_s9  }
   0x3   : > { %p40_p1 = scmp.ge.s32.totalorder %s38_s12, 4  ;;  %p176_p2 = scmp.lt.s32.totalorder %s877_s11, 5 }
   0x5   : > { %s978_s12 = smov (%p40_p1, %s38_s12), 0  ;;  %p177_p3 = pnand %p723_p0, %p176_p2 }
   0x6   : > { %p225_p4 = scmp.lt.s32.totalorder (!%p177_p3), %s869_s9, 3 }
   0x7   : > { %180 = sbr.rel (%p177_p3) target bundleno = 274 (0x112), region = 28 }
   0xe   : > { %s980_s9 = smov (!%p225_p4, %s869_s9), 3 }
   0xf   : > { %s748_s13 = sshll.u32 %s980_s9, 6  ;;  %s750_s20 = sshll.u32 %s980_s9, 7 }
  0x10   : > { %s918_s16 = scalar_lea.vmem %s973_s1, %s748_s13  ;;  %s926_s19 = scalar_lea.vmem %s972_s0, %s748_s13 }
  0x11   : > { %v839_v0 = vld [vmem:[%s918_s16] sm:$0xff]   ;;  %v840_v1 = vld [vmem:[%s918_s16 + $0x8] sm:$0xff]   ;;  %v841_v2 = vld [vmem:[%s918_s16 + $0x10] sm:$0xff]   ;;  %s945_s23 = scalar_lea.vmem %s974_s2, %s750_s20 }
  0x12   : > { %767 = vmatprep.subr.bf16.mxu0 %v839_v0  ;;  %799 = vmatprep.subr.bf16.mxu1 %v839_v0  ;;  %v842_v3 = vld [vmem:[%s918_s16 + $0x18] sm:$0xff]   ;;  %v847_v4 = vld [vmem:[%s926_s19] sm:$0xff]   ;;  %v844_v7 = vld [vmem:[%s918_s16 + $0x28] sm:$0xff]  }
  0x13   : > { %768 = vmatpush3.bf16.msra.mxu0 %v839_v0  ;;  %807 = vmatpush3.bf16.msra.mxu1 %v839_v0  ;;  %v848_v5 = vld [vmem:[%s926_s19 + $0x20] sm:$0xff]   ;;  %v845_v8 = vld [vmem:[%s918_s16 + $0x30] sm:$0xff]   ;;  %v846_v9 = vld [vmem:[%s918_s16 + $0x38] sm:$0xff]  }
  0x14   : > { %769 = vmatprep.subr.bf16.mxu0 %v840_v1  ;;  %800 = vmatprep.subr.bf16.mxu1 %v840_v1  ;;  %v843_v6 = vld [vmem:[%s918_s16 + $0x20] sm:$0xff]   ;;  %v849_v10 = vld [vmem:[%s926_s19 + $0x8] sm:$0xff]   ;;  %v851_v12 = vld [vmem:[%s926_s19 + $0x10] sm:$0xff]  }
  0x15   : > { %783 = vmatprep.mubr.bf16.mxu0 %v847_v4  ;;  %791 = vmatprep.mubr.bf16.mxu1 %v848_v5  ;;  %v850_v11 = vld [vmem:[%s926_s19 + $0x28] sm:$0xff]   ;;  %v852_v13 = vld [vmem:[%s926_s19 + $0x30] sm:$0xff]   ;;  %v853_v14 = vld [vmem:[%s926_s19 + $0x18] sm:$0xff]  }
  0x16   : > { %v854_v15 = vld [vmem:[%s926_s19 + $0x38] sm:$0xff]  }
  0x17   : > { %770 = vmatpush3.bf16.msra.mxu0 %v840_v1  ;;  %808 = vmatpush3.bf16.msra.mxu1 %v840_v1 }
  0x18   : > { %771 = vmatprep.subr.bf16.mxu0 %v841_v2  ;;  %801 = vmatprep.subr.bf16.mxu1 %v841_v2 }
  0x1b   : > { %772 = vmatpush3.bf16.msra.mxu0 %v841_v2  ;;  %809 = vmatpush3.bf16.msra.mxu1 %v841_v2 }
  0x1c   : > { %773 = vmatprep.subr.bf16.mxu0 %v842_v3  ;;  %802 = vmatprep.subr.bf16.mxu1 %v842_v3 }
  0x1f   : > { %774 = vmatpush3.bf16.msra.mxu0 %v842_v3  ;;  %810 = vmatpush3.bf16.msra.mxu1 %v842_v3 }
  0x20   : > { %775 = vmatprep.subr.bf16.mxu0 %v843_v6  ;;  %803 = vmatprep.subr.bf16.mxu1 %v843_v6 }
  0x23   : > { %776 = vmatpush3.bf16.msra.mxu0 %v843_v6  ;;  %811 = vmatpush3.bf16.msra.mxu1 %v843_v6 }
  0x24   : > { %777 = vmatprep.subr.bf16.mxu0 %v844_v7  ;;  %804 = vmatprep.subr.bf16.mxu1 %v844_v7 }
  0x27   : > { %778 = vmatpush3.bf16.msra.mxu0 %v844_v7  ;;  %812 = vmatpush3.bf16.msra.mxu1 %v844_v7 }
  0x28   : > { %779 = vmatprep.subr.bf16.mxu0 %v845_v8  ;;  %805 = vmatprep.subr.bf16.mxu1 %v845_v8 }
  0x2b   : > { %780 = vmatpush3.bf16.msra.mxu0 %v845_v8  ;;  %813 = vmatpush3.bf16.msra.mxu1 %v845_v8 }
  0x2c   : > { %781 = vmatprep.subr.bf16.mxu0 %v846_v9  ;;  %806 = vmatprep.subr.bf16.mxu1 %v846_v9 }
  0x2f   : > { %782 = vmatpush3.bf16.msra.mxu0 %v846_v9  ;;  %814 = vmatpush3.bf16.msra.mxu1 %v846_v9 }
  0x32   : > { %784 = vmatmul.mubr.bf16.vlgmr.msra.gmra.mrb[0].mxu0 %v849_v10  ;;  %792 = vmatmul.mubr.bf16.vlgmr.msra.gmra.mrb[0].mxu1 %v850_v11 }
  0x33   : > { %787 = vmatprep.mubr.bf16.mxu0 %v851_v12  ;;  %795 = vmatprep.mubr.bf16.mxu1 %v852_v13 }
  0x3a   : > { %788 = vmatmul.mubr.bf16.gmra.mrb[4].mxu0 %v853_v14  ;;  %796 = vmatmul.mubr.bf16.gmra.mrb[4].mxu1 %v854_v15 }
 0x105   : > { %v785_v16 = vpop.f32.mrb[0].mxu0  ;;  %v793_v17 = vpop.f32.mrb[0].mxu1 }
 0x106   : > { %578 = vst [vmem:[%s945_s23 + $0x10] sm:$0xff] %v785_v16  ;;  %586 = vst [vmem:[%s945_s23 + $0x50] sm:$0xff] %v793_v17  ;;  %v462_v18 = vpop.f32.mrb[1].mxu0  ;;  %v494_v19 = vpop.f32.mrb[1].mxu1 }
 0x107   : > { %576 = vst [vmem:[%s945_s23] sm:$0xff] %v462_v18  ;;  %584 = vst [vmem:[%s945_s23 + $0x40] sm:$0xff] %v494_v19  ;;  %v786_v20 = vpop.f32.mrb[2].mxu0  ;;  %v794_v21 = vpop.f32.mrb[2].mxu1 }
 0x108   : > { %579 = vst [vmem:[%s945_s23 + $0x18] sm:$0xff] %v786_v20  ;;  %587 = vst [vmem:[%s945_s23 + $0x58] sm:$0xff] %v794_v21  ;;  %v465_v22 = vpop.f32.mrb[3].mxu0  ;;  %v497_v23 = vpop.f32.mrb[3].mxu1 }
 0x109   : > { %577 = vst [vmem:[%s945_s23 + $0x8] sm:$0xff] %v465_v22  ;;  %585 = vst [vmem:[%s945_s23 + $0x48] sm:$0xff] %v497_v23 }
 0x10d   : > { %v789_v24 = vpop.f32.mrb[4].mxu0  ;;  %v797_v25 = vpop.f32.mrb[4].mxu1 }
 0x10e   : > { %582 = vst [vmem:[%s945_s23 + $0x30] sm:$0xff] %v789_v24  ;;  %590 = vst [vmem:[%s945_s23 + $0x70] sm:$0xff] %v797_v25  ;;  %v478_v26 = vpop.f32.mrb[5].mxu0  ;;  %v510_v27 = vpop.f32.mrb[5].mxu1 }
 0x10f   : > { %580 = vst [vmem:[%s945_s23 + $0x20] sm:$0xff] %v478_v26  ;;  %588 = vst [vmem:[%s945_s23 + $0x60] sm:$0xff] %v510_v27  ;;  %v790_v28 = vpop.f32.mrb[6].mxu0  ;;  %v798_v29 = vpop.f32.mrb[6].mxu1 }
 0x110   : > { %583 = vst [vmem:[%s945_s23 + $0x38] sm:$0xff] %v790_v28  ;;  %591 = vst [vmem:[%s945_s23 + $0x78] sm:$0xff] %v798_v29  ;;  %v481_v30 = vpop.f32.mrb[7].mxu0  ;;  %v513_v31 = vpop.f32.mrb[7].mxu1 }
 0x111   : > { %581 = vst [vmem:[%s945_s23 + $0x28] sm:$0xff] %v481_v30  ;;  %589 = vst [vmem:[%s945_s23 + $0x68] sm:$0xff] %v513_v31 }
 0x112 PF: > { %s12_s11 = sadd.s32 1, %s877_s11   ;;  %s975_s9 = smov %s873_s10 }
 0x113   : > { %p9_p5 = scmp.ge.s32.totalorder %s12_s11, 6   ;;  %s976_s10 = smov %s978_s12 }
 0x115   :  { %11 = sbr.rel (!%p9_p5) target bundleno = 2 (0x2), region = 69 }

// kernel: vss_layer_up_forward.11
= control target key start
LH: loop header
LB: loop body
LE: loop exit
PB: predicated region body
PF: predicated region fallthrough
CT: control target
= control target key end

     0   :  { %s5349_s18 = smov 0   ;;  %s5351_s19 = smov 0   ;;  %s7020_s0 = inlined_call_operand.vmem [shape: f32[4,2,64,32], index: 0, kind: input, shape index: {}]   ;;  %s7021_s1 = inlined_call_operand.vmem [shape: f32[4,2,64,32], index: 1, kind: input, shape index: {}]   ;;  %s7022_s2 = inlined_call_operand.vmem [shape: f32[4,2,64,16], index: 2, kind: input, shape index: {}]   ;;  %s7023_s3 = inlined_call_operand.vmem [shape: f32[4,2,64,16], index: 3, kind: input, shape index: {}]   ;;  %s7024_s4 = inlined_call_operand.vmem [shape: f32[4,16,32], index: 4, kind: input, shape index: {}]   ;;  %s7025_s5 = inlined_call_operand.vmem [shape: f32[4,2,64,32], index: 5, kind: output, shape index: {}]  }
   0x1   :  { %s5353_s20 = smov 0   ;;  %s5355_s21 = smov 0  }
   0x2   :  { %s5357_s22 = smov 0  }
   0x3 LB: > { %s30_s23 = sadd.s32 1, %s5295_s20  ;;  %s34_s24 = sadd.s32 1, %s5299_s21  ;;  %s5303_s22 = sphi %s5357_s22, %s15_s22   ;;  %s5299_s21 = sphi %s5355_s21, %s7140_s21   ;;  %s5295_s20 = sphi %s5353_s20, %s7139_s20   ;;  %s5291_s19 = sphi %s5351_s19, %s7138_s19   ;;  %s5287_s18 = sphi %s5349_s18, %s7137_s18  }
   0x4   : > { %p32_p0 = scmp.ge.s32.totalorder %s30_s23, 2  ;;  %p4793_p1 = scmp.ge.s32.totalorder %s5303_s22, 1 }
   0x5   : > { %p302_p2 = scmp.lt.s32.totalorder %s5303_s22, 9 }
   0x6   : > { %s7142_s23 = smov (%p32_p0, %s30_s23), 0  ;;  %s7144_s24 = smov (!%p32_p0, %s34_s24), %s5299_s21 }
   0x7   : > { %p303_p3 = pnand %p4793_p1, %p302_p2  ;;  %p36_p4 = scmp.ge.s32.totalorder %s7144_s24, 4 }
   0x9   : > { %s7146_s24 = smov (%p36_p4, %s7144_s24), 0  ;;  %306 = sbr.rel (%p303_p3) target bundleno = 794 (0x31a), region = 40 }
  0x10   : > { %p391_p5 = scmp.lt.s32.totalorder %s5291_s19, 3  ;;  %p393_p6 = scmp.lt.s32.totalorder %s5287_s18, 1  ;;  %v494_v0 = vlaneseq  ;;  %v5317_v5 = vmov 1966171168   ;;  %vm469_vm0 = vcmask 261120  }
  0x11   : > { %v492_v6 = vunpack.c.l.s4 %v5317_v5 }
  0x12   : > { %s7148_s19 = smov (!%p391_p5, %s5291_s19), 3  ;;  %v5381_v1 = vshrl.u32 %v494_v0, 7  ;;  %s7150_s18 = smov (!%p393_p6, %s5287_s18), 1 }
  0x13   : > { %s4795_s25 = sshll.u32 %s7148_s19, 4  ;;  %s4794_s26 = sshll.u32 %s7150_s18, 3  ;;  %v493_v7 = vunpack.c.0.s8 %v492_v6 }
  0x14   : > { %7035 = vst [vmem:[#allocation6_spill] sm:$0xff] %v5381_v1  ;;  %s400_s27 = sadd.s32 %s4795_s25, %s4794_s26  ;;  %v5387_v2 = vsub.s32 1, %v5381_v1  ;;  %v5415_v23 = vsub.s32 0, %v5381_v1  ;;  %v5422_v26 = vsub.s32 2, %v5381_v1  ;;  %v5430_v31 = vsub.s32 3, %v5381_v1  ;;  %s450_s12 = scalar_lea.vmem %s7024_s4, %s4795_s25 }
  0x15   : > { %s5389_s28 = sshll.u32 %s400_s27, 3  ;;  %v5407_v9 = vsub.s32 %v493_v7, %v5381_v1  ;;  %s6909_s27 = smov 0  }
  0x16   : > { %7036 = vst [vmem:[#allocation7_spill] sm:$0xff] %v5387_v2  ;;  %s5395_s6 = scalar_lea.vmem %s7022_s2, %s5389_s28  ;;  %s402_s9 = scalar_lea.vmem %s7020_s0, %s5389_s28  ;;  %7038 = vst [vmem:[#allocation9_spill] sm:$0xff] %v5422_v26 }
  0x17   : > { %v5398_v3 = vld [vmem:[%s5395_s6] sm:$0xff]  ;;  %v475_v10 = vld [vmem:[%s402_s9 + $0x8] sm:$0xff]  ;;  %v476_v13 = vld [vmem:[%s402_s9 + $0x10] sm:$0xff]  ;;  %7039 = vst [vmem:[#allocation10_spill] sm:$0xff] %v5430_v31  ;;  %s6050_s15 = scalar_lea.vmem %s7021_s1, %s5389_s28  ;;  %s463_s18 = scalar_lea.vmem %s7025_s5, %s5389_s28 }
  0x18   : > { %7037 = vst [vmem:[#allocation8_spill] sm:$0xff] %v5398_v3  ;;  %v2145_v4 = vrot.slane %v5398_v3, %v5387_v2  ;;  %v474_v8 = vld [vmem:[%s402_s9] sm:$0xff]  ;;  %v539_v15 = vcombine.high %v475_v10, %v475_v10  ;;  %v5410_v16 = vld [vmem:[%s402_s9 + $0x18] sm:$0xff]  ;;  %v479_v17 = vld [vmem:[%s402_s9 + $0x28] sm:$0xff]  ;;  %v546_v19 = vrot.slane %v475_v10, %v5407_v9  ;;  %v588_v21 = vcombine.high %v476_v13, %v476_v13  ;;  %s6535_s26 = scalar_lea.vmem %s7023_s3, %s5389_s28 }
  0x19   : > { %v490_v11 = vcombine.high %v474_v8, %v474_v8  ;;  %v497_v12 = vrot.slane %v474_v8, %v5407_v9  ;;  %v478_v14 = vld [vmem:[%s402_s9 + $0x20] sm:$0xff]  ;;  %v5419_v25 = vrot.slane %v476_v13, %v5407_v9  ;;  %v480_v27 = vld [vmem:[%s402_s9 + $0x30] sm:$0xff]  ;;  %v735_v30 = vcombine.high %v479_v17, %v479_v17  ;;  %v481_v32 = vld [vmem:[%s402_s9 + $0x38] sm:$0xff] }
  0x1a   : > { %2147 = vbcast.lane.b32.xlu1 %v2145_v4, 256  ;;  %v686_v22 = vcombine.high %v478_v14, %v478_v14  ;;  %v553_v24 = vrot.slane %v539_v15, %v5407_v9  ;;  %v554_v34 = vcombine.high %v546_v19, %v546_v19  ;;  %v5433_v35 = vrot.slane %v546_v19, %v5407_v9  ;;  %v5545_v31 = vld [vmem:[%s450_s12] sm:$0xff] }
  0x1b   : > { %v504_v18 = vrot.slane %v490_v11, %v5407_v9  ;;  %v505_v20 = vcombine.high %v497_v12, %v497_v12  ;;  %v5425_v28 = vrot.slane %v497_v12, %v5407_v9  ;;  %v693_v36 = vrot.slane %v478_v14, %v5407_v9 }
  0x1c   : > { %v5443_v39 = vrot.slane %v588_v21, %v5407_v9  ;;  %v700_v40 = vrot.slane %v686_v22, %v5407_v9  ;;  %v555_v41 = vcombine.high %v553_v24, %v553_v24  ;;  %v5447_v42 = vrot.slane %v553_v24, %v5407_v9 }
  0x1d   : > { %v506_v33 = vcombine.high %v504_v18, %v504_v18  ;;  %v5437_v37 = vrot.slane %v504_v18, %v5407_v9  ;;  %v5440_v38 = vrot.slane %v505_v20, %v5407_v9  ;;  %v784_v44 = vcombine.high %v480_v27, %v480_v27 }
  0x1e   : > { %2151 = vbcast.lane.b32.xlu1 %v2145_v4, 264  ;;  %v535_v45 = vcombine.high %v5425_v28, %v5425_v28  ;;  %v742_v46 = vrot.slane %v479_v17, %v5407_v9  ;;  %v749_v47 = vrot.slane %v735_v30, %v5407_v9  ;;  %v833_v48 = vcombine.high %v481_v32, %v481_v32 }
  0x1f   : > { %v5456_v49 = vrot.slane %v506_v33, %v5407_v9  ;;  %v5459_v50 = vrot.slane %v554_v34, %v5407_v9  ;;  %v701_v52 = vcombine.high %v693_v36, %v693_v36  ;;  %v537_v54 = vcombine.high %v5440_v38, %v5440_v38 }
  0x20   : > { %v702_v55 = vcombine.high %v700_v40, %v700_v40  ;;  %v791_v56 = vrot.slane %v480_v27, %v5407_v9  ;;  %v5469_v57 = vrot.slane %v555_v41, %v5407_v9  ;;  %v798_v60 = vrot.slane %v784_v44, %v5407_v9 }
  0x21   : > { %v750_v61 = vcombine.high %v742_v46, %v742_v46  ;;  %v751_v62 = vcombine.high %v749_v47, %v749_v47  ;;  %v840_v63 = vrot.slane %v481_v32, %v5407_v9  ;;  %v847_v0 = vrot.slane %v833_v48, %v5407_v9 }
  0x22   : > { %v709_v5 = vrot.slane %v693_v36, %v5407_v9  ;;  %v716_v6 = vrot.slane %v700_v40, %v5407_v9  ;;  %v723_v7 = vrot.slane %v701_v52, %v5407_v9  ;;  %v5487_v10 = vrot.slane %v5419_v25, %v5407_v9 }
  0x23   : > { %v730_v11 = vrot.slane %v702_v55, %v5407_v9  ;;  %v799_v12 = vcombine.high %v791_v56, %v791_v56  ;;  %v5492_v13 = vrot.slane %v5443_v39, %v5407_v9  ;;  %v758_v14 = vrot.slane %v742_v46, %v5407_v9 }
  0x24   : > { %v765_v15 = vrot.slane %v749_v47, %v5407_v9  ;;  %v800_v17 = vcombine.high %v798_v60, %v798_v60  ;;  %v772_v18 = vrot.slane %v750_v61, %v5407_v9  ;;  %v779_v19 = vrot.slane %v751_v62, %v5407_v9 }
  0x25   : > { %v848_v20 = vcombine.high %v840_v63, %v840_v63  ;;  %v849_v21 = vcombine.high %v847_v0, %v847_v0  ;;  %v731_v22 = vcombine.high %v709_v5, %v709_v5  ;;  %v732_v24 = vcombine.high %v716_v6, %v716_v6 }
  0x26   : > { %v733_v27 = vcombine.high %v723_v7, %v723_v7  ;;  %v807_v30 = vrot.slane %v791_v56, %v5407_v9  ;;  %v734_v32 = vcombine.high %v730_v11, %v730_v11  ;;  %v814_v33 = vrot.slane %v798_v60, %v5407_v9 }
  0x27   : > { %v821_v34 = vrot.slane %v799_v12, %v5407_v9  ;;  %v856_v36 = vrot.slane %v840_v63, %v5407_v9  ;;  %v780_v40 = vcombine.high %v758_v14, %v758_v14  ;;  %v781_v41 = vcombine.high %v765_v15, %v765_v15 }
  0x28   : > { %v828_v44 = vrot.slane %v800_v17, %v5407_v9  ;;  %v863_v46 = vrot.slane %v847_v0, %v5407_v9  ;;  %v782_v47 = vcombine.high %v772_v18, %v772_v18  ;;  %v783_v48 = vcombine.high %v779_v19, %v779_v19 }
  0x29   : > { %v870_v52 = vrot.slane %v848_v20, %v5407_v9  ;;  %v877_v55 = vrot.slane %v849_v21, %v5407_v9  ;;  %v829_v56 = vcombine.high %v807_v30, %v807_v30  ;;  %v885_v60 = vrot.slane %v5425_v28, %v5415_v23 }
  0x2a   : > { %v889_v61 = vrot.slane %v5440_v38, %v5415_v23  ;;  %v893_v62 = vrot.slane %v535_v45, %v5415_v23  ;;  %v830_v63 = vcombine.high %v814_v33, %v814_v33  ;;  %v831_v12 = vcombine.high %v821_v34, %v821_v34 }
  0x2b   : > { %v878_v17 = vcombine.high %v856_v36, %v856_v36  ;;  %v5512_v0 = vrot.slane %v537_v54, %v5415_v23  ;;  %v832_v58 = vcombine.high %v828_v44, %v828_v44  ;;  %v879_v20 = vcombine.high %v863_v46, %v863_v46 }
  0x2c   : > { %v5516_v21 = vrot.slane %v5437_v37, %v5415_v23  ;;  %v5520_v28 = vrot.slane %v5456_v49, %v5415_v23  ;;  %v880_v38 = vcombine.high %v870_v52, %v870_v52  ;;  %v881_v4 = vcombine.high %v877_v55, %v877_v55 }
  0x2d   : > { %v1013_v45 = vrot.slane %v709_v5, %v5415_v23  ;;  %v1017_v51 = vrot.slane %v723_v7, %v5415_v23  ;;  %v1021_v29 = vrot.slane %v731_v22, %v5415_v23  ;;  %v1025_v54 = vrot.slane %v733_v27, %v5415_v23 }
  0x2e   : > { %v1029_v8 = vrot.slane %v716_v6, %v5415_v23  ;;  %v1033_v53 = vrot.slane %v730_v11, %v5415_v23  ;;  %v1037_v59 = vrot.slane %v732_v24, %v5415_v23  ;;  %v1041_v43 = vrot.slane %v734_v32, %v5415_v23 }
  0x2f   : > { %v1045_v5 = vrot.slane %v758_v14, %v5415_v23  ;;  %v1049_v7 = vrot.slane %v772_v18, %v5415_v23  ;;  %v1053_v22 = vrot.slane %v780_v40, %v5415_v23  ;;  %v1057_v27 = vrot.slane %v782_v47, %v5415_v23  ;;  %v5547_v14 = vld [vmem:[%s450_s12 + $0x8] sm:$0xff] }
  0x30   : > { %v1061_v6 = vrot.slane %v765_v15, %v5415_v23  ;;  %v1065_v11 = vrot.slane %v779_v19, %v5415_v23  ;;  %v1069_v2 = vrot.slane %v781_v41, %v5415_v23  ;;  %v1073_v1 = vrot.slane %v783_v48, %v5415_v23 }
  0x31   : > { %v1077_v24 = vrot.slane %v807_v30, %v5415_v23  ;;  %v1081_v32 = vrot.slane %v821_v34, %v5415_v23  ;;  %v1085_v18 = vrot.slane %v829_v56, %v5415_v23  ;;  %v1089_v40 = vrot.slane %v831_v12, %v5415_v23 }
  0x32   : > { %v1093_v15 = vrot.slane %v814_v33, %v5415_v23  ;;  %v1097_v19 = vrot.slane %v828_v44, %v5415_v23  ;;  %v1101_v41 = vrot.slane %v830_v63, %v5415_v23  ;;  %v5555_v47 = vrot.slane %v832_v58, %v5415_v23 }
  0x33   : > { %v5558_v30 = vrot.slane %v856_v36, %v5415_v23  ;;  %v5561_v34 = vrot.slane %v870_v52, %v5415_v23  ;;  %v5564_v48 = vrot.slane %v878_v17, %v5415_v23  ;;  %v5567_v56 = vrot.slane %v880_v38, %v5415_v23 }
  0x34   : > { %v5570_v33 = vrot.slane %v863_v46, %v5415_v23  ;;  %v5573_v44 = vrot.slane %v877_v55, %v5415_v23  ;;  %v5576_v58 = vrot.slane %v879_v20, %v5415_v23  ;;  %v5579_v36 = vrot.slane %v881_v4, %v5415_v23 }
  0x35   : > { %v5582_v52 = vmul.f32 %v885_v60, %v5545_v31  ;;  %v5585_v63 = vmul.f32 %v885_v60, %v5547_v14  ;;  %v5588_v12 = vmul.f32 %v889_v61, %v5545_v31  ;;  %v5591_v46 = vmul.f32 %v889_v61, %v5547_v14 }
  0x36   : > { %v5594_v55 = vmul.f32 %v893_v62, %v5545_v31  ;;  %v5597_v17 = vmul.f32 %v893_v62, %v5547_v14  ;;  %v5601_v4 = vmul.f32 %v5512_v0, %v5545_v31  ;;  %v5604_v20 = vmul.f32 %v1013_v45, %v5545_v31 }
  0x37   : > { %v5607_v60 = vmul.f32 %v1013_v45, %v5547_v14  ;;  %v5610_v38 = vmul.f32 %v1017_v51, %v5545_v31  ;;  %v5613_v61 = vmul.f32 %v1017_v51, %v5547_v14  ;;  %v5616_v26 = vmul.f32 %v1021_v29, %v5545_v31 }
  0x38   : > { %7040 = vst [vmem:[#allocation11_spill] sm:$0xff] %v5604_v20  ;;  %v5619_v62 = vmul.f32 %v1021_v29, %v5547_v14  ;;  %v5622_v3 = vmul.f32 %v1025_v54, %v5545_v31  ;;  %v5625_v20 = vmul.f32 %v1025_v54, %v5547_v14  ;;  %v5628_v45 = vmul.f32 %v1029_v8, %v5545_v31 }
  0x39   : > { %7041 = vst [vmem:[#allocation12_spill] sm:$0xff] %v5610_v38  ;;  %7042 = vst [vmem:[#allocation13_spill] sm:$0xff] %v5616_v26  ;;  %v5631_v38 = vmul.f32 %v1029_v8, %v5547_v14  ;;  %v5634_v51 = vmul.f32 %v1033_v53, %v5545_v31  ;;  %v5637_v26 = vmul.f32 %v1033_v53, %v5547_v14 }
  0x3a   : > { %7043 = vst [vmem:[#allocation14_spill] sm:$0xff] %v5622_v3  ;;  %7044 = vst [vmem:[#allocation15_spill] sm:$0xff] %v5628_v45  ;;  %v5640_v29 = vmul.f32 %v1037_v59, %v5545_v31  ;;  %v5643_v3 = vmul.f32 %v1037_v59, %v5547_v14  ;;  %v5646_v54 = vmul.f32 %v1041_v43, %v5545_v31 }
  0x3b   : > { %7045 = vst [vmem:[#allocation16_spill] sm:$0xff] %v5634_v51  ;;  %v5649_v45 = vmul.f32 %v1041_v43, %v5547_v14  ;;  %v5652_v8 = vmul.f32 %v1045_v5, %v5545_v31  ;;  %v5655_v51 = vmul.f32 %v1045_v5, %v5547_v14  ;;  %v5658_v53 = vmul.f32 %v1049_v7, %v5545_v31 }
  0x3c   : > { %7046 = vst [vmem:[#allocation17_spill] sm:$0xff] %v5640_v29  ;;  %7047 = vst [vmem:[#allocation18_spill] sm:$0xff] %v5646_v54  ;;  %v5661_v29 = vmul.f32 %v1049_v7, %v5547_v14  ;;  %v5664_v59 = vmul.f32 %v1053_v22, %v5545_v31  ;;  %v5667_v54 = vmul.f32 %v1053_v22, %v5547_v14 }
  0x3d   : > { %7048 = vst [vmem:[#allocation19_spill] sm:$0xff] %v5652_v8  ;;  %7049 = vst [vmem:[#allocation20_spill] sm:$0xff] %v5658_v53  ;;  %v5670_v43 = vmul.f32 %v1057_v27, %v5545_v31  ;;  %v5673_v8 = vmul.f32 %v1057_v27, %v5547_v14  ;;  %v5676_v5 = vmul.f32 %v1061_v6, %v5545_v31 }
  0x3e   : > { %7050 = vst [vmem:[#allocation21_spill] sm:$0xff] %v5664_v59  ;;  %v5679_v53 = vmul.f32 %v1061_v6, %v5547_v14  ;;  %v5682_v7 = vmul.f32 %v1065_v11, %v5545_v31  ;;  %v5685_v59 = vmul.f32 %v1065_v11, %v5547_v14  ;;  %v5688_v22 = vmul.f32 %v1069_v2, %v5545_v31 }
  0x3f   : > { %7051 = vst [vmem:[#allocation22_spill] sm:$0xff] %v5670_v43  ;;  %7052 = vst [vmem:[#allocation23_spill] sm:$0xff] %v5676_v5  ;;  %v5691_v43 = vmul.f32 %v1069_v2, %v5547_v14  ;;  %v5694_v27 = vmul.f32 %v1073_v1, %v5545_v31  ;;  %v5697_v5 = vmul.f32 %v1073_v1, %v5547_v14 }
  0x40   : > { %7053 = vst [vmem:[#allocation24_spill] sm:$0xff] %v5682_v7  ;;  %7054 = vst [vmem:[#allocation25_spill] sm:$0xff] %v5688_v22  ;;  %v5700_v6 = vmul.f32 %v1077_v24, %v5545_v31  ;;  %v5703_v7 = vmul.f32 %v1077_v24, %v5547_v14  ;;  %v5706_v11 = vmul.f32 %v1081_v32, %v5545_v31 }
  0x41   : > { %7055 = vst [vmem:[#allocation26_spill] sm:$0xff] %v5694_v27  ;;  %v5709_v22 = vmul.f32 %v1081_v32, %v5547_v14  ;;  %v5712_v2 = vmul.f32 %v1085_v18, %v5545_v31  ;;  %v5715_v27 = vmul.f32 %v1085_v18, %v5547_v14  ;;  %v5718_v1 = vmul.f32 %v1089_v40, %v5545_v31 }
  0x42   : > { %7056 = vst [vmem:[#allocation27_spill] sm:$0xff] %v5700_v6  ;;  %7057 = vst [vmem:[#allocation28_spill] sm:$0xff] %v5706_v11  ;;  %v5721_v6 = vmul.f32 %v1089_v40, %v5547_v14  ;;  %v5724_v24 = vmul.f32 %v1093_v15, %v5545_v31  ;;  %v5727_v11 = vmul.f32 %v1093_v15, %v5547_v14 }
  0x43   : > { %7058 = vst [vmem:[#allocation29_spill] sm:$0xff] %v5712_v2  ;;  %7059 = vst [vmem:[#allocation30_spill] sm:$0xff] %v5718_v1  ;;  %v5730_v32 = vmul.f32 %v1097_v19, %v5545_v31  ;;  %v5733_v2 = vmul.f32 %v1097_v19, %v5547_v14  ;;  %v5736_v18 = vmul.f32 %v1101_v41, %v5545_v31 }
  0x44   : > { %v5739_v1 = vmul.f32 %v1101_v41, %v5547_v14  ;;  %v5743_v40 = vmul.f32 %v5555_v47, %v5545_v31  ;;  %v5747_v15 = vmul.f32 %v5555_v47, %v5547_v14  ;;  %v5755_v19 = vmul.f32 %v5558_v30, %v5547_v14 }
  0x45   : > { %7060 = vst [vmem:[#allocation31_spill] sm:$0xff] %v5730_v32  ;;  %v5751_v32 = vmul.f32 %v5558_v30, %v5545_v31  ;;  %v5759_v41 = vmul.f32 %v5561_v34, %v5545_v31  ;;  %v5767_v47 = vmul.f32 %v5564_v48, %v5545_v31  ;;  %v5775_v30 = vmul.f32 %v5567_v56, %v5545_v31 }
  0x46   : > { %7061 = vst [vmem:[#allocation32_spill] sm:$0xff] %v5739_v1  ;;  %7062 = vst [vmem:[#allocation33_spill] sm:$0xff] %v5747_v15  ;;  %v5763_v1 = vmul.f32 %v5561_v34, %v5547_v14  ;;  %v5771_v15 = vmul.f32 %v5564_v48, %v5547_v14  ;;  %v5783_v34 = vmul.f32 %v5570_v33, %v5545_v31 }
  0x47   : > { %7063 = vst [vmem:[#allocation34_spill] sm:$0xff] %v5755_v19  ;;  %7065 = vst [vmem:[#allocation36_spill] sm:$0xff] %v5767_v47  ;;  %v5779_v19 = vmul.f32 %v5567_v56, %v5547_v14  ;;  %v5791_v48 = vmul.f32 %v5573_v44, %v5545_v31  ;;  %v5799_v56 = vmul.f32 %v5576_v58, %v5545_v31 }
  0x48   : > { %7064 = vst [vmem:[#allocation35_spill] sm:$0xff] %v5763_v1  ;;  %7066 = vst [vmem:[#allocation37_spill] sm:$0xff] %v5771_v15  ;;  %v5787_v1 = vmul.f32 %v5570_v33, %v5547_v14  ;;  %v5795_v15 = vmul.f32 %v5573_v44, %v5547_v14  ;;  %v5807_v33 = vmul.f32 %v5579_v36, %v5545_v31  ;;  %v1332_v44 = vmul.f32 1.442695, %v5585_v63 }
  0x49   : > { %7067 = vst [vmem:[#allocation38_spill] sm:$0xff] %v5775_v30  ;;  %7068 = vst [vmem:[#allocation39_spill] sm:$0xff] %v5779_v19  ;;  %v5803_v19 = vmul.f32 %v5576_v58, %v5547_v14  ;;  %v7079_v63 = vcombine.high %v5437_v37, %v5437_v37  ;;  %v7080_v37 = vcombine.high %v5456_v49, %v5456_v49 }
  0x4a   : > { %7069 = vst [vmem:[#allocation40_spill] sm:$0xff] %v5783_v34  ;;  %7070 = vst [vmem:[#allocation41_spill] sm:$0xff] %v5787_v1  ;;  %v5811_v1 = vmul.f32 %v5579_v36, %v5547_v14  ;;  %v1209_v36 = vmul.f32 %v5512_v0, %v5547_v14  ;;  %v1340_v0 = vmul.f32 1.442695, %v5597_v17 }
  0x4b   : > { %7071 = vst [vmem:[#allocation42_spill] sm:$0xff] %v5791_v48  ;;  %7072 = vst [vmem:[#allocation43_spill] sm:$0xff] %v5795_v15  ;;  %v1330_v48 = vmul.f32 1.442695, %v5582_v52  ;;  %v1334_v15 = vmul.f32 1.442695, %v5588_v12  ;;  %v909_v12 = vrot.slane %v7079_v63, %v5415_v23 }
  0x4c   : > { %7073 = vst [vmem:[#allocation44_spill] sm:$0xff] %v5799_v56  ;;  %7074 = vst [vmem:[#allocation45_spill] sm:$0xff] %v5803_v19  ;;  %v7077_v56 = vcombine.high %v5419_v25, %v5419_v25  ;;  %v1336_v52 = vmul.f32 1.442695, %v5591_v46  ;;  %v1210_v25 = vmul.f32 %v5516_v21, %v5545_v31  ;;  %v913_v46 = vrot.slane %v7080_v37, %v5415_v23 }
  0x4d   : > { %7075 = vst [vmem:[#allocation46_spill] sm:$0xff] %v5807_v33  ;;  %7076 = vst [vmem:[#allocation47_spill] sm:$0xff] %v5811_v1  ;;  %v7078_v33 = vcombine.high %v5443_v39, %v5443_v39  ;;  %4996 = vpow2.f32 %v1330_v48  ;;  %v1212_v48 = vmul.f32 %v5520_v28, %v5545_v31  ;;  %v1344_v17 = vmul.f32 1.442695, %v1209_v36 }
  0x4e   : > { %v5820_v58 = vrot.slane %v7077_v56, %v5407_v9  ;;  %v1338_v56 = vmul.f32 1.442695, %v5594_v55  ;;  %4998 = vpow2.f32 %v1332_v44  ;;  %v1342_v55 = vmul.f32 1.442695, %v5601_v4 }
  0x4f   : > { %v5826_v19 = vrot.slane %v7078_v33, %v5407_v9  ;;  %v1211_v33 = vmul.f32 %v5516_v21, %v5547_v14  ;;  %5000 = vpow2.f32 %v1334_v15  ;;  %v1213_v21 = vmul.f32 %v5520_v28, %v5547_v14 }
  0x50   : > { %5002 = vpow2.f32 %v1336_v52  ;;  %v917_v44 = vrot.slane %v5433_v35, %v5415_v23  ;;  %v1214_v49 = vmul.f32 %v909_v12, %v5545_v31  ;;  %v1346_v37 = vmul.f32 1.442695, %v1210_v25 }
  0x51   : > { %5004 = vpow2.f32 %v1338_v56  ;;  %v5859_v15 = vrot.slane %v5410_v16, %v5407_v9  ;;  %v1215_v4 = vmul.f32 %v909_v12, %v5547_v14  ;;  %v1348_v63 = vmul.f32 1.442695, %v1211_v33 }
  0x52   : > { %5006 = vpow2.f32 %v1340_v0  ;;  %v921_v28 = vrot.slane %v5459_v50, %v5415_v23  ;;  %v1216_v36 = vmul.f32 %v913_v46, %v5545_v31  ;;  %v1350_v52 = vmul.f32 1.442695, %v1212_v48 }
  0x53   : > { %5008 = vpow2.f32 %v1342_v55  ;;  %v7081_v56 = vcombine.high %v5410_v16, %v5410_v16  ;;  %v1217_v39 = vmul.f32 %v913_v46, %v5547_v14  ;;  %v1352_v1 = vmul.f32 1.442695, %v1213_v21 }
  0x54   : > { %5010 = vpow2.f32 %v1344_v17  ;;  %v7082_v12 = vcombine.high %v5433_v35, %v5433_v35  ;;  %v1218_v0 = vmul.f32 %v917_v44, %v5545_v31  ;;  %v1354_v55 = vmul.f32 1.442695, %v1214_v49 }
  0x55   : > { %v5869_v25 = vrot.slane %v7081_v56, %v5407_v9  ;;  %5012 = vpow2.f32 %v1346_v37  ;;  %v1219_v16 = vmul.f32 %v917_v44, %v5547_v14  ;;  %v1356_v56 = vmul.f32 1.442695, %v1215_v4 }
  0x56   : > { %v925_v33 = vrot.slane %v7082_v12, %v5415_v23  ;;  %5014 = vpow2.f32 %v1348_v63  ;;  %v7083_v46 = vcombine.high %v5459_v50, %v5459_v50  ;;  %v1220_v35 = vmul.f32 %v921_v28, %v5545_v31 }
  0x57   : > { %v4997_v34 = vpop.eup %4996  ;;  %5016 = vpow2.f32 %v1350_v52  ;;  %v1358_v17 = vmul.f32 1.442695, %v1216_v36  ;;  %v635_v49 = vcombine.high %v5820_v58, %v5820_v58  ;;  %v1221_v37 = vmul.f32 %v921_v28, %v5547_v14 }
  0x58   : > { %v929_v21 = vrot.slane %v7083_v46, %v5415_v23  ;;  %v4999_v12 = vpop.eup %4998  ;;  %5018 = vpow2.f32 %v1352_v1  ;;  %v1360_v44 = vmul.f32 1.442695, %v1217_v39  ;;  %1587 = vst.msk [vmem:[#allocation3] sm:$0xff] %vm469_vm0, %v4997_v34  ;;  %v933_v4 = vrot.slane %v5447_v42, %v5415_v23 }
  0x59   : > { %v5001_v63 = vpop.eup %5000  ;;  %v1222_v50 = vmul.f32 %v925_v33, %v5545_v31  ;;  %5020 = vpow2.f32 %v1354_v55  ;;  %v1362_v46 = vmul.f32 1.442695, %v1218_v0  ;;  %1588 = vst.msk [vmem:[#allocation3 + $0x8] sm:$0xff] %vm469_vm0, %v4999_v12  ;;  %v1223_v28 = vmul.f32 %v925_v33, %v5547_v14 }
  0x5a   : > { %v5003_v36 = vpop.eup %5002  ;;  %5022 = vpow2.f32 %v1356_v56  ;;  %v1364_v1 = vmul.f32 1.442695, %v1219_v16  ;;  %1589 = vst.msk [vmem:[#allocation3 + $0x10] sm:$0xff] %vm469_vm0, %v5001_v63  ;;  %v937_v39 = vrot.slane %v5469_v57, %v5415_v23  ;;  %v1224_v48 = vmul.f32 %v929_v21, %v5545_v31 }
  0x5b   : > { %v5005_v34 = vpop.eup %5004  ;;  %5024 = vpow2.f32 %v1358_v17  ;;  %v1366_v0 = vmul.f32 1.442695, %v1220_v35  ;;  %1590 = vst.msk [vmem:[#allocation3 + $0x18] sm:$0xff] %vm469_vm0, %v5003_v36  ;;  %v652_v12 = vcombine.high %v5859_v15, %v5859_v15  ;;  %v1225_v33 = vmul.f32 %v929_v21, %v5547_v14 }
  0x5c   : > { %v5007_v55 = vpop.eup %5006  ;;  %5026 = vpow2.f32 %v1360_v44  ;;  %v1368_v16 = vmul.f32 1.442695, %v1221_v37  ;;  %1591 = vst.msk [vmem:[#allocation3 + $0x20] sm:$0xff] %vm469_vm0, %v5005_v34  ;;  %v7084_v63 = vcombine.high %v5447_v42, %v5447_v42  ;;  %v1226_v35 = vmul.f32 %v933_v4, %v5545_v31 }
  0x5d   : > { %v5009_v56 = vpop.eup %5008  ;;  %5028 = vpow2.f32 %v1362_v46  ;;  %v1370_v17 = vmul.f32 1.442695, %v1222_v50  ;;  %1592 = vst.msk [vmem:[#allocation3 + $0x28] sm:$0xff] %vm469_vm0, %v5007_v55  ;;  %v653_v21 = vcombine.high %v5869_v25, %v5869_v25  ;;  %v1227_v37 = vmul.f32 %v933_v4, %v5547_v14 }
  0x5e   : > { %v941_v52 = vrot.slane %v7084_v63, %v5415_v23  ;;  %v5011_v36 = vpop.eup %5010  ;;  %5030 = vpow2.f32 %v1364_v1  ;;  %v1372_v44 = vmul.f32 1.442695, %v1223_v28  ;;  %1593 = vst.msk [vmem:[#allocation3 + $0x30] sm:$0xff] %vm469_vm0, %v5009_v56  ;;  %v7085_v42 = vcombine.high %v5469_v57, %v5469_v57 }
  0x5f   : > { %v5013_v34 = vpop.eup %5012  ;;  %v1228_v50 = vmul.f32 %v937_v39, %v5545_v31  ;;  %5032 = vpow2.f32 %v1366_v0  ;;  %v1374_v46 = vmul.f32 1.442695, %v1224_v48  ;;  %1594 = vst.msk [vmem:[#allocation3 + $0x38] sm:$0xff] %vm469_vm0, %v5011_v36  ;;  %v5923_v4 = vrot.slane %v5859_v15, %v5407_v9 }
  0x60   : > { %v945_v63 = vrot.slane %v7085_v42, %v5415_v23  ;;  %v5015_v55 = vpop.eup %5014  ;;  %v1229_v28 = vmul.f32 %v937_v39, %v5547_v14  ;;  %5034 = vpow2.f32 %v1368_v16  ;;  %v1376_v1 = vmul.f32 1.442695, %v1225_v33  ;;  %1595 = vst.msk [vmem:[#allocation3 + $0x40] sm:$0xff] %vm469_vm0, %v5013_v34 }
  0x61   : > { %v5017_v56 = vpop.eup %5016  ;;  %v949_v57 = vrot.slane %v5487_v10, %v5415_v23  ;;  %v1230_v0 = vmul.f32 %v941_v52, %v5545_v31  ;;  %5036 = vpow2.f32 %v1370_v17  ;;  %v1378_v48 = vmul.f32 1.442695, %v1226_v35  ;;  %1596 = vst.msk [vmem:[#allocation3 + $0x48] sm:$0xff] %vm469_vm0, %v5015_v55 }
  0x62   : > { %v5019_v36 = vpop.eup %5018  ;;  %v5933_v15 = vrot.slane %v5869_v25, %v5407_v9  ;;  %v1231_v39 = vmul.f32 %v941_v52, %v5547_v14  ;;  %5038 = vpow2.f32 %v1372_v44  ;;  %v1380_v33 = vmul.f32 1.442695, %v1227_v37  ;;  %1597 = vst.msk [vmem:[#allocation3 + $0x50] sm:$0xff] %vm469_vm0, %v5017_v56 }
  0x63   : > { %v5021_v16 = vpop.eup %5020  ;;  %v953_v34 = vrot.slane %v5820_v58, %v5415_v23  ;;  %v1232_v17 = vmul.f32 %v945_v63, %v5545_v31  ;;  %5040 = vpow2.f32 %v1374_v46  ;;  %v1382_v35 = vmul.f32 1.442695, %v1228_v50  ;;  %1598 = vst.msk [vmem:[#allocation3 + $0x58] sm:$0xff] %vm469_vm0, %v5019_v36 }
  0x64   : > { %v5023_v42 = vpop.eup %5022  ;;  %v5942_v25 = vrot.slane %v652_v12, %v5407_v9  ;;  %v1233_v52 = vmul.f32 %v945_v63, %v5547_v14  ;;  %5042 = vpow2.f32 %v1376_v1  ;;  %v1384_v37 = vmul.f32 1.442695, %v1229_v28  ;;  %1599 = vst.msk [vmem:[#allocation3 + $0x60] sm:$0xff] %vm469_vm0, %v5021_v16 }
  0x65   : > { %v5025_v44 = vpop.eup %5024  ;;  %v7086_v55 = vcombine.high %v5487_v10, %v5487_v10  ;;  %v1234_v50 = vmul.f32 %v949_v57, %v5545_v31  ;;  %5044 = vpow2.f32 %v1378_v48  ;;  %v1386_v46 = vmul.f32 1.442695, %v1230_v0  ;;  %1600 = vst.msk [vmem:[#allocation3 + $0x68] sm:$0xff] %vm469_vm0, %v5023_v42 }
  0x66   : > { %v5027_v12 = vpop.eup %5026  ;;  %v5953_v36 = vrot.slane %v653_v21, %v5407_v9  ;;  %v1235_v63 = vmul.f32 %v949_v57, %v5547_v14  ;;  %5046 = vpow2.f32 %v1380_v33  ;;  %v1388_v28 = vmul.f32 1.442695, %v1231_v39  ;;  %1601 = vst.msk [vmem:[#allocation3 + $0x70] sm:$0xff] %vm469_vm0, %v5025_v44 }
  0x67   : > { %v957_v56 = vrot.slane %v7086_v55, %v5415_v23  ;;  %v5029_v1 = vpop.eup %5028  ;;  %v961_v10 = vrot.slane %v635_v49, %v5415_v23  ;;  %v1236_v0 = vmul.f32 %v953_v34, %v5545_v31  ;;  %5048 = vpow2.f32 %v1382_v35  ;;  %1602 = vst.msk [vmem:[#allocation3 + $0x78] sm:$0xff] %vm469_vm0, %v5027_v12 }
  0x68   : > { %v1390_v48 = vmul.f32 1.442695, %v1232_v17  ;;  %v5031_v21 = vpop.eup %5030  ;;  %v682_v57 = vcombine.high %v5923_v4, %v5923_v4  ;;  %v1237_v39 = vmul.f32 %v953_v34, %v5547_v14  ;;  %5050 = vpow2.f32 %v1384_v37  ;;  %1603 = vst.msk [vmem:[#allocation3 + $0x80] sm:$0xff] %vm469_vm0, %v5029_v1 }
  0x69   : > { %v1392_v33 = vmul.f32 1.442695, %v1233_v52  ;;  %v5033_v16 = vpop.eup %5032  ;;  %v965_v58 = vrot.slane %v5492_v13, %v5415_v23  ;;  %v1238_v49 = vmul.f32 %v957_v56, %v5545_v31  ;;  %5052 = vpow2.f32 %v1386_v46  ;;  %1604 = vst.msk [vmem:[#allocation3 + $0x88] sm:$0xff] %vm469_vm0, %v5031_v21 }
  0x6a   : > { %v1394_v17 = vmul.f32 1.442695, %v1234_v50  ;;  %v5035_v35 = vpop.eup %5034  ;;  %v1239_v34 = vmul.f32 %v957_v56, %v5547_v14  ;;  %5054 = vpow2.f32 %v1388_v28  ;;  %v1396_v52 = vmul.f32 1.442695, %v1235_v63  ;;  %1605 = vst.msk [vmem:[#allocation3 + $0x90] sm:$0xff] %vm469_vm0, %v5033_v16 }
  0x6b   : > { %v5037_v37 = vpop.eup %5036  ;;  %v969_v44 = vrot.slane %v5826_v19, %v5415_v23  ;;  %v1240_v55 = vmul.f32 %v961_v10, %v5545_v31  ;;  %5056 = vpow2.f32 %v1390_v48  ;;  %v1398_v50 = vmul.f32 1.442695, %v1236_v0  ;;  %1606 = vst.msk [vmem:[#allocation3 + $0x98] sm:$0xff] %vm469_vm0, %v5035_v35 }
  0x6c   : > { %v5039_v46 = vpop.eup %5038  ;;  %v684_v12 = vcombine.high %v5942_v25, %v5942_v25  ;;  %v1241_v56 = vmul.f32 %v961_v10, %v5547_v14  ;;  %5058 = vpow2.f32 %v1392_v33  ;;  %v1400_v63 = vmul.f32 1.442695, %v1237_v39  ;;  %1607 = vst.msk [vmem:[#allocation3 + $0xa0] sm:$0xff] %vm469_vm0, %v5037_v37 }
  0x6d   : > { %v5041_v28 = vpop.eup %5040  ;;  %v7087_v1 = vcombine.high %v5492_v13, %v5492_v13  ;;  %v1242_v0 = vmul.f32 %v965_v58, %v5545_v31  ;;  %5060 = vpow2.f32 %v1394_v17  ;;  %v1402_v48 = vmul.f32 1.442695, %v1238_v49  ;;  %1608 = vst.msk [vmem:[#allocation3 + $0xa8] sm:$0xff] %vm469_vm0, %v5039_v46 }
  0x6e   : > { %v5043_v16 = vpop.eup %5042  ;;  %v1243_v39 = vmul.f32 %v965_v58, %v5547_v14  ;;  %5062 = vpow2.f32 %v1396_v52  ;;  %v1404_v33 = vmul.f32 1.442695, %v1239_v34  ;;  %1609 = vst.msk [vmem:[#allocation3 + $0xb0] sm:$0xff] %vm469_vm0, %v5041_v28  ;;  %v7088_v13 = vcombine.high %v5826_v19, %v5826_v19 }
  0x6f   : > { %v973_v21 = vrot.slane %v7087_v1, %v5415_v23  ;;  %v5045_v35 = vpop.eup %5044  ;;  %v1244_v49 = vmul.f32 %v969_v44, %v5545_v31  ;;  %5064 = vpow2.f32 %v1398_v50  ;;  %v1406_v17 = vmul.f32 1.442695, %v1240_v55  ;;  %1610 = vst.msk [vmem:[#allocation3 + $0xb8] sm:$0xff] %vm469_vm0, %v5043_v16  ;;  %v7089_v55 = vld [vmem:[#allocation8_spill] sm:$0xff] }
  0x70   : > { %v977_v37 = vrot.slane %v7088_v13, %v5415_v23  ;;  %v5047_v46 = vpop.eup %5046  ;;  %v981_v58 = vrot.slane %v5923_v4, %v5415_v23  ;;  %v1245_v34 = vmul.f32 %v969_v44, %v5547_v14  ;;  %5066 = vpow2.f32 %v1400_v63  ;;  %1611 = vst.msk [vmem:[#allocation3 + $0xc0] sm:$0xff] %vm469_vm0, %v5045_v35 }
  0x71   : > { %v1408_v52 = vmul.f32 1.442695, %v1241_v56  ;;  %v5049_v28 = vpop.eup %5048  ;;  %v1246_v19 = vmul.f32 %v973_v21, %v5545_v31  ;;  %5068 = vpow2.f32 %v1402_v48  ;;  %v1410_v1 = vmul.f32 1.442695, %v1242_v0  ;;  %1612 = vst.msk [vmem:[#allocation3 + $0xc8] sm:$0xff] %vm469_vm0, %v5047_v46 }
  0x72   : > { %v2134_v50 = vrot.slane %v7089_v55, %v5415_v23  ;;  %v5051_v16 = vpop.eup %5050  ;;  %v985_v13 = vrot.slane %v5942_v25, %v5415_v23  ;;  %v1247_v44 = vmul.f32 %v973_v21, %v5547_v14  ;;  %5070 = vpow2.f32 %v1404_v33  ;;  %1613 = vst.msk [vmem:[#allocation3 + $0xd0] sm:$0xff] %vm469_vm0, %v5049_v28 }
  0x73   : > { %v1412_v56 = vmul.f32 1.442695, %v1243_v39  ;;  %v5053_v63 = vpop.eup %5052  ;;  %v989_v0 = vrot.slane %v682_v57, %v5415_v23  ;;  %v1248_v48 = vmul.f32 %v977_v37, %v5545_v31  ;;  %5072 = vpow2.f32 %v1406_v17  ;;  %1614 = vst.msk [vmem:[#allocation3 + $0xd8] sm:$0xff] %vm469_vm0, %v5051_v16  ;;  %v7090_v57 = vld [vmem:[#allocation9_spill] sm:$0xff] }
  0x74   : > { %v1414_v35 = vmul.f32 1.442695, %v1244_v49  ;;  %v5055_v46 = vpop.eup %5054  ;;  %v993_v25 = vrot.slane %v684_v12, %v5415_v23  ;;  %v1249_v21 = vmul.f32 %v977_v37, %v5547_v14  ;;  %5074 = vpow2.f32 %v1408_v52  ;;  %1615 = vst.msk [vmem:[#allocation3 + $0xe0] sm:$0xff] %vm469_vm0, %v5053_v63  ;;  %2136 = vbcast.lane.b32.xlu0 %v2134_v50, 256  ;;  %v7092_v63 = vld [vmem:[#allocation6_spill] sm:$0xff] }
  0x75   : > { %v1416_v39 = vmul.f32 1.442695, %v1245_v34  ;;  %v5057_v33 = vpop.eup %5056  ;;  %v1250_v28 = vmul.f32 %v981_v58, %v5545_v31  ;;  %5076 = vpow2.f32 %v1410_v1  ;;  %v1418_v4 = vmul.f32 1.442695, %v1246_v19  ;;  %1616 = vst.msk [vmem:[#allocation3 + $0xe8] sm:$0xff] %vm469_vm0, %v5055_v46  ;;  %v7091_v19 = vld [vmem:[#allocation10_spill] sm:$0xff] }
  0x76   : > { %v2156_v49 = vrot.slane %v7089_v55, %v7090_v57  ;;  %v5059_v17 = vpop.eup %5058  ;;  %v1251_v12 = vmul.f32 %v981_v58, %v5547_v14  ;;  %v1252_v37 = vmul.f32 %v985_v13, %v5545_v31  ;;  %5078 = vpow2.f32 %v1412_v56  ;;  %1617 = vst.msk [vmem:[#allocation3 + $0xf0] sm:$0xff] %vm469_vm0, %v5057_v33 }
  0x77   : > { %v1420_v34 = vmul.f32 1.442695, %v1247_v44  ;;  %v5061_v52 = vpop.eup %5060  ;;  %5080 = vpow2.f32 %v1414_v35  ;;  %v1422_v16 = vmul.f32 1.442695, %v1248_v48  ;;  %1618 = vst.msk [vmem:[#allocation3 + $0xf8] sm:$0xff] %vm469_vm0, %v5059_v17  ;;  %v6030_v1 = vrot.slane %v7089_v55, %v7091_v19 }
  0x78   : > { %2162 = vbcast.lane.b32.xlu1 %v2156_v49, 264  ;;  %v6033_v46 = vsub.s32 4, %v7092_v63  ;;  %v5063_v58 = vpop.eup %5062  ;;  %v997_v56 = vrot.slane %v5933_v15, %v5415_v23  ;;  %v1253_v44 = vmul.f32 %v985_v13, %v5547_v14  ;;  %5082 = vpow2.f32 %v1416_v39  ;;  %1619 = vst.msk [vmem:[#allocation3 + $0x100] sm:$0xff] %vm469_vm0, %v5061_v52  ;;  %2140 = vbcast.lane.b32.xlu0 %v2134_v50, 264 }
  0x79   : > { %v1424_v35 = vmul.f32 1.442695, %v1249_v21  ;;  %v5065_v48 = vpop.eup %5064  ;;  %v1001_v33 = vrot.slane %v5953_v36, %v5415_v23  ;;  %v1254_v17 = vmul.f32 %v989_v0, %v5545_v31  ;;  %5084 = vpow2.f32 %v1418_v4  ;;  %1620 = vst.msk [vmem:[#allocation3 + $0x108] sm:$0xff] %vm469_vm0, %v5063_v58 }
  0x7a   : > { %v1426_v10 = vmul.f32 1.442695, %v1250_v28  ;;  %v5067_v42 = vpop.eup %5066  ;;  %v1255_v30 = vmul.f32 %v989_v0, %v5547_v14  ;;  %v1256_v13 = vmul.f32 %v993_v25, %v5545_v31  ;;  %5086 = vpow2.f32 %v1420_v34  ;;  %1621 = vst.msk [vmem:[#allocation3 + $0x110] sm:$0xff] %vm469_vm0, %v5065_v48 }
  0x7b   : > { %v1428_v21 = vmul.f32 1.442695, %v1251_v12  ;;  %v5069_v39 = vpop.eup %5068  ;;  %5088 = vpow2.f32 %v1422_v16  ;;  %v1430_v28 = vmul.f32 1.442695, %v1252_v37  ;;  %1622 = vst.msk [vmem:[#allocation3 + $0x118] sm:$0xff] %vm469_vm0, %v5067_v42  ;;  %v6056_v50 = vrot.slane %v7089_v55, %v6033_v46 }
  0x7c   : > { %2173 = vbcast.lane.b32.xlu1 %v6030_v1, 264  ;;  %v6059_v0 = vsub.s32 5, %v7092_v63  ;;  %v5071_v4 = vpop.eup %5070  ;;  %v7093_v12 = vcombine.high %v5933_v15, %v5933_v15  ;;  %v1257_v37 = vmul.f32 %v993_v25, %v5547_v14  ;;  %5090 = vpow2.f32 %v1424_v35  ;;  %1623 = vst.msk [vmem:[#allocation3 + $0x120] sm:$0xff] %vm469_vm0, %v5069_v39  ;;  %2158 = vbcast.lane.b32.xlu0 %v2156_v49, 256  ;;  %v6074_v15 = vld [vmem:[%s6050_s15] sm:$0xff] }
  0x7d   : > { %v1432_v42 = vmul.f32 1.442695, %v1253_v44  ;;  %v5073_v52 = vpop.eup %5072  ;;  %v7094_v55 = vcombine.high %v5953_v36, %v5953_v36  ;;  %v1258_v58 = vmul.f32 %v997_v56, %v5545_v31  ;;  %5092 = vpow2.f32 %v1426_v10  ;;  %1624 = vst.msk [vmem:[#allocation3 + $0x128] sm:$0xff] %vm469_vm0, %v5071_v4  ;;  %7095 = vst [vmem:[#allocation8_spill] sm:$0xff] %v6074_v15  ;;  %v5252_v10 = vld [vmem:[%s5395_s6] sm:$0xff] }
  0x7e   : > { %v1005_v34 = vrot.slane %v7093_v12, %v5415_v23  ;;  %v1434_v48 = vmul.f32 1.442695, %v1254_v17  ;;  %v5075_v25 = vpop.eup %5074  ;;  %v1259_v44 = vmul.f32 %v997_v56, %v5547_v14  ;;  %v1260_v35 = vmul.f32 %v1001_v33, %v5545_v31  ;;  %1625 = vst.msk [vmem:[#allocation3 + $0x130] sm:$0xff] %vm469_vm0, %v5073_v52 }
  0x7f   : > { %v1009_v16 = vrot.slane %v7094_v55, %v5415_v23  ;;  %5094 = vpow2.f32 %v1428_v21  ;;  %v1436_v39 = vmul.f32 1.442695, %v1255_v30  ;;  %v5077_v36 = vpop.eup %5076  ;;  %v1438_v12 = vmul.f32 1.442695, %v1256_v13  ;;  %1626 = vst.msk [vmem:[#allocation3 + $0x138] sm:$0xff] %vm469_vm0, %v5075_v25 }
  0x80   : > { %5096 = vpow2.f32 %v1430_v28  ;;  %2184 = vbcast.lane.b32.xlu1 %v6056_v50, 264  ;;  %v6083_v49 = vrot.slane %v5252_v10, %v6059_v0  ;;  %v6086_v17 = vsub.s32 6, %v7092_v63  ;;  %v5079_v4 = vpop.eup %5078  ;;  %v1261_v30 = vmul.f32 %v1001_v33, %v5547_v14  ;;  %1627 = vst.msk [vmem:[#allocation3 + $0x140] sm:$0xff] %vm469_vm0, %v5077_v36  ;;  %2169 = vbcast.lane.b32.xlu0 %v6030_v1, 256 }
  0x81   : > { %5098 = vpow2.f32 %v1432_v42  ;;  %v1440_v21 = vmul.f32 1.442695, %v1257_v37  ;;  %v6092_v13 = vrot.slane %v6074_v15, %v5407_v9  ;;  %v5081_v28 = vpop.eup %5080  ;;  %v1262_v52 = vmul.f32 %v1005_v34, %v5545_v31  ;;  %1628 = vst.msk [vmem:[#allocation3 + $0x148] sm:$0xff] %vm469_vm0, %v5079_v4 }
  0x82   : > { %v1263_v55 = vmul.f32 %v1005_v34, %v5547_v14  ;;  %5100 = vpow2.f32 %v1434_v48  ;;  %v1442_v25 = vmul.f32 1.442695, %v1258_v58  ;;  %v5083_v33 = vpop.eup %5082  ;;  %v1264_v37 = vmul.f32 %v1009_v16, %v5545_v31  ;;  %1629 = vst.msk [vmem:[#allocation3 + $0x150] sm:$0xff] %vm469_vm0, %v5081_v28  ;;  %v6122_v28 = vld [vmem:[%s5395_s6 + $0x8] sm:$0xff] }
  0x83   : > { %5102 = vpow2.f32 %v1436_v39  ;;  %v1444_v42 = vmul.f32 1.442695, %v1259_v44  ;;  %v1746_v36 = vcombine.high %v6092_v13, %v6092_v13  ;;  %v5085_v15 = vpop.eup %5084  ;;  %v1446_v47 = vmul.f32 1.442695, %v1260_v35  ;;  %1630 = vst.msk [vmem:[#allocation3 + $0x158] sm:$0xff] %vm469_vm0, %v5083_v33  ;;  %v7096_v33 = vld [vmem:[#allocation11_spill] sm:$0xff] }
  0x84   : > { %5104 = vpow2.f32 %v1438_v12  ;;  %2195 = vbcast.lane.b32.xlu1 %v6083_v49, 264  ;;  %v2200_v34 = vrot.slane %v5252_v10, %v6086_v17  ;;  %v6106_v1 = vsub.s32 7, %v7092_v63  ;;  %v5087_v31 = vpop.eup %5086  ;;  %v1265_v58 = vmul.f32 %v1009_v16, %v5547_v14  ;;  %1631 = vst.msk [vmem:[#allocation3 + $0x160] sm:$0xff] %vm469_vm0, %v5085_v15  ;;  %2180 = vbcast.lane.b32.xlu0 %v6056_v50, 256 }
  0x85   : > { %5106 = vpow2.f32 %v1440_v21  ;;  %v1448_v48 = vmul.f32 1.442695, %v1261_v30  ;;  %v6111_v44 = vrot.slane %v1746_v36, %v5407_v9  ;;  %v5089_v35 = vpop.eup %5088  ;;  %v1450_v39 = vmul.f32 1.442695, %v1262_v52  ;;  %1632 = vst.msk [vmem:[#allocation3 + $0x168] sm:$0xff] %vm469_vm0, %v5087_v31 }
  0x86   : > { %5108 = vpow2.f32 %v1442_v25  ;;  %v5091_v63 = vpop.eup %5090  ;;  %v1452_v4 = vmul.f32 1.442695, %v1263_v55  ;;  %1633 = vst.msk [vmem:[#allocation3 + $0x170] sm:$0xff] %vm469_vm0, %v5089_v35  ;;  %v1454_v15 = vmul.f32 1.442695, %v1264_v37  ;;  %v2211_v30 = vrot.slane %v5252_v10, %v6106_v1  ;;  %v7097_v37 = vld [vmem:[#allocation12_spill] sm:$0xff] }
  0x87   : > { %5110 = vpow2.f32 %v1444_v42  ;;  %v2842_v14 = vrot.slane %v6111_v44, %v5415_v23  ;;  %v5093_v16 = vpop.eup %5092  ;;  %1634 = vst.msk [vmem:[#allocation3 + $0x178] sm:$0xff] %vm469_vm0, %v5091_v63  ;;  %v1456_v50 = vmul.f32 1.442695, %v1265_v58  ;;  %v1458_v42 = vmul.f32 1.442695, %v7096_v33  ;;  %v7102_v33 = vld [vmem:[#allocation16_spill] sm:$0xff] }
  0x88   : > { %5112 = vpow2.f32 %v1446_v47  ;;  %2206 = vbcast.lane.b32.xlu1 %v2200_v34, 264  ;;  %1635 = vst.msk [vmem:[#allocation3 + $0x180] sm:$0xff] %vm469_vm0, %v5093_v16  ;;  %2191 = vbcast.lane.b32.xlu0 %v6083_v49, 256  ;;  %v1460_v10 = vmul.f32 1.442695, %v5607_v60  ;;  %v2222_v49 = vrot.slane %v6122_v28, %v5415_v23 }
  0x89   : > { %v5095_v21 = vpop.eup %5094  ;;  %5114 = vpow2.f32 %v1448_v48  ;;  %v1462_v36 = vmul.f32 1.442695, %v7097_v37  ;;  %v1464_v60 = vmul.f32 1.442695, %v5613_v61  ;;  %v7098_v48 = vld [vmem:[#allocation13_spill] sm:$0xff]  ;;  %v7100_v61 = vld [vmem:[#allocation7_spill] sm:$0xff] }
  0x8a   : > { %v5097_v25 = vpop.eup %5096  ;;  %5116 = vpow2.f32 %v1450_v39  ;;  %1636 = vst.msk [vmem:[#allocation3 + $0x188] sm:$0xff] %vm469_vm0, %v5095_v21  ;;  %v1466_v35 = vmul.f32 1.442695, %v7098_v48  ;;  %v2233_v16 = vrot.slane %v6122_v28, %v7100_v61 }
  0x8b   : > { %v5099_v47 = vpop.eup %5098  ;;  %5118 = vpow2.f32 %v1452_v4  ;;  %1637 = vst.msk [vmem:[#allocation3 + $0x190] sm:$0xff] %vm469_vm0, %v5097_v25  ;;  %v7099_v4 = vld [vmem:[#allocation14_spill] sm:$0xff] }
  0x8c   : > { %v2148_v56 = vpop.permute.xlu1 %2147  ;;  %5120 = vpow2.f32 %v1454_v15  ;;  %1638 = vst.msk [vmem:[#allocation3 + $0x198] sm:$0xff] %vm469_vm0, %v5099_v47  ;;  %2217 = vbcast.lane.b32.xlu1 %v2211_v30, 264  ;;  %2202 = vbcast.lane.b32.xlu0 %v2200_v34, 256  ;;  %v1472_v34 = vmul.f32 1.442695, %v5625_v20  ;;  %v2244_v20 = vrot.slane %v6122_v28, %v7090_v57 }
  0x8d   : > { %v3157_v52 = vmul.f32 %v2842_v14, %v2148_v56  ;;  %v5101_v56 = vpop.eup %5100  ;;  %5122 = vpow2.f32 %v1456_v50 }
  0x8e   : > { %v5103_v31 = vpop.eup %5102  ;;  %1639 = vst.msk [vmem:[#allocation3 + $0x1a0] sm:$0xff] %vm469_vm0, %v5101_v56  ;;  %5124 = vpow2.f32 %v1458_v42  ;;  %v1478_v42 = vmul.f32 1.442695, %v7102_v33 }
  0x8f   : > { %3285 = vst.msk [vmem:[#allocation4 + $0x10] sm:$0xff] %vm469_vm0, %v3157_v52  ;;  %v5105_v58 = vpop.eup %5104  ;;  %1640 = vst.msk [vmem:[#allocation3 + $0x1a8] sm:$0xff] %vm469_vm0, %v5103_v31  ;;  %5126 = vpow2.f32 %v1460_v10 }
  0x90   : > { %v2152_v12 = vpop.permute.xlu1 %2151  ;;  %v5107_v39 = vpop.eup %5106  ;;  %1641 = vst.msk [vmem:[#allocation3 + $0x1b0] sm:$0xff] %vm469_vm0, %v5105_v58  ;;  %5128 = vpow2.f32 %v1462_v36  ;;  %2228 = vbcast.lane.b32.xlu1 %v2222_v49, 264  ;;  %2213 = vbcast.lane.b32.xlu0 %v2211_v30, 256  ;;  %v1480_v30 = vmul.f32 1.442695, %v5637_v26  ;;  %v2255_v26 = vrot.slane %v6122_v28, %v7091_v19 }
  0x91   : > { %v3158_v55 = vmul.f32 %v2842_v14, %v2152_v12  ;;  %v1468_v12 = vmul.f32 1.442695, %v5619_v62  ;;  %v5109_v63 = vpop.eup %5108  ;;  %v1470_v14 = vmul.f32 1.442695, %v7099_v4  ;;  %1642 = vst.msk [vmem:[#allocation3 + $0x1b8] sm:$0xff] %vm469_vm0, %v5107_v39  ;;  %5130 = vpow2.f32 %v1464_v60  ;;  %v7101_v62 = vld [vmem:[#allocation15_spill] sm:$0xff] }
  0x92   : > { %v5111_v15 = vpop.eup %5110  ;;  %1643 = vst.msk [vmem:[#allocation3 + $0x1c0] sm:$0xff] %vm469_vm0, %v5109_v63  ;;  %5132 = vpow2.f32 %v1466_v35  ;;  %v1474_v50 = vmul.f32 1.442695, %v7101_v62  ;;  %v1484_v36 = vmul.f32 1.442695, %v5643_v3  ;;  %v7104_v60 = vld [vmem:[#allocation18_spill] sm:$0xff] }
  0x93   : > { %3286 = vst.msk [vmem:[#allocation4 + $0x18] sm:$0xff] %vm469_vm0, %v3158_v55  ;;  %v5113_v21 = vpop.eup %5112  ;;  %1644 = vst.msk [vmem:[#allocation3 + $0x1c8] sm:$0xff] %vm469_vm0, %v5111_v15  ;;  %5134 = vpow2.f32 %v1468_v12  ;;  %v1476_v55 = vmul.f32 1.442695, %v5631_v38  ;;  %v7103_v38 = vld [vmem:[#allocation17_spill] sm:$0xff]  ;;  %v7105_v3 = vld [vmem:[#allocation19_spill] sm:$0xff] }
  0x94   : > { %v5115_v52 = vpop.eup %5114  ;;  %1645 = vst.msk [vmem:[#allocation3 + $0x1d0] sm:$0xff] %vm469_vm0, %v5113_v21  ;;  %5136 = vpow2.f32 %v1470_v14  ;;  %2239 = vbcast.lane.b32.xlu1 %v2233_v16, 264  ;;  %v1482_v56 = vmul.f32 1.442695, %v7103_v38  ;;  %2224 = vbcast.lane.b32.xlu0 %v2222_v49, 256  ;;  %v7106_v14 = vld [vmem:[#allocation20_spill] sm:$0xff] }
  0x95   : > { %v5117_v25 = vpop.eup %5116  ;;  %1646 = vst.msk [vmem:[#allocation3 + $0x1d8] sm:$0xff] %vm469_vm0, %v5115_v52  ;;  %5138 = vpow2.f32 %v1472_v34  ;;  %v1486_v58 = vmul.f32 1.442695, %v7104_v60  ;;  %v1488_v49 = vmul.f32 1.442695, %v5649_v45  ;;  %v2266_v45 = vrot.slane %v6122_v28, %v6033_v46 }
  0x96   : > { %v5119_v47 = vpop.eup %5118  ;;  %1647 = vst.msk [vmem:[#allocation3 + $0x1e0] sm:$0xff] %vm469_vm0, %v5117_v25  ;;  %5140 = vpow2.f32 %v1474_v50  ;;  %v1490_v39 = vmul.f32 1.442695, %v7105_v3  ;;  %v1492_v63 = vmul.f32 1.442695, %v5655_v51  ;;  %v7107_v51 = vld [vmem:[#allocation21_spill] sm:$0xff] }
  0x97   : > { %v5121_v10 = vpop.eup %5120  ;;  %1648 = vst.msk [vmem:[#allocation3 + $0x1e8] sm:$0xff] %vm469_vm0, %v5119_v47  ;;  %5142 = vpow2.f32 %v1476_v55  ;;  %v1494_v15 = vmul.f32 1.442695, %v7106_v14  ;;  %v1498_v62 = vmul.f32 1.442695, %v7107_v51  ;;  %v7108_v25 = vld [vmem:[#allocation22_spill] sm:$0xff] }
  0x98   : > { %v5123_v37 = vpop.eup %5122  ;;  %1649 = vst.msk [vmem:[#allocation3 + $0x1f0] sm:$0xff] %vm469_vm0, %v5121_v10  ;;  %5144 = vpow2.f32 %v1478_v42  ;;  %2250 = vbcast.lane.b32.xlu1 %v2244_v20, 264  ;;  %2235 = vbcast.lane.b32.xlu0 %v2233_v16, 256  ;;  %v1496_v16 = vmul.f32 1.442695, %v5661_v29  ;;  %v2277_v29 = vrot.slane %v6122_v28, %v6059_v0  ;;  %v7112_v3 = vld [vmem:[#allocation26_spill] sm:$0xff] }
  0x99   : > { %v5125_v31 = vpop.eup %5124  ;;  %1650 = vst.msk [vmem:[#allocation3 + $0x1f8] sm:$0xff] %vm469_vm0, %v5123_v37  ;;  %5146 = vpow2.f32 %v1480_v30  ;;  %v1500_v52 = vmul.f32 1.442695, %v5667_v54  ;;  %v1502_v33 = vmul.f32 1.442695, %v7108_v25  ;;  %v7109_v54 = vld [vmem:[#allocation23_spill] sm:$0xff] }
  0x9a   : > { %v5127_v48 = vpop.eup %5126  ;;  %1651 = vst.msk [vmem:[#allocation3 + $0x200] sm:$0xff] %vm469_vm0, %v5125_v31  ;;  %5148 = vpow2.f32 %v1482_v56  ;;  %v1506_v30 = vmul.f32 1.442695, %v7109_v54  ;;  %v1508_v38 = vmul.f32 1.442695, %v5679_v53  ;;  %v7110_v37 = vld [vmem:[#allocation24_spill] sm:$0xff] }
  0x9b   : > { %v5129_v35 = vpop.eup %5128  ;;  %1652 = vst.msk [vmem:[#allocation3 + $0x208] sm:$0xff] %vm469_vm0, %v5127_v48  ;;  %5150 = vpow2.f32 %v1484_v36  ;;  %v1510_v36 = vmul.f32 1.442695, %v7110_v37  ;;  %v1512_v60 = vmul.f32 1.442695, %v5685_v59  ;;  %v7111_v53 = vld [vmem:[#allocation25_spill] sm:$0xff] }
  0x9c   : > { %v5131_v12 = vpop.eup %5130  ;;  %1653 = vst.msk [vmem:[#allocation3 + $0x210] sm:$0xff] %vm469_vm0, %v5129_v35  ;;  %5152 = vpow2.f32 %v1486_v58  ;;  %2261 = vbcast.lane.b32.xlu1 %v2255_v26, 264  ;;  %2246 = vbcast.lane.b32.xlu0 %v2244_v20, 256  ;;  %v1504_v20 = vmul.f32 1.442695, %v5673_v8  ;;  %v2288_v8 = vrot.slane %v6122_v28, %v6086_v17  ;;  %v7113_v14 = vld [vmem:[#allocation27_spill] sm:$0xff] }
  0x9d   : > { %v5133_v4 = vpop.eup %5132  ;;  %1654 = vst.msk [vmem:[#allocation3 + $0x218] sm:$0xff] %vm469_vm0, %v5131_v12  ;;  %5154 = vpow2.f32 %v1488_v49  ;;  %v1516_v49 = vmul.f32 1.442695, %v5691_v43  ;;  %v1518_v59 = vmul.f32 1.442695, %v7112_v3 }
  0x9e   : > { %v5135_v34 = vpop.eup %5134  ;;  %1655 = vst.msk [vmem:[#allocation3 + $0x220] sm:$0xff] %vm469_vm0, %v5133_v4  ;;  %5156 = vpow2.f32 %v1490_v39  ;;  %v2299_v39 = vrot.slane %v6122_v28, %v6106_v1  ;;  %v6208_v4 = vld [vmem:[%s5395_s6 + $0x10] sm:$0xff]  ;;  %v1532_v25 = vmul.f32 1.442695, %v5715_v27  ;;  %v1538_v27 = vmul.f32 1.442695, %v5724_v24 }
  0x9f   : > { %v5137_v21 = vpop.eup %5136  ;;  %1656 = vst.msk [vmem:[#allocation3 + $0x228] sm:$0xff] %vm469_vm0, %v5135_v34  ;;  %5158 = vpow2.f32 %v1492_v63  ;;  %v1520_v63 = vmul.f32 1.442695, %v5697_v5  ;;  %v1524_v34 = vmul.f32 1.442695, %v5703_v7  ;;  %v7114_v5 = vld [vmem:[#allocation28_spill] sm:$0xff] }
  0xa0   : > { %v5139_v50 = vpop.eup %5138  ;;  %1657 = vst.msk [vmem:[#allocation3 + $0x230] sm:$0xff] %vm469_vm0, %v5137_v21  ;;  %5160 = vpow2.f32 %v1494_v15  ;;  %2272 = vbcast.lane.b32.xlu1 %v2266_v45, 264  ;;  %2257 = vbcast.lane.b32.xlu0 %v2255_v26, 256  ;;  %v1514_v26 = vmul.f32 1.442695, %v7111_v53  ;;  %v2310_v21 = vrot.slane %v6208_v4, %v5415_v23  ;;  %v7115_v7 = vld [vmem:[#allocation29_spill] sm:$0xff] }
  0xa1   : > { %v5141_v55 = vpop.eup %5140  ;;  %1658 = vst.msk [vmem:[#allocation3 + $0x238] sm:$0xff] %vm469_vm0, %v5139_v50  ;;  %5162 = vpow2.f32 %v1496_v16  ;;  %v1522_v15 = vmul.f32 1.442695, %v7113_v14  ;;  %v1526_v16 = vmul.f32 1.442695, %v7114_v5  ;;  %v7121_v14 = vld [vmem:[#allocation35_spill] sm:$0xff] }
  0xa2   : > { %v5143_v42 = vpop.eup %5142  ;;  %1659 = vst.msk [vmem:[#allocation3 + $0x240] sm:$0xff] %vm469_vm0, %v5141_v55  ;;  %5164 = vpow2.f32 %v1498_v62  ;;  %v1528_v62 = vmul.f32 1.442695, %v5709_v22  ;;  %v2321_v22 = vrot.slane %v6208_v4, %v7100_v61  ;;  %v1554_v3 = vmul.f32 1.442695, %v5751_v32  ;;  %v7123_v5 = vld [vmem:[#allocation37_spill] sm:$0xff] }
  0xa3   : > { %v5145_v47 = vpop.eup %5144  ;;  %1660 = vst.msk [vmem:[#allocation3 + $0x248] sm:$0xff] %vm469_vm0, %v5143_v42  ;;  %5166 = vpow2.f32 %v1500_v52  ;;  %v1530_v52 = vmul.f32 1.442695, %v7115_v7 }
  0xa4   : > { %v5147_v10 = vpop.eup %5146  ;;  %1661 = vst.msk [vmem:[#allocation3 + $0x250] sm:$0xff] %vm469_vm0, %v5145_v47  ;;  %5168 = vpow2.f32 %v1502_v33  ;;  %2283 = vbcast.lane.b32.xlu1 %v2277_v29, 264  ;;  %2268 = vbcast.lane.b32.xlu0 %v2266_v45, 256  ;;  %v1536_v47 = vmul.f32 1.442695, %v5721_v6  ;;  %v2332_v6 = vrot.slane %v6208_v4, %v7090_v57 }
  0xa5   : > { %v5149_v56 = vpop.eup %5148  ;;  %1662 = vst.msk [vmem:[#allocation3 + $0x258] sm:$0xff] %vm469_vm0, %v5147_v10  ;;  %5170 = vpow2.f32 %v1504_v20  ;;  %v1540_v10 = vmul.f32 1.442695, %v5727_v11  ;;  %v1546_v11 = vmul.f32 1.442695, %v5736_v18 }
  0xa6   : > { %v5151_v31 = vpop.eup %5150  ;;  %1663 = vst.msk [vmem:[#allocation3 + $0x260] sm:$0xff] %vm469_vm0, %v5149_v56  ;;  %5172 = vpow2.f32 %v1506_v30  ;;  %v7117_v56 = vld [vmem:[#allocation31_spill] sm:$0xff] }
  0xa7   : > { %v5153_v58 = vpop.eup %5152  ;;  %1664 = vst.msk [vmem:[#allocation3 + $0x268] sm:$0xff] %vm469_vm0, %v5151_v31  ;;  %5174 = vpow2.f32 %v1508_v38  ;;  %v1542_v37 = vmul.f32 1.442695, %v7117_v56 }
  0xa8   : > { %v5155_v48 = vpop.eup %5154  ;;  %1665 = vst.msk [vmem:[#allocation3 + $0x270] sm:$0xff] %vm469_vm0, %v5153_v58  ;;  %5176 = vpow2.f32 %v1510_v36  ;;  %2294 = vbcast.lane.b32.xlu1 %v2288_v8, 264  ;;  %2279 = vbcast.lane.b32.xlu0 %v2277_v29, 256  ;;  %v7116_v29 = vld [vmem:[#allocation30_spill] sm:$0xff]  ;;  %v1544_v36 = vmul.f32 1.442695, %v5733_v2  ;;  %v2343_v2 = vrot.slane %v6208_v4, %v7091_v19 }
  0xa9   : > { %v5157_v35 = vpop.eup %5156  ;;  %1666 = vst.msk [vmem:[#allocation3 + $0x278] sm:$0xff] %vm469_vm0, %v5155_v48  ;;  %5178 = vpow2.f32 %v1512_v60  ;;  %v1534_v42 = vmul.f32 1.442695, %v7116_v29  ;;  %v7118_v60 = vld [vmem:[#allocation32_spill] sm:$0xff]  ;;  %v7119_v48 = vld [vmem:[#allocation33_spill] sm:$0xff] }
  0xaa   : > { %v5159_v12 = vpop.eup %5158  ;;  %1667 = vst.msk [vmem:[#allocation3 + $0x280] sm:$0xff] %vm469_vm0, %v5157_v35  ;;  %5180 = vpow2.f32 %v1514_v26  ;;  %v1548_v58 = vmul.f32 1.442695, %v7118_v60  ;;  %v1550_v26 = vmul.f32 1.442695, %v5743_v40  ;;  %v7132_v60 = vld [vmem:[#allocation46_spill] sm:$0xff] }
  0xab   : > { %v5161_v43 = vpop.eup %5160  ;;  %1668 = vst.msk [vmem:[#allocation3 + $0x288] sm:$0xff] %vm469_vm0, %v5159_v12  ;;  %5182 = vpow2.f32 %v1516_v49  ;;  %v1552_v49 = vmul.f32 1.442695, %v7119_v48  ;;  %v6291_v48 = vld [vmem:[%s5395_s6 + $0x18] sm:$0xff] }
  0xac   : > { %v5163_v45 = vpop.eup %5162  ;;  %1669 = vst.msk [vmem:[#allocation3 + $0x290] sm:$0xff] %vm469_vm0, %v5161_v43  ;;  %5184 = vpow2.f32 %v1518_v59  ;;  %2305 = vbcast.lane.b32.xlu1 %v2299_v39, 264  ;;  %2290 = vbcast.lane.b32.xlu0 %v2288_v8, 256  ;;  %v7120_v59 = vld [vmem:[#allocation34_spill] sm:$0xff]  ;;  %v2354_v43 = vrot.slane %v6208_v4, %v6033_v46 }
  0xad   : > { %v5165_v28 = vpop.eup %5164  ;;  %1670 = vst.msk [vmem:[#allocation3 + $0x298] sm:$0xff] %vm469_vm0, %v5163_v45  ;;  %5186 = vpow2.f32 %v1520_v63  ;;  %v1558_v63 = vmul.f32 1.442695, %v5759_v41 }
  0xae   : > { %v5167_v51 = vpop.eup %5166  ;;  %1671 = vst.msk [vmem:[#allocation3 + $0x2a0] sm:$0xff] %vm469_vm0, %v5165_v28  ;;  %5188 = vpow2.f32 %v1522_v15  ;;  %v1560_v15 = vmul.f32 1.442695, %v7121_v14 }
  0xaf   : > { %v5169_v50 = vpop.eup %5168  ;;  %1672 = vst.msk [vmem:[#allocation3 + $0x2a8] sm:$0xff] %vm469_vm0, %v5167_v51  ;;  %5190 = vpow2.f32 %v1524_v34  ;;  %v7122_v34 = vld [vmem:[#allocation36_spill] sm:$0xff]  ;;  %v7124_v51 = vld [vmem:[#allocation38_spill] sm:$0xff] }
  0xb0   : > { %v5171_v55 = vpop.eup %5170  ;;  %1673 = vst.msk [vmem:[#allocation3 + $0x2b0] sm:$0xff] %vm469_vm0, %v5169_v50  ;;  %5192 = vpow2.f32 %v1526_v16  ;;  %2316 = vbcast.lane.b32.xlu1 %v2310_v21, 264  ;;  %2301 = vbcast.lane.b32.xlu0 %v2299_v39, 256  ;;  %v1556_v39 = vmul.f32 1.442695, %v7120_v59  ;;  %v2365_v50 = vrot.slane %v6208_v4, %v6059_v0 }
  0xb1   : > { %v5173_v33 = vpop.eup %5172  ;;  %1674 = vst.msk [vmem:[#allocation3 + $0x2b8] sm:$0xff] %vm469_vm0, %v5171_v55  ;;  %5194 = vpow2.f32 %v1528_v62  ;;  %v1562_v28 = vmul.f32 1.442695, %v7122_v34  ;;  %v1564_v16 = vmul.f32 1.442695, %v7123_v5  ;;  %v2431_v5 = vrot.slane %v6291_v48, %v7091_v19 }
  0xb2   : > { %v5175_v20 = vpop.eup %5174  ;;  %1675 = vst.msk [vmem:[#allocation3 + $0x2c0] sm:$0xff] %vm469_vm0, %v5173_v33  ;;  %5196 = vpow2.f32 %v1530_v52  ;;  %v1566_v62 = vmul.f32 1.442695, %v7124_v51  ;;  %v7125_v52 = vld [vmem:[#allocation39_spill] sm:$0xff]  ;;  %v7126_v33 = vld [vmem:[#allocation40_spill] sm:$0xff]  ;;  %v1754_v51 = vrot.slane %v6092_v13, %v5407_v9 }
  0xb3   : > { %v5177_v54 = vpop.eup %5176  ;;  %1676 = vst.msk [vmem:[#allocation3 + $0x2c8] sm:$0xff] %vm469_vm0, %v5175_v20  ;;  %5198 = vpow2.f32 %v1532_v25  ;;  %v1568_v55 = vmul.f32 1.442695, %v7125_v52  ;;  %v1570_v29 = vmul.f32 1.442695, %v7126_v33  ;;  %v2464_v52 = vrot.slane %v6291_v48, %v6086_v17 }
  0xb4   : > { %v5179_v30 = vpop.eup %5178  ;;  %1677 = vst.msk [vmem:[#allocation3 + $0x2d0] sm:$0xff] %vm469_vm0, %v5177_v54  ;;  %5200 = vpow2.f32 %v1534_v42  ;;  %2327 = vbcast.lane.b32.xlu1 %v2321_v22, 264  ;;  %2312 = vbcast.lane.b32.xlu0 %v2310_v21, 256  ;;  %v7128_v54 = vld [vmem:[#allocation42_spill] sm:$0xff]  ;;  %v1778_v33 = vcombine.high %v6111_v44, %v6111_v44 }
  0xb5   : > { %v5181_v38 = vpop.eup %5180  ;;  %1678 = vst.msk [vmem:[#allocation3 + $0x2d8] sm:$0xff] %vm469_vm0, %v5179_v30  ;;  %5202 = vpow2.f32 %v1536_v47  ;;  %v2376_v30 = vrot.slane %v6208_v4, %v6086_v17 }
  0xb6   : > { %v5183_v24 = vpop.eup %5182  ;;  %1679 = vst.msk [vmem:[#allocation3 + $0x2e0] sm:$0xff] %vm469_vm0, %v5181_v38  ;;  %5204 = vpow2.f32 %v1538_v27  ;;  %v1574_v27 = vmul.f32 1.442695, %v7128_v54  ;;  %v7129_v38 = vld [vmem:[#allocation43_spill] sm:$0xff] }
  0xb7   : > { %v5185_v8 = vpop.eup %5184  ;;  %1680 = vst.msk [vmem:[#allocation3 + $0x2e8] sm:$0xff] %vm469_vm0, %v5183_v24  ;;  %5206 = vpow2.f32 %v1540_v10  ;;  %v1576_v56 = vmul.f32 1.442695, %v7129_v38 }
  0xb8   : > { %v5187_v31 = vpop.eup %5186  ;;  %1681 = vst.msk [vmem:[#allocation3 + $0x2f0] sm:$0xff] %vm469_vm0, %v5185_v8  ;;  %5208 = vpow2.f32 %v1542_v37  ;;  %2338 = vbcast.lane.b32.xlu1 %v2332_v6, 264  ;;  %2323 = vbcast.lane.b32.xlu0 %v2321_v22, 256  ;;  %v7127_v22 = vld [vmem:[#allocation41_spill] sm:$0xff] }
  0xb9   : > { %v5189_v53 = vpop.eup %5188  ;;  %1682 = vst.msk [vmem:[#allocation3 + $0x2f8] sm:$0xff] %vm469_vm0, %v5187_v31  ;;  %5210 = vpow2.f32 %v1544_v36  ;;  %v1572_v20 = vmul.f32 1.442695, %v7127_v22  ;;  %v7131_v8 = vld [vmem:[#allocation45_spill] sm:$0xff] }
  0xba   : > { %v5191_v18 = vpop.eup %5190  ;;  %1683 = vst.msk [vmem:[#allocation3 + $0x300] sm:$0xff] %vm469_vm0, %v5189_v53  ;;  %5212 = vpow2.f32 %v1546_v11  ;;  %v1580_v11 = vmul.f32 1.442695, %v7131_v8  ;;  %v2387_v53 = vrot.slane %v6208_v4, %v6106_v1  ;;  %v2398_v4 = vrot.slane %v6291_v48, %v5415_v23 }
  0xbb   : > { %v5193_v35 = vpop.eup %5192  ;;  %1684 = vst.msk [vmem:[#allocation3 + $0x308] sm:$0xff] %vm469_vm0, %v5191_v18  ;;  %5214 = vpow2.f32 %v1548_v58  ;;  %v1582_v58 = vmul.f32 1.442695, %v7132_v60 }
  0xbc   : > { %v5195_v40 = vpop.eup %5194  ;;  %1685 = vst.msk [vmem:[#allocation3 + $0x310] sm:$0xff] %vm469_vm0, %v5193_v35  ;;  %5216 = vpow2.f32 %v1550_v26  ;;  %2349 = vbcast.lane.b32.xlu1 %v2343_v2, 264  ;;  %2334 = vbcast.lane.b32.xlu0 %v2332_v6, 256  ;;  %v7130_v6 = vld [vmem:[#allocation44_spill] sm:$0xff] }
  0xbd   : > { %v5197_v12 = vpop.eup %5196  ;;  %1686 = vst.msk [vmem:[#allocation3 + $0x318] sm:$0xff] %vm469_vm0, %v5195_v40  ;;  %5218 = vpow2.f32 %v1552_v49  ;;  %v1578_v24 = vmul.f32 1.442695, %v7130_v6 }
  0xbe   : > { %v5199_v32 = vpop.eup %5198  ;;  %1687 = vst.msk [vmem:[#allocation3 + $0x320] sm:$0xff] %vm469_vm0, %v5197_v12  ;;  %5220 = vpow2.f32 %v1554_v3 }
  0xbf   : > { %v5201_v45 = vpop.eup %5200  ;;  %1688 = vst.msk [vmem:[#allocation3 + $0x328] sm:$0xff] %vm469_vm0, %v5199_v32  ;;  %5222 = vpow2.f32 %v1556_v39 }
  0xc0   : > { %v5203_v41 = vpop.eup %5202  ;;  %1689 = vst.msk [vmem:[#allocation3 + $0x330] sm:$0xff] %vm469_vm0, %v5201_v45  ;;  %5224 = vpow2.f32 %v1558_v63  ;;  %2360 = vbcast.lane.b32.xlu1 %v2354_v43, 264  ;;  %2345 = vbcast.lane.b32.xlu0 %v2343_v2, 256  ;;  %v7133_v2 = vld [vmem:[#allocation47_spill] sm:$0xff]  ;;  %v2409_v63 = vrot.slane %v6291_v48, %v7100_v61  ;;  %v2420_v45 = vrot.slane %v6291_v48, %v7090_v57 }
  0xc1   : > { %v5205_v21 = vpop.eup %5204  ;;  %1690 = vst.msk [vmem:[#allocation3 + $0x338] sm:$0xff] %vm469_vm0, %v5203_v41  ;;  %5226 = vpow2.f32 %v1560_v15  ;;  %v1584_v18 = vmul.f32 1.442695, %v7133_v2 }
  0xc2   : > { %v5207_v7 = vpop.eup %5206  ;;  %1691 = vst.msk [vmem:[#allocation3 + $0x340] sm:$0xff] %vm469_vm0, %v5205_v21  ;;  %5228 = vpow2.f32 %v1562_v28  ;;  %v2453_v21 = vrot.slane %v6291_v48, %v6059_v0 }
  0xc3   : > { %v5209_v25 = vpop.eup %5208  ;;  %1692 = vst.msk [vmem:[#allocation3 + $0x348] sm:$0xff] %vm469_vm0, %v5207_v7  ;;  %5230 = vpow2.f32 %v1564_v16  ;;  %v2442_v16 = vrot.slane %v6291_v48, %v6033_v46 }
  0xc4   : > { %v5211_v42 = vpop.eup %5210  ;;  %1693 = vst.msk [vmem:[#allocation3 + $0x350] sm:$0xff] %vm469_vm0, %v5209_v25  ;;  %5232 = vpow2.f32 %v1566_v62  ;;  %2371 = vbcast.lane.b32.xlu1 %v2365_v50, 264  ;;  %2356 = vbcast.lane.b32.xlu0 %v2354_v43, 256  ;;  %v1776_v62 = vcombine.high %v1754_v51, %v1754_v51 }
  0xc5   : > { %v5213_v47 = vpop.eup %5212  ;;  %1694 = vst.msk [vmem:[#allocation3 + $0x358] sm:$0xff] %vm469_vm0, %v5211_v42  ;;  %5234 = vpow2.f32 %v1568_v55  ;;  %v2838_v55 = vrot.slane %v1754_v51, %v5415_v23  ;;  %v2475_v42 = vrot.slane %v6291_v48, %v6106_v1  ;;  %v1716_v48 = vld [vmem:[%s6050_s15 + $0x8] sm:$0xff] }
  0xc6   : > { %v5215_v10 = vpop.eup %5214  ;;  %1695 = vst.msk [vmem:[#allocation3 + $0x360] sm:$0xff] %vm469_vm0, %v5213_v47  ;;  %5236 = vpow2.f32 %v1570_v29  ;;  %v2846_v25 = vrot.slane %v1776_v62, %v5415_v23 }
  0xc7   : > { %v5217_v37 = vpop.eup %5216  ;;  %1696 = vst.msk [vmem:[#allocation3 + $0x368] sm:$0xff] %vm469_vm0, %v5215_v10  ;;  %5238 = vpow2.f32 %v1572_v20  ;;  %v6334_v20 = vld [vmem:[%s5395_s6 + $0x20] sm:$0xff] }
  0xc8   : > { %v5219_v36 = vpop.eup %5218  ;;  %1697 = vst.msk [vmem:[#allocation3 + $0x370] sm:$0xff] %vm469_vm0, %v5217_v37  ;;  %5240 = vpow2.f32 %v1574_v27  ;;  %2382 = vbcast.lane.b32.xlu1 %v2376_v30, 264  ;;  %2367 = vbcast.lane.b32.xlu0 %v2365_v50, 256  ;;  %v7134_v50 = vld [vmem:[#allocation8_spill] sm:$0xff]  ;;  %v2850_v27 = vrot.slane %v1778_v33, %v5415_v23  ;;  %v2486_v38 = vrot.slane %v6334_v20, %v5415_v23 }
  0xc9   : > { %v5221_v31 = vpop.eup %5220  ;;  %1698 = vst.msk [vmem:[#allocation3 + $0x378] sm:$0xff] %vm469_vm0, %v5219_v36  ;;  %5242 = vpow2.f32 %v1576_v56  ;;  %v1731_v7 = vcombine.high %v7134_v50, %v7134_v50  ;;  %v2541_v50 = vrot.slane %v6334_v20, %v6059_v0 }
  0xca   : > { %v5223_v26 = vpop.eup %5222  ;;  %1699 = vst.msk [vmem:[#allocation3 + $0x380] sm:$0xff] %vm469_vm0, %v5221_v31  ;;  %5244 = vpow2.f32 %v1578_v24 }
  0xcb   : > { %v5225_v49 = vpop.eup %5224  ;;  %1700 = vst.msk [vmem:[#allocation3 + $0x388] sm:$0xff] %vm469_vm0, %v5223_v26  ;;  %5246 = vpow2.f32 %v1580_v11  ;;  %v1745_v29 = vrot.slane %v1731_v7, %v5407_v9  ;;  %v2497_v11 = vrot.slane %v6334_v20, %v7100_v61 }
  0xcc   : > { %v5227_v35 = vpop.eup %5226  ;;  %1701 = vst.msk [vmem:[#allocation3 + $0x390] sm:$0xff] %vm469_vm0, %v5225_v49  ;;  %5248 = vpow2.f32 %v1582_v58  ;;  %2393 = vbcast.lane.b32.xlu1 %v2387_v53, 264  ;;  %2378 = vbcast.lane.b32.xlu0 %v2376_v30, 256 }
  0xcd   : > { %v5229_v3 = vpop.eup %5228  ;;  %1702 = vst.msk [vmem:[#allocation3 + $0x398] sm:$0xff] %vm469_vm0, %v5227_v35  ;;  %5250 = vpow2.f32 %v1584_v18  ;;  %v1761_v30 = vrot.slane %v1745_v29, %v5407_v9  ;;  %v1747_v44 = vcombine.high %v1745_v29, %v1745_v29  ;;  %v2508_v18 = vrot.slane %v6334_v20, %v7090_v57 }
  0xce   : > { %v5231_v40 = vpop.eup %5230  ;;  %1703 = vst.msk [vmem:[#allocation3 + $0x3a0] sm:$0xff] %vm469_vm0, %v5229_v3  ;;  %v1780_v29 = vcombine.high %v1716_v48, %v1716_v48 }
  0xcf   : > { %v5233_v59 = vpop.eup %5232  ;;  %1704 = vst.msk [vmem:[#allocation3 + $0x3a8] sm:$0xff] %vm469_vm0, %v5231_v40  ;;  %v2854_v24 = vrot.slane %v1761_v30, %v5415_v23  ;;  %v1775_v36 = vrot.slane %v1747_v44, %v5407_v9  ;;  %v1777_v26 = vcombine.high %v1761_v30, %v1761_v30 }
  0xd0   : > { %v5235_v39 = vpop.eup %5234  ;;  %1705 = vst.msk [vmem:[#allocation3 + $0x3b0] sm:$0xff] %vm469_vm0, %v5233_v59  ;;  %2404 = vbcast.lane.b32.xlu1 %v2398_v4, 264  ;;  %2389 = vbcast.lane.b32.xlu0 %v2387_v53, 256  ;;  %v1787_v59 = vrot.slane %v1716_v48, %v5407_v9  ;;  %v1794_v44 = vrot.slane %v1780_v29, %v5407_v9 }
  0xd1   : > { %v5237_v12 = vpop.eup %5236  ;;  %1706 = vst.msk [vmem:[#allocation3 + $0x3b8] sm:$0xff] %vm469_vm0, %v5235_v39  ;;  %v2858_v53 = vrot.slane %v1775_v36, %v5415_v23  ;;  %v1779_v40 = vcombine.high %v1775_v36, %v1775_v36 }
  0xd2   : > { %v5239_v43 = vpop.eup %5238  ;;  %1707 = vst.msk [vmem:[#allocation3 + $0x3c0] sm:$0xff] %vm469_vm0, %v5237_v12  ;;  %v2519_v12 = vrot.slane %v6334_v20, %v7091_v19 }
  0xd3   : > { %v5241_v32 = vpop.eup %5240  ;;  %1708 = vst.msk [vmem:[#allocation3 + $0x3c8] sm:$0xff] %vm469_vm0, %v5239_v43 }
  0xd4   : > { %v5243_v14 = vpop.eup %5242  ;;  %1709 = vst.msk [vmem:[#allocation3 + $0x3d0] sm:$0xff] %vm469_vm0, %v5241_v32  ;;  %2415 = vbcast.lane.b32.xlu1 %v2409_v63, 264  ;;  %2400 = vbcast.lane.b32.xlu0 %v2398_v4, 256  ;;  %v2862_v4 = vrot.slane %v1777_v26, %v5415_v23 }
  0xd5   : > { %v5245_v15 = vpop.eup %5244  ;;  %1710 = vst.msk [vmem:[#allocation3 + $0x3d8] sm:$0xff] %vm469_vm0, %v5243_v14  ;;  %v2866_v14 = vrot.slane %v1779_v40, %v5415_v23 }
  0xd6   : > { %v5247_v34 = vpop.eup %5246  ;;  %1711 = vst.msk [vmem:[#allocation3 + $0x3e0] sm:$0xff] %vm469_vm0, %v5245_v15  ;;  %v1803_v15 = vrot.slane %v1787_v59, %v5407_v9 }
  0xd7   : > { %v5249_v28 = vpop.eup %5248  ;;  %1712 = vst.msk [vmem:[#allocation3 + $0x3e8] sm:$0xff] %vm469_vm0, %v5247_v34 }
  0xd8   : > { %v5251_v41 = vpop.eup %5250  ;;  %1713 = vst.msk [vmem:[#allocation3 + $0x3f0] sm:$0xff] %vm469_vm0, %v5249_v28  ;;  %2426 = vbcast.lane.b32.xlu1 %v2420_v45, 264  ;;  %2411 = vbcast.lane.b32.xlu0 %v2409_v63, 256  ;;  %v2530_v28 = vrot.slane %v6334_v20, %v6033_v46  ;;  %v1825_v33 = vcombine.high %v1803_v15, %v1803_v15 }
  0xd9   : > { %1714 = vst.msk [vmem:[#allocation3 + $0x3f8] sm:$0xff] %vm469_vm0, %v5251_v41 }
  0xdc   : > { %2437 = vbcast.lane.b32.xlu1 %v2431_v5, 264  ;;  %2422 = vbcast.lane.b32.xlu0 %v2420_v45, 256  ;;  %v1795_v45 = vcombine.high %v1787_v59, %v1787_v59 }
  0xde   : > { %v1817_v51 = vrot.slane %v1795_v45, %v5407_v9 }
  0xe0   : > { %2448 = vbcast.lane.b32.xlu1 %v2442_v16, 264  ;;  %2433 = vbcast.lane.b32.xlu0 %v2431_v5, 256  ;;  %v1827_v30 = vcombine.high %v1817_v51, %v1817_v51 }
  0xe2   : > { %v2882_v36 = vrot.slane %v1827_v30, %v5415_v23 }
  0xe4   : > { %2459 = vbcast.lane.b32.xlu1 %v2453_v21, 264  ;;  %2444 = vbcast.lane.b32.xlu0 %v2442_v16, 256 }
  0xe6   : > { %v2137_v13 = vpop.permute.xlu0 %2136 }
  0xe7   : > { %v3155_v22 = vmul.f32 %v2838_v55, %v2137_v13 }
  0xe8   : > { %2470 = vbcast.lane.b32.xlu1 %v2464_v52, 264  ;;  %2455 = vbcast.lane.b32.xlu0 %v2453_v21, 256  ;;  %v2870_v21 = vrot.slane %v1803_v15, %v5415_v23 }
  0xe9   : > { %3283 = vst.msk [vmem:[#allocation4] sm:$0xff] %vm469_vm0, %v3155_v22 }
  0xea   : > { %v2163_v47 = vpop.permute.xlu1 %2162  ;;  %v2141_v10 = vpop.permute.xlu0 %2140 }
  0xeb   : > { %v3160_v54 = vmul.f32 %v2846_v25, %v2163_v47  ;;  %v3156_v56 = vmul.f32 %v2838_v55, %v2141_v10 }
  0xec   : > { %2481 = vbcast.lane.b32.xlu1 %v2475_v42, 264  ;;  %2466 = vbcast.lane.b32.xlu0 %v2464_v52, 256 }
  0xed   : > { %3288 = vst.msk [vmem:[#allocation4 + $0x28] sm:$0xff] %vm469_vm0, %v3160_v54  ;;  %3284 = vst.msk [vmem:[#allocation4 + $0x8] sm:$0xff] %vm469_vm0, %v3156_v56 }
  0xee   : > { %v2174_v37 = vpop.permute.xlu1 %2173  ;;  %v2159_v8 = vpop.permute.xlu0 %2158 }
  0xef   : > { %v3162_v6 = vmul.f32 %v2850_v27, %v2174_v37  ;;  %v3159_v31 = vmul.f32 %v2846_v25, %v2159_v8  ;;  %v2874_v25 = vrot.slane %v1817_v51, %v5415_v23  ;;  %v6384_v37 = vld [vmem:[%s5395_s6 + $0x28] sm:$0xff]  ;;  %v1810_v8 = vrot.slane %v1794_v44, %v5407_v9 }
  0xf0   : > { %2492 = vbcast.lane.b32.xlu1 %v2486_v38, 264  ;;  %2477 = vbcast.lane.b32.xlu0 %v2475_v42, 256  ;;  %v2552_v42 = vrot.slane %v6334_v20, %v6086_v17  ;;  %v2585_v48 = vrot.slane %v6384_v37, %v7100_v61 }
  0xf1   : > { %3290 = vst.msk [vmem:[#allocation4 + $0x38] sm:$0xff] %vm469_vm0, %v3162_v6  ;;  %3287 = vst.msk [vmem:[#allocation4 + $0x20] sm:$0xff] %vm469_vm0, %v3159_v31  ;;  %v2886_v26 = vrot.slane %v1810_v8, %v5415_v23  ;;  %v1826_v40 = vcombine.high %v1810_v8, %v1810_v8 }
  0xf2   : > { %v2185_v60 = vpop.permute.xlu1 %2184  ;;  %v2170_v2 = vpop.permute.xlu0 %2169 }
  0xf3   : > { %v3164_v58 = vmul.f32 %v2854_v24, %v2185_v60  ;;  %v3161_v49 = vmul.f32 %v2850_v27, %v2170_v2  ;;  %v2878_v27 = vrot.slane %v1825_v33, %v5415_v23 }
  0xf4   : > { %2503 = vbcast.lane.b32.xlu1 %v2497_v11, 264  ;;  %2488 = vbcast.lane.b32.xlu0 %v2486_v38, 256  ;;  %v2563_v38 = vrot.slane %v6334_v20, %v6106_v1  ;;  %v2574_v20 = vrot.slane %v6384_v37, %v5415_v23 }
  0xf5   : > { %3292 = vst.msk [vmem:[#allocation4 + $0x48] sm:$0xff] %vm469_vm0, %v3164_v58  ;;  %3289 = vst.msk [vmem:[#allocation4 + $0x30] sm:$0xff] %vm469_vm0, %v3161_v49 }
  0xf6   : > { %v2196_v35 = vpop.permute.xlu1 %2195  ;;  %v2181_v39 = vpop.permute.xlu0 %2180 }
  0xf7   : > { %v3166_v3 = vmul.f32 %v2858_v53, %v2196_v35  ;;  %v3163_v63 = vmul.f32 %v2854_v24, %v2181_v39  ;;  %v2596_v39 = vrot.slane %v6384_v37, %v7090_v57 }
  0xf8   : > { %2514 = vbcast.lane.b32.xlu1 %v2508_v18, 264  ;;  %2499 = vbcast.lane.b32.xlu0 %v2497_v11, 256  ;;  %v1796_v11 = vcombine.high %v1794_v44, %v1794_v44 }
  0xf9   : > { %3294 = vst.msk [vmem:[#allocation4 + $0x58] sm:$0xff] %vm469_vm0, %v3166_v3  ;;  %3291 = vst.msk [vmem:[#allocation4 + $0x40] sm:$0xff] %vm469_vm0, %v3163_v63 }
  0xfa   : > { %v2207_v43 = vpop.permute.xlu1 %2206  ;;  %v2192_v34 = vpop.permute.xlu0 %2191  ;;  %v1824_v2 = vrot.slane %v1796_v11, %v5407_v9 }
  0xfb   : > { %v3168_v32 = vmul.f32 %v2862_v4, %v2207_v43  ;;  %v3165_v41 = vmul.f32 %v2858_v53, %v2192_v34 }
  0xfc   : > { %2525 = vbcast.lane.b32.xlu1 %v2519_v12, 264  ;;  %2510 = vbcast.lane.b32.xlu0 %v2508_v18, 256  ;;  %v1828_v15 = vcombine.high %v1824_v2, %v1824_v2 }
  0xfd   : > { %3296 = vst.msk [vmem:[#allocation4 + $0x68] sm:$0xff] %vm469_vm0, %v3168_v32  ;;  %3293 = vst.msk [vmem:[#allocation4 + $0x50] sm:$0xff] %vm469_vm0, %v3165_v41 }
  0xfe   : > { %v2218_v5 = vpop.permute.xlu1 %2217  ;;  %v2203_v62 = vpop.permute.xlu0 %2202 }
  0xff   : > { %v3170_v16 = vmul.f32 %v2866_v14, %v2218_v5  ;;  %v3167_v7 = vmul.f32 %v2862_v4, %v2203_v62  ;;  %v2890_v4 = vrot.slane %v1824_v2, %v5415_v23 }
 0x100   : > { %2536 = vbcast.lane.b32.xlu1 %v2530_v28, 264  ;;  %2521 = vbcast.lane.b32.xlu0 %v2519_v12, 256  ;;  %v1717_v12 = vld [vmem:[%s6050_s15 + $0x10] sm:$0xff] }
 0x101   : > { %3298 = vst.msk [vmem:[#allocation4 + $0x78] sm:$0xff] %vm469_vm0, %v3170_v16  ;;  %3295 = vst.msk [vmem:[#allocation4 + $0x60] sm:$0xff] %vm469_vm0, %v3167_v7  ;;  %v1836_v45 = vrot.slane %v1717_v12, %v5407_v9  ;;  %v2618_v7 = vrot.slane %v6384_v37, %v6033_v46  ;;  %v1829_v44 = vcombine.high %v1717_v12, %v1717_v12 }
 0x102   : > { %v2229_v52 = vpop.permute.xlu1 %2228  ;;  %v2214_v13 = vpop.permute.xlu0 %2213 }
 0x103   : > { %v3172_v55 = vmul.f32 %v2870_v21, %v2229_v52  ;;  %v3169_v22 = vmul.f32 %v2866_v14, %v2214_v13  ;;  %v2894_v14 = vrot.slane %v1826_v40, %v5415_v23  ;;  %v1852_v51 = vrot.slane %v1836_v45, %v5407_v9 }
 0x104   : > { %2547 = vbcast.lane.b32.xlu1 %v2541_v50, 264  ;;  %2532 = vbcast.lane.b32.xlu0 %v2530_v28, 256  ;;  %v2607_v28 = vrot.slane %v6384_v37, %v7091_v19  ;;  %v1844_v62 = vcombine.high %v1836_v45, %v1836_v45  ;;  %v1843_v11 = vrot.slane %v1829_v44, %v5407_v9 }
 0x105   : > { %3300 = vst.msk [vmem:[#allocation4 + $0x88] sm:$0xff] %vm469_vm0, %v3172_v55  ;;  %3297 = vst.msk [vmem:[#allocation4 + $0x70] sm:$0xff] %vm469_vm0, %v3169_v22  ;;  %v2902_v33 = vrot.slane %v1852_v51, %v5415_v23  ;;  %v1874_v30 = vcombine.high %v1852_v51, %v1852_v51 }
 0x106   : > { %v2240_v47 = vpop.permute.xlu1 %2239  ;;  %v2225_v10 = vpop.permute.xlu0 %2224  ;;  %v1866_v29 = vrot.slane %v1844_v62, %v5407_v9 }
 0x107   : > { %v3174_v54 = vmul.f32 %v2874_v25, %v2240_v47  ;;  %v3171_v56 = vmul.f32 %v2870_v21, %v2225_v10  ;;  %v2898_v21 = vrot.slane %v1828_v15, %v5415_v23 }
 0x108   : > { %2558 = vbcast.lane.b32.xlu1 %v2552_v42, 264  ;;  %2543 = vbcast.lane.b32.xlu0 %v2541_v50, 256  ;;  %v1876_v8 = vcombine.high %v1866_v29, %v1866_v29 }
 0x109   : > { %3302 = vst.msk [vmem:[#allocation4 + $0x98] sm:$0xff] %vm469_vm0, %v3174_v54  ;;  %3299 = vst.msk [vmem:[#allocation4 + $0x80] sm:$0xff] %vm469_vm0, %v3171_v56 }
 0x10a   : > { %v2251_v6 = vpop.permute.xlu1 %2250  ;;  %v2236_v31 = vpop.permute.xlu0 %2235  ;;  %v2914_v2 = vrot.slane %v1876_v8, %v5415_v23 }
 0x10b   : > { %v3176_v24 = vmul.f32 %v2878_v27, %v2251_v6  ;;  %v3173_v60 = vmul.f32 %v2874_v25, %v2236_v31 }
 0x10c   : > { %2569 = vbcast.lane.b32.xlu1 %v2563_v38, 264  ;;  %2554 = vbcast.lane.b32.xlu0 %v2552_v42, 256  ;;  %v2629_v42 = vrot.slane %v6384_v37, %v6059_v0 }
 0x10d   : > { %3304 = vst.msk [vmem:[#allocation4 + $0xa8] sm:$0xff] %vm469_vm0, %v3176_v24  ;;  %3301 = vst.msk [vmem:[#allocation4 + $0x90] sm:$0xff] %vm469_vm0, %v3173_v60 }
 0x10e   : > { %v2262_v58 = vpop.permute.xlu1 %2261  ;;  %v2247_v18 = vpop.permute.xlu0 %2246 }
 0x10f   : > { %v3178_v53 = vmul.f32 %v2882_v36, %v2262_v58  ;;  %v3175_v49 = vmul.f32 %v2878_v27, %v2247_v18  ;;  %v2906_v27 = vrot.slane %v1866_v29, %v5415_v23  ;;  %v6434_v58 = vld [vmem:[%s5395_s6 + $0x30] sm:$0xff]  ;;  %v1859_v18 = vrot.slane %v1843_v11, %v5407_v9 }
 0x110   : > { %2580 = vbcast.lane.b32.xlu1 %v2574_v20, 264  ;;  %2565 = vbcast.lane.b32.xlu0 %v2563_v38, 256  ;;  %v2640_v38 = vrot.slane %v6384_v37, %v6086_v17  ;;  %v2673_v12 = vrot.slane %v6434_v58, %v7100_v61 }
 0x111   : > { %3306 = vst.msk [vmem:[#allocation4 + $0xb8] sm:$0xff] %vm469_vm0, %v3178_v53  ;;  %3303 = vst.msk [vmem:[#allocation4 + $0xa0] sm:$0xff] %vm469_vm0, %v3175_v49  ;;  %v2918_v40 = vrot.slane %v1859_v18, %v5415_v23  ;;  %v1875_v15 = vcombine.high %v1859_v18, %v1859_v18 }
 0x112   : > { %v2273_v35 = vpop.permute.xlu1 %2272  ;;  %v2258_v59 = vpop.permute.xlu0 %2257 }
 0x113   : > { %v3180_v3 = vmul.f32 %v2886_v26, %v2273_v35  ;;  %v3177_v63 = vmul.f32 %v2882_v36, %v2258_v59  ;;  %v2910_v36 = vrot.slane %v1874_v30, %v5415_v23 }
 0x114   : > { %2591 = vbcast.lane.b32.xlu1 %v2585_v48, 264  ;;  %2576 = vbcast.lane.b32.xlu0 %v2574_v20, 256  ;;  %v2651_v20 = vrot.slane %v6384_v37, %v6106_v1  ;;  %v2662_v37 = vrot.slane %v6434_v58, %v5415_v23 }
 0x115   : > { %3308 = vst.msk [vmem:[#allocation4 + $0xc8] sm:$0xff] %vm469_vm0, %v3180_v3  ;;  %3305 = vst.msk [vmem:[#allocation4 + $0xb0] sm:$0xff] %vm469_vm0, %v3177_v63 }
 0x116   : > { %v2284_v43 = vpop.permute.xlu1 %2283  ;;  %v2269_v34 = vpop.permute.xlu0 %2268 }
 0x117   : > { %v3182_v32 = vmul.f32 %v2890_v4, %v2284_v43  ;;  %v3179_v41 = vmul.f32 %v2886_v26, %v2269_v34  ;;  %v2684_v34 = vrot.slane %v6434_v58, %v7090_v57 }
 0x118   : > { %2602 = vbcast.lane.b32.xlu1 %v2596_v39, 264  ;;  %2587 = vbcast.lane.b32.xlu0 %v2585_v48, 256  ;;  %v1845_v48 = vcombine.high %v1843_v11, %v1843_v11 }
 0x119   : > { %3310 = vst.msk [vmem:[#allocation4 + $0xd8] sm:$0xff] %vm469_vm0, %v3182_v32  ;;  %3307 = vst.msk [vmem:[#allocation4 + $0xc0] sm:$0xff] %vm469_vm0, %v3179_v41 }
 0x11a   : > { %v2295_v5 = vpop.permute.xlu1 %2294  ;;  %v2280_v50 = vpop.permute.xlu0 %2279  ;;  %v1873_v59 = vrot.slane %v1845_v48, %v5407_v9 }
 0x11b   : > { %v3184_v16 = vmul.f32 %v2894_v14, %v2295_v5  ;;  %v3181_v52 = vmul.f32 %v2890_v4, %v2280_v50 }
 0x11c   : > { %2613 = vbcast.lane.b32.xlu1 %v2607_v28, 264  ;;  %2598 = vbcast.lane.b32.xlu0 %v2596_v39, 256  ;;  %v1877_v51 = vcombine.high %v1873_v59, %v1873_v59 }
 0x11d   : > { %3312 = vst.msk [vmem:[#allocation4 + $0xe8] sm:$0xff] %vm469_vm0, %v3184_v16  ;;  %3309 = vst.msk [vmem:[#allocation4 + $0xd0] sm:$0xff] %vm469_vm0, %v3181_v52 }
 0x11e   : > { %v2306_v55 = vpop.permute.xlu1 %2305  ;;  %v2291_v13 = vpop.permute.xlu0 %2290 }
 0x11f   : > { %v3186_v25 = vmul.f32 %v2898_v21, %v2306_v55  ;;  %v3183_v22 = vmul.f32 %v2894_v14, %v2291_v13  ;;  %v2922_v14 = vrot.slane %v1873_v59, %v5415_v23 }
 0x120   : > { %2624 = vbcast.lane.b32.xlu1 %v2618_v7, 264  ;;  %2609 = vbcast.lane.b32.xlu0 %v2607_v28, 256  ;;  %v1718_v28 = vld [vmem:[%s6050_s15 + $0x18] sm:$0xff] }
 0x121   : > { %3314 = vst.msk [vmem:[#allocation4 + $0xf8] sm:$0xff] %vm469_vm0, %v3186_v25  ;;  %3311 = vst.msk [vmem:[#allocation4 + $0xe0] sm:$0xff] %vm469_vm0, %v3183_v22  ;;  %v1885_v62 = vrot.slane %v1718_v28, %v5407_v9  ;;  %v2706_v22 = vrot.slane %v6434_v58, %v6033_v46  ;;  %v1878_v11 = vcombine.high %v1718_v28, %v1718_v28 }
 0x122   : > { %v2317_v47 = vpop.permute.xlu1 %2316  ;;  %v2302_v10 = vpop.permute.xlu0 %2301 }
 0x123   : > { %v3188_v54 = vmul.f32 %v2902_v33, %v2317_v47  ;;  %v3185_v56 = vmul.f32 %v2898_v21, %v2302_v10  ;;  %v2926_v21 = vrot.slane %v1875_v15, %v5415_v23  ;;  %v1901_v29 = vrot.slane %v1885_v62, %v5407_v9 }
 0x124   : > { %2635 = vbcast.lane.b32.xlu1 %v2629_v42, 264  ;;  %2620 = vbcast.lane.b32.xlu0 %v2618_v7, 256  ;;  %v2695_v7 = vrot.slane %v6434_v58, %v7091_v19  ;;  %v1893_v13 = vcombine.high %v1885_v62, %v1885_v62  ;;  %v1892_v48 = vrot.slane %v1878_v11, %v5407_v9 }
 0x125   : > { %3316 = vst.msk [vmem:[#allocation4 + $0x108] sm:$0xff] %vm469_vm0, %v3188_v54  ;;  %3313 = vst.msk [vmem:[#allocation4 + $0xf0] sm:$0xff] %vm469_vm0, %v3185_v56  ;;  %v2934_v30 = vrot.slane %v1901_v29, %v5415_v23  ;;  %v1923_v8 = vcombine.high %v1901_v29, %v1901_v29 }
 0x126   : > { %v2328_v6 = vpop.permute.xlu1 %2327  ;;  %v2313_v31 = vpop.permute.xlu0 %2312  ;;  %v1915_v44 = vrot.slane %v1893_v13, %v5407_v9 }
 0x127   : > { %v3190_v24 = vmul.f32 %v2906_v27, %v2328_v6  ;;  %v3187_v60 = vmul.f32 %v2902_v33, %v2313_v31  ;;  %v2930_v33 = vrot.slane %v1877_v51, %v5415_v23 }
 0x128   : > { %2646 = vbcast.lane.b32.xlu1 %v2640_v38, 264  ;;  %2631 = vbcast.lane.b32.xlu0 %v2629_v42, 256  ;;  %v1925_v18 = vcombine.high %v1915_v44, %v1915_v44 }
 0x129   : > { %3318 = vst.msk [vmem:[#allocation4 + $0x118] sm:$0xff] %vm469_vm0, %v3190_v24  ;;  %3315 = vst.msk [vmem:[#allocation4 + $0x100] sm:$0xff] %vm469_vm0, %v3187_v60 }
 0x12a   : > { %v2339_v53 = vpop.permute.xlu1 %2338  ;;  %v2324_v49 = vpop.permute.xlu0 %2323  ;;  %v2946_v59 = vrot.slane %v1925_v18, %v5415_v23 }
 0x12b   : > { %v3192_v26 = vmul.f32 %v2910_v36, %v2339_v53  ;;  %v3189_v35 = vmul.f32 %v2906_v27, %v2324_v49 }
 0x12c   : > { %2657 = vbcast.lane.b32.xlu1 %v2651_v20, 264  ;;  %2642 = vbcast.lane.b32.xlu0 %v2640_v38, 256  ;;  %v2717_v38 = vrot.slane %v6434_v58, %v6059_v0 }
 0x12d   : > { %3320 = vst.msk [vmem:[#allocation4 + $0x128] sm:$0xff] %vm469_vm0, %v3192_v26  ;;  %3317 = vst.msk [vmem:[#allocation4 + $0x110] sm:$0xff] %vm469_vm0, %v3189_v35 }
 0x12e   : > { %v2350_v3 = vpop.permute.xlu1 %2349  ;;  %v2335_v39 = vpop.permute.xlu0 %2334 }
 0x12f   : > { %v3194_v4 = vmul.f32 %v2914_v2, %v2350_v3  ;;  %v3191_v63 = vmul.f32 %v2910_v36, %v2335_v39  ;;  %v2938_v36 = vrot.slane %v1915_v44, %v5415_v23  ;;  %v6488_v3 = vld [vmem:[%s5395_s6 + $0x38] sm:$0xff]  ;;  %v1908_v39 = vrot.slane %v1892_v48, %v5407_v9 }
 0x130   : > { %2668 = vbcast.lane.b32.xlu1 %v2662_v37, 264  ;;  %2653 = vbcast.lane.b32.xlu0 %v2651_v20, 256  ;;  %v2728_v20 = vrot.slane %v6434_v58, %v6086_v17  ;;  %v2761_v28 = vrot.slane %v6488_v3, %v7100_v61 }
 0x131   : > { %3322 = vst.msk [vmem:[#allocation4 + $0x138] sm:$0xff] %vm469_vm0, %v3194_v4  ;;  %3319 = vst.msk [vmem:[#allocation4 + $0x120] sm:$0xff] %vm469_vm0, %v3191_v63  ;;  %v2950_v15 = vrot.slane %v1908_v39, %v5415_v23  ;;  %v1924_v51 = vcombine.high %v1908_v39, %v1908_v39 }
 0x132   : > { %v2361_v43 = vpop.permute.xlu1 %2360  ;;  %v2346_v45 = vpop.permute.xlu0 %2345 }
 0x133   : > { %v3196_v32 = vmul.f32 %v2918_v40, %v2361_v43  ;;  %v3193_v41 = vmul.f32 %v2914_v2, %v2346_v45  ;;  %v2942_v2 = vrot.slane %v1923_v8, %v5415_v23 }
 0x134   : > { %2679 = vbcast.lane.b32.xlu1 %v2673_v12, 264  ;;  %2664 = vbcast.lane.b32.xlu0 %v2662_v37, 256  ;;  %v2739_v37 = vrot.slane %v6434_v58, %v6106_v1  ;;  %v2750_v58 = vrot.slane %v6488_v3, %v5415_v23 }
 0x135   : > { %3324 = vst.msk [vmem:[#allocation4 + $0x148] sm:$0xff] %vm469_vm0, %v3196_v32  ;;  %3321 = vst.msk [vmem:[#allocation4 + $0x130] sm:$0xff] %vm469_vm0, %v3193_v41 }
 0x136   : > { %v2372_v5 = vpop.permute.xlu1 %2371  ;;  %v2357_v50 = vpop.permute.xlu0 %2356 }
 0x137   : > { %v3198_v16 = vmul.f32 %v2922_v14, %v2372_v5  ;;  %v3195_v52 = vmul.f32 %v2918_v40, %v2357_v50  ;;  %v2772_v50 = vrot.slane %v6488_v3, %v7090_v57 }
 0x138   : > { %2690 = vbcast.lane.b32.xlu1 %v2684_v34, 264  ;;  %2675 = vbcast.lane.b32.xlu0 %v2673_v12, 256  ;;  %v1894_v12 = vcombine.high %v1892_v48, %v1892_v48 }
 0x139   : > { %3326 = vst.msk [vmem:[#allocation4 + $0x158] sm:$0xff] %vm469_vm0, %v3198_v16  ;;  %3323 = vst.msk [vmem:[#allocation4 + $0x140] sm:$0xff] %vm469_vm0, %v3195_v52 }
 0x13a   : > { %v2383_v55 = vpop.permute.xlu1 %2382  ;;  %v2368_v42 = vpop.permute.xlu0 %2367  ;;  %v1922_v45 = vrot.slane %v1894_v12, %v5407_v9 }
 0x13b   : > { %v3200_v25 = vmul.f32 %v2926_v21, %v2383_v55  ;;  %v3197_v47 = vmul.f32 %v2922_v14, %v2368_v42 }
 0x13c   : > { %2701 = vbcast.lane.b32.xlu1 %v2695_v7, 264  ;;  %2686 = vbcast.lane.b32.xlu0 %v2684_v34, 256  ;;  %v1926_v29 = vcombine.high %v1922_v45, %v1922_v45 }
 0x13d   : > { %3328 = vst.msk [vmem:[#allocation4 + $0x168] sm:$0xff] %vm469_vm0, %v3200_v25  ;;  %3325 = vst.msk [vmem:[#allocation4 + $0x150] sm:$0xff] %vm469_vm0, %v3197_v47 }
 0x13e   : > { %v2394_v54 = vpop.permute.xlu1 %2393  ;;  %v2379_v10 = vpop.permute.xlu0 %2378 }
 0x13f   : > { %v3202_v27 = vmul.f32 %v2930_v33, %v2394_v54  ;;  %v3199_v56 = vmul.f32 %v2926_v21, %v2379_v10  ;;  %v2954_v21 = vrot.slane %v1922_v45, %v5415_v23 }
 0x140   : > { %2712 = vbcast.lane.b32.xlu1 %v2706_v22, 264  ;;  %2697 = vbcast.lane.b32.xlu0 %v2695_v7, 256  ;;  %v1719_v7 = vld [vmem:[%s6050_s15 + $0x20] sm:$0xff] }
 0x141   : > { %3330 = vst.msk [vmem:[#allocation4 + $0x178] sm:$0xff] %vm469_vm0, %v3202_v27  ;;  %3327 = vst.msk [vmem:[#allocation4 + $0x160] sm:$0xff] %vm469_vm0, %v3199_v56  ;;  %v1934_v13 = vrot.slane %v1719_v7, %v5407_v9  ;;  %v2794_v56 = vrot.slane %v6488_v3, %v6033_v46  ;;  %v1927_v48 = vcombine.high %v1719_v7, %v1719_v7 }
 0x142   : > { %v2405_v6 = vpop.permute.xlu1 %2404  ;;  %v2390_v31 = vpop.permute.xlu0 %2389 }
 0x143   : > { %v3204_v24 = vmul.f32 %v2934_v30, %v2405_v6  ;;  %v3201_v60 = vmul.f32 %v2930_v33, %v2390_v31  ;;  %v2958_v33 = vrot.slane %v1924_v51, %v5415_v23  ;;  %v1950_v44 = vrot.slane %v1934_v13, %v5407_v9 }
 0x144   : > { %2723 = vbcast.lane.b32.xlu1 %v2717_v38, 264  ;;  %2708 = vbcast.lane.b32.xlu0 %v2706_v22, 256  ;;  %v2783_v22 = vrot.slane %v6488_v3, %v7091_v19  ;;  %v1942_v10 = vcombine.high %v1934_v13, %v1934_v13  ;;  %v1941_v12 = vrot.slane %v1927_v48, %v5407_v9 }
 0x145   : > { %3332 = vst.msk [vmem:[#allocation4 + $0x188] sm:$0xff] %vm469_vm0, %v3204_v24  ;;  %3329 = vst.msk [vmem:[#allocation4 + $0x170] sm:$0xff] %vm469_vm0, %v3201_v60  ;;  %v2966_v8 = vrot.slane %v1950_v44, %v5415_v23  ;;  %v1972_v18 = vcombine.high %v1950_v44, %v1950_v44 }
 0x146   : > { %v2416_v53 = vpop.permute.xlu1 %2415  ;;  %v2401_v49 = vpop.permute.xlu0 %2400  ;;  %v1964_v11 = vrot.slane %v1942_v10, %v5407_v9 }
 0x147   : > { %v3206_v26 = vmul.f32 %v2938_v36, %v2416_v53  ;;  %v3203_v35 = vmul.f32 %v2934_v30, %v2401_v49  ;;  %v2962_v30 = vrot.slane %v1926_v29, %v5415_v23 }
 0x148   : > { %2734 = vbcast.lane.b32.xlu1 %v2728_v20, 264  ;;  %2719 = vbcast.lane.b32.xlu0 %v2717_v38, 256  ;;  %v1974_v39 = vcombine.high %v1964_v11, %v1964_v11 }
 0x149   : > { %3334 = vst.msk [vmem:[#allocation4 + $0x198] sm:$0xff] %vm469_vm0, %v3206_v26  ;;  %3331 = vst.msk [vmem:[#allocation4 + $0x180] sm:$0xff] %vm469_vm0, %v3203_v35 }
 0x14a   : > { %v2427_v4 = vpop.permute.xlu1 %2426  ;;  %v2412_v63 = vpop.permute.xlu0 %2411  ;;  %v2978_v45 = vrot.slane %v1974_v39, %v5415_v23 }
 0x14b   : > { %v3208_v40 = vmul.f32 %v2942_v2, %v2427_v4  ;;  %v3205_v43 = vmul.f32 %v2938_v36, %v2412_v63 }
 0x14c   : > { %2745 = vbcast.lane.b32.xlu1 %v2739_v37, 264  ;;  %2730 = vbcast.lane.b32.xlu0 %v2728_v20, 256  ;;  %v2805_v20 = vrot.slane %v6488_v3, %v6059_v0 }
 0x14d   : > { %3336 = vst.msk [vmem:[#allocation4 + $0x1a8] sm:$0xff] %vm469_vm0, %v3208_v40  ;;  %3333 = vst.msk [vmem:[#allocation4 + $0x190] sm:$0xff] %vm469_vm0, %v3205_v43 }
 0x14e   : > { %v2438_v32 = vpop.permute.xlu1 %2437  ;;  %v2423_v34 = vpop.permute.xlu0 %2422 }
 0x14f   : > { %v3210_v14 = vmul.f32 %v2946_v59, %v2438_v32  ;;  %v3207_v41 = vmul.f32 %v2942_v2, %v2423_v34  ;;  %v2970_v2 = vrot.slane %v1964_v11, %v5415_v23  ;;  %v6544_v32 = vld [vmem:[%s6535_s26] sm:$0xff]  ;;  %v1957_v34 = vrot.slane %v1941_v12, %v5407_v9 }
 0x150   : > { %2756 = vbcast.lane.b32.xlu1 %v2750_v58, 264  ;;  %2741 = vbcast.lane.b32.xlu0 %v2739_v37, 256  ;;  %v2816_v37 = vrot.slane %v6488_v3, %v6086_v17  ;;  %v3433_v7 = vrot.slane %v6544_v32, %v7100_v61 }
 0x151   : > { %3338 = vst.msk [vmem:[#allocation4 + $0x1b8] sm:$0xff] %vm469_vm0, %v3210_v14  ;;  %3335 = vst.msk [vmem:[#allocation4 + $0x1a0] sm:$0xff] %vm469_vm0, %v3207_v41  ;;  %v2982_v51 = vrot.slane %v1957_v34, %v5415_v23  ;;  %v1973_v29 = vcombine.high %v1957_v34, %v1957_v34 }
 0x152   : > { %v2449_v5 = vpop.permute.xlu1 %2448  ;;  %v2434_v62 = vpop.permute.xlu0 %2433 }
 0x153   : > { %v3212_v16 = vmul.f32 %v2950_v15, %v2449_v5  ;;  %v3209_v52 = vmul.f32 %v2946_v59, %v2434_v62  ;;  %v2974_v59 = vrot.slane %v1972_v18, %v5415_v23 }
 0x154   : > { %2767 = vbcast.lane.b32.xlu1 %v2761_v28, 264  ;;  %2752 = vbcast.lane.b32.xlu0 %v2750_v58, 256  ;;  %v2827_v58 = vrot.slane %v6488_v3, %v6106_v1  ;;  %v3422_v3 = vrot.slane %v6544_v32, %v5415_v23 }
 0x155   : > { %3340 = vst.msk [vmem:[#allocation4 + $0x1c8] sm:$0xff] %vm469_vm0, %v3212_v16  ;;  %3337 = vst.msk [vmem:[#allocation4 + $0x1b0] sm:$0xff] %vm469_vm0, %v3209_v52 }
 0x156   : > { %v2460_v55 = vpop.permute.xlu1 %2459  ;;  %v2445_v42 = vpop.permute.xlu0 %2444 }
 0x157   : > { %v3214_v25 = vmul.f32 %v2954_v21, %v2460_v55  ;;  %v3211_v47 = vmul.f32 %v2950_v15, %v2445_v42  ;;  %v3444_v42 = vrot.slane %v6544_v32, %v7090_v57 }
 0x158   : > { %2778 = vbcast.lane.b32.xlu1 %v2772_v50, 264  ;;  %2763 = vbcast.lane.b32.xlu0 %v2761_v28, 256  ;;  %v1943_v28 = vcombine.high %v1941_v12, %v1941_v12 }
 0x159   : > { %3342 = vst.msk [vmem:[#allocation4 + $0x1d8] sm:$0xff] %vm469_vm0, %v3214_v25  ;;  %3339 = vst.msk [vmem:[#allocation4 + $0x1c0] sm:$0xff] %vm469_vm0, %v3211_v47 }
 0x15a   : > { %v2471_v54 = vpop.permute.xlu1 %2470  ;;  %v2456_v38 = vpop.permute.xlu0 %2455  ;;  %v1971_v62 = vrot.slane %v1943_v28, %v5407_v9 }
 0x15b   : > { %v3216_v27 = vmul.f32 %v2958_v33, %v2471_v54  ;;  %v3213_v6 = vmul.f32 %v2954_v21, %v2456_v38 }
 0x15c   : > { %2789 = vbcast.lane.b32.xlu1 %v2783_v22, 264  ;;  %2774 = vbcast.lane.b32.xlu0 %v2772_v50, 256  ;;  %v1975_v44 = vcombine.high %v1971_v62, %v1971_v62 }
 0x15d   : > { %3344 = vst.msk [vmem:[#allocation4 + $0x1e8] sm:$0xff] %vm469_vm0, %v3216_v27  ;;  %3341 = vst.msk [vmem:[#allocation4 + $0x1d0] sm:$0xff] %vm469_vm0, %v3213_v6 }
 0x15e   : > { %v2482_v24 = vpop.permute.xlu1 %2481  ;;  %v2467_v31 = vpop.permute.xlu0 %2466 }
 0x15f   : > { %v3218_v36 = vmul.f32 %v2962_v30, %v2482_v24  ;;  %v3215_v60 = vmul.f32 %v2958_v33, %v2467_v31  ;;  %v2986_v33 = vrot.slane %v1971_v62, %v5415_v23 }
 0x160   : > { %2800 = vbcast.lane.b32.xlu1 %v2794_v56, 264  ;;  %2785 = vbcast.lane.b32.xlu0 %v2783_v22, 256  ;;  %v1720_v22 = vld [vmem:[%s6050_s15 + $0x28] sm:$0xff] }
 0x161   : > { %3346 = vst.msk [vmem:[#allocation4 + $0x1f8] sm:$0xff] %vm469_vm0, %v3218_v36  ;;  %3343 = vst.msk [vmem:[#allocation4 + $0x1e0] sm:$0xff] %vm469_vm0, %v3215_v60  ;;  %v1983_v10 = vrot.slane %v1720_v22, %v5407_v9  ;;  %v3466_v60 = vrot.slane %v6544_v32, %v6033_v46  ;;  %v1976_v12 = vcombine.high %v1720_v22, %v1720_v22 }
 0x162   : > { %v2493_v53 = vpop.permute.xlu1 %2492  ;;  %v2478_v49 = vpop.permute.xlu0 %2477 }
 0x163   : > { %v3220_v26 = vmul.f32 %v2966_v8, %v2493_v53  ;;  %v3217_v35 = vmul.f32 %v2962_v30, %v2478_v49  ;;  %v2990_v30 = vrot.slane %v1973_v29, %v5415_v23  ;;  %v1999_v11 = vrot.slane %v1983_v10, %v5407_v9 }
 0x164   : > { %2811 = vbcast.lane.b32.xlu1 %v2805_v20, 264  ;;  %2796 = vbcast.lane.b32.xlu0 %v2794_v56, 256  ;;  %v3455_v56 = vrot.slane %v6544_v32, %v7091_v19  ;;  %v1991_v31 = vcombine.high %v1983_v10, %v1983_v10  ;;  %v1990_v28 = vrot.slane %v1976_v12, %v5407_v9 }
 0x165   : > { %3348 = vst.msk [vmem:[#allocation4 + $0x208] sm:$0xff] %vm469_vm0, %v3220_v26  ;;  %3345 = vst.msk [vmem:[#allocation4 + $0x1f0] sm:$0xff] %vm469_vm0, %v3217_v35  ;;  %v2998_v18 = vrot.slane %v1999_v11, %v5415_v23  ;;  %v2021_v39 = vcombine.high %v1999_v11, %v1999_v11 }
 0x166   : > { %v2504_v4 = vpop.permute.xlu1 %2503  ;;  %v2489_v63 = vpop.permute.xlu0 %2488  ;;  %v2013_v48 = vrot.slane %v1991_v31, %v5407_v9 }
 0x167   : > { %v3222_v40 = vmul.f32 %v2970_v2, %v2504_v4  ;;  %v3219_v43 = vmul.f32 %v2966_v8, %v2489_v63  ;;  %v2994_v8 = vrot.slane %v1975_v44, %v5415_v23 }
 0x168   : > { %2822 = vbcast.lane.b32.xlu1 %v2816_v37, 264  ;;  %2807 = vbcast.lane.b32.xlu0 %v2805_v20, 256  ;;  %v2023_v34 = vcombine.high %v2013_v48, %v2013_v48 }
 0x169   : > { %3350 = vst.msk [vmem:[#allocation4 + $0x218] sm:$0xff] %vm469_vm0, %v3222_v40  ;;  %3347 = vst.msk [vmem:[#allocation4 + $0x200] sm:$0xff] %vm469_vm0, %v3219_v43 }
 0x16a   : > { %v2515_v14 = vpop.permute.xlu1 %2514  ;;  %v2500_v41 = vpop.permute.xlu0 %2499  ;;  %v3010_v62 = vrot.slane %v2023_v34, %v5415_v23 }
 0x16b   : > { %v3224_v15 = vmul.f32 %v2974_v59, %v2515_v14  ;;  %v3221_v5 = vmul.f32 %v2970_v2, %v2500_v41 }
 0x16c   : > { %2833 = vbcast.lane.b32.xlu1 %v2827_v58, 264  ;;  %2818 = vbcast.lane.b32.xlu0 %v2816_v37, 256  ;;  %v3477_v37 = vrot.slane %v6544_v32, %v6059_v0 }
 0x16d   : > { %3352 = vst.msk [vmem:[#allocation4 + $0x228] sm:$0xff] %vm469_vm0, %v3224_v15  ;;  %3349 = vst.msk [vmem:[#allocation4 + $0x210] sm:$0xff] %vm469_vm0, %v3221_v5 }
 0x16e   : > { %v2526_v16 = vpop.permute.xlu1 %2525  ;;  %v2511_v50 = vpop.permute.xlu0 %2510 }
 0x16f   : > { %v3226_v21 = vmul.f32 %v2978_v45, %v2526_v16  ;;  %v3223_v52 = vmul.f32 %v2974_v59, %v2511_v50  ;;  %v3002_v59 = vrot.slane %v2013_v48, %v5415_v23  ;;  %v6594_v16 = vld [vmem:[%s6535_s26 + $0x8] sm:$0xff]  ;;  %v2006_v50 = vrot.slane %v1990_v28, %v5407_v9 }
 0x170   : > { %3428 = vbcast.lane.b32.xlu1 %v3422_v3, 264  ;;  %2829 = vbcast.lane.b32.xlu0 %v2827_v58, 256  ;;  %v3488_v58 = vrot.slane %v6544_v32, %v6086_v17  ;;  %v3521_v22 = vrot.slane %v6594_v16, %v7100_v61 }
 0x171   : > { %3354 = vst.msk [vmem:[#allocation4 + $0x238] sm:$0xff] %vm469_vm0, %v3226_v21  ;;  %3351 = vst.msk [vmem:[#allocation4 + $0x220] sm:$0xff] %vm469_vm0, %v3223_v52  ;;  %v3014_v29 = vrot.slane %v2006_v50, %v5415_v23  ;;  %v2022_v44 = vcombine.high %v2006_v50, %v2006_v50 }
 0x172   : > { %v2537_v55 = vpop.permute.xlu1 %2536  ;;  %v2522_v13 = vpop.permute.xlu0 %2521 }
 0x173   : > { %v3228_v25 = vmul.f32 %v2982_v51, %v2537_v55  ;;  %v3225_v47 = vmul.f32 %v2978_v45, %v2522_v13  ;;  %v3006_v45 = vrot.slane %v2021_v39, %v5415_v23 }
 0x174   : > { %3439 = vbcast.lane.b32.xlu1 %v3433_v7, 264  ;;  %3424 = vbcast.lane.b32.xlu0 %v3422_v3, 256  ;;  %v3499_v3 = vrot.slane %v6544_v32, %v6106_v1  ;;  %v3510_v32 = vrot.slane %v6594_v16, %v5415_v23 }
 0x175   : > { %3356 = vst.msk [vmem:[#allocation4 + $0x248] sm:$0xff] %vm469_vm0, %v3228_v25  ;;  %3353 = vst.msk [vmem:[#allocation4 + $0x230] sm:$0xff] %vm469_vm0, %v3225_v47 }
 0x176   : > { %v2548_v54 = vpop.permute.xlu1 %2547  ;;  %v2533_v38 = vpop.permute.xlu0 %2532 }
 0x177   : > { %v3230_v27 = vmul.f32 %v2986_v33, %v2548_v54  ;;  %v3227_v6 = vmul.f32 %v2982_v51, %v2533_v38  ;;  %v3532_v38 = vrot.slane %v6594_v16, %v7090_v57 }
 0x178   : > { %3450 = vbcast.lane.b32.xlu1 %v3444_v42, 264  ;;  %3435 = vbcast.lane.b32.xlu0 %v3433_v7, 256  ;;  %v1992_v7 = vcombine.high %v1990_v28, %v1990_v28 }
 0x179   : > { %3358 = vst.msk [vmem:[#allocation4 + $0x258] sm:$0xff] %vm469_vm0, %v3230_v27  ;;  %3355 = vst.msk [vmem:[#allocation4 + $0x240] sm:$0xff] %vm469_vm0, %v3227_v6 }
 0x17a   : > { %v2559_v24 = vpop.permute.xlu1 %2558  ;;  %v2544_v20 = vpop.permute.xlu0 %2543  ;;  %v2020_v13 = vrot.slane %v1992_v7, %v5407_v9 }
 0x17b   : > { %v3232_v36 = vmul.f32 %v2990_v30, %v2559_v24  ;;  %v3229_v53 = vmul.f32 %v2986_v33, %v2544_v20 }
 0x17c   : > { %3461 = vbcast.lane.b32.xlu1 %v3455_v56, 264  ;;  %3446 = vbcast.lane.b32.xlu0 %v3444_v42, 256  ;;  %v2024_v11 = vcombine.high %v2020_v13, %v2020_v13 }
 0x17d   : > { %3360 = vst.msk [vmem:[#allocation4 + $0x268] sm:$0xff] %vm469_vm0, %v3232_v36  ;;  %3357 = vst.msk [vmem:[#allocation4 + $0x250] sm:$0xff] %vm469_vm0, %v3229_v53 }
 0x17e   : > { %v2570_v26 = vpop.permute.xlu1 %2569  ;;  %v2555_v49 = vpop.permute.xlu0 %2554 }
 0x17f   : > { %v3234_v2 = vmul.f32 %v2994_v8, %v2570_v26  ;;  %v3231_v35 = vmul.f32 %v2990_v30, %v2555_v49  ;;  %v3018_v30 = vrot.slane %v2020_v13, %v5415_v23 }
 0x180   : > { %3472 = vbcast.lane.b32.xlu1 %v3466_v60, 264  ;;  %3457 = vbcast.lane.b32.xlu0 %v3455_v56, 256  ;;  %v1721_v56 = vld [vmem:[%s6050_s15 + $0x30] sm:$0xff] }
 0x181   : > { %3362 = vst.msk [vmem:[#allocation4 + $0x278] sm:$0xff] %vm469_vm0, %v3234_v2  ;;  %3359 = vst.msk [vmem:[#allocation4 + $0x260] sm:$0xff] %vm469_vm0, %v3231_v35  ;;  %v2032_v31 = vrot.slane %v1721_v56, %v5407_v9  ;;  %v3554_v35 = vrot.slane %v6594_v16, %v6033_v46  ;;  %v2025_v28 = vcombine.high %v1721_v56, %v1721_v56 }
 0x182   : > { %v2581_v4 = vpop.permute.xlu1 %2580  ;;  %v2566_v63 = vpop.permute.xlu0 %2565 }
 0x183   : > { %v3236_v40 = vmul.f32 %v2998_v18, %v2581_v4  ;;  %v3233_v43 = vmul.f32 %v2994_v8, %v2566_v63  ;;  %v3022_v8 = vrot.slane %v2022_v44, %v5415_v23  ;;  %v2048_v48 = vrot.slane %v2032_v31, %v5407_v9 }
 0x184   : > { %3483 = vbcast.lane.b32.xlu1 %v3477_v37, 264  ;;  %3468 = vbcast.lane.b32.xlu0 %v3466_v60, 256  ;;  %v3543_v60 = vrot.slane %v6594_v16, %v7091_v19  ;;  %v2040_v49 = vcombine.high %v2032_v31, %v2032_v31  ;;  %v2039_v7 = vrot.slane %v2025_v28, %v5407_v9 }
 0x185   : > { %3364 = vst.msk [vmem:[#allocation4 + $0x288] sm:$0xff] %vm469_vm0, %v3236_v40  ;;  %3361 = vst.msk [vmem:[#allocation4 + $0x270] sm:$0xff] %vm469_vm0, %v3233_v43  ;;  %v3030_v39 = vrot.slane %v2048_v48, %v5415_v23  ;;  %v2070_v34 = vcombine.high %v2048_v48, %v2048_v48 }
 0x186   : > { %v2592_v14 = vpop.permute.xlu1 %2591  ;;  %v2577_v41 = vpop.permute.xlu0 %2576  ;;  %v2062_v12 = vrot.slane %v2040_v49, %v5407_v9 }
 0x187   : > { %v3238_v15 = vmul.f32 %v3002_v59, %v2592_v14  ;;  %v3235_v5 = vmul.f32 %v2998_v18, %v2577_v41  ;;  %v3026_v18 = vrot.slane %v2024_v11, %v5415_v23 }
 0x188   : > { %3494 = vbcast.lane.b32.xlu1 %v3488_v58, 264  ;;  %3479 = vbcast.lane.b32.xlu0 %v3477_v37, 256  ;;  %v2072_v50 = vcombine.high %v2062_v12, %v2062_v12 }
 0x189   : > { %3366 = vst.msk [vmem:[#allocation4 + $0x298] sm:$0xff] %vm469_vm0, %v3238_v15  ;;  %3363 = vst.msk [vmem:[#allocation4 + $0x280] sm:$0xff] %vm469_vm0, %v3235_v5 }
 0x18a   : > { %v2603_v21 = vpop.permute.xlu1 %2602  ;;  %v2588_v52 = vpop.permute.xlu0 %2587  ;;  %v3042_v13 = vrot.slane %v2072_v50, %v5415_v23 }
 0x18b   : > { %v3240_v51 = vmul.f32 %v3006_v45, %v2603_v21  ;;  %v3237_v55 = vmul.f32 %v3002_v59, %v2588_v52 }
 0x18c   : > { %3505 = vbcast.lane.b32.xlu1 %v3499_v3, 264  ;;  %3490 = vbcast.lane.b32.xlu0 %v3488_v58, 256  ;;  %v3565_v58 = vrot.slane %v6594_v16, %v6059_v0 }
 0x18d   : > { %3368 = vst.msk [vmem:[#allocation4 + $0x2a8] sm:$0xff] %vm469_vm0, %v3240_v51  ;;  %3365 = vst.msk [vmem:[#allocation4 + $0x290] sm:$0xff] %vm469_vm0, %v3237_v55 }
 0x18e   : > { %v2614_v25 = vpop.permute.xlu1 %2613  ;;  %v2599_v42 = vpop.permute.xlu0 %2598 }
 0x18f   : > { %v3242_v33 = vmul.f32 %v3010_v62, %v2614_v25  ;;  %v3239_v47 = vmul.f32 %v3006_v45, %v2599_v42  ;;  %v3034_v45 = vrot.slane %v2062_v12, %v5415_v23  ;;  %v6644_v25 = vld [vmem:[%s6535_s26 + $0x10] sm:$0xff]  ;;  %v2055_v42 = vrot.slane %v2039_v7, %v5407_v9 }
 0x190   : > { %3516 = vbcast.lane.b32.xlu1 %v3510_v32, 264  ;;  %3501 = vbcast.lane.b32.xlu0 %v3499_v3, 256  ;;  %v3576_v3 = vrot.slane %v6594_v16, %v6086_v17  ;;  %v3609_v56 = vrot.slane %v6644_v25, %v7100_v61 }
 0x191   : > { %3370 = vst.msk [vmem:[#allocation4 + $0x2b8] sm:$0xff] %vm469_vm0, %v3242_v33  ;;  %3367 = vst.msk [vmem:[#allocation4 + $0x2a0] sm:$0xff] %vm469_vm0, %v3239_v47  ;;  %v3046_v44 = vrot.slane %v2055_v42, %v5415_v23  ;;  %v2071_v11 = vcombine.high %v2055_v42, %v2055_v42 }
 0x192   : > { %v2625_v54 = vpop.permute.xlu1 %2624  ;;  %v2610_v10 = vpop.permute.xlu0 %2609 }
 0x193   : > { %v3244_v27 = vmul.f32 %v3014_v29, %v2625_v54  ;;  %v3241_v6 = vmul.f32 %v3010_v62, %v2610_v10  ;;  %v3038_v62 = vrot.slane %v2070_v34, %v5415_v23 }
 0x194   : > { %3527 = vbcast.lane.b32.xlu1 %v3521_v22, 264  ;;  %3512 = vbcast.lane.b32.xlu0 %v3510_v32, 256  ;;  %v3587_v32 = vrot.slane %v6594_v16, %v6106_v1  ;;  %v3598_v16 = vrot.slane %v6644_v25, %v5415_v23 }
 0x195   : > { %3372 = vst.msk [vmem:[#allocation4 + $0x2c8] sm:$0xff] %vm469_vm0, %v3244_v27  ;;  %3369 = vst.msk [vmem:[#allocation4 + $0x2b0] sm:$0xff] %vm469_vm0, %v3241_v6 }
 0x196   : > { %v2636_v24 = vpop.permute.xlu1 %2635  ;;  %v2621_v20 = vpop.permute.xlu0 %2620 }
 0x197   : > { %v3246_v36 = vmul.f32 %v3018_v30, %v2636_v24  ;;  %v3243_v53 = vmul.f32 %v3014_v29, %v2621_v20  ;;  %v3620_v20 = vrot.slane %v6644_v25, %v7090_v57 }
 0x198   : > { %3538 = vbcast.lane.b32.xlu1 %v3532_v38, 264  ;;  %3523 = vbcast.lane.b32.xlu0 %v3521_v22, 256  ;;  %v2041_v22 = vcombine.high %v2039_v7, %v2039_v7 }
 0x199   : > { %3374 = vst.msk [vmem:[#allocation4 + $0x2d8] sm:$0xff] %vm469_vm0, %v3246_v36  ;;  %3371 = vst.msk [vmem:[#allocation4 + $0x2c0] sm:$0xff] %vm469_vm0, %v3243_v53 }
 0x19a   : > { %v2647_v26 = vpop.permute.xlu1 %2646  ;;  %v2632_v37 = vpop.permute.xlu0 %2631  ;;  %v2069_v10 = vrot.slane %v2041_v22, %v5407_v9 }
 0x19b   : > { %v3248_v2 = vmul.f32 %v3022_v8, %v2647_v26  ;;  %v3245_v4 = vmul.f32 %v3018_v30, %v2632_v37 }
 0x19c   : > { %3549 = vbcast.lane.b32.xlu1 %v3543_v60, 264  ;;  %3534 = vbcast.lane.b32.xlu0 %v3532_v38, 256  ;;  %v2073_v48 = vcombine.high %v2069_v10, %v2069_v10 }
 0x19d   : > { %3376 = vst.msk [vmem:[#allocation4 + $0x2e8] sm:$0xff] %vm469_vm0, %v3248_v2  ;;  %3373 = vst.msk [vmem:[#allocation4 + $0x2d0] sm:$0xff] %vm469_vm0, %v3245_v4 }
 0x19e   : > { %v2658_v40 = vpop.permute.xlu1 %2657  ;;  %v2643_v63 = vpop.permute.xlu0 %2642 }
 0x19f   : > { %v3250_v59 = vmul.f32 %v3026_v18, %v2658_v40  ;;  %v3247_v43 = vmul.f32 %v3022_v8, %v2643_v63  ;;  %v3050_v8 = vrot.slane %v2069_v10, %v5415_v23 }
 0x1a0   : > { %3560 = vbcast.lane.b32.xlu1 %v3554_v35, 264  ;;  %3545 = vbcast.lane.b32.xlu0 %v3543_v60, 256  ;;  %v1722_v60 = vld [vmem:[%s6050_s15 + $0x38] sm:$0xff] }
 0x1a1   : > { %3378 = vst.msk [vmem:[#allocation4 + $0x2f8] sm:$0xff] %vm469_vm0, %v3250_v59  ;;  %3375 = vst.msk [vmem:[#allocation4 + $0x2e0] sm:$0xff] %vm469_vm0, %v3247_v43  ;;  %v2081_v49 = vrot.slane %v1722_v60, %v5407_v9  ;;  %v3642_v43 = vrot.slane %v6644_v25, %v6033_v46  ;;  %v2074_v7 = vcombine.high %v1722_v60, %v1722_v60 }
 0x1a2   : > { %v2669_v14 = vpop.permute.xlu1 %2668  ;;  %v2654_v41 = vpop.permute.xlu0 %2653 }
 0x1a3   : > { %v3252_v15 = vmul.f32 %v3030_v39, %v2669_v14  ;;  %v3249_v5 = vmul.f32 %v3026_v18, %v2654_v41  ;;  %v3054_v18 = vrot.slane %v2071_v11, %v5415_v23  ;;  %v2097_v12 = vrot.slane %v2081_v49, %v5407_v9 }
 0x1a4   : > { %3571 = vbcast.lane.b32.xlu1 %v3565_v58, 264  ;;  %3556 = vbcast.lane.b32.xlu0 %v3554_v35, 256  ;;  %v3631_v35 = vrot.slane %v6644_v25, %v7091_v19  ;;  %v2089_v63 = vcombine.high %v2081_v49, %v2081_v49  ;;  %v2088_v22 = vrot.slane %v2074_v7, %v5407_v9 }
 0x1a5   : > { %3380 = vst.msk [vmem:[#allocation4 + $0x308] sm:$0xff] %vm469_vm0, %v3252_v15  ;;  %3377 = vst.msk [vmem:[#allocation4 + $0x2f0] sm:$0xff] %vm469_vm0, %v3249_v5  ;;  %v3062_v34 = vrot.slane %v2097_v12, %v5415_v23  ;;  %v2119_v50 = vcombine.high %v2097_v12, %v2097_v12 }
 0x1a6   : > { %v2680_v21 = vpop.permute.xlu1 %2679  ;;  %v2665_v52 = vpop.permute.xlu0 %2664  ;;  %v2111_v28 = vrot.slane %v2089_v63, %v5407_v9 }
 0x1a7   : > { %v3254_v51 = vmul.f32 %v3034_v45, %v2680_v21  ;;  %v3251_v55 = vmul.f32 %v3030_v39, %v2665_v52  ;;  %v3058_v39 = vrot.slane %v2073_v48, %v5415_v23 }
 0x1a8   : > { %3582 = vbcast.lane.b32.xlu1 %v3576_v3, 264  ;;  %3567 = vbcast.lane.b32.xlu0 %v3565_v58, 256  ;;  %v2121_v42 = vcombine.high %v2111_v28, %v2111_v28 }
 0x1a9   : > { %3382 = vst.msk [vmem:[#allocation4 + $0x318] sm:$0xff] %vm469_vm0, %v3254_v51  ;;  %3379 = vst.msk [vmem:[#allocation4 + $0x300] sm:$0xff] %vm469_vm0, %v3251_v55 }
 0x1aa   : > { %v2691_v33 = vpop.permute.xlu1 %2690  ;;  %v2676_v47 = vpop.permute.xlu0 %2675  ;;  %v3074_v10 = vrot.slane %v2121_v42, %v5415_v23 }
 0x1ab   : > { %v3256_v29 = vmul.f32 %v3038_v62, %v2691_v33  ;;  %v3253_v54 = vmul.f32 %v3034_v45, %v2676_v47 }
 0x1ac   : > { %3593 = vbcast.lane.b32.xlu1 %v3587_v32, 264  ;;  %3578 = vbcast.lane.b32.xlu0 %v3576_v3, 256  ;;  %v3653_v3 = vrot.slane %v6644_v25, %v6059_v0 }
 0x1ad   : > { %3384 = vst.msk [vmem:[#allocation4 + $0x328] sm:$0xff] %vm469_vm0, %v3256_v29  ;;  %3381 = vst.msk [vmem:[#allocation4 + $0x310] sm:$0xff] %vm469_vm0, %v3253_v54 }
 0x1ae   : > { %v2702_v27 = vpop.permute.xlu1 %2701  ;;  %v2687_v38 = vpop.permute.xlu0 %2686 }
 0x1af   : > { %v3258_v30 = vmul.f32 %v3042_v13, %v2702_v27  ;;  %v3255_v6 = vmul.f32 %v3038_v62, %v2687_v38  ;;  %v3066_v62 = vrot.slane %v2111_v28, %v5415_v23  ;;  %v6694_v27 = vld [vmem:[%s6535_s26 + $0x18] sm:$0xff]  ;;  %v2104_v38 = vrot.slane %v2088_v22, %v5407_v9 }
 0x1b0   : > { %3604 = vbcast.lane.b32.xlu1 %v3598_v16, 264  ;;  %3589 = vbcast.lane.b32.xlu0 %v3587_v32, 256  ;;  %v3664_v32 = vrot.slane %v6644_v25, %v6086_v17  ;;  %v3697_v60 = vrot.slane %v6694_v27, %v7100_v61  ;;  %v3719_v12 = vrot.slane %v6694_v27, %v7091_v19 }
 0x1b1   : > { %3386 = vst.msk [vmem:[#allocation4 + $0x338] sm:$0xff] %vm469_vm0, %v3258_v30  ;;  %3383 = vst.msk [vmem:[#allocation4 + $0x320] sm:$0xff] %vm469_vm0, %v3255_v6  ;;  %v3078_v11 = vrot.slane %v2104_v38, %v5415_v23  ;;  %v2120_v48 = vcombine.high %v2104_v38, %v2104_v38 }
 0x1b2   : > { %v2713_v24 = vpop.permute.xlu1 %2712  ;;  %v2698_v31 = vpop.permute.xlu0 %2697 }
 0x1b3   : > { %v3260_v36 = vmul.f32 %v3046_v44, %v2713_v24  ;;  %v3257_v53 = vmul.f32 %v3042_v13, %v2698_v31  ;;  %v3070_v13 = vrot.slane %v2119_v50, %v5415_v23  ;;  %v3752_v50 = vrot.slane %v6694_v27, %v6086_v17 }
 0x1b4   : > { %3615 = vbcast.lane.b32.xlu1 %v3609_v56, 264  ;;  %3600 = vbcast.lane.b32.xlu0 %v3598_v16, 256  ;;  %v3675_v16 = vrot.slane %v6644_v25, %v6106_v1  ;;  %v3686_v25 = vrot.slane %v6694_v27, %v5415_v23 }
 0x1b5   : > { %3388 = vst.msk [vmem:[#allocation4 + $0x348] sm:$0xff] %vm469_vm0, %v3260_v36  ;;  %3385 = vst.msk [vmem:[#allocation4 + $0x330] sm:$0xff] %vm469_vm0, %v3257_v53 }
 0x1b6   : > { %v2724_v26 = vpop.permute.xlu1 %2723  ;;  %v2709_v37 = vpop.permute.xlu0 %2708 }
 0x1b7   : > { %v3262_v2 = vmul.f32 %v3050_v8, %v2724_v26  ;;  %v3259_v4 = vmul.f32 %v3046_v44, %v2709_v37 }
 0x1b8   : > { %3626 = vbcast.lane.b32.xlu1 %v3620_v20, 264  ;;  %3611 = vbcast.lane.b32.xlu0 %v3609_v56, 256  ;;  %v2090_v56 = vcombine.high %v2088_v22, %v2088_v22 }
 0x1b9   : > { %3390 = vst.msk [vmem:[#allocation4 + $0x358] sm:$0xff] %vm469_vm0, %v3262_v2  ;;  %3387 = vst.msk [vmem:[#allocation4 + $0x340] sm:$0xff] %vm469_vm0, %v3259_v4 }
 0x1ba   : > { %v2735_v40 = vpop.permute.xlu1 %2734  ;;  %v2720_v58 = vpop.permute.xlu0 %2719  ;;  %v2118_v31 = vrot.slane %v2090_v56, %v5407_v9  ;;  %v3708_v9 = vrot.slane %v6694_v27, %v7090_v57 }
 0x1bb   : > { %v3264_v59 = vmul.f32 %v3054_v18, %v2735_v40  ;;  %v3261_v14 = vmul.f32 %v3050_v8, %v2720_v58  ;;  %v3086_v40 = vrot.slane %v2120_v48, %v5415_v23 }
 0x1bc   : > { %3637 = vbcast.lane.b32.xlu1 %v3631_v35, 264  ;;  %3622 = vbcast.lane.b32.xlu0 %v3620_v20, 256 }
 0x1bd   : > { %3392 = vst.msk [vmem:[#allocation4 + $0x368] sm:$0xff] %vm469_vm0, %v3264_v59  ;;  %3389 = vst.msk [vmem:[#allocation4 + $0x350] sm:$0xff] %vm469_vm0, %v3261_v14  ;;  %v2122_v59 = vcombine.high %v2118_v31, %v2118_v31 }
 0x1be   : > { %v2746_v15 = vpop.permute.xlu1 %2745  ;;  %v2731_v41 = vpop.permute.xlu0 %2730 }
 0x1bf   : > { %v3266_v45 = vmul.f32 %v3058_v39, %v2746_v15  ;;  %v3263_v5 = vmul.f32 %v3054_v18, %v2731_v41  ;;  %v3082_v18 = vrot.slane %v2118_v31, %v5415_v23  ;;  %v3090_v14 = vrot.slane %v2122_v59, %v5415_v23 }
 0x1c0   : > { %3648 = vbcast.lane.b32.xlu1 %v3642_v43, 264  ;;  %3633 = vbcast.lane.b32.xlu0 %v3631_v35, 256 }
 0x1c1   : > { %3394 = vst.msk [vmem:[#allocation4 + $0x378] sm:$0xff] %vm469_vm0, %v3266_v45  ;;  %3391 = vst.msk [vmem:[#allocation4 + $0x360] sm:$0xff] %vm469_vm0, %v3263_v5  ;;  %v3730_v45 = vrot.slane %v6694_v27, %v6033_v46  ;;  %v3741_v5 = vrot.slane %v6694_v27, %v6059_v0 }
 0x1c2   : > { %v2757_v21 = vpop.permute.xlu1 %2756  ;;  %v2742_v52 = vpop.permute.xlu0 %2741 }
 0x1c3   : > { %v3268_v51 = vmul.f32 %v3062_v34, %v2757_v21  ;;  %v3265_v55 = vmul.f32 %v3058_v39, %v2742_v52 }
 0x1c4   : > { %3659 = vbcast.lane.b32.xlu1 %v3653_v3, 264  ;;  %3644 = vbcast.lane.b32.xlu0 %v3642_v43, 256 }
 0x1c5   : > { %3396 = vst.msk [vmem:[#allocation4 + $0x388] sm:$0xff] %vm469_vm0, %v3268_v51  ;;  %3393 = vst.msk [vmem:[#allocation4 + $0x370] sm:$0xff] %vm469_vm0, %v3265_v55  ;;  %v3763_v55 = vrot.slane %v6694_v27, %v6106_v1 }
 0x1c6   : > { %v2768_v33 = vpop.permute.xlu1 %2767  ;;  %v2753_v47 = vpop.permute.xlu0 %2752 }
 0x1c7   : > { %v3270_v29 = vmul.f32 %v3066_v62, %v2768_v33  ;;  %v3267_v54 = vmul.f32 %v3062_v34, %v2753_v47  ;;  %v3415_v33 = vld [vmem:[%s6535_s26 + $0x20] sm:$0xff] }
 0x1c8   : > { %3670 = vbcast.lane.b32.xlu1 %v3664_v32, 264  ;;  %3655 = vbcast.lane.b32.xlu0 %v3653_v3, 256  ;;  %v3774_v42 = vrot.slane %v3415_v33, %v5415_v23  ;;  %v3807_v38 = vrot.slane %v3415_v33, %v7091_v19 }
 0x1c9   : > { %3398 = vst.msk [vmem:[#allocation4 + $0x398] sm:$0xff] %vm469_vm0, %v3270_v29  ;;  %3395 = vst.msk [vmem:[#allocation4 + $0x380] sm:$0xff] %vm469_vm0, %v3267_v54 }
 0x1ca   : > { %v2779_v30 = vpop.permute.xlu1 %2778  ;;  %v2764_v6 = vpop.permute.xlu0 %2763 }
 0x1cb   : > { %v3272_v44 = vmul.f32 %v3070_v13, %v2779_v30  ;;  %v3269_v24 = vmul.f32 %v3066_v62, %v2764_v6  ;;  %v3796_v30 = vrot.slane %v3415_v33, %v7090_v57 }
 0x1cc   : > { %3681 = vbcast.lane.b32.xlu1 %v3675_v16, 264  ;;  %3666 = vbcast.lane.b32.xlu0 %v3664_v32, 256 }
 0x1cd   : > { %3400 = vst.msk [vmem:[#allocation4 + $0x3a8] sm:$0xff] %vm469_vm0, %v3272_v44  ;;  %3397 = vst.msk [vmem:[#allocation4 + $0x390] sm:$0xff] %vm469_vm0, %v3269_v24 }
 0x1ce   : > { %v2790_v36 = vpop.permute.xlu1 %2789  ;;  %v2775_v20 = vpop.permute.xlu0 %2774 }
 0x1cf   : > { %v3274_v8 = vmul.f32 %v3074_v10, %v2790_v36  ;;  %v3271_v53 = vmul.f32 %v3070_v13, %v2775_v20  ;;  %v3840_v20 = vrot.slane %v3415_v33, %v6086_v17 }
 0x1d0   : > { %3692 = vbcast.lane.b32.xlu1 %v3686_v25, 264  ;;  %3677 = vbcast.lane.b32.xlu0 %v3675_v16, 256  ;;  %v3785_v16 = vrot.slane %v3415_v33, %v7100_v61 }
 0x1d1   : > { %3402 = vst.msk [vmem:[#allocation4 + $0x3b8] sm:$0xff] %vm469_vm0, %v3274_v8  ;;  %3399 = vst.msk [vmem:[#allocation4 + $0x3a0] sm:$0xff] %vm469_vm0, %v3271_v53  ;;  %v3829_v8 = vrot.slane %v3415_v33, %v6059_v0 }
 0x1d2   : > { %v2801_v26 = vpop.permute.xlu1 %2800  ;;  %v2786_v49 = vpop.permute.xlu0 %2785 }
 0x1d3   : > { %v3276_v2 = vmul.f32 %v3078_v11, %v2801_v26  ;;  %v3273_v37 = vmul.f32 %v3074_v10, %v2786_v49  ;;  %v3851_v26 = vrot.slane %v3415_v33, %v6106_v1 }
 0x1d4   : > { %3703 = vbcast.lane.b32.xlu1 %v3697_v60, 264  ;;  %3688 = vbcast.lane.b32.xlu0 %v3686_v25, 256  ;;  %v3818_v25 = vrot.slane %v3415_v33, %v6033_v46 }
 0x1d5   : > { %3404 = vst.msk [vmem:[#allocation4 + $0x3c8] sm:$0xff] %vm469_vm0, %v3276_v2  ;;  %3401 = vst.msk [vmem:[#allocation4 + $0x3b0] sm:$0xff] %vm469_vm0, %v3273_v37  ;;  %v3416_v2 = vld [vmem:[%s6535_s26 + $0x28] sm:$0xff] }
 0x1d6   : > { %v2812_v35 = vpop.permute.xlu1 %2811  ;;  %v2797_v39 = vpop.permute.xlu0 %2796  ;;  %v3862_v49 = vrot.slane %v3416_v2, %v5415_v23  ;;  %v3884_v59 = vrot.slane %v3416_v2, %v7090_v57 }
 0x1d7   : > { %v3278_v4 = vmul.f32 %v3082_v18, %v2812_v35  ;;  %v3275_v63 = vmul.f32 %v3078_v11, %v2797_v39  ;;  %v3873_v35 = vrot.slane %v3416_v2, %v7100_v61 }
 0x1d8   : > { %3714 = vbcast.lane.b32.xlu1 %v3708_v9, 264  ;;  %3699 = vbcast.lane.b32.xlu0 %v3697_v60, 256 }
 0x1d9   : > { %3406 = vst.msk [vmem:[#allocation4 + $0x3d8] sm:$0xff] %vm469_vm0, %v3278_v4  ;;  %3403 = vst.msk [vmem:[#allocation4 + $0x3c0] sm:$0xff] %vm469_vm0, %v3275_v63  ;;  %v3895_v63 = vrot.slane %v3416_v2, %v7091_v19 }
 0x1da   : > { %v2823_v58 = vpop.permute.xlu1 %2822  ;;  %v2808_v15 = vpop.permute.xlu0 %2807 }
 0x1db   : > { %v3280_v43 = vmul.f32 %v3086_v40, %v2823_v58  ;;  %v3277_v34 = vmul.f32 %v3082_v18, %v2808_v15 }
 0x1dc   : > { %3725 = vbcast.lane.b32.xlu1 %v3719_v12, 264  ;;  %3710 = vbcast.lane.b32.xlu0 %v3708_v9, 256 }
 0x1dd   : > { %3408 = vst.msk [vmem:[#allocation4 + $0x3e8] sm:$0xff] %vm469_vm0, %v3280_v43  ;;  %3405 = vst.msk [vmem:[#allocation4 + $0x3d0] sm:$0xff] %vm469_vm0, %v3277_v34  ;;  %v3917_v34 = vrot.slane %v3416_v2, %v6059_v0 }
 0x1de   : > { %v2834_v28 = vpop.permute.xlu1 %2833  ;;  %v2819_v3 = vpop.permute.xlu0 %2818 }
 0x1df   : > { %v3282_v41 = vmul.f32 %v3090_v14, %v2834_v28  ;;  %v3279_v21 = vmul.f32 %v3086_v40, %v2819_v3  ;;  %v3928_v3 = vrot.slane %v3416_v2, %v6086_v17 }
 0x1e0   : > { %3736 = vbcast.lane.b32.xlu1 %v3730_v45, 264  ;;  %3721 = vbcast.lane.b32.xlu0 %v3719_v12, 256 }
 0x1e1   : > { %3410 = vst.msk [vmem:[#allocation4 + $0x3f8] sm:$0xff] %vm469_vm0, %v3282_v41  ;;  %3407 = vst.msk [vmem:[#allocation4 + $0x3e0] sm:$0xff] %vm469_vm0, %v3279_v21 }
 0x1e2   : > { %v3429_v51 = vpop.permute.xlu1 %3428  ;;  %v2830_v62 = vpop.permute.xlu0 %2829 }
 0x1e3   : > { %4124 = vst.msk [vmem:[#allocation5 + $0x8] sm:$0xff] %vm469_vm0, %v3429_v51  ;;  %v3281_v7 = vmul.f32 %v3090_v14, %v2830_v62  ;;  %v3906_v14 = vrot.slane %v3416_v2, %v6033_v46  ;;  %v3939_v51 = vrot.slane %v3416_v2, %v6106_v1  ;;  %v3417_v62 = vld [vmem:[%s6535_s26 + $0x30] sm:$0xff] }
 0x1e4   : > { %3747 = vbcast.lane.b32.xlu1 %v3741_v5, 264  ;;  %3732 = vbcast.lane.b32.xlu0 %v3730_v45, 256  ;;  %v3961_v33 = vrot.slane %v3417_v62, %v7100_v61 }
 0x1e5   : > { %3409 = vst.msk [vmem:[#allocation4 + $0x3f0] sm:$0xff] %vm469_vm0, %v3281_v7 }
 0x1e6   : > { %v3440_v52 = vpop.permute.xlu1 %3439  ;;  %v3425_v32 = vpop.permute.xlu0 %3424 }
 0x1e7   : > { %4126 = vst.msk [vmem:[#allocation5 + $0x18] sm:$0xff] %vm469_vm0, %v3440_v52  ;;  %4123 = vst.msk [vmem:[#allocation5] sm:$0xff] %vm469_vm0, %v3425_v32  ;;  %v3950_v52 = vrot.slane %v3417_v62, %v5415_v23 }
 0x1e8   : > { %3758 = vbcast.lane.b32.xlu1 %v3752_v50, 264  ;;  %3743 = vbcast.lane.b32.xlu0 %v3741_v5, 256 }
 0x1ea   : > { %v3451_v29 = vpop.permute.xlu1 %3450  ;;  %v3436_v13 = vpop.permute.xlu0 %3435 }
 0x1eb   : > { %4128 = vst.msk [vmem:[#allocation5 + $0x28] sm:$0xff] %vm469_vm0, %v3451_v29  ;;  %4125 = vst.msk [vmem:[#allocation5 + $0x10] sm:$0xff] %vm469_vm0, %v3436_v13 }
 0x1ec   : > { %3769 = vbcast.lane.b32.xlu1 %v3763_v55, 264  ;;  %3754 = vbcast.lane.b32.xlu0 %v3752_v50, 256 }
 0x1ee   : > { %v3462_v22 = vpop.permute.xlu1 %3461  ;;  %v3447_v47 = vpop.permute.xlu0 %3446 }
 0x1ef   : > { %4130 = vst.msk [vmem:[#allocation5 + $0x38] sm:$0xff] %vm469_vm0, %v3462_v22  ;;  %4127 = vst.msk [vmem:[#allocation5 + $0x20] sm:$0xff] %vm469_vm0, %v3447_v47 }
 0x1f0   : > { %3780 = vbcast.lane.b32.xlu1 %v3774_v42, 264  ;;  %3765 = vbcast.lane.b32.xlu0 %v3763_v55, 256 }
 0x1f2   : > { %v3473_v54 = vpop.permute.xlu1 %3472  ;;  %v3458_v27 = vpop.permute.xlu0 %3457 }
 0x1f3   : > { %4132 = vst.msk [vmem:[#allocation5 + $0x48] sm:$0xff] %vm469_vm0, %v3473_v54  ;;  %4129 = vst.msk [vmem:[#allocation5 + $0x30] sm:$0xff] %vm469_vm0, %v3458_v27 }
 0x1f4   : > { %3791 = vbcast.lane.b32.xlu1 %v3785_v16, 264  ;;  %3776 = vbcast.lane.b32.xlu0 %v3774_v42, 256  ;;  %v3972_v42 = vrot.slane %v3417_v62, %v7090_v57 }
 0x1f6   : > { %v3484_v44 = vpop.permute.xlu1 %3483  ;;  %v3469_v10 = vpop.permute.xlu0 %3468 }
 0x1f7   : > { %4134 = vst.msk [vmem:[#allocation5 + $0x58] sm:$0xff] %vm469_vm0, %v3484_v44  ;;  %4131 = vst.msk [vmem:[#allocation5 + $0x40] sm:$0xff] %vm469_vm0, %v3469_v10 }
 0x1f8   : > { %3802 = vbcast.lane.b32.xlu1 %v3796_v30, 264  ;;  %3787 = vbcast.lane.b32.xlu0 %v3785_v16, 256  ;;  %v3983_v16 = vrot.slane %v3417_v62, %v7091_v19 }
 0x1fa   : > { %v3495_v56 = vpop.permute.xlu1 %3494  ;;  %v3480_v6 = vpop.permute.xlu0 %3479 }
 0x1fb   : > { %4136 = vst.msk [vmem:[#allocation5 + $0x68] sm:$0xff] %vm469_vm0, %v3495_v56  ;;  %4133 = vst.msk [vmem:[#allocation5 + $0x50] sm:$0xff] %vm469_vm0, %v3480_v6 }
 0x1fc   : > { %3813 = vbcast.lane.b32.xlu1 %v3807_v38, 264  ;;  %3798 = vbcast.lane.b32.xlu0 %v3796_v30, 256  ;;  %v3994_v30 = vrot.slane %v3417_v62, %v6033_v46 }
 0x1fe   : > { %v3506_v24 = vpop.permute.xlu1 %3505  ;;  %v3491_v36 = vpop.permute.xlu0 %3490 }
 0x1ff   : > { %4138 = vst.msk [vmem:[#allocation5 + $0x78] sm:$0xff] %vm469_vm0, %v3506_v24  ;;  %4135 = vst.msk [vmem:[#allocation5 + $0x60] sm:$0xff] %vm469_vm0, %v3491_v36 }
 0x200   : > { %3824 = vbcast.lane.b32.xlu1 %v3818_v25, 264  ;;  %3809 = vbcast.lane.b32.xlu0 %v3807_v38, 256  ;;  %v4005_v38 = vrot.slane %v3417_v62, %v6059_v0 }
 0x202   : > { %v3517_v11 = vpop.permute.xlu1 %3516  ;;  %v3502_v31 = vpop.permute.xlu0 %3501 }
 0x203   : > { %4140 = vst.msk [vmem:[#allocation5 + $0x88] sm:$0xff] %vm469_vm0, %v3517_v11  ;;  %4137 = vst.msk [vmem:[#allocation5 + $0x70] sm:$0xff] %vm469_vm0, %v3502_v31  ;;  %v3418_v11 = vld [vmem:[%s6535_s26 + $0x38] sm:$0xff] }
 0x204   : > { %3835 = vbcast.lane.b32.xlu1 %v3829_v8, 264  ;;  %3820 = vbcast.lane.b32.xlu0 %v3818_v25, 256  ;;  %v4016_v25 = vrot.slane %v3417_v62, %v6086_v17  ;;  %v4049_v2 = vrot.slane %v3418_v11, %v7100_v61  ;;  %v4071_v61 = vrot.slane %v3418_v11, %v7091_v19 }
 0x206   : > { %v3528_v60 = vpop.permute.xlu1 %3527  ;;  %v3513_v53 = vpop.permute.xlu0 %3512 }
 0x207   : > { %4142 = vst.msk [vmem:[#allocation5 + $0x98] sm:$0xff] %vm469_vm0, %v3528_v60  ;;  %4139 = vst.msk [vmem:[#allocation5 + $0x80] sm:$0xff] %vm469_vm0, %v3513_v53  ;;  %v4038_v60 = vrot.slane %v3418_v11, %v5415_v23  ;;  %v4060_v23 = vrot.slane %v3418_v11, %v7090_v57  ;;  %v4082_v57 = vrot.slane %v3418_v11, %v6033_v46 }
 0x208   : > { %3846 = vbcast.lane.b32.xlu1 %v3840_v20, 264  ;;  %3831 = vbcast.lane.b32.xlu0 %v3829_v8, 256  ;;  %v4027_v8 = vrot.slane %v3417_v62, %v6106_v1 }
 0x20a   : > { %v3539_v18 = vpop.permute.xlu1 %3538  ;;  %v3524_v48 = vpop.permute.xlu0 %3523 }
 0x20b   : > { %4144 = vst.msk [vmem:[#allocation5 + $0xa8] sm:$0xff] %vm469_vm0, %v3539_v18  ;;  %4141 = vst.msk [vmem:[#allocation5 + $0x90] sm:$0xff] %vm469_vm0, %v3524_v48 }
 0x20c   : > { %3857 = vbcast.lane.b32.xlu1 %v3851_v26, 264  ;;  %3842 = vbcast.lane.b32.xlu0 %v3840_v20, 256 }
 0x20e   : > { %v3550_v9 = vpop.permute.xlu1 %3549  ;;  %v3535_v37 = vpop.permute.xlu0 %3534 }
 0x20f   : > { %4146 = vst.msk [vmem:[#allocation5 + $0xb8] sm:$0xff] %vm469_vm0, %v3550_v9  ;;  %4143 = vst.msk [vmem:[#allocation5 + $0xa0] sm:$0xff] %vm469_vm0, %v3535_v37 }
 0x210   : > { %3868 = vbcast.lane.b32.xlu1 %v3862_v49, 264  ;;  %3853 = vbcast.lane.b32.xlu0 %v3851_v26, 256 }
 0x212   : > { %v3561_v4 = vpop.permute.xlu1 %3560  ;;  %v3546_v40 = vpop.permute.xlu0 %3545 }
 0x213   : > { %4148 = vst.msk [vmem:[#allocation5 + $0xc8] sm:$0xff] %vm469_vm0, %v3561_v4  ;;  %4145 = vst.msk [vmem:[#allocation5 + $0xb0] sm:$0xff] %vm469_vm0, %v3546_v40  ;;  %v5318_v40 = vmov 0.0  }
 0x214   : > { %3879 = vbcast.lane.b32.xlu1 %v3873_v35, 264  ;;  %3864 = vbcast.lane.b32.xlu0 %v3862_v49, 256  ;;  %470 = vst.msk [vmem:[#allocation2] sm:$0xff] %vm469_vm0, %v5318_v40  ;;  %471 = vst.msk [vmem:[#allocation2 + $0x8] sm:$0xff] %vm469_vm0, %v5318_v40 }
 0x216   : > { %v3572_v39 = vpop.permute.xlu1 %3571  ;;  %v3557_v12 = vpop.permute.xlu0 %3556 }
 0x217   : > { %4150 = vst.msk [vmem:[#allocation5 + $0xd8] sm:$0xff] %vm469_vm0, %v3572_v39  ;;  %4147 = vst.msk [vmem:[#allocation5 + $0xc0] sm:$0xff] %vm469_vm0, %v3557_v12  ;;  %v4104_v12 = vrot.slane %v3418_v11, %v6086_v17 }
 0x218   : > { %3890 = vbcast.lane.b32.xlu1 %v3884_v59, 264  ;;  %3875 = vbcast.lane.b32.xlu0 %v3873_v35, 256 }
 0x21a   : > { %v3583_v58 = vpop.permute.xlu1 %3582  ;;  %v3568_v43 = vpop.permute.xlu0 %3567 }
 0x21b   : > { %4152 = vst.msk [vmem:[#allocation5 + $0xe8] sm:$0xff] %vm469_vm0, %v3583_v58  ;;  %4149 = vst.msk [vmem:[#allocation5 + $0xd0] sm:$0xff] %vm469_vm0, %v3568_v43  ;;  %v6837_v58 = vld [vmem:[#allocation2 + $0x8] sm:$0xff]  }
 0x21c   : > { %3901 = vbcast.lane.b32.xlu1 %v3895_v63, 264  ;;  %3886 = vbcast.lane.b32.xlu0 %v3884_v59, 256  ;;  %v4093_v59 = vrot.slane %v3418_v11, %v6059_v0 }
 0x21e   : > { %v3594_v15 = vpop.permute.xlu1 %3593  ;;  %v3579_v45 = vpop.permute.xlu0 %3578 }
 0x21f   : > { %4154 = vst.msk [vmem:[#allocation5 + $0xf8] sm:$0xff] %vm469_vm0, %v3594_v15  ;;  %4151 = vst.msk [vmem:[#allocation5 + $0xe0] sm:$0xff] %vm469_vm0, %v3579_v45 }
 0x220   : > { %3912 = vbcast.lane.b32.xlu1 %v3906_v14, 264  ;;  %3897 = vbcast.lane.b32.xlu0 %v3895_v63, 256  ;;  %v6835_v63 = vld [vmem:[#allocation2] sm:$0xff]  }
 0x222   : > { %v3605_v28 = vpop.permute.xlu1 %3604  ;;  %v3590_v41 = vpop.permute.xlu0 %3589 }
 0x223   : > { %4156 = vst.msk [vmem:[#allocation5 + $0x108] sm:$0xff] %vm469_vm0, %v3605_v28  ;;  %4153 = vst.msk [vmem:[#allocation5 + $0xf0] sm:$0xff] %vm469_vm0, %v3590_v41 }
 0x224   : > { %3923 = vbcast.lane.b32.xlu1 %v3917_v34, 264  ;;  %3908 = vbcast.lane.b32.xlu0 %v3906_v14, 256  ;;  %v4115_v14 = vrot.slane %v3418_v11, %v6106_v1 }
 0x226   : > { %v3616_v5 = vpop.permute.xlu1 %3615  ;;  %v3601_v21 = vpop.permute.xlu0 %3600 }
 0x227   : > { %4158 = vst.msk [vmem:[#allocation5 + $0x118] sm:$0xff] %vm469_vm0, %v3616_v5  ;;  %4155 = vst.msk [vmem:[#allocation5 + $0x100] sm:$0xff] %vm469_vm0, %v3601_v21 }
 0x228   : > { %3934 = vbcast.lane.b32.xlu1 %v3928_v3, 264  ;;  %3919 = vbcast.lane.b32.xlu0 %v3917_v34, 256 }
 0x22a   : > { %v3627_v50 = vpop.permute.xlu1 %3626  ;;  %v3612_v7 = vpop.permute.xlu0 %3611 }
 0x22b   : > { %4160 = vst.msk [vmem:[#allocation5 + $0x128] sm:$0xff] %vm469_vm0, %v3627_v50  ;;  %4157 = vst.msk [vmem:[#allocation5 + $0x110] sm:$0xff] %vm469_vm0, %v3612_v7 }
 0x22c   : > { %3945 = vbcast.lane.b32.xlu1 %v3939_v51, 264  ;;  %3930 = vbcast.lane.b32.xlu0 %v3928_v3, 256 }
 0x22e   : > { %v3638_v32 = vpop.permute.xlu1 %3637  ;;  %v3623_v55 = vpop.permute.xlu0 %3622 }
 0x22f   : > { %4162 = vst.msk [vmem:[#allocation5 + $0x138] sm:$0xff] %vm469_vm0, %v3638_v32  ;;  %4159 = vst.msk [vmem:[#allocation5 + $0x120] sm:$0xff] %vm469_vm0, %v3623_v55 }
 0x230   : > { %3956 = vbcast.lane.b32.xlu1 %v3950_v52, 264  ;;  %3941 = vbcast.lane.b32.xlu0 %v3939_v51, 256 }
 0x232   : > { %v3649_v29 = vpop.permute.xlu1 %3648  ;;  %v3634_v13 = vpop.permute.xlu0 %3633 }
 0x233   : > { %4164 = vst.msk [vmem:[#allocation5 + $0x148] sm:$0xff] %vm469_vm0, %v3649_v29  ;;  %4161 = vst.msk [vmem:[#allocation5 + $0x130] sm:$0xff] %vm469_vm0, %v3634_v13 }
 0x234   : > { %3967 = vbcast.lane.b32.xlu1 %v3961_v33, 264  ;;  %3952 = vbcast.lane.b32.xlu0 %v3950_v52, 256 }
 0x236   : > { %v3660_v22 = vpop.permute.xlu1 %3659  ;;  %v3645_v47 = vpop.permute.xlu0 %3644 }
 0x237   : > { %4166 = vst.msk [vmem:[#allocation5 + $0x158] sm:$0xff] %vm469_vm0, %v3660_v22  ;;  %4163 = vst.msk [vmem:[#allocation5 + $0x140] sm:$0xff] %vm469_vm0, %v3645_v47 }
 0x238   : > { %3978 = vbcast.lane.b32.xlu1 %v3972_v42, 264  ;;  %3963 = vbcast.lane.b32.xlu0 %v3961_v33, 256 }
 0x23a   : > { %v3671_v54 = vpop.permute.xlu1 %3670  ;;  %v3656_v27 = vpop.permute.xlu0 %3655 }
 0x23b   : > { %4168 = vst.msk [vmem:[#allocation5 + $0x168] sm:$0xff] %vm469_vm0, %v3671_v54  ;;  %4165 = vst.msk [vmem:[#allocation5 + $0x150] sm:$0xff] %vm469_vm0, %v3656_v27 }
 0x23c   : > { %3989 = vbcast.lane.b32.xlu1 %v3983_v16, 264  ;;  %3974 = vbcast.lane.b32.xlu0 %v3972_v42, 256 }
 0x23e   : > { %v3682_v44 = vpop.permute.xlu1 %3681  ;;  %v3667_v10 = vpop.permute.xlu0 %3666 }
 0x23f   : > { %4170 = vst.msk [vmem:[#allocation5 + $0x178] sm:$0xff] %vm469_vm0, %v3682_v44  ;;  %4167 = vst.msk [vmem:[#allocation5 + $0x160] sm:$0xff] %vm469_vm0, %v3667_v10 }
 0x240   : > { %4000 = vbcast.lane.b32.xlu1 %v3994_v30, 264  ;;  %3985 = vbcast.lane.b32.xlu0 %v3983_v16, 256 }
 0x242   : > { %v3693_v56 = vpop.permute.xlu1 %3692  ;;  %v3678_v6 = vpop.permute.xlu0 %3677 }
 0x243   : > { %4172 = vst.msk [vmem:[#allocation5 + $0x188] sm:$0xff] %vm469_vm0, %v3693_v56  ;;  %4169 = vst.msk [vmem:[#allocation5 + $0x170] sm:$0xff] %vm469_vm0, %v3678_v6 }
 0x244   : > { %4011 = vbcast.lane.b32.xlu1 %v4005_v38, 264  ;;  %3996 = vbcast.lane.b32.xlu0 %v3994_v30, 256 }
 0x246   : > { %v3704_v24 = vpop.permute.xlu1 %3703  ;;  %v3689_v36 = vpop.permute.xlu0 %3688 }
 0x247   : > { %4174 = vst.msk [vmem:[#allocation5 + $0x198] sm:$0xff] %vm469_vm0, %v3704_v24  ;;  %4171 = vst.msk [vmem:[#allocation5 + $0x180] sm:$0xff] %vm469_vm0, %v3689_v36 }
 0x248   : > { %4022 = vbcast.lane.b32.xlu1 %v4016_v25, 264  ;;  %4007 = vbcast.lane.b32.xlu0 %v4005_v38, 256 }
 0x24a   : > { %v3715_v31 = vpop.permute.xlu1 %3714  ;;  %v3700_v20 = vpop.permute.xlu0 %3699 }
 0x24b   : > { %4176 = vst.msk [vmem:[#allocation5 + $0x1a8] sm:$0xff] %vm469_vm0, %v3715_v31  ;;  %4173 = vst.msk [vmem:[#allocation5 + $0x190] sm:$0xff] %vm469_vm0, %v3700_v20 }
 0x24c   : > { %4033 = vbcast.lane.b32.xlu1 %v4027_v8, 264  ;;  %4018 = vbcast.lane.b32.xlu0 %v4016_v25, 256 }
 0x24e   : > { %v3726_v53 = vpop.permute.xlu1 %3725  ;;  %v3711_v26 = vpop.permute.xlu0 %3710 }
 0x24f   : > { %4178 = vst.msk [vmem:[#allocation5 + $0x1b8] sm:$0xff] %vm469_vm0, %v3726_v53  ;;  %4175 = vst.msk [vmem:[#allocation5 + $0x1a0] sm:$0xff] %vm469_vm0, %v3711_v26 }
 0x250   : > { %4044 = vbcast.lane.b32.xlu1 %v4038_v60, 264  ;;  %4029 = vbcast.lane.b32.xlu0 %v4027_v8, 256 }
 0x252   : > { %v3737_v18 = vpop.permute.xlu1 %3736  ;;  %v3722_v48 = vpop.permute.xlu0 %3721 }
 0x253   : > { %4180 = vst.msk [vmem:[#allocation5 + $0x1c8] sm:$0xff] %vm469_vm0, %v3737_v18  ;;  %4177 = vst.msk [vmem:[#allocation5 + $0x1b0] sm:$0xff] %vm469_vm0, %v3722_v48 }
 0x254   : > { %4055 = vbcast.lane.b32.xlu1 %v4049_v2, 264  ;;  %4040 = vbcast.lane.b32.xlu0 %v4038_v60, 256 }
 0x256   : > { %v3748_v49 = vpop.permute.xlu1 %3747  ;;  %v3733_v9 = vpop.permute.xlu0 %3732 }
 0x257   : > { %4182 = vst.msk [vmem:[#allocation5 + $0x1d8] sm:$0xff] %vm469_vm0, %v3748_v49  ;;  %4179 = vst.msk [vmem:[#allocation5 + $0x1c0] sm:$0xff] %vm469_vm0, %v3733_v9 }
 0x258   : > { %4066 = vbcast.lane.b32.xlu1 %v4060_v23, 264  ;;  %4051 = vbcast.lane.b32.xlu0 %v4049_v2, 256 }
 0x25a   : > { %v3759_v37 = vpop.permute.xlu1 %3758  ;;  %v3744_v35 = vpop.permute.xlu0 %3743 }
 0x25b   : > { %4184 = vst.msk [vmem:[#allocation5 + $0x1e8] sm:$0xff] %vm469_vm0, %v3759_v37  ;;  %4181 = vst.msk [vmem:[#allocation5 + $0x1d0] sm:$0xff] %vm469_vm0, %v3744_v35 }
 0x25c   : > { %4077 = vbcast.lane.b32.xlu1 %v4071_v61, 264  ;;  %4062 = vbcast.lane.b32.xlu0 %v4060_v23, 256 }
 0x25e   : > { %v3770_v4 = vpop.permute.xlu1 %3769  ;;  %v3755_v19 = vpop.permute.xlu0 %3754 }
 0x25f   : > { %4186 = vst.msk [vmem:[#allocation5 + $0x1f8] sm:$0xff] %vm469_vm0, %v3770_v4  ;;  %4183 = vst.msk [vmem:[#allocation5 + $0x1e0] sm:$0xff] %vm469_vm0, %v3755_v19 }
 0x260   : > { %4088 = vbcast.lane.b32.xlu1 %v4082_v57, 264  ;;  %4073 = vbcast.lane.b32.xlu0 %v4071_v61, 256 }
 0x262   : > { %v3781_v39 = vpop.permute.xlu1 %3780  ;;  %v3766_v46 = vpop.permute.xlu0 %3765 }
 0x263   : > { %4188 = vst.msk [vmem:[#allocation5 + $0x208] sm:$0xff] %vm469_vm0, %v3781_v39  ;;  %4185 = vst.msk [vmem:[#allocation5 + $0x1f0] sm:$0xff] %vm469_vm0, %v3766_v46 }
 0x264   : > { %4099 = vbcast.lane.b32.xlu1 %v4093_v59, 264  ;;  %4084 = vbcast.lane.b32.xlu0 %v4082_v57, 256 }
 0x266   : > { %v3792_v43 = vpop.permute.xlu1 %3791  ;;  %v3777_v0 = vpop.permute.xlu0 %3776 }
 0x267   : > { %4190 = vst.msk [vmem:[#allocation5 + $0x218] sm:$0xff] %vm469_vm0, %v3792_v43  ;;  %4187 = vst.msk [vmem:[#allocation5 + $0x200] sm:$0xff] %vm469_vm0, %v3777_v0 }
 0x268   : > { %4110 = vbcast.lane.b32.xlu1 %v4104_v12, 264  ;;  %4095 = vbcast.lane.b32.xlu0 %v4093_v59, 256 }
 0x26a   : > { %v3803_v15 = vpop.permute.xlu1 %3802  ;;  %v3788_v17 = vpop.permute.xlu0 %3787 }
 0x26b   : > { %4192 = vst.msk [vmem:[#allocation5 + $0x228] sm:$0xff] %vm469_vm0, %v3803_v15  ;;  %4189 = vst.msk [vmem:[#allocation5 + $0x210] sm:$0xff] %vm469_vm0, %v3788_v17 }
 0x26c   : > { %4121 = vbcast.lane.b32.xlu1 %v4115_v14, 264  ;;  %4106 = vbcast.lane.b32.xlu0 %v4104_v12, 256 }
 0x26e   : > { %v3814_v45 = vpop.permute.xlu1 %3813  ;;  %v3799_v34 = vpop.permute.xlu0 %3798 }
 0x26f   : > { %4194 = vst.msk [vmem:[#allocation5 + $0x238] sm:$0xff] %vm469_vm0, %v3814_v45  ;;  %4191 = vst.msk [vmem:[#allocation5 + $0x220] sm:$0xff] %vm469_vm0, %v3799_v34 }
 0x270   : > { %4117 = vbcast.lane.b32.xlu0 %v4115_v14, 256 }
 0x272   : > { %v3825_v28 = vpop.permute.xlu1 %3824  ;;  %v3810_v1 = vpop.permute.xlu0 %3809 }
 0x273   : > { %4196 = vst.msk [vmem:[#allocation5 + $0x248] sm:$0xff] %vm469_vm0, %v3825_v28  ;;  %4193 = vst.msk [vmem:[#allocation5 + $0x230] sm:$0xff] %vm469_vm0, %v3810_v1 }
 0x276   : > { %v3836_v41 = vpop.permute.xlu1 %3835  ;;  %v3821_v3 = vpop.permute.xlu0 %3820 }
 0x277   : > { %4198 = vst.msk [vmem:[#allocation5 + $0x258] sm:$0xff] %vm469_vm0, %v3836_v41  ;;  %4195 = vst.msk [vmem:[#allocation5 + $0x240] sm:$0xff] %vm469_vm0, %v3821_v3 }
 0x27a   : > { %v3847_v5 = vpop.permute.xlu1 %3846  ;;  %v3832_v21 = vpop.permute.xlu0 %3831 }
 0x27b   : > { %4200 = vst.msk [vmem:[#allocation5 + $0x268] sm:$0xff] %vm469_vm0, %v3847_v5  ;;  %4197 = vst.msk [vmem:[#allocation5 + $0x250] sm:$0xff] %vm469_vm0, %v3832_v21 }
 0x27e   : > { %v3858_v51 = vpop.permute.xlu1 %3857  ;;  %v3843_v62 = vpop.permute.xlu0 %3842 }
 0x27f   : > { %4202 = vst.msk [vmem:[#allocation5 + $0x278] sm:$0xff] %vm469_vm0, %v3858_v51  ;;  %4199 = vst.msk [vmem:[#allocation5 + $0x260] sm:$0xff] %vm469_vm0, %v3843_v62 }
 0x282   : > { %v3869_v50 = vpop.permute.xlu1 %3868  ;;  %v3854_v7 = vpop.permute.xlu0 %3853 }
 0x283   : > { %4204 = vst.msk [vmem:[#allocation5 + $0x288] sm:$0xff] %vm469_vm0, %v3869_v50  ;;  %4201 = vst.msk [vmem:[#allocation5 + $0x270] sm:$0xff] %vm469_vm0, %v3854_v7 }
 0x286   : > { %v3880_v52 = vpop.permute.xlu1 %3879  ;;  %v3865_v32 = vpop.permute.xlu0 %3864 }
 0x287   : > { %4206 = vst.msk [vmem:[#allocation5 + $0x298] sm:$0xff] %vm469_vm0, %v3880_v52  ;;  %4203 = vst.msk [vmem:[#allocation5 + $0x280] sm:$0xff] %vm469_vm0, %v3865_v32 }
 0x28a   : > { %v3891_v55 = vpop.permute.xlu1 %3890  ;;  %v3876_v33 = vpop.permute.xlu0 %3875 }
 0x28b   : > { %4208 = vst.msk [vmem:[#allocation5 + $0x2a8] sm:$0xff] %vm469_vm0, %v3891_v55  ;;  %4205 = vst.msk [vmem:[#allocation5 + $0x290] sm:$0xff] %vm469_vm0, %v3876_v33 }
 0x28e   : > { %v3902_v29 = vpop.permute.xlu1 %3901  ;;  %v3887_v13 = vpop.permute.xlu0 %3886 }
 0x28f   : > { %4210 = vst.msk [vmem:[#allocation5 + $0x2b8] sm:$0xff] %vm469_vm0, %v3902_v29  ;;  %4207 = vst.msk [vmem:[#allocation5 + $0x2a0] sm:$0xff] %vm469_vm0, %v3887_v13 }
 0x292   : > { %v3913_v42 = vpop.permute.xlu1 %3912  ;;  %v3898_v22 = vpop.permute.xlu0 %3897 }
 0x293   : > { %4212 = vst.msk [vmem:[#allocation5 + $0x2c8] sm:$0xff] %vm469_vm0, %v3913_v42  ;;  %4209 = vst.msk [vmem:[#allocation5 + $0x2b0] sm:$0xff] %vm469_vm0, %v3898_v22 }
 0x296   : > { %v3924_v47 = vpop.permute.xlu1 %3923  ;;  %v3909_v16 = vpop.permute.xlu0 %3908 }
 0x297   : > { %4214 = vst.msk [vmem:[#allocation5 + $0x2d8] sm:$0xff] %vm469_vm0, %v3924_v47  ;;  %4211 = vst.msk [vmem:[#allocation5 + $0x2c0] sm:$0xff] %vm469_vm0, %v3909_v16 }
 0x29a   : > { %v3935_v54 = vpop.permute.xlu1 %3934  ;;  %v3920_v27 = vpop.permute.xlu0 %3919 }
 0x29b   : > { %4216 = vst.msk [vmem:[#allocation5 + $0x2e8] sm:$0xff] %vm469_vm0, %v3935_v54  ;;  %4213 = vst.msk [vmem:[#allocation5 + $0x2d0] sm:$0xff] %vm469_vm0, %v3920_v27 }
 0x29e   : > { %v3946_v30 = vpop.permute.xlu1 %3945  ;;  %v3931_v44 = vpop.permute.xlu0 %3930 }
 0x29f   : > { %4218 = vst.msk [vmem:[#allocation5 + $0x2f8] sm:$0xff] %vm469_vm0, %v3946_v30  ;;  %4215 = vst.msk [vmem:[#allocation5 + $0x2e0] sm:$0xff] %vm469_vm0, %v3931_v44 }
 0x2a2   : > { %v3957_v10 = vpop.permute.xlu1 %3956  ;;  %v3942_v38 = vpop.permute.xlu0 %3941 }
 0x2a3   : > { %4220 = vst.msk [vmem:[#allocation5 + $0x308] sm:$0xff] %vm469_vm0, %v3957_v10  ;;  %4217 = vst.msk [vmem:[#allocation5 + $0x2f0] sm:$0xff] %vm469_vm0, %v3942_v38 }
 0x2a6   : > { %v3968_v56 = vpop.permute.xlu1 %3967  ;;  %v3953_v6 = vpop.permute.xlu0 %3952 }
 0x2a7   : > { %4222 = vst.msk [vmem:[#allocation5 + $0x318] sm:$0xff] %vm469_vm0, %v3968_v56  ;;  %4219 = vst.msk [vmem:[#allocation5 + $0x300] sm:$0xff] %vm469_vm0, %v3953_v6 }
 0x2aa   : > { %v3979_v25 = vpop.permute.xlu1 %3978  ;;  %v3964_v24 = vpop.permute.xlu0 %3963 }
 0x2ab   : > { %4224 = vst.msk [vmem:[#allocation5 + $0x328] sm:$0xff] %vm469_vm0, %v3979_v25  ;;  %4221 = vst.msk [vmem:[#allocation5 + $0x310] sm:$0xff] %vm469_vm0, %v3964_v24 }
 0x2ae   : > { %v3990_v36 = vpop.permute.xlu1 %3989  ;;  %v3975_v8 = vpop.permute.xlu0 %3974 }
 0x2af   : > { %4226 = vst.msk [vmem:[#allocation5 + $0x338] sm:$0xff] %vm469_vm0, %v3990_v36  ;;  %4223 = vst.msk [vmem:[#allocation5 + $0x320] sm:$0xff] %vm469_vm0, %v3975_v8 }
 0x2b2   : > { %v4001_v11 = vpop.permute.xlu1 %4000  ;;  %v3986_v31 = vpop.permute.xlu0 %3985 }
 0x2b3   : > { %4228 = vst.msk [vmem:[#allocation5 + $0x348] sm:$0xff] %vm469_vm0, %v4001_v11  ;;  %4225 = vst.msk [vmem:[#allocation5 + $0x330] sm:$0xff] %vm469_vm0, %v3986_v31 }
 0x2b6   : > { %v4012_v20 = vpop.permute.xlu1 %4011  ;;  %v3997_v60 = vpop.permute.xlu0 %3996 }
 0x2b7   : > { %4230 = vst.msk [vmem:[#allocation5 + $0x358] sm:$0xff] %vm469_vm0, %v4012_v20  ;;  %4227 = vst.msk [vmem:[#allocation5 + $0x340] sm:$0xff] %vm469_vm0, %v3997_v60 }
 0x2ba   : > { %v4023_v53 = vpop.permute.xlu1 %4022  ;;  %v4008_v26 = vpop.permute.xlu0 %4007 }
 0x2bb   : > { %4232 = vst.msk [vmem:[#allocation5 + $0x368] sm:$0xff] %vm469_vm0, %v4023_v53  ;;  %4229 = vst.msk [vmem:[#allocation5 + $0x350] sm:$0xff] %vm469_vm0, %v4008_v26 }
 0x2be   : > { %v4034_v2 = vpop.permute.xlu1 %4033  ;;  %v4019_v18 = vpop.permute.xlu0 %4018 }
 0x2bf   : > { %4234 = vst.msk [vmem:[#allocation5 + $0x378] sm:$0xff] %vm469_vm0, %v4034_v2  ;;  %4231 = vst.msk [vmem:[#allocation5 + $0x360] sm:$0xff] %vm469_vm0, %v4019_v18 }
 0x2c2   : > { %v4045_v48 = vpop.permute.xlu1 %4044  ;;  %v4030_v23 = vpop.permute.xlu0 %4029 }
 0x2c3   : > { %4236 = vst.msk [vmem:[#allocation5 + $0x388] sm:$0xff] %vm469_vm0, %v4045_v48  ;;  %4233 = vst.msk [vmem:[#allocation5 + $0x370] sm:$0xff] %vm469_vm0, %v4030_v23 }
 0x2c6   : > { %v4056_v49 = vpop.permute.xlu1 %4055  ;;  %v4041_v9 = vpop.permute.xlu0 %4040 }
 0x2c7   : > { %4238 = vst.msk [vmem:[#allocation5 + $0x398] sm:$0xff] %vm469_vm0, %v4056_v49  ;;  %4235 = vst.msk [vmem:[#allocation5 + $0x380] sm:$0xff] %vm469_vm0, %v4041_v9 }
 0x2ca   : > { %v4067_v61 = vpop.permute.xlu1 %4066  ;;  %v4052_v37 = vpop.permute.xlu0 %4051 }
 0x2cb   : > { %4240 = vst.msk [vmem:[#allocation5 + $0x3a8] sm:$0xff] %vm469_vm0, %v4067_v61  ;;  %4237 = vst.msk [vmem:[#allocation5 + $0x390] sm:$0xff] %vm469_vm0, %v4052_v37 }
 0x2ce   : > { %v4078_v35 = vpop.permute.xlu1 %4077  ;;  %v4063_v57 = vpop.permute.xlu0 %4062 }
 0x2cf   : > { %4242 = vst.msk [vmem:[#allocation5 + $0x3b8] sm:$0xff] %vm469_vm0, %v4078_v35  ;;  %4239 = vst.msk [vmem:[#allocation5 + $0x3a0] sm:$0xff] %vm469_vm0, %v4063_v57 }
 0x2d2   : > { %v4089_v4 = vpop.permute.xlu1 %4088  ;;  %v4074_v40 = vpop.permute.xlu0 %4073 }
 0x2d3   : > { %4244 = vst.msk [vmem:[#allocation5 + $0x3c8] sm:$0xff] %vm469_vm0, %v4089_v4  ;;  %4241 = vst.msk [vmem:[#allocation5 + $0x3b0] sm:$0xff] %vm469_vm0, %v4074_v40 }
 0x2d6   : > { %v4100_v19 = vpop.permute.xlu1 %4099  ;;  %v4085_v59 = vpop.permute.xlu0 %4084 }
 0x2d7   : > { %4246 = vst.msk [vmem:[#allocation5 + $0x3d8] sm:$0xff] %vm469_vm0, %v4100_v19  ;;  %4243 = vst.msk [vmem:[#allocation5 + $0x3c0] sm:$0xff] %vm469_vm0, %v4085_v59 }
 0x2da   : > { %v4111_v39 = vpop.permute.xlu1 %4110  ;;  %v4096_v46 = vpop.permute.xlu0 %4095 }
 0x2db   : > { %4248 = vst.msk [vmem:[#allocation5 + $0x3e8] sm:$0xff] %vm469_vm0, %v4111_v39  ;;  %4245 = vst.msk [vmem:[#allocation5 + $0x3d0] sm:$0xff] %vm469_vm0, %v4096_v46 }
 0x2de   : > { %v4122_v12 = vpop.permute.xlu1 %4121  ;;  %v4107_v43 = vpop.permute.xlu0 %4106 }
 0x2df   : > { %4250 = vst.msk [vmem:[#allocation5 + $0x3f8] sm:$0xff] %vm469_vm0, %v4122_v12  ;;  %4247 = vst.msk [vmem:[#allocation5 + $0x3e0] sm:$0xff] %vm469_vm0, %v4107_v43 }
 0x2e2   : > { %v4118_v0 = vpop.permute.xlu0 %4117 }
 0x2e3   : > { %4249 = vst.msk [vmem:[#allocation5 + $0x3f0] sm:$0xff] %vm469_vm0, %v4118_v0 }
 0x2e4 LB: >> { %s4900_s29 = sshll.u32 %s5315_s27, 7  ;;  %vm4469_vm1 = vcmask 1040384   ;;  %vm4471_vm2 = vcmask 1041408   ;;  %vm4473_vm3 = vcmask 1042432   ;;  %vm4475_vm4 = vcmask 1043456   ;;  %s4811_s8 = sshll.u32 %s5315_s27, 3  ;;  %s5315_s27 = sphi %s6909_s27, %s4258_s27   ;;  %v5311_v63 = vphi %v6835_v63, %v7136_v63   ;;  %v5307_v58 = vphi %v6837_v58, %v7135_v58  }
 0x2e5   : >> { %s6917_s30 = scalar_lea.vmem [#allocation3], %s4900_s29  ;;  %s6921_s6 = scalar_lea.vmem [#allocation4], %s4900_s29  ;;  %vm4477_vm5 = vcmask 1044480   ;;  %vm4479_vm6 = vcmask 1045504   ;;  %vm4481_vm7 = vcmask 1046528  }
 0x2e6   : >> { %v4264_v14 = vld [vmem:[%s6917_s30] sm:$0xff]  ;;  %v4265_v15 = vld [vmem:[%s6917_s30 + $0x8] sm:$0xff]  ;;  %s6925_s7 = scalar_lea.vmem [#allocation5], %s4900_s29  ;;  %v4815_v3 = vld [vmem:[%s6917_s30 + $0x10] sm:$0xff]  ;;  %s4483_s11 = scalar_lea.vmem %s463_s18, %s4811_s8 }
 0x2e7   : >> { %v4269_v17 = vld [vmem:[%s6921_s6] sm:$0xff]  ;;  %v4266_v45 = vmul.f32 %v5311_v63, %v4264_v14  ;;  %v4267_v34 = vmul.f32 %v5307_v58, %v4265_v15  ;;  %v4270_v28 = vld [vmem:[%s6921_s6 + $0x8] sm:$0xff]  ;;  %v4816_v5 = vld [vmem:[%s6917_s30 + $0x18] sm:$0xff]  ;;  %s4258_s27 = sadd.s32 1, %s5315_s27  }
 0x2e8   : >> { %v4819_v62 = vld [vmem:[%s6921_s6 + $0x10] sm:$0xff]  ;;  %v4820_v63 = vld [vmem:[%s6921_s6 + $0x18] sm:$0xff]  ;;  %v4827_v33 = vld [vmem:[%s6917_s30 + $0x20] sm:$0xff]  ;;  %p4255_p7 = scmp.ge.s32.totalorder %s4258_s27, 8  }
 0x2e9   : >> { %v4271_v21 = vadd.f32 %v4269_v17, %v4266_v45  ;;  %v4272_v51 = vadd.f32 %v4270_v28, %v4267_v34  ;;  %v4828_v29 = vld [vmem:[%s6917_s30 + $0x28] sm:$0xff]  ;;  %v4831_v54 = vld [vmem:[%s6921_s6 + $0x20] sm:$0xff]  ;;  %v4839_v24 = vld [vmem:[%s6917_s30 + $0x30] sm:$0xff] }
 0x2ea   : >> { %v4274_v1 = vld [vmem:[%s6925_s7] sm:$0xff]  ;;  %v4275_v41 = vld [vmem:[%s6925_s7 + $0x8] sm:$0xff]  ;;  %v4823_v32 = vld [vmem:[%s6925_s7 + $0x10] sm:$0xff] }
 0x2eb   : >> { %v4276_v58 = vmul.f32 %v4274_v1, %v4271_v21  ;;  %v4277_v50 = vmul.f32 %v4275_v41, %v4272_v51  ;;  %v4292_v7 = vmul.f32 %v4815_v3, %v4271_v21  ;;  %v4293_v52 = vmul.f32 %v4816_v5, %v4272_v51  ;;  %v4824_v55 = vld [vmem:[%s6925_s7 + $0x18] sm:$0xff]  ;;  %v4832_v27 = vld [vmem:[%s6921_s6 + $0x28] sm:$0xff]  ;;  %v4835_v56 = vld [vmem:[%s6925_s7 + $0x20] sm:$0xff] }
 0x2ec   : >> { %v4836_v25 = vld [vmem:[%s6925_s7 + $0x28] sm:$0xff]  ;;  %v4840_v36 = vld [vmem:[%s6917_s30 + $0x38] sm:$0xff]  ;;  %v4843_v26 = vld [vmem:[%s6921_s6 + $0x30] sm:$0xff] }
 0x2ed   : >> { %v4278_v13 = vsel %vm469_vm0, %v4276_v58, 0.0  ;;  %v4279_v42 = vsel %vm469_vm0, %v4277_v50, 0.0  ;;  %v4297_v22 = vadd.f32 %v4819_v62, %v4292_v7  ;;  %v4298_v47 = vadd.f32 %v4820_v63, %v4293_v52  ;;  %v4844_v2 = vld [vmem:[%s6921_s6 + $0x38] sm:$0xff]  ;;  %v4847_v9 = vld [vmem:[%s6925_s7 + $0x30] sm:$0xff]  ;;  %v4851_v57 = vld [vmem:[%s6917_s30 + $0x40] sm:$0xff] }
 0x2ee   : >> { %v4280_v16 = vadd.f32 %v4279_v42, %v4278_v13  ;;  %v4848_v35 = vld [vmem:[%s6925_s7 + $0x38] sm:$0xff]  ;;  %v4852_v4 = vld [vmem:[%s6917_s30 + $0x48] sm:$0xff]  ;;  %v4855_v43 = vld [vmem:[%s6921_s6 + $0x40] sm:$0xff] }
 0x2ef   : >> { %v4302_v30 = vmul.f32 %v4823_v32, %v4297_v22  ;;  %v4303_v44 = vmul.f32 %v4824_v55, %v4298_v47  ;;  %v4318_v10 = vmul.f32 %v4827_v33, %v4297_v22  ;;  %v4319_v38 = vmul.f32 %v4828_v29, %v4298_v47  ;;  %v4856_v0 = vld [vmem:[%s6921_s6 + $0x48] sm:$0xff]  ;;  %v4859_v34 = vld [vmem:[%s6925_s7 + $0x40] sm:$0xff]  ;;  %v4863_v5 = vld [vmem:[%s6917_s30 + $0x50] sm:$0xff] }
 0x2f0   : >> { %v4281_v6 = vrot.slane %v4280_v16, 4  ;;  %v4860_v3 = vld [vmem:[%s6925_s7 + $0x48] sm:$0xff]  ;;  %v4864_v21 = vld [vmem:[%s6917_s30 + $0x58] sm:$0xff]  ;;  %v4867_v32 = vld [vmem:[%s6921_s6 + $0x50] sm:$0xff] }
 0x2f1   : >> { %v4304_v8 = vsel %vm469_vm0, %v4302_v30, 0.0  ;;  %v4305_v11 = vsel %vm469_vm0, %v4303_v44, 0.0  ;;  %v4323_v31 = vadd.f32 %v4831_v54, %v4318_v10  ;;  %v4324_v20 = vadd.f32 %v4832_v27, %v4319_v38  ;;  %v4868_v55 = vld [vmem:[%s6921_s6 + $0x58] sm:$0xff]  ;;  %v4871_v22 = vld [vmem:[%s6925_s7 + $0x50] sm:$0xff]  ;;  %v4875_v30 = vld [vmem:[%s6917_s30 + $0x60] sm:$0xff] }
 0x2f2   : >> { %v4282_v60 = vadd.f32 %v4281_v6, %v4280_v16  ;;  %v4306_v53 = vadd.f32 %v4305_v11, %v4304_v8  ;;  %v4872_v27 = vld [vmem:[%s6925_s7 + $0x58] sm:$0xff]  ;;  %v4876_v44 = vld [vmem:[%s6917_s30 + $0x68] sm:$0xff]  ;;  %v4879_v11 = vld [vmem:[%s6921_s6 + $0x60] sm:$0xff] }
 0x2f3   : >> { %v4328_v18 = vmul.f32 %v4835_v56, %v4323_v31  ;;  %v4329_v48 = vmul.f32 %v4836_v25, %v4324_v20  ;;  %v4344_v23 = vmul.f32 %v4839_v24, %v4323_v31  ;;  %v4345_v49 = vmul.f32 %v4840_v36, %v4324_v20  ;;  %v4880_v31 = vld [vmem:[%s6921_s6 + $0x68] sm:$0xff] }
 0x2f4   : >> { %v4283_v61 = vrot.slane %v4282_v60, 2  ;;  %v4307_v37 = vrot.slane %v4306_v53, 4 }
 0x2f5   : >> { %v4330_v40 = vsel %vm469_vm0, %v4328_v18, 0.0  ;;  %v4331_v19 = vsel %vm469_vm0, %v4329_v48, 0.0  ;;  %v4349_v59 = vadd.f32 %v4843_v26, %v4344_v23  ;;  %v4350_v39 = vadd.f32 %v4844_v2, %v4345_v49  ;;  %v4883_v2 = vld [vmem:[%s6925_s7 + $0x60] sm:$0xff] }
 0x2f6   : >> { %v4308_v46 = vadd.f32 %v4307_v37, %v4306_v53  ;;  %v4332_v12 = vadd.f32 %v4331_v19, %v4330_v40  ;;  %v4284_v28 = vadd.f32 %v4283_v61, %v4282_v60  ;;  %v4887_v61 = vld [vmem:[%s6917_s30 + $0x70] sm:$0xff]  ;;  %v4888_v37 = vld [vmem:[%s6917_s30 + $0x78] sm:$0xff] }
 0x2f7   : >> { %v4354_v14 = vmul.f32 %v4847_v9, %v4349_v59  ;;  %v4355_v15 = vmul.f32 %v4848_v35, %v4350_v39  ;;  %v4370_v17 = vmul.f32 %v4851_v57, %v4349_v59  ;;  %v4371_v45 = vmul.f32 %v4852_v4, %v4350_v39  ;;  %v4884_v9 = vld [vmem:[%s6925_s7 + $0x68] sm:$0xff] }
 0x2f8   : >> { %v4309_v1 = vrot.slane %v4308_v46, 2  ;;  %v4333_v41 = vrot.slane %v4332_v12, 4  ;;  %v4285_v47 = vrot.slane %v4284_v28, 1 }
 0x2f9   : >> { %v4356_v51 = vsel %vm469_vm0, %v4354_v14, 0.0  ;;  %v4357_v62 = vsel %vm469_vm0, %v4355_v15, 0.0  ;;  %v4375_v63 = vadd.f32 %v4855_v43, %v4370_v17  ;;  %v4376_v58 = vadd.f32 %v4856_v0, %v4371_v45  ;;  %v4892_v43 = vld [vmem:[%s6921_s6 + $0x78] sm:$0xff] }
 0x2fa   : >> { %v4310_v50 = vadd.f32 %v4309_v1, %v4308_v46  ;;  %v4334_v7 = vadd.f32 %v4333_v41, %v4332_v12  ;;  %v4358_v52 = vadd.f32 %v4357_v62, %v4356_v51  ;;  %v4286_v18 = vadd.f32 %v4285_v47, %v4284_v28  ;;  %v4891_v12 = vld [vmem:[%s6921_s6 + $0x70] sm:$0xff] }
 0x2fb   : >> { %v4380_v33 = vmul.f32 %v4859_v34, %v4375_v63  ;;  %v4381_v29 = vmul.f32 %v4860_v3, %v4376_v58  ;;  %v4396_v13 = vmul.f32 %v4863_v5, %v4375_v63  ;;  %v4397_v42 = vmul.f32 %v4864_v21, %v4376_v58  ;;  %v4895_v41 = vld [vmem:[%s6925_s7 + $0x70] sm:$0xff]  ;;  %v4896_v3 = vld [vmem:[%s6925_s7 + $0x78] sm:$0xff] }
 0x2fc   : >> { %v4335_v16 = vrot.slane %v4334_v7, 2  ;;  %v4359_v54 = vrot.slane %v4358_v52, 4  ;;  %v4311_v25 = vrot.slane %v4310_v50, 1 }
 0x2fd   : >> { %v4382_v10 = vsel %vm469_vm0, %v4380_v33, 0.0  ;;  %v4383_v38 = vsel %vm469_vm0, %v4381_v29, 0.0  ;;  %v4401_v56 = vadd.f32 %v4867_v32, %v4396_v13  ;;  %v4402_v6 = vadd.f32 %v4868_v55, %v4397_v42 }
 0x2fe   : >> { %v4336_v24 = vadd.f32 %v4335_v16, %v4334_v7  ;;  %v4360_v36 = vadd.f32 %v4359_v54, %v4358_v52  ;;  %v4384_v8 = vadd.f32 %v4383_v38, %v4382_v10  ;;  %v4312_v19 = vadd.f32 %v4311_v25, %v4310_v50 }
 0x2ff   : >> { %v4406_v20 = vmul.f32 %v4871_v22, %v4401_v56  ;;  %v4407_v60 = vmul.f32 %v4872_v27, %v4402_v6  ;;  %v4422_v53 = vmul.f32 %v4875_v30, %v4401_v56  ;;  %v4423_v26 = vmul.f32 %v4876_v44, %v4402_v6 }
 0x300   : >> { %v4337_v48 = vrot.slane %v4336_v24, 1  ;;  %v4361_v23 = vrot.slane %v4360_v36, 2  ;;  %v4385_v49 = vrot.slane %v4384_v8, 4  ;;  %v4470_v7 = vsel %vm4469_vm1, %v4286_v18, %v4312_v19 }
 0x301   : >> { %v4408_v35 = vsel %vm469_vm0, %v4406_v20, 0.0  ;;  %v4409_v57 = vsel %vm469_vm0, %v4407_v60, 0.0  ;;  %v4427_v4 = vadd.f32 %v4879_v11, %v4422_v53  ;;  %v4428_v40 = vadd.f32 %v4880_v31, %v4423_v26 }
 0x302   : >> { %v4362_v59 = vadd.f32 %v4361_v23, %v4360_v36  ;;  %v4386_v39 = vadd.f32 %v4385_v49, %v4384_v8  ;;  %v4410_v46 = vadd.f32 %v4409_v57, %v4408_v35  ;;  %v4338_v45 = vadd.f32 %v4337_v48, %v4336_v24 }
 0x303   : >> { %v4432_v0 = vmul.f32 %v4883_v2, %v4427_v4  ;;  %v4433_v14 = vmul.f32 %v4884_v9, %v4428_v40  ;;  %v4448_v15 = vmul.f32 %v4887_v61, %v4427_v4  ;;  %v4449_v17 = vmul.f32 %v4888_v37, %v4428_v40 }
 0x304   : >> { %v4363_v34 = vrot.slane %v4362_v59, 1  ;;  %v4387_v28 = vrot.slane %v4386_v39, 2  ;;  %v4411_v1 = vrot.slane %v4410_v46, 4  ;;  %v4472_v47 = vsel %vm4471_vm2, %v4470_v7, %v4338_v45 }
 0x305   : >> { %v4434_v5 = vsel %vm469_vm0, %v4432_v0, 0.0  ;;  %v4435_v21 = vsel %vm469_vm0, %v4433_v14, 0.0  ;;  %v4453_v51 = vadd.f32 %v4891_v12, %v4448_v15   ;;  %v4454_v62 = vadd.f32 %v4892_v43, %v4449_v17  }
 0x306   : >> { %v4388_v63 = vadd.f32 %v4387_v28, %v4386_v39  ;;  %v4412_v58 = vadd.f32 %v4411_v1, %v4410_v46  ;;  %v4436_v50 = vadd.f32 %v4435_v21, %v4434_v5  ;;  %v4364_v55 = vadd.f32 %v4363_v34, %v4362_v59 }
 0x307   : >> { %v4458_v52 = vmul.f32 %v4895_v41, %v4453_v51  ;;  %v4459_v32 = vmul.f32 %v4896_v3, %v4454_v62  ;;  %4485 = vst.msk [vmem:[#allocation2] sm:$0xff] (%p4255_p7), %vm469_vm0, %v4453_v51  ;;  %4486 = vst.msk [vmem:[#allocation2 + $0x8] sm:$0xff] (%p4255_p7), %vm469_vm0, %v4454_v62 }
 0x308   : >> { %v4389_v33 = vrot.slane %v4388_v63, 1  ;;  %v4413_v29 = vrot.slane %v4412_v58, 2  ;;  %v4437_v13 = vrot.slane %v4436_v50, 4  ;;  %v4474_v56 = vsel %vm4473_vm3, %v4472_v47, %v4364_v55 }
 0x309   : >> { %v4460_v42 = vsel %vm469_vm0, %v4458_v52, 0.0  ;;  %v4461_v22 = vsel %vm469_vm0, %v4459_v32, 0.0 }
 0x30a   : >> { %v4414_v16 = vadd.f32 %v4413_v29, %v4412_v58  ;;  %v4438_v54 = vadd.f32 %v4437_v13, %v4436_v50  ;;  %v4462_v27 = vadd.f32 %v4461_v22, %v4460_v42  ;;  %v4390_v30 = vadd.f32 %v4389_v33, %v4388_v63 }
 0x30b   : >> { %v7135_v58 = vmov %v4454_v62  ;;  %v7136_v63 = vmov %v4453_v51 }
 0x30c   : >> { %v4415_v44 = vrot.slane %v4414_v16, 1  ;;  %v4439_v10 = vrot.slane %v4438_v54, 2  ;;  %v4463_v38 = vrot.slane %v4462_v27, 4  ;;  %v4476_v36 = vsel %vm4475_vm4, %v4474_v56, %v4390_v30 }
 0x30e   : >> { %v4416_v6 = vadd.f32 %v4415_v44, %v4414_v16  ;;  %v4440_v25 = vadd.f32 %v4439_v10, %v4438_v54  ;;  %v4464_v24 = vadd.f32 %v4463_v38, %v4462_v27 }
 0x310   : >> { %v4441_v8 = vrot.slane %v4440_v25, 1  ;;  %v4465_v11 = vrot.slane %v4464_v24, 2  ;;  %v4478_v60 = vsel %vm4477_vm5, %v4476_v36, %v4416_v6 }
 0x312   : >> { %v4442_v31 = vadd.f32 %v4441_v8, %v4440_v25  ;;  %v4466_v20 = vadd.f32 %v4465_v11, %v4464_v24 }
 0x313   : > { %4257 = sbr.rel (!%p4255_p7) target bundleno = 740 (0x2e4), region = 118 }
 0x314   : >> { %v4467_v53 = vrot.slane %v4466_v20, 1  ;;  %v4480_v26 = vsel %vm4479_vm6, %v4478_v60, %v4442_v31 }
 0x316   : >> { %v4468_v2 = vadd.f32 %v4467_v53, %v4466_v20 }
 0x318   : >> { %v4482_v18 = vsel %vm4481_vm7, %v4480_v26, %v4468_v2 }
 0x319   : >> { %4484 = vst.msk [vmem:[%s4483_s11] sm:$0xff] %vm469_vm0, %v4482_v18 }
 0x31a PF: > { %s15_s22 = sadd.s32 1, %s5303_s22   ;;  %s7137_s18 = smov %s5295_s20 }
 0x31b   : > { %p12_p8 = scmp.ge.s32.totalorder %s15_s22, 10   ;;  %s7138_s19 = smov %s5299_s21 }
 0x31c   : > { %s7139_s20 = smov %s7142_s23  ;;  %s7140_s21 = smov %s7146_s24 }
 0x31d   :  { %14 = sbr.rel (!%p12_p8) target bundleno = 3 (0x3), region = 129 }

</bundles_post_ra>
